<compile_context>
chip_gen: v6e
topology: v6e:2x2x1
jax: 0.10.0
libtpu: 0.0.40
codegen_flags: <defaults>
</compile_context>

<pallas_src>
import numpy as np
import jax
import jax.numpy as jnp
from jax import lax
from jax.experimental import pallas as pl
from jax.experimental.pallas import tpu as pltpu

EPS = 1e-5          # nn.BatchNorm2d default eps
K = 4               # every ConvTranspose2d in the generator is 4x4
_LAYER_CFG = [(1, 0), (2, 1), (2, 1), (2, 1), (2, 1)]   # (stride, padding) per layer


# ---------------------------------------------------------------------------
# Fused Pallas kernel: the whole generator forward, activations stay in VMEM.
# ---------------------------------------------------------------------------
def _generator_kernel(z_ref,
                      u0_ref, m0_ref, g0_ref, gt0_ref, gm0_ref, bt0_ref,
                      u1_ref, m1_ref, g1_ref, gt1_ref, gm1_ref, bt1_ref,
                      u2_ref, m2_hbm, g2_ref, gt2_ref, gm2_ref, bt2_ref,
                      u3_ref, m3_hbm, g3_ref, gt3_ref, gm3_ref, bt3_ref,
                      u4_ref, m4_hbm, bias4_ref,
                      out_ref,
                      stack_ref, m2_vmem, m3_vmem, m4_vmem, dma_sem):
    f32 = jnp.float32

    # Prefetch the three large late-layer folded-weight matrices (~3 MiB) HBM->VMEM.
    # The copies overlap with layer-0/1 compute and are waited on right before first use.
    cp2 = pltpu.make_async_copy(m2_hbm, m2_vmem, dma_sem.at[0])
    cp3 = pltpu.make_async_copy(m3_hbm, m3_vmem, dma_sem.at[1])
    cp4 = pltpu.make_async_copy(m4_hbm, m4_vmem, dma_sem.at[2])
    cp2.start()
    cp3.start()
    cp4.start()

    def conv_t(x, u_ref, m):
        # ConvTranspose2d as exactly two MXU matmuls:
        #   P = x @ [M_0|M_1|M_2|M_3]             (one wide dot on the small rows_in M-dim)
        #   Y = [U_0|U_1|U_2|U_3] @ vstack(P_k)   (taps stacked on sublanes via scratch)
        rows_in = x.shape[0]
        lanes_out = m.shape[1] // 4
        p = jnp.dot(x, m, preferred_element_type=f32)
        for k in range(4):            # static, 128-aligned lane / 8-aligned sublane slices
            stack_ref[k * rows_in:(k + 1) * rows_in, :lanes_out] = \
                p[:, k * lanes_out:(k + 1) * lanes_out]
        return jnp.dot(u_ref[...], stack_ref[:4 * rows_in, :lanes_out],
                       preferred_element_type=f32)

    def bn_relu(y, g_ref, gt_ref, gamma_ref, beta_ref):
        # Single-pass BatchNorm2d (batch stats, biased variance) + ReLU.
        # var = E[y^2] - E[y]^2 ; the channel-group averaging projection Pi is shipped
        # factored as Pi = G @ (G^T / count)  ->  two skinny M=1 dots per statistic.
        s1 = jnp.sum(y, axis=0, keepdims=True)
        s2 = jnp.sum(y * y, axis=0, keepdims=True)
        mean = jnp.dot(jnp.dot(s1, g_ref[...], preferred_element_type=f32),
                       gt_ref[...], preferred_element_type=f32)
        ex2 = jnp.dot(jnp.dot(s2, g_ref[...], preferred_element_type=f32),
                      gt_ref[...], preferred_element_type=f32)
        var = jnp.maximum(ex2 - mean * mean, 0.0)
        scale = gamma_ref[...] * lax.rsqrt(var + EPS)
        return jnp.maximum((y - mean) * scale + beta_ref[...], 0.0)

    x = bn_relu(conv_t(z_ref[...], u0_ref, m0_ref[...]),
                g0_ref, gt0_ref, gm0_ref, bt0_ref)                 # (N*4,  4*C1)
    x = bn_relu(conv_t(x, u1_ref, m1_ref[...]),
                g1_ref, gt1_ref, gm1_ref, bt1_ref)                 # (N*8,  8*C2)
    cp2.wait()
    x = bn_relu(conv_t(x, u2_ref, m2_vmem[...]),
                g2_ref, gt2_ref, gm2_ref, bt2_ref)                 # (N*16, 16*C3)
    cp3.wait()
    x = bn_relu(conv_t(x, u3_ref, m3_vmem[...]),
                g3_ref, gt3_ref, gm3_ref, bt3_ref)                 # (N*32, 32*C4)
    cp4.wait()
    out_ref[...] = jnp.tanh(conv_t(x, u4_ref, m4_vmem[...]) + bias4_ref[...])   # (N*64, 64*Cp)


# ---------------------------------------------------------------------------
# One-time constant construction from PyTorch-layout weights (numpy, host side).
# ---------------------------------------------------------------------------
def _convT_row_op(N, Hin, rh, a):
    """U_k: (N*2Hin, N*Hin) 0/1 matrix = H shift by di=rh+a-1 + place at output parity rh."""
    di = rh + a - 1
    U = np.zeros((N * 2 * Hin, N * Hin), np.float32)
    for n in range(N):
        for oi in range(Hin):
            i = oi + di
            if 0 <= i < Hin:
                U[n * 2 * Hin + 2 * oi + rh, n * Hin + i] = 1.0
    return U


def _convT_lane_op(w, rh, a, Win):
    """M_k: (Win*Cin, 2*Win*Cout). Folds W shift, the (kh, kw) conv taps and W interleave.

    w has PyTorch ConvTranspose2d layout (Cin, Cout, kh, kw); stride 2, padding 1, k=4.
    """
    Cin, Cout = w.shape[0], w.shape[1]
    kh = 3 - rh - 2 * a
    M = np.zeros((Win * Cin, 2 * Win * Cout), np.float32)
    for rw in (0, 1):
        for b in (0, 1):
            dj = rw + b - 1
            kw = 3 - rw - 2 * b
            for oj in range(Win):
                j = oj + dj
                if 0 <= j < Win:
                    M[j * Cin:(j + 1) * Cin,
                      (2 * oj + rw) * Cout:(2 * oj + rw + 1) * Cout] += w[:, :, kh, kw]
    return M


def _layer0_ops(w0, N, zrows):
    """Layer 0 (1x1 input, stride 1, pad 0): U_i (N*4, zrows), M_i (latent, 4*Cout)."""
    latent, Cout = w0.shape[0], w0.shape[1]
    Us, Ms = [], []
    for i in range(4):
        U = np.zeros((N * 4, zrows), np.float32)
        for n in range(N):
            U[n * 4 + i, n] = 1.0
        Us.append(U)
        Ms.append(np.transpose(w0[:, :, i, :], (0, 2, 1)).reshape(latent, 4 * Cout))
    return Us, Ms


def _bn_factors(Wout, Cout, count):
    """Factorized BN projection Pi = G @ (G^T/count): G maps (w,c) lanes -> channel groups."""
    G = np.zeros((Wout * Cout, Cout), np.float32)
    for j in range(Wout):
        G[j * Cout:(j + 1) * Cout, :] = np.eye(Cout, dtype=np.float32)
    return G, (G.T / np.float32(count)).astype(np.float32)


def prepare_generator_constants(params, latent_dim, channels, feature_g, batch):
    dims = [latent_dim, feature_g * 16, feature_g * 8, feature_g * 4, feature_g * 2, channels]
    H = [1, 4, 8, 16, 32, 64]                      # spatial size before each layer / final
    N = batch
    zrows = max(N, 8)                              # pad z rows so every dot has M/K >= 8
    p = {k: np.asarray(v, np.float32) for k, v in params.items()}

    c = {}
    # layer 0: ConvT(latent -> fg*16, 4, 1, 0) + BN + ReLU
    U0s, M0s = _layer0_ops(p["w0"], N, zrows)
    c["u0"] = np.concatenate(U0s, axis=1)                      # (N*4,  4*zrows)
    c["m0"] = np.concatenate(M0s, axis=1)                      # (latent, 4*4*C1)
    G, Gt = _bn_factors(4, dims[1], N * 4 * 4)
    c["g0"], c["gt0"] = G, Gt
    c["gamma0"] = np.tile(p["gamma0"], 4)[None, :]
    c["beta0"] = np.tile(p["beta0"], 4)[None, :]
    # layers 1..3: ConvT(4, 2, 1) + BN + ReLU
    for l in range(1, 4):
        w = p[f"w{l}"]
        Hin = H[l]
        c[f"u{l}"] = np.concatenate(
            [_convT_row_op(N, Hin, rh, a) for rh in (0, 1) for a in (0, 1)], axis=1)
        c[f"m{l}"] = np.concatenate(
            [_convT_lane_op(w, rh, a, Hin) for rh in (0, 1) for a in (0, 1)], axis=1)
        G, Gt = _bn_factors(2 * Hin, dims[l + 1], N * (2 * Hin) * (2 * Hin))
        c[f"g{l}"], c[f"gt{l}"] = G, Gt
        c[f"gamma{l}"] = np.tile(p[f"gamma{l}"], 2 * Hin)[None, :]
        c[f"beta{l}"] = np.tile(p[f"beta{l}"], 2 * Hin)[None, :]
    # layer 4: ConvT(4, 2, 1) with bias + Tanh.  Pad output channels so the kernel's output
    # lane width (2*Hin*Cpad) is a multiple of 128 -> unmasked full-vreg stores.
    Hin = H[4]
    Cpad = channels
    while (2 * Hin * Cpad) % 128 != 0:
        Cpad += 1
    w4, bias4 = p["w4"], p["bias4"]
    if Cpad != channels:
        w4 = np.concatenate(
            [w4, np.zeros((w4.shape[0], Cpad - channels, K, K), np.float32)], axis=1)
        bias4 = np.concatenate([bias4, np.zeros((Cpad - channels,), np.float32)])
    c["u4"] = np.concatenate(
        [_convT_row_op(N, Hin, rh, a) for rh in (0, 1) for a in (0, 1)], axis=1)
    c["m4"] = np.concatenate(
        [_convT_lane_op(w4, rh, a, Hin) for rh in (0, 1) for a in (0, 1)], axis=1)
    c["bias4"] = np.tile(bias4, 2 * Hin)[None, :]
    return {k: jnp.asarray(v) for k, v in c.items()}


# ---------------------------------------------------------------------------
# Generator forward: one fused pallas_call + one tiny layout op on each side.
# ---------------------------------------------------------------------------
def generator_forward(consts, z_nchw, *, channels):
    N = z_nchw.shape[0]
    zrows = consts["u0"].shape[1] // 4
    rows_out = consts["u4"].shape[0]               # N * 64
    lanes_out = consts["m4"].shape[1] // 4         # 64 * Cpad (lane-dense, padded channels)
    Hout = rows_out // N
    Cpad = lanes_out // Hout

    z = z_nchw.reshape(N, -1).astype(jnp.float32)
    z = jnp.zeros((zrows, z.shape[1]), jnp.float32).at[:N, :].set(z)

    names = ["z",
             "u0", "m0", "g0", "gt0", "gamma0", "beta0",
             "u1", "m1", "g1", "gt1", "gamma1", "beta1",
             "u2", "m2", "g2", "gt2", "gamma2", "beta2",
             "u3", "m3", "g3", "gt3", "gamma3", "beta3",
             "u4", "m4", "bias4"]
    hbm_names = {"m2", "m3", "m4"}                 # prefetched by in-kernel async DMA
    vmem = pl.BlockSpec(memory_space=pltpu.MemorySpace.VMEM)
    hbm = pl.BlockSpec(memory_space=pl.ANY)
    in_specs = [hbm if n in hbm_names else vmem for n in names]
    args = [z if n == "z" else consts[n] for n in names]

    stack_rows = max(consts[f"u{l}"].shape[1] for l in range(5))
    stack_lanes = max(consts[f"m{l}"].shape[1] // 4 for l in range(5))

    out = pl.pallas_call(
        _generator_kernel,
        out_shape=jax.ShapeDtypeStruct((rows_out, lanes_out), jnp.float32),
        in_specs=in_specs,
        out_specs=vmem,
        scratch_shapes=[
            pltpu.VMEM((stack_rows, stack_lanes), jnp.float32),   # tap-stack buffer
            pltpu.VMEM(tuple(consts["m2"].shape), jnp.float32),   # prefetch dst, layer 2
            pltpu.VMEM(tuple(consts["m3"].shape), jnp.float32),   # prefetch dst, layer 3
            pltpu.VMEM(tuple(consts["m4"].shape), jnp.float32),   # prefetch dst, layer 4
            pltpu.SemaphoreType.DMA((3,)),
        ],
    )(*args)

    # rows = (n, h), lanes = (w, c_padded) -> NCHW, dropping the lane-padding channels.
    x = out.reshape(N, Hout, Hout, Cpad)[..., :channels]
    return jnp.transpose(x, (0, 3, 1, 2))


# ---------------------------------------------------------------------------
# Independent reference (XLA convolution, HIGHEST precision): validates the whole
# ConvTranspose2d lowering, not just the kernel's matmul math.
# ---------------------------------------------------------------------------
def reference_forward(params, z_nchw):
    x = jnp.transpose(z_nchw, (0, 2, 3, 1)).astype(jnp.float32)      # NHWC
    for l in range(5):
        s, pad = _LAYER_CFG[l]
        w = params[f"w{l}"]
        w_hwio = jnp.transpose(w[:, :, ::-1, ::-1], (2, 3, 0, 1))    # flipped, HWIO
        x = lax.conv_general_dilated(
            x, w_hwio, window_strides=(1, 1),
            padding=[(K - 1 - pad, K - 1 - pad)] * 2,
            lhs_dilation=(s, s),
            dimension_numbers=("NHWC", "HWIO", "NHWC"),
            precision=lax.Precision.HIGHEST)
        if l < 4:
            mean = x.mean(axis=(0, 1, 2), keepdims=True)
            var = ((x - mean) ** 2).mean(axis=(0, 1, 2), keepdims=True)
            x = (x - mean) / jnp.sqrt(var + EPS)
            x = jnp.maximum(x * params[f"gamma{l}"] + params[f"beta{l}"], 0.0)
        else:
            x = jnp.tanh(x + params["bias4"])
    return jnp.transpose(x, (0, 3, 1, 2))                            # NCHW


# ---------------------------------------------------------------------------
# Deterministic parameter init (shapes follow Generator.__init__)
# ---------------------------------------------------------------------------
def init_generator_params(key, latent_dim, channels, feature_g):
    dims = [latent_dim, feature_g * 16, feature_g * 8, feature_g * 4,
            feature_g * 2, channels]
    keys = jax.random.split(key, 16)
    params = {}
    for i in range(5):
        # ConvTranspose2d weight layout: (Cin, Cout, kH, kW); DCGAN-style N(0, 0.02)
        params[f"w{i}"] = 0.02 * jax.random.normal(
            keys[i], (dims[i], dims[i + 1], K, K), jnp.float32)
    for i in range(4):
        params[f"gamma{i}"] = 1.0 + 0.1 * jax.random.normal(
            keys[5 + i], (dims[i + 1],), jnp.float32)
        params[f"beta{i}"] = 0.1 * jax.random.normal(
            keys[9 + i], (dims[i + 1],), jnp.float32)
    params["bias4"] = 0.1 * jax.random.normal(keys[13], (channels,), jnp.float32)
    return params


if __name__ == "__main__":
    key = jax.random.PRNGKey(0)
    latent_dim, channels, feature_g, batch = 16, 3, 4, 2
    pkey, xkey = jax.random.split(key)

    params = init_generator_params(pkey, latent_dim, channels, feature_g)
    z = jax.random.normal(xkey, (batch, latent_dim, 1, 1), jnp.float32)

    # One-time weight preparation (host side), then a single fused TPU kernel per forward.
    consts = prepare_generator_constants(params, latent_dim, channels, feature_g, batch)
    fwd = jax.jit(generator_forward, static_argnames=("channels",))
    out = jax.block_until_ready(fwd(consts, z, channels=channels))

    assert out.shape == (batch, channels, 64, 64), out.shape
    assert bool(jnp.all(jnp.isfinite(out)))
    assert bool(jnp.max(jnp.abs(out)) <= 1.0 + 1e-6)       # tanh output range

    ref = reference_forward(params, z)
    max_err = float(jnp.max(jnp.abs(out - ref)))
    assert bool(jnp.allclose(out, ref, atol=3e-2, rtol=3e-2)), max_err

    print("KERNEL_OK")
</pallas_src>

<mosaic_0001>
module attributes {stable_mosaic.version = 11 : i64} {
  func.func @_generator_kernel(%arg0: memref<8x16xf32, #tpu.memory_space<vmem>>, %arg1: memref<8x32xf32, #tpu.memory_space<vmem>>, %arg2: memref<16x1024xf32, #tpu.memory_space<vmem>>, %arg3: memref<256x64xf32, #tpu.memory_space<vmem>>, %arg4: memref<64x256xf32, #tpu.memory_space<vmem>>, %arg5: memref<1x256xf32, #tpu.memory_space<vmem>>, %arg6: memref<1x256xf32, #tpu.memory_space<vmem>>, %arg7: memref<16x32xf32, #tpu.memory_space<vmem>>, %arg8: memref<256x1024xf32, #tpu.memory_space<vmem>>, %arg9: memref<256x32xf32, #tpu.memory_space<vmem>>, %arg10: memref<32x256xf32, #tpu.memory_space<vmem>>, %arg11: memref<1x256xf32, #tpu.memory_space<vmem>>, %arg12: memref<1x256xf32, #tpu.memory_space<vmem>>, %arg13: memref<32x64xf32, #tpu.memory_space<vmem>>, %arg14: memref<256x1024xf32, #tpu.memory_space<any>>, %arg15: memref<256x16xf32, #tpu.memory_space<vmem>>, %arg16: memref<16x256xf32, #tpu.memory_space<vmem>>, %arg17: memref<1x256xf32, #tpu.memory_space<vmem>>, %arg18: memref<1x256xf32, #tpu.memory_space<vmem>>, %arg19: memref<64x128xf32, #tpu.memory_space<vmem>>, %arg20: memref<256x1024xf32, #tpu.memory_space<any>>, %arg21: memref<256x8xf32, #tpu.memory_space<vmem>>, %arg22: memref<8x256xf32, #tpu.memory_space<vmem>>, %arg23: memref<1x256xf32, #tpu.memory_space<vmem>>, %arg24: memref<1x256xf32, #tpu.memory_space<vmem>>, %arg25: memref<128x256xf32, #tpu.memory_space<vmem>>, %arg26: memref<256x1024xf32, #tpu.memory_space<any>>, %arg27: memref<1x256xf32, #tpu.memory_space<vmem>>, %arg28: memref<128x256xf32, #tpu.memory_space<vmem>>, %arg29: memref<256x256xf32, #tpu.memory_space<vmem>>, %arg30: memref<256x1024xf32, #tpu.memory_space<vmem>>, %arg31: memref<256x1024xf32, #tpu.memory_space<vmem>>, %arg32: memref<256x1024xf32, #tpu.memory_space<vmem>>, %arg33: memref<3x!tpu.dma_semaphore, #tpu.memory_space<semaphore_mem>>) attributes {dimension_semantics = [], scalar_prefetch = 0 : i64, scratch_operands = 5 : i64, tpu.core_type = #tpu.core_type<tc>} {
    %c0_i32 = arith.constant 0 : i32
    %0 = tpu.memref_slice %arg33[%c0_i32] : memref<3x!tpu.dma_semaphore, #tpu.memory_space<semaphore_mem>> -> memref<1x!tpu.dma_semaphore, #tpu.memory_space<semaphore_mem>>
    %1 = tpu.memref_squeeze %0 : memref<1x!tpu.dma_semaphore, #tpu.memory_space<semaphore_mem>> -> memref<!tpu.dma_semaphore, #tpu.memory_space<semaphore_mem>>
    tpu.enqueue_dma source(%arg14 : memref<256x1024xf32, #tpu.memory_space<any>>) target(%arg30 : memref<256x1024xf32, #tpu.memory_space<vmem>>) target_semaphore(%1 : memref<!tpu.dma_semaphore, #tpu.memory_space<semaphore_mem>>)
    %c1_i32 = arith.constant 1 : i32
    %2 = tpu.memref_slice %arg33[%c1_i32] : memref<3x!tpu.dma_semaphore, #tpu.memory_space<semaphore_mem>> -> memref<1x!tpu.dma_semaphore, #tpu.memory_space<semaphore_mem>>
    %3 = tpu.memref_squeeze %2 : memref<1x!tpu.dma_semaphore, #tpu.memory_space<semaphore_mem>> -> memref<!tpu.dma_semaphore, #tpu.memory_space<semaphore_mem>>
    tpu.enqueue_dma source(%arg20 : memref<256x1024xf32, #tpu.memory_space<any>>) target(%arg31 : memref<256x1024xf32, #tpu.memory_space<vmem>>) target_semaphore(%3 : memref<!tpu.dma_semaphore, #tpu.memory_space<semaphore_mem>>)
    %c2_i32 = arith.constant 2 : i32
    %4 = tpu.memref_slice %arg33[%c2_i32] : memref<3x!tpu.dma_semaphore, #tpu.memory_space<semaphore_mem>> -> memref<1x!tpu.dma_semaphore, #tpu.memory_space<semaphore_mem>>
    %5 = tpu.memref_squeeze %4 : memref<1x!tpu.dma_semaphore, #tpu.memory_space<semaphore_mem>> -> memref<!tpu.dma_semaphore, #tpu.memory_space<semaphore_mem>>
    tpu.enqueue_dma source(%arg26 : memref<256x1024xf32, #tpu.memory_space<any>>) target(%arg32 : memref<256x1024xf32, #tpu.memory_space<vmem>>) target_semaphore(%5 : memref<!tpu.dma_semaphore, #tpu.memory_space<semaphore_mem>>)
    %c0 = arith.constant 0 : index
    %c0_0 = arith.constant 0 : index
    %6 = vector.load %arg0[%c0, %c0_0] : memref<8x16xf32, #tpu.memory_space<vmem>>, vector<8x16xf32>
    %c0_1 = arith.constant 0 : index
    %c0_2 = arith.constant 0 : index
    %7 = vector.load %arg2[%c0_1, %c0_2] : memref<16x1024xf32, #tpu.memory_space<vmem>>, vector<16x1024xf32>
    %cst = arith.constant dense<0.000000e+00> : vector<8x1024xf32>
    %8 = tpu.matmul %6, %7, %cst {dimension_numbers = #tpu.dot_dimension_numbers<[1], [0], [0], [1], [0, 0, 1, 1], [], []>} : vector<8x16xf32>, vector<16x1024xf32>, vector<8x1024xf32> -> vector<8x1024xf32>
    %9 = vector.extract_strided_slice %8 {offsets = [0, 0], sizes = [8, 256], strides = [1, 1]} : vector<8x1024xf32> to vector<8x256xf32>
    %c0_3 = arith.constant 0 : index
    %c0_4 = arith.constant 0 : index
    %10 = vector.load %arg29[%c0_3, %c0_4] : memref<256x256xf32, #tpu.memory_space<vmem>>, vector<8x256xf32>
    tpu.vector_store %arg29[%c0_3, %c0_4], %9 {strides = array<i32>} : memref<256x256xf32, #tpu.memory_space<vmem>>, vector<8x256xf32>,
    %11 = vector.extract_strided_slice %8 {offsets = [0, 256], sizes = [8, 256], strides = [1, 1]} : vector<8x1024xf32> to vector<8x256xf32>
    %c8 = arith.constant 8 : index
    %c0_5 = arith.constant 0 : index
    %12 = vector.load %arg29[%c8, %c0_5] : memref<256x256xf32, #tpu.memory_space<vmem>>, vector<8x256xf32>
    tpu.vector_store %arg29[%c8, %c0_5], %11 {strides = array<i32>} : memref<256x256xf32, #tpu.memory_space<vmem>>, vector<8x256xf32>,
    %13 = vector.extract_strided_slice %8 {offsets = [0, 512], sizes = [8, 256], strides = [1, 1]} : vector<8x1024xf32> to vector<8x256xf32>
    %c16 = arith.constant 16 : index
    %c0_6 = arith.constant 0 : index
    %14 = vector.load %arg29[%c16, %c0_6] : memref<256x256xf32, #tpu.memory_space<vmem>>, vector<8x256xf32>
    tpu.vector_store %arg29[%c16, %c0_6], %13 {strides = array<i32>} : memref<256x256xf32, #tpu.memory_space<vmem>>, vector<8x256xf32>,
    %15 = vector.extract_strided_slice %8 {offsets = [0, 768], sizes = [8, 256], strides = [1, 1]} : vector<8x1024xf32> to vector<8x256xf32>
    %c24 = arith.constant 24 : index
    %c0_7 = arith.constant 0 : index
    %16 = vector.load %arg29[%c24, %c0_7] : memref<256x256xf32, #tpu.memory_space<vmem>>, vector<8x256xf32>
    tpu.vector_store %arg29[%c24, %c0_7], %15 {strides = array<i32>} : memref<256x256xf32, #tpu.memory_space<vmem>>, vector<8x256xf32>,
    %c0_8 = arith.constant 0 : index
    %c0_9 = arith.constant 0 : index
    %17 = vector.load %arg1[%c0_8, %c0_9] : memref<8x32xf32, #tpu.memory_space<vmem>>, vector<8x32xf32>
    %c0_10 = arith.constant 0 : index
    %c0_11 = arith.constant 0 : index
    %18 = vector.load %arg29[%c0_10, %c0_11] : memref<256x256xf32, #tpu.memory_space<vmem>>, vector<32x256xf32>
    %cst_12 = arith.constant dense<0.000000e+00> : vector<8x256xf32>
    %19 = tpu.matmul %17, %18, %cst_12 {dimension_numbers = #tpu.dot_dimension_numbers<[1], [0], [0], [1], [0, 0, 1, 1], [], []>} : vector<8x32xf32>, vector<32x256xf32>, vector<8x256xf32> -> vector<8x256xf32>
    %cst_13 = arith.constant dense<0.000000e+00> : vector<256xf32>
    %20 = vector.multi_reduction <add>, %19, %cst_13 [0] : vector<8x256xf32> to vector<256xf32>
    %21 = vector.shape_cast %20 : vector<256xf32> to vector<1x256xf32>
    %22 = arith.mulf %19, %19 : vector<8x256xf32>
    %cst_14 = arith.constant dense<0.000000e+00> : vector<256xf32>
    %23 = vector.multi_reduction <add>, %22, %cst_14 [0] : vector<8x256xf32> to vector<256xf32>
    %24 = vector.shape_cast %23 : vector<256xf32> to vector<1x256xf32>
    %c0_15 = arith.constant 0 : index
    %c0_16 = arith.constant 0 : index
    %25 = vector.load %arg3[%c0_15, %c0_16] : memref<256x64xf32, #tpu.memory_space<vmem>>, vector<256x64xf32>
    %cst_17 = arith.constant dense<0.000000e+00> : vector<1x64xf32>
    %26 = tpu.matmul %21, %25, %cst_17 {dimension_numbers = #tpu.dot_dimension_numbers<[1], [0], [0], [1], [0, 0, 1, 1], [], []>} : vector<1x256xf32>, vector<256x64xf32>, vector<1x64xf32> -> vector<1x64xf32>
    %c0_18 = arith.constant 0 : index
    %c0_19 = arith.constant 0 : index
    %27 = vector.load %arg4[%c0_18, %c0_19] : memref<64x256xf32, #tpu.memory_space<vmem>>, vector<64x256xf32>
    %cst_20 = arith.constant dense<0.000000e+00> : vector<1x256xf32>
    %28 = tpu.matmul %26, %27, %cst_20 {dimension_numbers = #tpu.dot_dimension_numbers<[1], [0], [0], [1], [0, 0, 1, 1], [], []>} : vector<1x64xf32>, vector<64x256xf32>, vector<1x256xf32> -> vector<1x256xf32>
    %c0_21 = arith.constant 0 : index
    %c0_22 = arith.constant 0 : index
    %29 = vector.load %arg3[%c0_21, %c0_22] : memref<256x64xf32, #tpu.memory_space<vmem>>, vector<256x64xf32>
    %cst_23 = arith.constant dense<0.000000e+00> : vector<1x64xf32>
    %30 = tpu.matmul %24, %29, %cst_23 {dimension_numbers = #tpu.dot_dimension_numbers<[1], [0], [0], [1], [0, 0, 1, 1], [], []>} : vector<1x256xf32>, vector<256x64xf32>, vector<1x64xf32> -> vector<1x64xf32>
    %c0_24 = arith.constant 0 : index
    %c0_25 = arith.constant 0 : index
    %31 = vector.load %arg4[%c0_24, %c0_25] : memref<64x256xf32, #tpu.memory_space<vmem>>, vector<64x256xf32>
    %cst_26 = arith.constant dense<0.000000e+00> : vector<1x256xf32>
    %32 = tpu.matmul %30, %31, %cst_26 {dimension_numbers = #tpu.dot_dimension_numbers<[1], [0], [0], [1], [0, 0, 1, 1], [], []>} : vector<1x64xf32>, vector<64x256xf32>, vector<1x256xf32> -> vector<1x256xf32>
    %33 = arith.mulf %28, %28 : vector<1x256xf32>
    %34 = arith.subf %32, %33 : vector<1x256xf32>
    %cst_27 = arith.constant 0.000000e+00 : f32
    %35 = vector.broadcast %cst_27 : f32 to vector<1x256xf32>
    %36 = arith.maximumf %34, %35 : vector<1x256xf32>
    %c0_28 = arith.constant 0 : index
    %c0_29 = arith.constant 0 : index
    %37 = vector.load %arg5[%c0_28, %c0_29] : memref<1x256xf32, #tpu.memory_space<vmem>>, vector<1x256xf32>
    %cst_30 = arith.constant 9.99999974E-6 : f32
    %38 = vector.broadcast %cst_30 : f32 to vector<1x256xf32>
    %39 = arith.addf %36, %38 : vector<1x256xf32>
    %40 = math.rsqrt %39 : vector<1x256xf32>
    %41 = arith.mulf %37, %40 : vector<1x256xf32>
    %42 = vector.broadcast %28 : vector<1x256xf32> to vector<8x256xf32>
    %43 = arith.subf %19, %42 : vector<8x256xf32>
    %44 = vector.broadcast %41 : vector<1x256xf32> to vector<8x256xf32>
    %45 = arith.mulf %43, %44 : vector<8x256xf32>
    %c0_31 = arith.constant 0 : index
    %c0_32 = arith.constant 0 : index
    %46 = vector.load %arg6[%c0_31, %c0_32] : memref<1x256xf32, #tpu.memory_space<vmem>>, vector<1x256xf32>
    %47 = vector.broadcast %46 : vector<1x256xf32> to vector<8x256xf32>
    %48 = arith.addf %45, %47 : vector<8x256xf32>
    %cst_33 = arith.constant 0.000000e+00 : f32
    %49 = vector.broadcast %cst_33 : f32 to vector<8x256xf32>
    %50 = arith.maximumf %48, %49 : vector<8x256xf32>
    %c0_34 = arith.constant 0 : index
    %c0_35 = arith.constant 0 : index
    %51 = vector.load %arg8[%c0_34, %c0_35] : memref<256x1024xf32, #tpu.memory_space<vmem>>, vector<256x1024xf32>
    %cst_36 = arith.constant dense<0.000000e+00> : vector<8x1024xf32>
    %52 = tpu.matmul %50, %51, %cst_36 {dimension_numbers = #tpu.dot_dimension_numbers<[1], [0], [0], [1], [0, 0, 1, 1], [], []>} : vector<8x256xf32>, vector<256x1024xf32>, vector<8x1024xf32> -> vector<8x1024xf32>
    %53 = vector.extract_strided_slice %52 {offsets = [0, 0], sizes = [8, 256], strides = [1, 1]} : vector<8x1024xf32> to vector<8x256xf32>
    %c0_37 = arith.constant 0 : index
    %c0_38 = arith.constant 0 : index
    %54 = vector.load %arg29[%c0_37, %c0_38] : memref<256x256xf32, #tpu.memory_space<vmem>>, vector<8x256xf32>
    tpu.vector_store %arg29[%c0_37, %c0_38], %53 {strides = array<i32>} : memref<256x256xf32, #tpu.memory_space<vmem>>, vector<8x256xf32>,
    %55 = vector.extract_strided_slice %52 {offsets = [0, 256], sizes = [8, 256], strides = [1, 1]} : vector<8x1024xf32> to vector<8x256xf32>
    %c8_39 = arith.constant 8 : index
    %c0_40 = arith.constant 0 : index
    %56 = vector.load %arg29[%c8_39, %c0_40] : memref<256x256xf32, #tpu.memory_space<vmem>>, vector<8x256xf32>
    tpu.vector_store %arg29[%c8_39, %c0_40], %55 {strides = array<i32>} : memref<256x256xf32, #tpu.memory_space<vmem>>, vector<8x256xf32>,
    %57 = vector.extract_strided_slice %52 {offsets = [0, 512], sizes = [8, 256], strides = [1, 1]} : vector<8x1024xf32> to vector<8x256xf32>
    %c16_41 = arith.constant 16 : index
    %c0_42 = arith.constant 0 : index
    %58 = vector.load %arg29[%c16_41, %c0_42] : memref<256x256xf32, #tpu.memory_space<vmem>>, vector<8x256xf32>
    tpu.vector_store %arg29[%c16_41, %c0_42], %57 {strides = array<i32>} : memref<256x256xf32, #tpu.memory_space<vmem>>, vector<8x256xf32>,
    %59 = vector.extract_strided_slice %52 {offsets = [0, 768], sizes = [8, 256], strides = [1, 1]} : vector<8x1024xf32> to vector<8x256xf32>
    %c24_43 = arith.constant 24 : index
    %c0_44 = arith.constant 0 : index
    %60 = vector.load %arg29[%c24_43, %c0_44] : memref<256x256xf32, #tpu.memory_space<vmem>>, vector<8x256xf32>
    tpu.vector_store %arg29[%c24_43, %c0_44], %59 {strides = array<i32>} : memref<256x256xf32, #tpu.memory_space<vmem>>, vector<8x256xf32>,
    %c0_45 = arith.constant 0 : index
    %c0_46 = arith.constant 0 : index
    %61 = vector.load %arg7[%c0_45, %c0_46] : memref<16x32xf32, #tpu.memory_space<vmem>>, vector<16x32xf32>
    %c0_47 = arith.constant 0 : index
    %c0_48 = arith.constant 0 : index
    %62 = vector.load %arg29[%c0_47, %c0_48] : memref<256x256xf32, #tpu.memory_space<vmem>>, vector<32x256xf32>
    %cst_49 = arith.constant dense<0.000000e+00> : vector<16x256xf32>
    %63 = tpu.matmul %61, %62, %cst_49 {dimension_numbers = #tpu.dot_dimension_numbers<[1], [0], [0], [1], [0, 0, 1, 1], [], []>} : vector<16x32xf32>, vector<32x256xf32>, vector<16x256xf32> -> vector<16x256xf32>
    %cst_50 = arith.constant dense<0.000000e+00> : vector<256xf32>
    %64 = vector.multi_reduction <add>, %63, %cst_50 [0] : vector<16x256xf32> to vector<256xf32>
    %65 = vector.shape_cast %64 : vector<256xf32> to vector<1x256xf32>
    %66 = arith.mulf %63, %63 : vector<16x256xf32>
    %cst_51 = arith.constant dense<0.000000e+00> : vector<256xf32>
    %67 = vector.multi_reduction <add>, %66, %cst_51 [0] : vector<16x256xf32> to vector<256xf32>
    %68 = vector.shape_cast %67 : vector<256xf32> to vector<1x256xf32>
    %c0_52 = arith.constant 0 : index
    %c0_53 = arith.constant 0 : index
    %69 = vector.load %arg9[%c0_52, %c0_53] : memref<256x32xf32, #tpu.memory_space<vmem>>, vector<256x32xf32>
    %cst_54 = arith.constant dense<0.000000e+00> : vector<1x32xf32>
    %70 = tpu.matmul %65, %69, %cst_54 {dimension_numbers = #tpu.dot_dimension_numbers<[1], [0], [0], [1], [0, 0, 1, 1], [], []>} : vector<1x256xf32>, vector<256x32xf32>, vector<1x32xf32> -> vector<1x32xf32>
    %c0_55 = arith.constant 0 : index
    %c0_56 = arith.constant 0 : index
    %71 = vector.load %arg10[%c0_55, %c0_56] : memref<32x256xf32, #tpu.memory_space<vmem>>, vector<32x256xf32>
    %cst_57 = arith.constant dense<0.000000e+00> : vector<1x256xf32>
    %72 = tpu.matmul %70, %71, %cst_57 {dimension_numbers = #tpu.dot_dimension_numbers<[1], [0], [0], [1], [0, 0, 1, 1], [], []>} : vector<1x32xf32>, vector<32x256xf32>, vector<1x256xf32> -> vector<1x256xf32>
    %c0_58 = arith.constant 0 : index
    %c0_59 = arith.constant 0 : index
    %73 = vector.load %arg9[%c0_58, %c0_59] : memref<256x32xf32, #tpu.memory_space<vmem>>, vector<256x32xf32>
    %cst_60 = arith.constant dense<0.000000e+00> : vector<1x32xf32>
    %74 = tpu.matmul %68, %73, %cst_60 {dimension_numbers = #tpu.dot_dimension_numbers<[1], [0], [0], [1], [0, 0, 1, 1], [], []>} : vector<1x256xf32>, vector<256x32xf32>, vector<1x32xf32> -> vector<1x32xf32>
    %c0_61 = arith.constant 0 : index
    %c0_62 = arith.constant 0 : index
    %75 = vector.load %arg10[%c0_61, %c0_62] : memref<32x256xf32, #tpu.memory_space<vmem>>, vector<32x256xf32>
    %cst_63 = arith.constant dense<0.000000e+00> : vector<1x256xf32>
    %76 = tpu.matmul %74, %75, %cst_63 {dimension_numbers = #tpu.dot_dimension_numbers<[1], [0], [0], [1], [0, 0, 1, 1], [], []>} : vector<1x32xf32>, vector<32x256xf32>, vector<1x256xf32> -> vector<1x256xf32>
    %77 = arith.mulf %72, %72 : vector<1x256xf32>
    %78 = arith.subf %76, %77 : vector<1x256xf32>
    %cst_64 = arith.constant 0.000000e+00 : f32
    %79 = vector.broadcast %cst_64 : f32 to vector<1x256xf32>
    %80 = arith.maximumf %78, %79 : vector<1x256xf32>
    %c0_65 = arith.constant 0 : index
    %c0_66 = arith.constant 0 : index
    %81 = vector.load %arg11[%c0_65, %c0_66] : memref<1x256xf32, #tpu.memory_space<vmem>>, vector<1x256xf32>
    %cst_67 = arith.constant 9.99999974E-6 : f32
    %82 = vector.broadcast %cst_67 : f32 to vector<1x256xf32>
    %83 = arith.addf %80, %82 : vector<1x256xf32>
    %84 = math.rsqrt %83 : vector<1x256xf32>
    %85 = arith.mulf %81, %84 : vector<1x256xf32>
    %86 = vector.broadcast %72 : vector<1x256xf32> to vector<16x256xf32>
    %87 = arith.subf %63, %86 : vector<16x256xf32>
    %88 = vector.broadcast %85 : vector<1x256xf32> to vector<16x256xf32>
    %89 = arith.mulf %87, %88 : vector<16x256xf32>
    %c0_68 = arith.constant 0 : index
    %c0_69 = arith.constant 0 : index
    %90 = vector.load %arg12[%c0_68, %c0_69] : memref<1x256xf32, #tpu.memory_space<vmem>>, vector<1x256xf32>
    %91 = vector.broadcast %90 : vector<1x256xf32> to vector<16x256xf32>
    %92 = arith.addf %89, %91 : vector<16x256xf32>
    %cst_70 = arith.constant 0.000000e+00 : f32
    %93 = vector.broadcast %cst_70 : f32 to vector<16x256xf32>
    %94 = arith.maximumf %92, %93 : vector<16x256xf32>
    %c0_i32_71 = arith.constant 0 : i32
    %95 = tpu.memref_slice %arg33[%c0_i32_71] : memref<3x!tpu.dma_semaphore, #tpu.memory_space<semaphore_mem>> -> memref<1x!tpu.dma_semaphore, #tpu.memory_space<semaphore_mem>>
    %96 = tpu.memref_squeeze %95 : memref<1x!tpu.dma_semaphore, #tpu.memory_space<semaphore_mem>> -> memref<!tpu.dma_semaphore, #tpu.memory_space<semaphore_mem>>
    tpu.wait_dma2 semaphore(%96 : memref<!tpu.dma_semaphore, #tpu.memory_space<semaphore_mem>>) src(%arg14 : memref<256x1024xf32, #tpu.memory_space<any>>) dst(%arg30 : memref<256x1024xf32, #tpu.memory_space<vmem>>)
    %c0_72 = arith.constant 0 : index
    %c0_73 = arith.constant 0 : index
    %97 = vector.load %arg30[%c0_72, %c0_73] : memref<256x1024xf32, #tpu.memory_space<vmem>>, vector<256x1024xf32>
    %cst_74 = arith.constant dense<0.000000e+00> : vector<16x1024xf32>
    %98 = tpu.matmul %94, %97, %cst_74 {dimension_numbers = #tpu.dot_dimension_numbers<[1], [0], [0], [1], [0, 0, 1, 1], [], []>} : vector<16x256xf32>, vector<256x1024xf32>, vector<16x1024xf32> -> vector<16x1024xf32>
    %99 = vector.extract_strided_slice %98 {offsets = [0, 0], sizes = [16, 256], strides = [1, 1]} : vector<16x1024xf32> to vector<16x256xf32>
    %c0_75 = arith.constant 0 : index
    %c0_76 = arith.constant 0 : index
    %100 = vector.load %arg29[%c0_75, %c0_76] : memref<256x256xf32, #tpu.memory_space<vmem>>, vector<16x256xf32>
    tpu.vector_store %arg29[%c0_75, %c0_76], %99 {strides = array<i32>} : memref<256x256xf32, #tpu.memory_space<vmem>>, vector<16x256xf32>,
    %101 = vector.extract_strided_slice %98 {offsets = [0, 256], sizes = [16, 256], strides = [1, 1]} : vector<16x1024xf32> to vector<16x256xf32>
    %c16_77 = arith.constant 16 : index
    %c0_78 = arith.constant 0 : index
    %102 = vector.load %arg29[%c16_77, %c0_78] : memref<256x256xf32, #tpu.memory_space<vmem>>, vector<16x256xf32>
    tpu.vector_store %arg29[%c16_77, %c0_78], %101 {strides = array<i32>} : memref<256x256xf32, #tpu.memory_space<vmem>>, vector<16x256xf32>,
    %103 = vector.extract_strided_slice %98 {offsets = [0, 512], sizes = [16, 256], strides = [1, 1]} : vector<16x1024xf32> to vector<16x256xf32>
    %c32 = arith.constant 32 : index
    %c0_79 = arith.constant 0 : index
    %104 = vector.load %arg29[%c32, %c0_79] : memref<256x256xf32, #tpu.memory_space<vmem>>, vector<16x256xf32>
    tpu.vector_store %arg29[%c32, %c0_79], %103 {strides = array<i32>} : memref<256x256xf32, #tpu.memory_space<vmem>>, vector<16x256xf32>,
    %105 = vector.extract_strided_slice %98 {offsets = [0, 768], sizes = [16, 256], strides = [1, 1]} : vector<16x1024xf32> to vector<16x256xf32>
    %c48 = arith.constant 48 : index
    %c0_80 = arith.constant 0 : index
    %106 = vector.load %arg29[%c48, %c0_80] : memref<256x256xf32, #tpu.memory_space<vmem>>, vector<16x256xf32>
    tpu.vector_store %arg29[%c48, %c0_80], %105 {strides = array<i32>} : memref<256x256xf32, #tpu.memory_space<vmem>>, vector<16x256xf32>,
    %c0_81 = arith.constant 0 : index
    %c0_82 = arith.constant 0 : index
    %107 = vector.load %arg13[%c0_81, %c0_82] : memref<32x64xf32, #tpu.memory_space<vmem>>, vector<32x64xf32>
    %c0_83 = arith.constant 0 : index
    %c0_84 = arith.constant 0 : index
    %108 = vector.load %arg29[%c0_83, %c0_84] : memref<256x256xf32, #tpu.memory_space<vmem>>, vector<64x256xf32>
    %cst_85 = arith.constant dense<0.000000e+00> : vector<32x256xf32>
    %109 = tpu.matmul %107, %108, %cst_85 {dimension_numbers = #tpu.dot_dimension_numbers<[1], [0], [0], [1], [0, 0, 1, 1], [], []>} : vector<32x64xf32>, vector<64x256xf32>, vector<32x256xf32> -> vector<32x256xf32>
    %cst_86 = arith.constant dense<0.000000e+00> : vector<256xf32>
    %110 = vector.multi_reduction <add>, %109, %cst_86 [0] : vector<32x256xf32> to vector<256xf32>
    %111 = vector.shape_cast %110 : vector<256xf32> to vector<1x256xf32>
    %112 = arith.mulf %109, %109 : vector<32x256xf32>
    %cst_87 = arith.constant dense<0.000000e+00> : vector<256xf32>
    %113 = vector.multi_reduction <add>, %112, %cst_87 [0] : vector<32x256xf32> to vector<256xf32>
    %114 = vector.shape_cast %113 : vector<256xf32> to vector<1x256xf32>
    %c0_88 = arith.constant 0 : index
    %c0_89 = arith.constant 0 : index
    %115 = vector.load %arg15[%c0_88, %c0_89] : memref<256x16xf32, #tpu.memory_space<vmem>>, vector<256x16xf32>
    %cst_90 = arith.constant dense<0.000000e+00> : vector<1x16xf32>
    %116 = tpu.matmul %111, %115, %cst_90 {dimension_numbers = #tpu.dot_dimension_numbers<[1], [0], [0], [1], [0, 0, 1, 1], [], []>} : vector<1x256xf32>, vector<256x16xf32>, vector<1x16xf32> -> vector<1x16xf32>
    %c0_91 = arith.constant 0 : index
    %c0_92 = arith.constant 0 : index
    %117 = vector.load %arg16[%c0_91, %c0_92] : memref<16x256xf32, #tpu.memory_space<vmem>>, vector<16x256xf32>
    %cst_93 = arith.constant dense<0.000000e+00> : vector<1x256xf32>
    %118 = tpu.matmul %116, %117, %cst_93 {dimension_numbers = #tpu.dot_dimension_numbers<[1], [0], [0], [1], [0, 0, 1, 1], [], []>} : vector<1x16xf32>, vector<16x256xf32>, vector<1x256xf32> -> vector<1x256xf32>
    %c0_94 = arith.constant 0 : index
    %c0_95 = arith.constant 0 : index
    %119 = vector.load %arg15[%c0_94, %c0_95] : memref<256x16xf32, #tpu.memory_space<vmem>>, vector<256x16xf32>
    %cst_96 = arith.constant dense<0.000000e+00> : vector<1x16xf32>
    %120 = tpu.matmul %114, %119, %cst_96 {dimension_numbers = #tpu.dot_dimension_numbers<[1], [0], [0], [1], [0, 0, 1, 1], [], []>} : vector<1x256xf32>, vector<256x16xf32>, vector<1x16xf32> -> vector<1x16xf32>
    %c0_97 = arith.constant 0 : index
    %c0_98 = arith.constant 0 : index
    %121 = vector.load %arg16[%c0_97, %c0_98] : memref<16x256xf32, #tpu.memory_space<vmem>>, vector<16x256xf32>
    %cst_99 = arith.constant dense<0.000000e+00> : vector<1x256xf32>
    %122 = tpu.matmul %120, %121, %cst_99 {dimension_numbers = #tpu.dot_dimension_numbers<[1], [0], [0], [1], [0, 0, 1, 1], [], []>} : vector<1x16xf32>, vector<16x256xf32>, vector<1x256xf32> -> vector<1x256xf32>
    %123 = arith.mulf %118, %118 : vector<1x256xf32>
    %124 = arith.subf %122, %123 : vector<1x256xf32>
    %cst_100 = arith.constant 0.000000e+00 : f32
    %125 = vector.broadcast %cst_100 : f32 to vector<1x256xf32>
    %126 = arith.maximumf %124, %125 : vector<1x256xf32>
    %c0_101 = arith.constant 0 : index
    %c0_102 = arith.constant 0 : index
    %127 = vector.load %arg17[%c0_101, %c0_102] : memref<1x256xf32, #tpu.memory_space<vmem>>, vector<1x256xf32>
    %cst_103 = arith.constant 9.99999974E-6 : f32
    %128 = vector.broadcast %cst_103 : f32 to vector<1x256xf32>
    %129 = arith.addf %126, %128 : vector<1x256xf32>
    %130 = math.rsqrt %129 : vector<1x256xf32>
    %131 = arith.mulf %127, %130 : vector<1x256xf32>
    %132 = vector.broadcast %118 : vector<1x256xf32> to vector<32x256xf32>
    %133 = arith.subf %109, %132 : vector<32x256xf32>
    %134 = vector.broadcast %131 : vector<1x256xf32> to vector<32x256xf32>
    %135 = arith.mulf %133, %134 : vector<32x256xf32>
    %c0_104 = arith.constant 0 : index
    %c0_105 = arith.constant 0 : index
    %136 = vector.load %arg18[%c0_104, %c0_105] : memref<1x256xf32, #tpu.memory_space<vmem>>, vector<1x256xf32>
    %137 = vector.broadcast %136 : vector<1x256xf32> to vector<32x256xf32>
    %138 = arith.addf %135, %137 : vector<32x256xf32>
    %cst_106 = arith.constant 0.000000e+00 : f32
    %139 = vector.broadcast %cst_106 : f32 to vector<32x256xf32>
    %140 = arith.maximumf %138, %139 : vector<32x256xf32>
    %c1_i32_107 = arith.constant 1 : i32
    %141 = tpu.memref_slice %arg33[%c1_i32_107] : memref<3x!tpu.dma_semaphore, #tpu.memory_space<semaphore_mem>> -> memref<1x!tpu.dma_semaphore, #tpu.memory_space<semaphore_mem>>
    %142 = tpu.memref_squeeze %141 : memref<1x!tpu.dma_semaphore, #tpu.memory_space<semaphore_mem>> -> memref<!tpu.dma_semaphore, #tpu.memory_space<semaphore_mem>>
    tpu.wait_dma2 semaphore(%142 : memref<!tpu.dma_semaphore, #tpu.memory_space<semaphore_mem>>) src(%arg20 : memref<256x1024xf32, #tpu.memory_space<any>>) dst(%arg31 : memref<256x1024xf32, #tpu.memory_space<vmem>>)
    %c0_108 = arith.constant 0 : index
    %c0_109 = arith.constant 0 : index
    %143 = vector.load %arg31[%c0_108, %c0_109] : memref<256x1024xf32, #tpu.memory_space<vmem>>, vector<256x1024xf32>
    %cst_110 = arith.constant dense<0.000000e+00> : vector<32x1024xf32>
    %144 = tpu.matmul %140, %143, %cst_110 {dimension_numbers = #tpu.dot_dimension_numbers<[1], [0], [0], [1], [0, 0, 1, 1], [], []>} : vector<32x256xf32>, vector<256x1024xf32>, vector<32x1024xf32> -> vector<32x1024xf32>
    %145 = vector.extract_strided_slice %144 {offsets = [0, 0], sizes = [32, 256], strides = [1, 1]} : vector<32x1024xf32> to vector<32x256xf32>
    %c0_111 = arith.constant 0 : index
    %c0_112 = arith.constant 0 : index
    %146 = vector.load %arg29[%c0_111, %c0_112] : memref<256x256xf32, #tpu.memory_space<vmem>>, vector<32x256xf32>
    tpu.vector_store %arg29[%c0_111, %c0_112], %145 {strides = array<i32>} : memref<256x256xf32, #tpu.memory_space<vmem>>, vector<32x256xf32>,
    %147 = vector.extract_strided_slice %144 {offsets = [0, 256], sizes = [32, 256], strides = [1, 1]} : vector<32x1024xf32> to vector<32x256xf32>
    %c32_113 = arith.constant 32 : index
    %c0_114 = arith.constant 0 : index
    %148 = vector.load %arg29[%c32_113, %c0_114] : memref<256x256xf32, #tpu.memory_space<vmem>>, vector<32x256xf32>
    tpu.vector_store %arg29[%c32_113, %c0_114], %147 {strides = array<i32>} : memref<256x256xf32, #tpu.memory_space<vmem>>, vector<32x256xf32>,
    %149 = vector.extract_strided_slice %144 {offsets = [0, 512], sizes = [32, 256], strides = [1, 1]} : vector<32x1024xf32> to vector<32x256xf32>
    %c64 = arith.constant 64 : index
    %c0_115 = arith.constant 0 : index
    %150 = vector.load %arg29[%c64, %c0_115] : memref<256x256xf32, #tpu.memory_space<vmem>>, vector<32x256xf32>
    tpu.vector_store %arg29[%c64, %c0_115], %149 {strides = array<i32>} : memref<256x256xf32, #tpu.memory_space<vmem>>, vector<32x256xf32>,
    %151 = vector.extract_strided_slice %144 {offsets = [0, 768], sizes = [32, 256], strides = [1, 1]} : vector<32x1024xf32> to vector<32x256xf32>
    %c96 = arith.constant 96 : index
    %c0_116 = arith.constant 0 : index
    %152 = vector.load %arg29[%c96, %c0_116] : memref<256x256xf32, #tpu.memory_space<vmem>>, vector<32x256xf32>
    tpu.vector_store %arg29[%c96, %c0_116], %151 {strides = array<i32>} : memref<256x256xf32, #tpu.memory_space<vmem>>, vector<32x256xf32>,
    %c0_117 = arith.constant 0 : index
    %c0_118 = arith.constant 0 : index
    %153 = vector.load %arg19[%c0_117, %c0_118] : memref<64x128xf32, #tpu.memory_space<vmem>>, vector<64x128xf32>
    %c0_119 = arith.constant 0 : index
    %c0_120 = arith.constant 0 : index
    %154 = vector.load %arg29[%c0_119, %c0_120] : memref<256x256xf32, #tpu.memory_space<vmem>>, vector<128x256xf32>
    %cst_121 = arith.constant dense<0.000000e+00> : vector<64x256xf32>
    %155 = tpu.matmul %153, %154, %cst_121 {dimension_numbers = #tpu.dot_dimension_numbers<[1], [0], [0], [1], [0, 0, 1, 1], [], []>} : vector<64x128xf32>, vector<128x256xf32>, vector<64x256xf32> -> vector<64x256xf32>
    %cst_122 = arith.constant dense<0.000000e+00> : vector<256xf32>
    %156 = vector.multi_reduction <add>, %155, %cst_122 [0] : vector<64x256xf32> to vector<256xf32>
    %157 = vector.shape_cast %156 : vector<256xf32> to vector<1x256xf32>
    %158 = arith.mulf %155, %155 : vector<64x256xf32>
    %cst_123 = arith.constant dense<0.000000e+00> : vector<256xf32>
    %159 = vector.multi_reduction <add>, %158, %cst_123 [0] : vector<64x256xf32> to vector<256xf32>
    %160 = vector.shape_cast %159 : vector<256xf32> to vector<1x256xf32>
    %c0_124 = arith.constant 0 : index
    %c0_125 = arith.constant 0 : index
    %161 = vector.load %arg21[%c0_124, %c0_125] : memref<256x8xf32, #tpu.memory_space<vmem>>, vector<256x8xf32>
    %cst_126 = arith.constant dense<0.000000e+00> : vector<1x8xf32>
    %162 = tpu.matmul %157, %161, %cst_126 {dimension_numbers = #tpu.dot_dimension_numbers<[1], [0], [0], [1], [0, 0, 1, 1], [], []>} : vector<1x256xf32>, vector<256x8xf32>, vector<1x8xf32> -> vector<1x8xf32>
    %c0_127 = arith.constant 0 : index
    %c0_128 = arith.constant 0 : index
    %163 = vector.load %arg22[%c0_127, %c0_128] : memref<8x256xf32, #tpu.memory_space<vmem>>, vector<8x256xf32>
    %cst_129 = arith.constant dense<0.000000e+00> : vector<1x256xf32>
    %164 = tpu.matmul %162, %163, %cst_129 {dimension_numbers = #tpu.dot_dimension_numbers<[1], [0], [0], [1], [0, 0, 1, 1], [], []>} : vector<1x8xf32>, vector<8x256xf32>, vector<1x256xf32> -> vector<1x256xf32>
    %c0_130 = arith.constant 0 : index
    %c0_131 = arith.constant 0 : index
    %165 = vector.load %arg21[%c0_130, %c0_131] : memref<256x8xf32, #tpu.memory_space<vmem>>, vector<256x8xf32>
    %cst_132 = arith.constant dense<0.000000e+00> : vector<1x8xf32>
    %166 = tpu.matmul %160, %165, %cst_132 {dimension_numbers = #tpu.dot_dimension_numbers<[1], [0], [0], [1], [0, 0, 1, 1], [], []>} : vector<1x256xf32>, vector<256x8xf32>, vector<1x8xf32> -> vector<1x8xf32>
    %c0_133 = arith.constant 0 : index
    %c0_134 = arith.constant 0 : index
    %167 = vector.load %arg22[%c0_133, %c0_134] : memref<8x256xf32, #tpu.memory_space<vmem>>, vector<8x256xf32>
    %cst_135 = arith.constant dense<0.000000e+00> : vector<1x256xf32>
    %168 = tpu.matmul %166, %167, %cst_135 {dimension_numbers = #tpu.dot_dimension_numbers<[1], [0], [0], [1], [0, 0, 1, 1], [], []>} : vector<1x8xf32>, vector<8x256xf32>, vector<1x256xf32> -> vector<1x256xf32>
    %169 = arith.mulf %164, %164 : vector<1x256xf32>
    %170 = arith.subf %168, %169 : vector<1x256xf32>
    %cst_136 = arith.constant 0.000000e+00 : f32
    %171 = vector.broadcast %cst_136 : f32 to vector<1x256xf32>
    %172 = arith.maximumf %170, %171 : vector<1x256xf32>
    %c0_137 = arith.constant 0 : index
    %c0_138 = arith.constant 0 : index
    %173 = vector.load %arg23[%c0_137, %c0_138] : memref<1x256xf32, #tpu.memory_space<vmem>>, vector<1x256xf32>
    %cst_139 = arith.constant 9.99999974E-6 : f32
    %174 = vector.broadcast %cst_139 : f32 to vector<1x256xf32>
    %175 = arith.addf %172, %174 : vector<1x256xf32>
    %176 = math.rsqrt %175 : vector<1x256xf32>
    %177 = arith.mulf %173, %176 : vector<1x256xf32>
    %178 = vector.broadcast %164 : vector<1x256xf32> to vector<64x256xf32>
    %179 = arith.subf %155, %178 : vector<64x256xf32>
    %180 = vector.broadcast %177 : vector<1x256xf32> to vector<64x256xf32>
    %181 = arith.mulf %179, %180 : vector<64x256xf32>
    %c0_140 = arith.constant 0 : index
    %c0_141 = arith.constant 0 : index
    %182 = vector.load %arg24[%c0_140, %c0_141] : memref<1x256xf32, #tpu.memory_space<vmem>>, vector<1x256xf32>
    %183 = vector.broadcast %182 : vector<1x256xf32> to vector<64x256xf32>
    %184 = arith.addf %181, %183 : vector<64x256xf32>
    %cst_142 = arith.constant 0.000000e+00 : f32
    %185 = vector.broadcast %cst_142 : f32 to vector<64x256xf32>
    %186 = arith.maximumf %184, %185 : vector<64x256xf32>
    %c2_i32_143 = arith.constant 2 : i32
    %187 = tpu.memref_slice %arg33[%c2_i32_143] : memref<3x!tpu.dma_semaphore, #tpu.memory_space<semaphore_mem>> -> memref<1x!tpu.dma_semaphore, #tpu.memory_space<semaphore_mem>>
    %188 = tpu.memref_squeeze %187 : memref<1x!tpu.dma_semaphore, #tpu.memory_space<semaphore_mem>> -> memref<!tpu.dma_semaphore, #tpu.memory_space<semaphore_mem>>
    tpu.wait_dma2 semaphore(%188 : memref<!tpu.dma_semaphore, #tpu.memory_space<semaphore_mem>>) src(%arg26 : memref<256x1024xf32, #tpu.memory_space<any>>) dst(%arg32 : memref<256x1024xf32, #tpu.memory_space<vmem>>)
    %c0_144 = arith.constant 0 : index
    %c0_145 = arith.constant 0 : index
    %189 = vector.load %arg32[%c0_144, %c0_145] : memref<256x1024xf32, #tpu.memory_space<vmem>>, vector<256x1024xf32>
    %cst_146 = arith.constant dense<0.000000e+00> : vector<64x1024xf32>
    %190 = tpu.matmul %186, %189, %cst_146 {dimension_numbers = #tpu.dot_dimension_numbers<[1], [0], [0], [1], [0, 0, 1, 1], [], []>} : vector<64x256xf32>, vector<256x1024xf32>, vector<64x1024xf32> -> vector<64x1024xf32>
    %191 = vector.extract_strided_slice %190 {offsets = [0, 0], sizes = [64, 256], strides = [1, 1]} : vector<64x1024xf32> to vector<64x256xf32>
    %c0_147 = arith.constant 0 : index
    %c0_148 = arith.constant 0 : index
    %192 = vector.load %arg29[%c0_147, %c0_148] : memref<256x256xf32, #tpu.memory_space<vmem>>, vector<64x256xf32>
    tpu.vector_store %arg29[%c0_147, %c0_148], %191 {strides = array<i32>} : memref<256x256xf32, #tpu.memory_space<vmem>>, vector<64x256xf32>,
    %193 = vector.extract_strided_slice %190 {offsets = [0, 256], sizes = [64, 256], strides = [1, 1]} : vector<64x1024xf32> to vector<64x256xf32>
    %c64_149 = arith.constant 64 : index
    %c0_150 = arith.constant 0 : index
    %194 = vector.load %arg29[%c64_149, %c0_150] : memref<256x256xf32, #tpu.memory_space<vmem>>, vector<64x256xf32>
    tpu.vector_store %arg29[%c64_149, %c0_150], %193 {strides = array<i32>} : memref<256x256xf32, #tpu.memory_space<vmem>>, vector<64x256xf32>,
    %195 = vector.extract_strided_slice %190 {offsets = [0, 512], sizes = [64, 256], strides = [1, 1]} : vector<64x1024xf32> to vector<64x256xf32>
    %c128 = arith.constant 128 : index
    %c0_151 = arith.constant 0 : index
    %196 = vector.load %arg29[%c128, %c0_151] : memref<256x256xf32, #tpu.memory_space<vmem>>, vector<64x256xf32>
    tpu.vector_store %arg29[%c128, %c0_151], %195 {strides = array<i32>} : memref<256x256xf32, #tpu.memory_space<vmem>>, vector<64x256xf32>,
    %197 = vector.extract_strided_slice %190 {offsets = [0, 768], sizes = [64, 256], strides = [1, 1]} : vector<64x1024xf32> to vector<64x256xf32>
    %c192 = arith.constant 192 : index
    %c0_152 = arith.constant 0 : index
    %198 = vector.load %arg29[%c192, %c0_152] : memref<256x256xf32, #tpu.memory_space<vmem>>, vector<64x256xf32>
    tpu.vector_store %arg29[%c192, %c0_152], %197 {strides = array<i32>} : memref<256x256xf32, #tpu.memory_space<vmem>>, vector<64x256xf32>,
    %c0_153 = arith.constant 0 : index
    %c0_154 = arith.constant 0 : index
    %199 = vector.load %arg25[%c0_153, %c0_154] : memref<128x256xf32, #tpu.memory_space<vmem>>, vector<128x256xf32>
    %c0_155 = arith.constant 0 : index
    %c0_156 = arith.constant 0 : index
    %200 = vector.load %arg29[%c0_155, %c0_156] : memref<256x256xf32, #tpu.memory_space<vmem>>, vector<256x256xf32>
    %cst_157 = arith.constant dense<0.000000e+00> : vector<128x256xf32>
    %201 = tpu.matmul %199, %200, %cst_157 {dimension_numbers = #tpu.dot_dimension_numbers<[1], [0], [0], [1], [0, 0, 1, 1], [], []>} : vector<128x256xf32>, vector<256x256xf32>, vector<128x256xf32> -> vector<128x256xf32>
    %c0_158 = arith.constant 0 : index
    %c0_159 = arith.constant 0 : index
    %202 = vector.load %arg27[%c0_158, %c0_159] : memref<1x256xf32, #tpu.memory_space<vmem>>, vector<1x256xf32>
    %203 = vector.broadcast %202 : vector<1x256xf32> to vector<128x256xf32>
    %204 = arith.addf %201, %203 : vector<128x256xf32>
    %205 = math.tanh %204 : vector<128x256xf32>
    %c0_160 = arith.constant 0 : index
    %c0_161 = arith.constant 0 : index
    %206 = vector.load %arg28[%c0_160, %c0_161] : memref<128x256xf32, #tpu.memory_space<vmem>>, vector<128x256xf32>
    tpu.vector_store %arg28[%c0_160, %c0_161], %205 {strides = array<i32>} : memref<128x256xf32, #tpu.memory_space<vmem>>, vector<128x256xf32>,
    return
  }
}

</mosaic_0001>

<bundles_post_ra>
// kernel: generator_forward.1
= control target key start
LH: loop header
LB: loop body
LE: loop exit
PB: predicated region body
PF: predicated region fallthrough
CT: control target
= control target key end

     0   :  { %s8018_s0 = inlined_call_operand.vmem [shape: f32[8,16], index: 0, kind: input, shape index: {}]   ;;  %s8019_s1 = inlined_call_operand.vmem [shape: f32[8,32], index: 1, kind: input, shape index: {}]   ;;  %s8020_s2 = inlined_call_operand.vmem [shape: f32[16,1024], index: 2, kind: input, shape index: {}]   ;;  %s8021_s3 = inlined_call_operand.vmem [shape: f32[256,64], index: 3, kind: input, shape index: {}]   ;;  %s8022_s4 = inlined_call_operand.vmem [shape: f32[64,256], index: 4, kind: input, shape index: {}]   ;;  %s8023_s5 = inlined_call_operand.vmem [shape: f32[1,256], index: 5, kind: input, shape index: {}]   ;;  %s8024_s6 = inlined_call_operand.vmem [shape: f32[1,256], index: 6, kind: input, shape index: {}]   ;;  %s8025_s7 = inlined_call_operand.vmem [shape: f32[16,32], index: 7, kind: input, shape index: {}]   ;;  %s8026_s8 = inlined_call_operand.hbm [shape: f32[256,1024], index: 8, kind: input, shape index: {}]   ;;  %s8027_s9 = inlined_call_operand.vmem [shape: f32[256,32], index: 9, kind: input, shape index: {}]   ;;  %s8028_s10 = inlined_call_operand.vmem [shape: f32[32,256], index: 10, kind: input, shape index: {}]   ;;  %s8029_s11 = inlined_call_operand.vmem [shape: f32[1,256], index: 11, kind: input, shape index: {}]   ;;  %s8030_s12 = inlined_call_operand.vmem [shape: f32[1,256], index: 12, kind: input, shape index: {}]   ;;  %s8031_s13 = inlined_call_operand.vmem [shape: f32[32,64], index: 13, kind: input, shape index: {}]   ;;  %s8032_s14 = inlined_call_operand.hbm [shape: f32[256,1024], index: 14, kind: input, shape index: {}]   ;;  %s8033_s15 = inlined_call_operand.vmem [shape: f32[256,16], index: 15, kind: input, shape index: {}]   ;;  %s8034_s16 = inlined_call_operand.vmem [shape: f32[16,256], index: 16, kind: input, shape index: {}]   ;;  %s8035_s17 = inlined_call_operand.vmem [shape: f32[1,256], index: 17, kind: input, shape index: {}]   ;;  %s8036_s18 = inlined_call_operand.vmem [shape: f32[1,256], index: 18, kind: input, shape index: {}]   ;;  %s8037_s19 = inlined_call_operand.vmem [shape: f32[64,128], index: 19, kind: input, shape index: {}]   ;;  %s8038_s20 = inlined_call_operand.hbm [shape: f32[256,1024], index: 20, kind: input, shape index: {}]   ;;  %s8039_s21 = inlined_call_operand.vmem [shape: f32[256,8], index: 21, kind: input, shape index: {}]   ;;  %s8040_s22 = inlined_call_operand.vmem [shape: f32[8,256], index: 22, kind: input, shape index: {}]   ;;  %s8041_s23 = inlined_call_operand.vmem [shape: f32[1,256], index: 23, kind: input, shape index: {}]   ;;  %s8042_s24 = inlined_call_operand.vmem [shape: f32[1,256], index: 24, kind: input, shape index: {}]   ;;  %s8043_s25 = inlined_call_operand.vmem [shape: f32[128,256], index: 25, kind: input, shape index: {}]   ;;  %s8044_s26 = inlined_call_operand.hbm [shape: f32[256,1024], index: 26, kind: input, shape index: {}]   ;;  %s8045_s27 = inlined_call_operand.vmem [shape: f32[1,256], index: 27, kind: input, shape index: {}]   ;;  %s8046_s28 = inlined_call_operand.vmem [shape: f32[128,256], index: 28, kind: output, shape index: {}]  }
   0x1   :  { %8053 = sst [smem:[#allocation21_spill]] %s8018_s0 }
   0x2   :  { %8054 = sst [smem:[#allocation22_spill]] %s8019_s1 }
   0x3   :  { %8055 = sst [smem:[#allocation23_spill]] %s8020_s2 }
   0x4   :  { %8056 = sst [smem:[#allocation24_spill]] %s8021_s3 }
   0x5   :  { %8057 = sst [smem:[#allocation25_spill]] %s8022_s4 }
   0x6   :  { %8058 = sst [smem:[#allocation26_spill]] %s8023_s5 }
   0x7   :  { %8059 = sst [smem:[#allocation27_spill]] %s8024_s6 }
   0x8   :  { %8060 = sst [smem:[#allocation28_spill]] %s8025_s7 }
   0x9   :  { %8061 = sst [smem:[#allocation29_spill]] %s8026_s8 }
   0xa   :  { %8062 = sst [smem:[#allocation30_spill]] %s8027_s9 }
   0xb   :  { %8063 = sst [smem:[#allocation31_spill]] %s8028_s10 }
   0xc   :  { %8064 = sst [smem:[#allocation32_spill]] %s8029_s11 }
   0xd   :  { %8065 = sst [smem:[#allocation33_spill]] %s8030_s12 }
   0xe   :  { %33 = vsyncpa [#allocation8], 0  ;;  %s6130_s8 = smov [#allocation7]  }
   0xf   :  { %s55_s5 = sshll.u32 %s6130_s8, 4  ;;  %s56_s5 = int_to_ptr.vmem [resolvable:$true] %s55_s5 }
  0x10   :  { %s6050_s9 = scalar_lea.vmem %s56_s5, 32768  ;;  %p6055_p1 = scmp.lt.s32.totalorder %s56_s5, %s56_s5 }
  0x11   :  { %p6051_p0 = scmp.ne.s32.totalorder %s56_s5, %s6050_s9  ;;  %p6056_p2 = scmp.lt.s32.totalorder %s6050_s9, %s6050_s9 }
  0x13   :  { %p6057_p3 = por %p6056_p2, %p6055_p1 }
  0x15   :  { %p6058_p4 = pnand %p6057_p3, %p6051_p0 }
  0x17   :  { %6061 = shalt.err (!%p6058_p4)
}
  0x18   :  { %s6131_s30 = smov 1024   ;;  %s6132_s3 = smov 64  }
  0x19   :  { %s8066_s0 = sld [smem:[#allocation29_spill]] }
  0x1f   :  { %61 = dma.hbm_to_vmem [thread:$0]  %s8066_s0, 32768, %s56_s5, [#allocation8], %s6131_s30, %s6131_s30, %s6132_s3  }
  0x20   :  { %6122 = dma.done.wait [#allocation8], 32768  }
  0x21   :  { %6123 = vsyncadd [#allocation8], 4294934528  ;;  %v6133_v0 = vmov 0.0   ;;  %s8067_s2 = sld [smem:[#allocation23_spill]]  ;;  %vm149_vm0 = vcmask 130048   ;;  %vm454_vm1 = vcmask 261120  }
  0x22   :  { %288 = vmatprep.mubr.f32.mxu1 %v6133_v0  ;;  %217 = vmatprep.mubr.f32.mxu0 %v6133_v0  ;;  %s8068_s1 = sld [smem:[#allocation21_spill]]  ;;  %vm673_vm2 = vcmask 523264   ;;  %s6136_s12 = smov [#allocation4]  }
  0x23   :  { %s8069_s9 = sld [smem:[#allocation22_spill]] }
  0x24   :  { %s8070_s6 = sld [smem:[#allocation24_spill]] }
  0x25   :  { %s8071_s8 = sld [smem:[#allocation25_spill]] }
  0x26   :  { %s8073_s10 = sld [smem:[#allocation27_spill]] }
  0x27   :  { %v144_v1 = vld [vmem:[%s8067_s2 + $0x58] sm:$0xff]  ;;  %v142_v2 = vld [vmem:[%s8067_s2 + $0x48] sm:$0xff]  ;;  %v143_v3 = vld [vmem:[%s8067_s2 + $0x50] sm:$0xff]  ;;  %s8074_s29 = sld [smem:[#allocation30_spill]] }
  0x28   :  { %252 = vmatprep.subr.mxu1 %v144_v1  ;;  %181 = vmatprep.subr.mxu0 %v142_v2  ;;  %v141_v4 = vld [vmem:[%s8067_s2 + $0x40] sm:$0xff]  ;;  %v136_v5 = vld [vmem:[%s8067_s2 + $0x18] sm:$0xff]  ;;  %v134_v6 = vld [vmem:[%s8067_s2 + $0x8] sm:$0xff]  ;;  %s8076_s11 = sld [smem:[#allocation31_spill]] }
  0x29   :  { %253 = vmatpush1.msra.mxu1 %v143_v3  ;;  %182 = vmatpush1.msra.mxu0 %v141_v4  ;;  %v135_v7 = vld [vmem:[%s8067_s2 + $0x10] sm:$0xff]  ;;  %v133_v8 = vld [vmem:[%s8067_s2] sm:$0xff]  ;;  %v148_v10 = vld [vmem:[%s8067_s2 + $0x78] sm:$0xff] }
  0x2a   :  { %v132_v9 = vld [vmem:[%s8068_s1] sm:$0xff]  ;;  %254 = vmatprep.subr.mxu1 %v136_v5  ;;  %183 = vmatprep.subr.mxu0 %v134_v6  ;;  %v146_v11 = vld [vmem:[%s8067_s2 + $0x68] sm:$0xff]  ;;  %v147_v12 = vld [vmem:[%s8067_s2 + $0x70] sm:$0xff]  ;;  %s116_s1 = sshll.u32 %s6136_s12, 4  ;;  %s117_s1 = int_to_ptr.vmem [resolvable:$true] %s116_s1 }
  0x2b   :  { %255 = vmatpush1.msra.mxu1 %v135_v7  ;;  %184 = vmatpush1.msra.mxu0 %v133_v8  ;;  %v145_v13 = vld [vmem:[%s8067_s2 + $0x60] sm:$0xff]  ;;  %v140_v14 = vld [vmem:[%s8067_s2 + $0x38] sm:$0xff]  ;;  %v138_v15 = vld [vmem:[%s8067_s2 + $0x28] sm:$0xff] }
  0x2c   :  { %5653 = vmatmul.mubr.msk.f32.vlgmr.msra.gmra.mxu1 %vm149_vm0, %v132_v9  ;;  %394 = vmatprep.subr.mxu1 %v148_v10  ;;  %v139_v16 = vld [vmem:[%s8067_s2 + $0x30] sm:$0xff]  ;;  %v137_v17 = vld [vmem:[%s8067_s2 + $0x20] sm:$0xff]  ;;  %v6352_v27 = vld [vmem:[%s8070_s6 + $0xf8] sm:$0xff] }
  0x2d   :  { %5652 = vmatmul.mubr.msk.f32.vlgmr.msra.gmra.mxu0 %vm149_vm0, %v132_v9  ;;  %323 = vmatprep.subr.mxu0 %v146_v11  ;;  %v445_v26 = vld [vmem:[%s8069_s9] sm:$0xff]  ;;  %v6357_v28 = vld [vmem:[%s8070_s6 + $0x78] sm:$0xff]  ;;  %v6362_v29 = vld [vmem:[%s8070_s6 + $0xf0] sm:$0xff]  ;;  %s8072_s9 = sld [smem:[#allocation26_spill]] }
  0x2e   :  { %395 = vmatpush1.msra.mxu1 %v147_v12  ;;  %324 = vmatpush1.msra.mxu0 %v145_v13  ;;  %v6369_v30 = vld [vmem:[%s8070_s6 + $0x70] sm:$0xff]  ;;  %v6375_v31 = vld [vmem:[%s8070_s6 + $0xe8] sm:$0xff]  ;;  %v6387_v33 = vld [vmem:[%s8070_s6 + $0xe0] sm:$0xff] }
  0x2f   :  { %396 = vmatprep.subr.mxu1 %v140_v14  ;;  %325 = vmatprep.subr.mxu0 %v138_v15  ;;  %v6381_v32 = vld [vmem:[%s8070_s6 + $0x68] sm:$0xff]  ;;  %v6393_v34 = vld [vmem:[%s8070_s6 + $0x60] sm:$0xff]  ;;  %v6399_v35 = vld [vmem:[%s8070_s6 + $0xd8] sm:$0xff] }
  0x30   :  { %397 = vmatpush1.msra.mxu1 %v139_v16  ;;  %430 = vmatprep.mubr.f32.mxu1 %v6133_v0  ;;  %v6405_v36 = vld [vmem:[%s8070_s6 + $0x58] sm:$0xff]  ;;  %v6411_v37 = vld [vmem:[%s8070_s6 + $0xd0] sm:$0xff]  ;;  %v6423_v39 = vld [vmem:[%s8070_s6 + $0xc8] sm:$0xff] }
  0x31   :  { %326 = vmatpush1.msra.mxu0 %v137_v17  ;;  %359 = vmatprep.mubr.f32.mxu0 %v6133_v0  ;;  %v6417_v38 = vld [vmem:[%s8070_s6 + $0x50] sm:$0xff]  ;;  %v6429_v40 = vld [vmem:[%s8070_s6 + $0x48] sm:$0xff]  ;;  %v6435_v41 = vld [vmem:[%s8070_s6 + $0xc0] sm:$0xff] }
  0x32   :  { %5655 = vmatmul.mubr.msk.f32.vlgmr.msra.gmra.mxu1 %vm149_vm0, %v132_v9  ;;  %5654 = vmatmul.mubr.msk.f32.vlgmr.msra.gmra.mxu0 %vm149_vm0, %v132_v9  ;;  %v6441_v42 = vld [vmem:[%s8070_s6 + $0x40] sm:$0xff]  ;;  %v6449_v43 = vld [vmem:[%s8070_s6 + $0xb8] sm:$0xff]  ;;  %v6461_v45 = vld [vmem:[%s8070_s6 + $0xb0] sm:$0xff] }
  0x33   :  { %522 = vmatprep.mubr.f32.mxu0 %v6133_v0  ;;  %v6455_v44 = vld [vmem:[%s8070_s6 + $0x38] sm:$0xff]  ;;  %v6467_v46 = vld [vmem:[%s8070_s6 + $0x30] sm:$0xff]  ;;  %v6473_v47 = vld [vmem:[%s8070_s6 + $0xa8] sm:$0xff] }
  0x34   :  { %v6479_v48 = vld [vmem:[%s8070_s6 + $0x28] sm:$0xff]  ;;  %v6485_v49 = vld [vmem:[%s8070_s6 + $0xa0] sm:$0xff]  ;;  %v6497_v51 = vld [vmem:[%s8070_s6 + $0x98] sm:$0xff] }
  0x35   :  { %v6491_v50 = vld [vmem:[%s8070_s6 + $0x20] sm:$0xff]  ;;  %v6502_v52 = vld [vmem:[%s8070_s6 + $0x18] sm:$0xff]  ;;  %v6507_v53 = vld [vmem:[%s8070_s6 + $0x90] sm:$0xff] }
  0x36   :  { %v6513_v54 = vld [vmem:[%s8070_s6 + $0x10] sm:$0xff]  ;;  %v6519_v55 = vld [vmem:[%s8070_s6 + $0x88] sm:$0xff]  ;;  %v6531_v57 = vld [vmem:[%s8070_s6 + $0x80] sm:$0xff] }
  0x37   :  { %v6525_v56 = vld [vmem:[%s8070_s6 + $0x8] sm:$0xff]  ;;  %v6537_v58 = vld [vmem:[%s8070_s6] sm:$0xff]  ;;  %v6545_v59 = vld [vmem:[%s8071_s8 + $0x78] sm:$0xff] }
  0x38   :  { %v6559_v11 = vld [vmem:[%s8071_s8 + $0x70] sm:$0xff]  ;;  %v6564_v12 = vld [vmem:[%s8071_s8 + $0x68] sm:$0xff]  ;;  %v6569_v13 = vld [vmem:[%s8071_s8 + $0x60] sm:$0xff] }
  0x39   :  { %v6575_v14 = vld [vmem:[%s8071_s8 + $0x58] sm:$0xff]  ;;  %v6582_v15 = vld [vmem:[%s8071_s8 + $0x50] sm:$0xff]  ;;  %v6588_v16 = vld [vmem:[%s8071_s8 + $0x48] sm:$0xff] }
  0x3a   :  { %v6594_v17 = vld [vmem:[%s8071_s8 + $0x40] sm:$0xff] }
  0xec   :  { %v290_v18 = vpop.f32.mrf.mxu1 }
  0xed   :  { %v219_v19 = vpop.f32.mrf.mxu0 }
  0xee   :  { %v292_v20 = vpop.f32.mrf.mxu1 }
  0xef   :  { %v221_v21 = vpop.f32.mrf.mxu0 }
  0xf2   :  { %v432_v22 = vpop.f32.mrf.mxu1  ;;  %v361_v23 = vpop.f32.mrf.mxu0 }
  0xf4   :  { %v434_v24 = vpop.f32.mrf.mxu1  ;;  %v363_v25 = vpop.f32.mrf.mxu0 }
  0xf5   :  { %482 = vmatprep.subr.mxu0 %v434_v24  ;;  %v6638_v24 = vld [vmem:[%s8071_s8 + $0x8] sm:$0xff] }
  0xf6   :  { %483 = vmatpush1.msra.mxu0 %v432_v22  ;;  %v6626_v22 = vld [vmem:[%s8071_s8 + $0x18] sm:$0xff] }
  0xf7   :  { %484 = vmatprep.subr.mxu0 %v363_v25  ;;  %v6644_v25 = vld [vmem:[%s8071_s8] sm:$0xff] }
  0xf8   :  { %485 = vmatpush1.msra.mxu0 %v361_v23  ;;  %v6632_v23 = vld [vmem:[%s8071_s8 + $0x10] sm:$0xff] }
  0xf9   :  { %486 = vmatprep.subr.mxu0 %v292_v20  ;;  %v6612_v20 = vld [vmem:[%s8071_s8 + $0x28] sm:$0xff] }
  0xfa   :  { %487 = vmatpush1.msra.mxu0 %v290_v18  ;;  %v6600_v18 = vld [vmem:[%s8071_s8 + $0x38] sm:$0xff] }
  0xfb   :  { %488 = vmatprep.subr.mxu0 %v221_v21  ;;  %v6618_v21 = vld [vmem:[%s8071_s8 + $0x20] sm:$0xff] }
  0xfc   :  { %489 = vmatpush1.msra.mxu0 %v219_v19  ;;  %v6606_v19 = vld [vmem:[%s8071_s8 + $0x30] sm:$0xff]  ;;  %s8075_s8 = sld [smem:[#allocation28_spill]] }
  0xfd   :  { %5656 = vmatmul.mubr.msk.f32.vlgmr.msra.gmra.mxu0 %vm454_vm1, %v445_v26  ;;  %5674 = vmatprep.subr.mxu0 %v6352_v27 }
  0xfe   :  { %5675 = vmatpush3.msra.mxu0 %v6357_v28 }
  0xff   :  { %5676 = vmatprep.subr.mxu0 %v6362_v29 }
 0x100   :  { %5677 = vmatpush3.msra.mxu0 %v6369_v30 }
 0x101   :  { %5678 = vmatprep.subr.mxu0 %v6375_v31 }
 0x102   :  { %5679 = vmatpush3.msra.mxu0 %v6381_v32 }
 0x103   :  { %5680 = vmatprep.subr.mxu0 %v6387_v33 }
 0x104   :  { %5681 = vmatpush3.msra.mxu0 %v6393_v34 }
 0x105   :  { %5682 = vmatprep.subr.mxu0 %v6399_v35 }
 0x106   :  { %5683 = vmatpush3.msra.mxu0 %v6405_v36 }
 0x107   :  { %5684 = vmatprep.subr.mxu0 %v6411_v37 }
 0x108   :  { %5685 = vmatpush3.msra.mxu0 %v6417_v38 }
 0x109   :  { %5686 = vmatprep.subr.mxu0 %v6423_v39 }
 0x10a   :  { %5687 = vmatpush3.msra.mxu0 %v6429_v40 }
 0x10b   :  { %5688 = vmatprep.subr.mxu0 %v6435_v41 }
 0x10c   :  { %5689 = vmatpush3.msra.mxu0 %v6441_v42 }
 0x10d   :  { %5690 = vmatprep.subr.mxu0 %v6449_v43 }
 0x10e   :  { %5691 = vmatpush3.msra.mxu0 %v6455_v44 }
 0x10f   :  { %5692 = vmatprep.subr.mxu0 %v6461_v45 }
 0x110   :  { %5693 = vmatpush3.msra.mxu0 %v6467_v46 }
 0x111   :  { %5694 = vmatprep.subr.mxu0 %v6473_v47 }
 0x112   :  { %5695 = vmatpush3.msra.mxu0 %v6479_v48 }
 0x113   :  { %5696 = vmatprep.subr.mxu0 %v6485_v49 }
 0x114   :  { %5697 = vmatpush3.msra.mxu0 %v6491_v50 }
 0x115   :  { %5698 = vmatprep.subr.mxu0 %v6497_v51 }
 0x116   :  { %5699 = vmatpush3.msra.mxu0 %v6502_v52 }
 0x117   :  { %5700 = vmatprep.subr.mxu0 %v6507_v53 }
 0x118   :  { %5701 = vmatpush3.msra.mxu0 %v6513_v54 }
 0x119   :  { %5702 = vmatprep.subr.mxu0 %v6519_v55 }
 0x11a   :  { %5703 = vmatpush3.msra.mxu0 %v6525_v56 }
 0x11b   :  { %5704 = vmatprep.subr.mxu0 %v6531_v57 }
 0x11c   :  { %5705 = vmatpush3.msra.mxu0 %v6537_v58 }
 0x11d   :  { %693 = vmatprep.subr.mxu0 %v6545_v59 }
 0x1bd   :  { %v6548_v60 = vpop.f32.mrf.mxu0 }
 0x1be   :  { %v529_v61 = vrot.slane %v6548_v60, 4 }
 0x1bf   :  { %v6551_v62 = vpop.f32.mrf.mxu0 }
 0x1c0   :  { %v530_v63 = vadd.f32 %v529_v61, %v6548_v60  ;;  %v535_v1 = vrot.slane %v6551_v62, 4  ;;  %v542_v26 = vmul.f32 %v6551_v62, %v6551_v62 }
 0x1c2   :  { %v531_v2 = vrot.slane %v530_v63, 2  ;;  %v536_v3 = vadd.f32 %v535_v1, %v6551_v62  ;;  %v549_v61 = vrot.slane %v542_v26, 4 }
 0x1c4   :  { %v532_v4 = vadd.f32 %v531_v2, %v530_v63  ;;  %v537_v5 = vrot.slane %v536_v3, 2  ;;  %v550_v63 = vadd.f32 %v549_v61, %v542_v26  ;;  %v1028_v26 = vld [vmem:[#allocation7 + $0x218] sm:$0xff]  ;;  %v1027_v61 = vld [vmem:[#allocation7 + $0x210] sm:$0xff] }
 0x1c6   :  { %v538_v6 = vadd.f32 %v537_v5, %v536_v3  ;;  %v533_v7 = vrot.slane %v532_v4, 1  ;;  %v551_v1 = vrot.slane %v550_v63, 2 }
 0x1c8   :  { %v539_v8 = vrot.slane %v538_v6, 1  ;;  %v534_v10 = vadd.f32 %v533_v7, %v532_v4  ;;  %v552_v2 = vadd.f32 %v551_v1, %v550_v63  ;;  %v1020_v63 = vld [vmem:[#allocation7 + $0x1d8] sm:$0xff]  ;;  %v1019_v1 = vld [vmem:[#allocation7 + $0x1d0] sm:$0xff] }
 0x1ca   :  { %v540_v9 = vadd.f32 %v539_v8, %v538_v6  ;;  %v553_v4 = vrot.slane %v552_v2, 1 }
 0x1cc   :  { %651 = vmatprep.mubr.f32.mxu0 %v540_v9  ;;  %v554_v7 = vadd.f32 %v553_v4, %v552_v2  ;;  %v1012_v2 = vld [vmem:[#allocation7 + $0x198] sm:$0xff] }
 0x1cd   :  { %652 = vmatmul.mubr.f32.vlgmr.msra.gmra.mxu0 %v534_v10  ;;  %v1004_v4 = vld [vmem:[#allocation7 + $0x158] sm:$0xff] }
 0x1ce   :  { %694 = vmatpush1.msra.mxu0 %v6559_v11  ;;  %741 = vmatprep.mubr.f32.mxu0 %v6133_v0 }
 0x1cf   :  { %695 = vmatprep.subr.mxu0 %v6564_v12 }
 0x1d0   :  { %696 = vmatpush1.msra.mxu0 %v6569_v13 }
 0x1d1   :  { %697 = vmatprep.subr.mxu0 %v6575_v14 }
 0x1d2   :  { %698 = vmatpush1.msra.mxu0 %v6582_v15 }
 0x1d3   :  { %699 = vmatprep.subr.mxu0 %v6588_v16 }
 0x1d4   :  { %700 = vmatpush1.msra.mxu0 %v6594_v17 }
 0x1d5   :  { %701 = vmatprep.subr.mxu0 %v6600_v18 }
 0x1d6   :  { %702 = vmatpush1.msra.mxu0 %v6606_v19 }
 0x1d7   :  { %703 = vmatprep.subr.mxu0 %v6612_v20 }
 0x1d8   :  { %704 = vmatpush1.msra.mxu0 %v6618_v21 }
 0x1d9   :  { %705 = vmatprep.subr.mxu0 %v6626_v22 }
 0x1da   :  { %706 = vmatpush1.msra.mxu0 %v6632_v23 }
 0x1db   :  { %707 = vmatprep.subr.mxu0 %v6638_v24 }
 0x1dc   :  { %708 = vmatpush1.msra.mxu0 %v6644_v25 }
 0x1dd   :  { %5709 = vmatprep.subr.mxu0 %v6352_v27  ;;  %v541_v27 = vmul.f32 %v6548_v60, %v6548_v60 }
 0x28d   :  { %v5706_v3 = vpop.f32.mrf.mxu0 }
 0x28f   :  { %v5707_v5 = vpop.f32.mrf.mxu0 }
 0x290   :  { %v5708_v6 = vadd.f32 %v5707_v5, %v5706_v3  ;;  %v1011_v3 = vld [vmem:[#allocation7 + $0x190] sm:$0xff] }
 0x291   :  { %v1003_v5 = vld [vmem:[#allocation7 + $0x150] sm:$0xff] }
 0x292   :  { %5657 = vmatmul.mubr.msk.f32.vlgmr.msra.gmra.mxu0 %vm673_vm2, %v5708_v6  ;;  %v996_v6 = vld [vmem:[#allocation7 + $0x118] sm:$0xff] }
 0x293   :  { %5710 = vmatpush3.msra.mxu0 %v6357_v28  ;;  %812 = vmatprep.mubr.f32.mxu0 %v554_v7  ;;  %v543_v28 = vrot.slane %v541_v27, 4  ;;  %v995_v7 = vld [vmem:[#allocation7 + $0x110] sm:$0xff] }
 0x294   :  { %5711 = vmatprep.subr.mxu0 %v6362_v29 }
 0x295   :  { %5712 = vmatpush3.msra.mxu0 %v6369_v30  ;;  %v544_v29 = vadd.f32 %v543_v28, %v541_v27  ;;  %v988_v27 = vld [vmem:[#allocation7 + $0xd8] sm:$0xff]  ;;  %v985_v28 = vld [vmem:[#allocation7 + $0xc0] sm:$0xff] }
 0x296   :  { %5713 = vmatprep.subr.mxu0 %v6375_v31 }
 0x297   :  { %5714 = vmatpush3.msra.mxu0 %v6381_v32  ;;  %v545_v30 = vrot.slane %v544_v29, 2 }
 0x298   :  { %5715 = vmatprep.subr.mxu0 %v6387_v33 }
 0x299   :  { %5716 = vmatpush3.msra.mxu0 %v6393_v34  ;;  %v546_v31 = vadd.f32 %v545_v30, %v544_v29  ;;  %v1082_v34 = vld [vmem:[#allocation7 + $0x3c8] sm:$0xff]  ;;  %v987_v29 = vld [vmem:[#allocation7 + $0xd0] sm:$0xff] }
 0x29a   :  { %5717 = vmatprep.subr.mxu0 %v6399_v35  ;;  %v1084_v35 = vld [vmem:[#allocation7 + $0x3d8] sm:$0xff]  ;;  %1217 = vmatprep.subr.mxu1 %v1082_v34  ;;  %v978_v30 = vld [vmem:[#allocation7 + $0x88] sm:$0xff] }
 0x29b   :  { %5718 = vmatpush3.msra.mxu0 %v6405_v36  ;;  %v547_v32 = vrot.slane %v546_v31, 1  ;;  %v1081_v36 = vld [vmem:[#allocation7 + $0x3c0] sm:$0xff]  ;;  %v970_v34 = vld [vmem:[#allocation7 + $0x48] sm:$0xff] }
 0x29c   :  { %5719 = vmatprep.subr.mxu0 %v6411_v37  ;;  %v1074_v37 = vld [vmem:[#allocation7 + $0x388] sm:$0xff]  ;;  %1218 = vmatpush1.msra.mxu1 %v1081_v36  ;;  %v969_v36 = vld [vmem:[#allocation7 + $0x40] sm:$0xff] }
 0x29d   :  { %5720 = vmatpush3.msra.mxu0 %v6417_v38  ;;  %v548_v33 = vadd.f32 %v547_v32, %v546_v31  ;;  %v1073_v38 = vld [vmem:[#allocation7 + $0x380] sm:$0xff]  ;;  %1219 = vmatprep.subr.mxu1 %v1074_v37  ;;  %v980_v31 = vld [vmem:[#allocation7 + $0x98] sm:$0xff]  ;;  %v971_v37 = vld [vmem:[#allocation7 + $0x50] sm:$0xff] }
 0x29e   :  { %5721 = vmatprep.subr.mxu0 %v6423_v39  ;;  %v1066_v39 = vld [vmem:[#allocation7 + $0x348] sm:$0xff]  ;;  %1220 = vmatpush1.msra.mxu1 %v1073_v38  ;;  %v977_v32 = vld [vmem:[#allocation7 + $0x80] sm:$0xff] }
 0x29f   :  { %5722 = vmatpush3.msra.mxu0 %v6429_v40  ;;  %v1065_v40 = vld [vmem:[#allocation7 + $0x340] sm:$0xff]  ;;  %1221 = vmatprep.subr.mxu1 %v1066_v39  ;;  %v962_v38 = vld [vmem:[#allocation7 + $0x8] sm:$0xff]  ;;  %v964_v39 = vld [vmem:[#allocation7 + $0x18] sm:$0xff] }
 0x2a0   :  { %5723 = vmatprep.subr.mxu0 %v6435_v41  ;;  %v1058_v41 = vld [vmem:[#allocation7 + $0x308] sm:$0xff]  ;;  %1222 = vmatpush1.msra.mxu1 %v1065_v40  ;;  %v961_v40 = vld [vmem:[#allocation7] sm:$0xff] }
 0x2a1   :  { %5724 = vmatpush3.msra.mxu0 %v6441_v42  ;;  %v1057_v42 = vld [vmem:[#allocation7 + $0x300] sm:$0xff]  ;;  %1223 = vmatprep.subr.mxu1 %v1058_v41  ;;  %v963_v41 = vld [vmem:[#allocation7 + $0x10] sm:$0xff] }
 0x2a2   :  { %5725 = vmatprep.subr.mxu0 %v6449_v43  ;;  %v1050_v43 = vld [vmem:[#allocation7 + $0x2c8] sm:$0xff]  ;;  %1224 = vmatpush1.msra.mxu1 %v1057_v42 }
 0x2a3   :  { %5726 = vmatpush3.msra.mxu0 %v6455_v44  ;;  %v1049_v44 = vld [vmem:[#allocation7 + $0x2c0] sm:$0xff]  ;;  %1225 = vmatprep.subr.mxu1 %v1050_v43  ;;  %v1210_v42 = vld [vmem:[#allocation7 + $0x7c8] sm:$0xff]  ;;  %v1212_v43 = vld [vmem:[#allocation7 + $0x7d8] sm:$0xff] }
 0x2a4   :  { %5727 = vmatprep.subr.mxu0 %v6461_v45  ;;  %v1042_v45 = vld [vmem:[#allocation7 + $0x288] sm:$0xff]  ;;  %1226 = vmatpush1.msra.mxu1 %v1049_v44  ;;  %v1209_v44 = vld [vmem:[#allocation7 + $0x7c0] sm:$0xff] }
 0x2a5   :  { %5728 = vmatpush3.msra.mxu0 %v6467_v46  ;;  %v1041_v46 = vld [vmem:[#allocation7 + $0x280] sm:$0xff]  ;;  %1227 = vmatprep.subr.mxu1 %v1042_v45  ;;  %v1211_v45 = vld [vmem:[#allocation7 + $0x7d0] sm:$0xff] }
 0x2a6   :  { %5729 = vmatprep.subr.mxu0 %v6473_v47  ;;  %v1034_v47 = vld [vmem:[#allocation7 + $0x248] sm:$0xff]  ;;  %1228 = vmatpush1.msra.mxu1 %v1041_v46 }
 0x2a7   :  { %5730 = vmatpush3.msra.mxu0 %v6479_v48  ;;  %v1033_v48 = vld [vmem:[#allocation7 + $0x240] sm:$0xff]  ;;  %1229 = vmatprep.subr.mxu1 %v1034_v47  ;;  %v1202_v46 = vld [vmem:[#allocation7 + $0x788] sm:$0xff]  ;;  %v1204_v47 = vld [vmem:[#allocation7 + $0x798] sm:$0xff] }
 0x2a8   :  { %5731 = vmatprep.subr.mxu0 %v6485_v49  ;;  %v1026_v49 = vld [vmem:[#allocation7 + $0x208] sm:$0xff]  ;;  %1230 = vmatpush1.msra.mxu1 %v1033_v48  ;;  %v1201_v48 = vld [vmem:[#allocation7 + $0x780] sm:$0xff] }
 0x2a9   :  { %5732 = vmatpush3.msra.mxu0 %v6491_v50  ;;  %v1025_v50 = vld [vmem:[#allocation7 + $0x200] sm:$0xff]  ;;  %1231 = vmatprep.subr.mxu1 %v1026_v49  ;;  %v1203_v49 = vld [vmem:[#allocation7 + $0x790] sm:$0xff] }
 0x2aa   :  { %5733 = vmatprep.subr.mxu0 %v6497_v51  ;;  %v1018_v51 = vld [vmem:[#allocation7 + $0x1c8] sm:$0xff]  ;;  %1232 = vmatpush1.msra.mxu1 %v1025_v50 }
 0x2ab   :  { %5734 = vmatpush3.msra.mxu0 %v6502_v52  ;;  %v1017_v52 = vld [vmem:[#allocation7 + $0x1c0] sm:$0xff]  ;;  %1233 = vmatprep.subr.mxu1 %v1018_v51  ;;  %v1194_v50 = vld [vmem:[#allocation7 + $0x748] sm:$0xff]  ;;  %v1196_v51 = vld [vmem:[#allocation7 + $0x758] sm:$0xff] }
 0x2ac   :  { %5735 = vmatprep.subr.mxu0 %v6507_v53  ;;  %v1010_v53 = vld [vmem:[#allocation7 + $0x188] sm:$0xff]  ;;  %1234 = vmatpush1.msra.mxu1 %v1017_v52  ;;  %v1193_v52 = vld [vmem:[#allocation7 + $0x740] sm:$0xff] }
 0x2ad   :  { %5736 = vmatpush3.msra.mxu0 %v6513_v54  ;;  %v1009_v54 = vld [vmem:[#allocation7 + $0x180] sm:$0xff]  ;;  %1235 = vmatprep.subr.mxu1 %v1010_v53  ;;  %v1195_v53 = vld [vmem:[#allocation7 + $0x750] sm:$0xff] }
 0x2ae   :  { %5737 = vmatprep.subr.mxu0 %v6519_v55  ;;  %v1002_v55 = vld [vmem:[#allocation7 + $0x148] sm:$0xff]  ;;  %1236 = vmatpush1.msra.mxu1 %v1009_v54 }
 0x2af   :  { %5738 = vmatpush3.msra.mxu0 %v6525_v56  ;;  %v1001_v56 = vld [vmem:[#allocation7 + $0x140] sm:$0xff]  ;;  %1237 = vmatprep.subr.mxu1 %v1002_v55  ;;  %v1186_v54 = vld [vmem:[#allocation7 + $0x708] sm:$0xff]  ;;  %v1188_v55 = vld [vmem:[#allocation7 + $0x718] sm:$0xff] }
 0x2b0   :  { %5739 = vmatprep.subr.mxu0 %v6531_v57  ;;  %v994_v57 = vld [vmem:[#allocation7 + $0x108] sm:$0xff]  ;;  %1238 = vmatpush1.msra.mxu1 %v1001_v56  ;;  %v1185_v56 = vld [vmem:[#allocation7 + $0x700] sm:$0xff] }
 0x2b1   :  { %5740 = vmatpush3.msra.mxu0 %v6537_v58  ;;  %v993_v58 = vld [vmem:[#allocation7 + $0x100] sm:$0xff]  ;;  %1239 = vmatprep.subr.mxu1 %v994_v57  ;;  %v1187_v57 = vld [vmem:[#allocation7 + $0x710] sm:$0xff] }
 0x2b2   :  { %813 = vmatmul.mubr.f32.vlgmr.msra.gmra.mxu0 %v548_v33  ;;  %837 = vmatprep.subr.mxu0 %v6545_v59  ;;  %v986_v59 = vld [vmem:[#allocation7 + $0xc8] sm:$0xff]  ;;  %v979_v33 = vld [vmem:[#allocation7 + $0x90] sm:$0xff] }
 0x2b3   :  { %838 = vmatpush1.msra.mxu0 %v6559_v11  ;;  %885 = vmatprep.mubr.f32.mxu0 %v6133_v0 }
 0x2b4   :  { %839 = vmatprep.subr.mxu0 %v6564_v12  ;;  %1240 = vmatpush1.msra.mxu1 %v993_v58  ;;  %v1178_v58 = vld [vmem:[#allocation7 + $0x6c8] sm:$0xff] }
 0x2b5   :  { %840 = vmatpush1.msra.mxu0 %v6569_v13  ;;  %1241 = vmatprep.subr.mxu1 %v986_v59  ;;  %v1083_v13 = vld [vmem:[#allocation7 + $0x3d0] sm:$0xff]  ;;  %v1180_v59 = vld [vmem:[#allocation7 + $0x6d8] sm:$0xff] }
 0x2b6   :  { %841 = vmatprep.subr.mxu0 %v6575_v14  ;;  %v1076_v14 = vld [vmem:[#allocation7 + $0x398] sm:$0xff]  ;;  %1242 = vmatpush1.msra.mxu1 %v985_v28 }
 0x2b7   :  { %842 = vmatpush1.msra.mxu0 %v6582_v15  ;;  %v1075_v15 = vld [vmem:[#allocation7 + $0x390] sm:$0xff]  ;;  %1243 = vmatprep.subr.mxu1 %v978_v30  ;;  %v1124_v28 = vld [vmem:[#allocation7 + $0x518] sm:$0xff] }
 0x2b8   :  { %843 = vmatprep.subr.mxu0 %v6588_v16  ;;  %v1068_v16 = vld [vmem:[#allocation7 + $0x358] sm:$0xff]  ;;  %1244 = vmatpush1.msra.mxu1 %v977_v32  ;;  %v1123_v30 = vld [vmem:[#allocation7 + $0x510] sm:$0xff] }
 0x2b9   :  { %844 = vmatpush1.msra.mxu0 %v6594_v17  ;;  %v1067_v17 = vld [vmem:[#allocation7 + $0x350] sm:$0xff]  ;;  %1245 = vmatprep.subr.mxu1 %v970_v34  ;;  %v1116_v32 = vld [vmem:[#allocation7 + $0x4d8] sm:$0xff] }
 0x2ba   :  { %845 = vmatprep.subr.mxu0 %v6600_v18  ;;  %v1060_v18 = vld [vmem:[#allocation7 + $0x318] sm:$0xff]  ;;  %1246 = vmatpush1.msra.mxu1 %v969_v36  ;;  %v1115_v34 = vld [vmem:[#allocation7 + $0x4d0] sm:$0xff] }
 0x2bb   :  { %846 = vmatpush1.msra.mxu0 %v6606_v19  ;;  %v1059_v19 = vld [vmem:[#allocation7 + $0x310] sm:$0xff]  ;;  %1247 = vmatprep.subr.mxu1 %v962_v38  ;;  %v1108_v36 = vld [vmem:[#allocation7 + $0x498] sm:$0xff] }
 0x2bc   :  { %847 = vmatprep.subr.mxu0 %v6612_v20  ;;  %v1052_v20 = vld [vmem:[#allocation7 + $0x2d8] sm:$0xff]  ;;  %1248 = vmatpush1.msra.mxu1 %v961_v40  ;;  %v1107_v38 = vld [vmem:[#allocation7 + $0x490] sm:$0xff] }
 0x2bd   :  { %848 = vmatpush1.msra.mxu0 %v6618_v21  ;;  %v1051_v21 = vld [vmem:[#allocation7 + $0x2d0] sm:$0xff]  ;;  %1249 = vmatprep.subr.mxu1 %v1210_v42  ;;  %v1100_v40 = vld [vmem:[#allocation7 + $0x458] sm:$0xff] }
 0x2be   :  { %849 = vmatprep.subr.mxu0 %v6626_v22  ;;  %v1044_v22 = vld [vmem:[#allocation7 + $0x298] sm:$0xff]  ;;  %1250 = vmatpush2.msra.mxu1 %v1209_v44  ;;  %v1099_v42 = vld [vmem:[#allocation7 + $0x450] sm:$0xff] }
 0x2bf   :  { %850 = vmatpush1.msra.mxu0 %v6632_v23  ;;  %v1043_v23 = vld [vmem:[#allocation7 + $0x290] sm:$0xff]  ;;  %1251 = vmatprep.subr.mxu1 %v1202_v46  ;;  %v1092_v44 = vld [vmem:[#allocation7 + $0x418] sm:$0xff] }
 0x2c0   :  { %851 = vmatprep.subr.mxu0 %v6638_v24  ;;  %v1036_v24 = vld [vmem:[#allocation7 + $0x258] sm:$0xff]  ;;  %1252 = vmatpush2.msra.mxu1 %v1201_v48  ;;  %v1091_v46 = vld [vmem:[#allocation7 + $0x410] sm:$0xff] }
 0x2c1   :  { %852 = vmatpush1.msra.mxu0 %v6644_v25  ;;  %v1035_v25 = vld [vmem:[#allocation7 + $0x250] sm:$0xff]  ;;  %1253 = vmatprep.subr.mxu1 %v1194_v50  ;;  %v1088_v48 = vld [vmem:[#allocation7 + $0x3f8] sm:$0xff] }
 0x2c2   :  { %1288 = vmatprep.subr.mxu0 %v1084_v35  ;;  %v972_v35 = vld [vmem:[#allocation7 + $0x58] sm:$0xff]  ;;  %1254 = vmatpush2.msra.mxu1 %v1193_v52 }
 0x2c3   :  { %1255 = vmatprep.subr.mxu1 %v1186_v54 }
 0x2c4   :  { %1256 = vmatpush2.msra.mxu1 %v1185_v56 }
 0x2c5   :  { %1257 = vmatprep.subr.mxu1 %v1178_v58 }
 0x352   :  { %v6701_v8 = vpop.f32.mrf.mxu0 }
 0x354   :  { %v6703_v9 = vpop.f32.mrf.mxu0 }
 0x372   :  { %v5741_v10 = vpop.f32.mrf.mxu0 }
 0x374   :  { %v5742_v11 = vpop.f32.mrf.mxu0 }
 0x375   :  { %v5743_v12 = vadd.f32 %v5742_v11, %v5741_v10  ;;  %v1177_v10 = vld [vmem:[#allocation7 + $0x6c0] sm:$0xff]  ;;  %v1179_v11 = vld [vmem:[#allocation7 + $0x6d0] sm:$0xff] }
 0x376   :  { %1258 = vmatpush2.msra.mxu1 %v1177_v10 }
 0x377   :  { %5658 = vmatmul.mubr.msk.f32.vlgmr.msra.gmra.mxu0 %vm673_vm2, %v5743_v12  ;;  %v1170_v12 = vld [vmem:[#allocation7 + $0x688] sm:$0xff] }
 0x378   :  { %1289 = vmatpush1.msra.mxu0 %v1083_v13  ;;  %v1172_v13 = vld [vmem:[#allocation7 + $0x698] sm:$0xff]  ;;  %1259 = vmatprep.subr.mxu1 %v1170_v12 }
 0x379   :  { %1290 = vmatprep.subr.mxu0 %v1076_v14  ;;  %v1169_v14 = vld [vmem:[#allocation7 + $0x680] sm:$0xff] }
 0x37a   :  { %1291 = vmatpush1.msra.mxu0 %v1075_v15  ;;  %v1171_v15 = vld [vmem:[#allocation7 + $0x690] sm:$0xff]  ;;  %1260 = vmatpush2.msra.mxu1 %v1169_v14 }
 0x37b   :  { %1292 = vmatprep.subr.mxu0 %v1068_v16  ;;  %v1162_v16 = vld [vmem:[#allocation7 + $0x648] sm:$0xff] }
 0x37c   :  { %1293 = vmatpush1.msra.mxu0 %v1067_v17  ;;  %v1164_v17 = vld [vmem:[#allocation7 + $0x658] sm:$0xff]  ;;  %1261 = vmatprep.subr.mxu1 %v1162_v16 }
 0x37d   :  { %1294 = vmatprep.subr.mxu0 %v1060_v18  ;;  %v1161_v18 = vld [vmem:[#allocation7 + $0x640] sm:$0xff] }
 0x37e   :  { %1295 = vmatpush1.msra.mxu0 %v1059_v19  ;;  %v1163_v19 = vld [vmem:[#allocation7 + $0x650] sm:$0xff]  ;;  %1262 = vmatpush2.msra.mxu1 %v1161_v18 }
 0x37f   :  { %1296 = vmatprep.subr.mxu0 %v1052_v20  ;;  %v1154_v20 = vld [vmem:[#allocation7 + $0x608] sm:$0xff] }
 0x380   :  { %1297 = vmatpush1.msra.mxu0 %v1051_v21  ;;  %v1156_v21 = vld [vmem:[#allocation7 + $0x618] sm:$0xff]  ;;  %1263 = vmatprep.subr.mxu1 %v1154_v20 }
 0x381   :  { %1298 = vmatprep.subr.mxu0 %v1044_v22  ;;  %v1153_v22 = vld [vmem:[#allocation7 + $0x600] sm:$0xff] }
 0x382   :  { %1299 = vmatpush1.msra.mxu0 %v1043_v23  ;;  %v1155_v23 = vld [vmem:[#allocation7 + $0x610] sm:$0xff]  ;;  %1264 = vmatpush2.msra.mxu1 %v1153_v22  ;;  %v898_v22 = vld [vmem:[%s8072_s9] sm:$0x3] }
 0x383   :  { %1300 = vmatprep.subr.mxu0 %v1036_v24  ;;  %v1146_v24 = vld [vmem:[#allocation7 + $0x5c8] sm:$0xff] }
 0x384   :  { %1301 = vmatpush1.msra.mxu0 %v1035_v25  ;;  %v1148_v25 = vld [vmem:[#allocation7 + $0x5d8] sm:$0xff]  ;;  %1265 = vmatprep.subr.mxu1 %v1146_v24 }
 0x385   :  { %1302 = vmatprep.subr.mxu0 %v1028_v26  ;;  %v1145_v26 = vld [vmem:[#allocation7 + $0x5c0] sm:$0xff] }
 0x386   :  { %1303 = vmatpush1.msra.mxu0 %v1027_v61  ;;  %v1147_v61 = vld [vmem:[#allocation7 + $0x5d0] sm:$0xff]  ;;  %1266 = vmatpush2.msra.mxu1 %v1145_v26 }
 0x387   :  { %1304 = vmatprep.subr.mxu0 %v1020_v63  ;;  %v1138_v63 = vld [vmem:[#allocation7 + $0x588] sm:$0xff] }
 0x388   :  { %1305 = vmatpush1.msra.mxu0 %v1019_v1  ;;  %v1140_v1 = vld [vmem:[#allocation7 + $0x598] sm:$0xff]  ;;  %1267 = vmatprep.subr.mxu1 %v1138_v63 }
 0x389   :  { %1306 = vmatprep.subr.mxu0 %v1012_v2  ;;  %v1137_v2 = vld [vmem:[#allocation7 + $0x580] sm:$0xff] }
 0x38a   :  { %1307 = vmatpush1.msra.mxu0 %v1011_v3  ;;  %v1139_v3 = vld [vmem:[#allocation7 + $0x590] sm:$0xff]  ;;  %1268 = vmatpush2.msra.mxu1 %v1137_v2 }
 0x38b   :  { %1308 = vmatprep.subr.mxu0 %v1004_v4  ;;  %v1130_v4 = vld [vmem:[#allocation7 + $0x548] sm:$0xff] }
 0x38c   :  { %1309 = vmatpush1.msra.mxu0 %v1003_v5  ;;  %v1132_v5 = vld [vmem:[#allocation7 + $0x558] sm:$0xff]  ;;  %1269 = vmatprep.subr.mxu1 %v1130_v4 }
 0x38d   :  { %1310 = vmatprep.subr.mxu0 %v996_v6  ;;  %v1129_v6 = vld [vmem:[#allocation7 + $0x540] sm:$0xff] }
 0x38e   :  { %1311 = vmatpush1.msra.mxu0 %v995_v7  ;;  %v1131_v7 = vld [vmem:[#allocation7 + $0x550] sm:$0xff]  ;;  %1270 = vmatpush2.msra.mxu1 %v1129_v6 }
 0x38f   :  { %1312 = vmatprep.subr.mxu0 %v988_v27  ;;  %v1122_v27 = vld [vmem:[#allocation7 + $0x508] sm:$0xff] }
 0x390   :  { %1313 = vmatpush1.msra.mxu0 %v987_v29  ;;  %v1121_v29 = vld [vmem:[#allocation7 + $0x500] sm:$0xff]  ;;  %1271 = vmatprep.subr.mxu1 %v1122_v27 }
 0x391   :  { %1314 = vmatprep.subr.mxu0 %v980_v31  ;;  %v1114_v31 = vld [vmem:[#allocation7 + $0x4c8] sm:$0xff]  ;;  %1272 = vmatpush2.msra.mxu1 %v1121_v29  ;;  %v1087_v29 = vld [vmem:[#allocation7 + $0x3f0] sm:$0xff] }
 0x392   :  { %1315 = vmatpush1.msra.mxu0 %v979_v33  ;;  %v1113_v33 = vld [vmem:[#allocation7 + $0x4c0] sm:$0xff]  ;;  %1273 = vmatprep.subr.mxu1 %v1114_v31  ;;  %v1079_v31 = vld [vmem:[#allocation7 + $0x3b0] sm:$0xff] }
 0x393   :  { %1316 = vmatprep.subr.mxu0 %v972_v35  ;;  %v1106_v35 = vld [vmem:[#allocation7 + $0x488] sm:$0xff]  ;;  %1274 = vmatpush2.msra.mxu1 %v1113_v33  ;;  %v1072_v33 = vld [vmem:[#allocation7 + $0x378] sm:$0xff] }
 0x394   :  { %1317 = vmatpush1.msra.mxu0 %v971_v37  ;;  %v1105_v37 = vld [vmem:[#allocation7 + $0x480] sm:$0xff]  ;;  %1275 = vmatprep.subr.mxu1 %v1106_v35  ;;  %v1071_v35 = vld [vmem:[#allocation7 + $0x370] sm:$0xff] }
 0x395   :  { %1318 = vmatprep.subr.mxu0 %v964_v39  ;;  %v1098_v39 = vld [vmem:[#allocation7 + $0x448] sm:$0xff]  ;;  %1276 = vmatpush2.msra.mxu1 %v1105_v37  ;;  %v1064_v37 = vld [vmem:[#allocation7 + $0x338] sm:$0xff] }
 0x396   :  { %1319 = vmatpush1.msra.mxu0 %v963_v41  ;;  %v1097_v41 = vld [vmem:[#allocation7 + $0x440] sm:$0xff]  ;;  %1277 = vmatprep.subr.mxu1 %v1098_v39  ;;  %v1063_v39 = vld [vmem:[#allocation7 + $0x330] sm:$0xff] }
 0x397   :  { %1320 = vmatprep.subr.mxu0 %v1212_v43  ;;  %v1090_v43 = vld [vmem:[#allocation7 + $0x408] sm:$0xff]  ;;  %1278 = vmatpush2.msra.mxu1 %v1097_v41  ;;  %v1056_v41 = vld [vmem:[#allocation7 + $0x2f8] sm:$0xff] }
 0x398   :  { %1321 = vmatpush2.msra.mxu0 %v1211_v45  ;;  %v1089_v45 = vld [vmem:[#allocation7 + $0x400] sm:$0xff]  ;;  %1279 = vmatprep.subr.mxu1 %v1090_v43  ;;  %v1055_v43 = vld [vmem:[#allocation7 + $0x2f0] sm:$0xff] }
 0x399   :  { %1322 = vmatprep.subr.mxu0 %v1204_v47  ;;  %1280 = vmatpush2.msra.mxu1 %v1089_v45  ;;  %v1086_v47 = vld [vmem:[#allocation7 + $0x3e8] sm:$0xff]  ;;  %v1048_v45 = vld [vmem:[#allocation7 + $0x2b8] sm:$0xff] }
 0x39a   :  { %1323 = vmatpush2.msra.mxu0 %v1203_v49  ;;  %1359 = vmatprep.subr.mxu1 %v1086_v47  ;;  %v892_v49 = vmul.f32 %v6701_v8, %v6701_v8  ;;  %v1047_v47 = vld [vmem:[#allocation7 + $0x2b0] sm:$0xff] }
 0x39b   :  { %1324 = vmatprep.subr.mxu0 %v1196_v51  ;;  %v893_v51 = vmul.f32 %v6703_v9, %v6703_v9 }
 0x39c   :  { %1325 = vmatpush2.msra.mxu0 %v1195_v53 }
 0x39d   :  { %1326 = vmatprep.subr.mxu0 %v1188_v55 }
 0x39e   :  { %1327 = vmatpush2.msra.mxu0 %v1187_v57 }
 0x39f   :  { %1328 = vmatprep.subr.mxu0 %v1180_v59  ;;  %v6134_v59 = vmov 1966171168  }
 0x3a0   :  { %1329 = vmatpush2.msra.mxu0 %v1179_v11  ;;  %v907_v10 = vunpack.c.l.s4 %v6134_v59  ;;  %v909_v11 = vlaneseq  ;;  %v1023_v59 = vld [vmem:[#allocation7 + $0x1f0] sm:$0xff] }
 0x3a1   :  { %1330 = vmatprep.subr.mxu0 %v1172_v13 }
 0x3a2   :  { %1331 = vmatpush2.msra.mxu0 %v1171_v15  ;;  %v908_v12 = vunpack.c.0.s8 %v907_v10  ;;  %v910_v13 = vshrl.u32 %v909_v11, 7  ;;  %v1014_v10 = vld [vmem:[#allocation7 + $0x1a8] sm:$0xff]  ;;  %v1016_v11 = vld [vmem:[#allocation7 + $0x1b8] sm:$0xff] }
 0x3a3   :  { %1332 = vmatprep.subr.mxu0 %v1164_v17 }
 0x3a4   :  { %1333 = vmatpush2.msra.mxu0 %v1163_v19  ;;  %v6710_v15 = vsub.s32 %v908_v12, %v910_v13  ;;  %v6712_v17 = vsub.s32 0, %v910_v13  ;;  %v6723_v24 = vsub.s32 1, %v910_v13  ;;  %v1013_v12 = vld [vmem:[#allocation7 + $0x1a0] sm:$0xff]  ;;  %v1015_v13 = vld [vmem:[#allocation7 + $0x1b0] sm:$0xff] }
 0x3a5   :  { %1334 = vmatprep.subr.mxu0 %v1156_v21 }
 0x3a6   :  { %1335 = vmatpush2.msra.mxu0 %v1155_v23  ;;  %v925_v20 = vrot.slane %v6701_v8, %v6712_v17  ;;  %v929_v21 = vrot.slane %v6703_v9, %v6712_v17 }
 0x3a7   :  { %1336 = vmatprep.subr.mxu0 %v1148_v25  ;;  %v945_v25 = vld [vmem:[%s8073_s10] sm:$0x3] }
 0x3a8   :  { %1337 = vmatpush2.msra.mxu0 %v1147_v61  ;;  %v930_v61 = vsub.f32 %v6548_v60, %v925_v20  ;;  %v931_v8 = vsub.f32 %v6551_v62, %v929_v21  ;;  %v954_v9 = vrot.slane %v945_v25, %v6723_v24  ;;  %v950_v2 = vrot.slane %v945_v25, %v6712_v17  ;;  %v1078_v60 = vld [vmem:[#allocation7 + $0x3a8] sm:$0xff]  ;;  %v1080_v62 = vld [vmem:[#allocation7 + $0x3b8] sm:$0xff] }
 0x3a9   :  { %1338 = vmatprep.subr.mxu0 %v1140_v1  ;;  %v998_v20 = vld [vmem:[#allocation7 + $0x128] sm:$0xff]  ;;  %v1000_v21 = vld [vmem:[#allocation7 + $0x138] sm:$0xff] }
 0x3aa   :  { %1339 = vmatpush2.msra.mxu0 %v1139_v3  ;;  %v990_v25 = vld [vmem:[#allocation7 + $0xe8] sm:$0xff] }
 0x3ab   :  { %1340 = vmatprep.subr.mxu0 %v1132_v5 }
 0x3ac   :  { %1341 = vmatpush2.msra.mxu0 %v1131_v7 }
 0x3ad   :  { %1342 = vmatprep.subr.mxu0 %v1124_v28  ;;  %v1085_v28 = vld [vmem:[#allocation7 + $0x3e0] sm:$0xff] }
 0x3ae   :  { %1343 = vmatpush2.msra.mxu0 %v1123_v30  ;;  %v1077_v30 = vld [vmem:[#allocation7 + $0x3a0] sm:$0xff] }
 0x3af   :  { %1344 = vmatprep.subr.mxu0 %v1116_v32  ;;  %v1070_v32 = vld [vmem:[#allocation7 + $0x368] sm:$0xff] }
 0x3b0   :  { %1345 = vmatpush2.msra.mxu0 %v1115_v34  ;;  %v1069_v34 = vld [vmem:[#allocation7 + $0x360] sm:$0xff] }
 0x3b1   :  { %1346 = vmatprep.subr.mxu0 %v1108_v36  ;;  %v1062_v36 = vld [vmem:[#allocation7 + $0x328] sm:$0xff] }
 0x3b2   :  { %1347 = vmatpush2.msra.mxu0 %v1107_v38  ;;  %v1061_v38 = vld [vmem:[#allocation7 + $0x320] sm:$0xff] }
 0x3b3   :  { %1348 = vmatprep.subr.mxu0 %v1100_v40  ;;  %v1054_v40 = vld [vmem:[#allocation7 + $0x2e8] sm:$0xff] }
 0x3b4   :  { %1349 = vmatpush2.msra.mxu0 %v1099_v42  ;;  %v1053_v42 = vld [vmem:[#allocation7 + $0x2e0] sm:$0xff] }
 0x3b5   :  { %1350 = vmatprep.subr.mxu0 %v1092_v44  ;;  %v1046_v44 = vld [vmem:[#allocation7 + $0x2a8] sm:$0xff] }
 0x3b6   :  { %1351 = vmatpush2.msra.mxu0 %v1091_v46  ;;  %v1045_v46 = vld [vmem:[#allocation7 + $0x2a0] sm:$0xff] }
 0x3b7   :  { %1430 = vmatprep.subr.mxu0 %v1088_v48  ;;  %v1038_v48 = vld [vmem:[#allocation7 + $0x268] sm:$0xff] }
 0x437   :  { %v887_v50 = vpop.f32.mrf.mxu0 }
 0x438   :  { %v894_v52 = vsub.f32 %v887_v50, %v892_v49  ;;  %v1040_v49 = vld [vmem:[#allocation7 + $0x278] sm:$0xff]  ;;  %v1037_v50 = vld [vmem:[#allocation7 + $0x260] sm:$0xff] }
 0x439   :  { %v889_v53 = vpop.f32.mrf.mxu0 }
 0x43a   :  { %v896_v54 = vmax.f32 %v894_v52, 0.0  ;;  %v895_v55 = vsub.f32 %v889_v53, %v893_v51  ;;  %v1039_v51 = vld [vmem:[#allocation7 + $0x270] sm:$0xff]  ;;  %v1030_v52 = vld [vmem:[#allocation7 + $0x228] sm:$0xff]  ;;  %v1032_v53 = vld [vmem:[#allocation7 + $0x238] sm:$0xff] }
 0x43c   :  { %v899_v56 = vadd.f32 1e-05, %v896_v54  ;;  %v897_v57 = vmax.f32 %v895_v55, 0.0  ;;  %v1029_v54 = vld [vmem:[#allocation7 + $0x220] sm:$0xff]  ;;  %v1031_v55 = vld [vmem:[#allocation7 + $0x230] sm:$0xff] }
 0x43e   :  { %v900_v58 = vadd.f32 1e-05, %v897_v57  ;;  %5962 = vrsqrt.f32 %v899_v56  ;;  %v1022_v56 = vld [vmem:[#allocation7 + $0x1e8] sm:$0xff]  ;;  %v1024_v57 = vld [vmem:[#allocation7 + $0x1f8] sm:$0xff] }
 0x440   :  { %5964 = vrsqrt.f32 %v900_v58  ;;  %v1021_v58 = vld [vmem:[#allocation7 + $0x1e0] sm:$0xff] }
 0x44b   :  { %v5963_v14 = vpop.eup %5962 }
 0x44d   :  { %v5965_v16 = vpop.eup %5964 }
 0x44e   :  { %v905_v18 = vcombine.low %v5963_v14, %v5965_v16  ;;  %v1006_v14 = vld [vmem:[#allocation7 + $0x168] sm:$0xff]  ;;  %v1008_v16 = vld [vmem:[#allocation7 + $0x178] sm:$0xff] }
 0x450   :  { %v912_v19 = vrot.slane %v905_v18, %v6710_v15  ;;  %v1005_v18 = vld [vmem:[#allocation7 + $0x160] sm:$0xff] }
 0x452   :  { %v919_v23 = vrot.slane %v912_v19, %v6710_v15  ;;  %v1007_v19 = vld [vmem:[#allocation7 + $0x170] sm:$0xff] }
 0x454   :  { %v921_v26 = vmul.f32 %v919_v23, %v898_v22  ;;  %v997_v22 = vld [vmem:[#allocation7 + $0x120] sm:$0xff]  ;;  %v999_v23 = vld [vmem:[#allocation7 + $0x130] sm:$0xff] }
 0x456   :  { %v940_v63 = vrot.slane %v921_v26, %v6723_v24  ;;  %v936_v1 = vrot.slane %v921_v26, %v6712_v17  ;;  %v992_v26 = vld [vmem:[#allocation7 + $0xf8] sm:$0xff] }
 0x458   :  { %v944_v3 = vmul.f32 %v940_v63, %v931_v8  ;;  %v943_v4 = vmul.f32 %v936_v1, %v930_v61  ;;  %v989_v61 = vld [vmem:[#allocation7 + $0xe0] sm:$0xff]  ;;  %v991_v8 = vld [vmem:[#allocation7 + $0xf0] sm:$0xff]  ;;  %v982_v63 = vld [vmem:[#allocation7 + $0xa8] sm:$0xff] }
 0x459   :  { %v981_v1 = vld [vmem:[#allocation7 + $0xa0] sm:$0xff] }
 0x45a   :  { %v958_v5 = vadd.f32 %v954_v9, %v944_v3  ;;  %v957_v6 = vadd.f32 %v950_v2, %v943_v4  ;;  %v984_v9 = vld [vmem:[#allocation7 + $0xb8] sm:$0xff]  ;;  %v983_v2 = vld [vmem:[#allocation7 + $0xb0] sm:$0xff]  ;;  %v974_v3 = vld [vmem:[#allocation7 + $0x68] sm:$0xff] }
 0x45b   :  { %v976_v4 = vld [vmem:[#allocation7 + $0x78] sm:$0xff] }
 0x45c   :  { %v960_v7 = vmax.f32 %v958_v5, 0.0  ;;  %v6734_v27 = vmax.f32 %v957_v6, 0.0  ;;  %v973_v5 = vld [vmem:[#allocation7 + $0x60] sm:$0xff]  ;;  %v975_v6 = vld [vmem:[#allocation7 + $0x70] sm:$0xff] }
 0x45e   :  { %1281 = vmatprep.mubr.f32.mxu1 %v960_v7  ;;  %1352 = vmatprep.mubr.f32.mxu0 %v960_v7 }
 0x45f   :  { %1282 = vmatmul.mubr.f32.vlgmr.msra.gmra.mxu1 %v6734_v27  ;;  %1353 = vmatmul.mubr.f32.vlgmr.msra.gmra.mxu0 %v6734_v27 }
 0x460   :  { %1360 = vmatpush1.msra.mxu1 %v1085_v28  ;;  %1431 = vmatpush1.msra.mxu0 %v1087_v29  ;;  %v968_v28 = vld [vmem:[#allocation7 + $0x38] sm:$0xff]  ;;  %v965_v29 = vld [vmem:[#allocation7 + $0x20] sm:$0xff] }
 0x461   :  { %1361 = vmatprep.subr.mxu1 %v1078_v60  ;;  %1423 = vmatprep.mubr.f32.mxu1 %v960_v7  ;;  %v967_v60 = vld [vmem:[#allocation7 + $0x30] sm:$0xff] }
 0x462   :  { %1432 = vmatprep.subr.mxu0 %v1080_v62  ;;  %1494 = vmatprep.mubr.f32.mxu0 %v960_v7  ;;  %v966_v7 = vld [vmem:[#allocation7 + $0x28] sm:$0xff] }
 0x463   :  { %1362 = vmatpush1.msra.mxu1 %v1077_v30  ;;  %1433 = vmatpush1.msra.mxu0 %v1079_v31  ;;  %v1214_v62 = vld [vmem:[#allocation7 + $0x7e8] sm:$0xff]  ;;  %v1216_v30 = vld [vmem:[#allocation7 + $0x7f8] sm:$0xff]  ;;  %v1213_v31 = vld [vmem:[#allocation7 + $0x7e0] sm:$0xff] }
 0x464   :  { %1363 = vmatprep.subr.mxu1 %v1070_v32  ;;  %1434 = vmatprep.subr.mxu0 %v1072_v33  ;;  %v1215_v32 = vld [vmem:[#allocation7 + $0x7f0] sm:$0xff]  ;;  %v1206_v33 = vld [vmem:[#allocation7 + $0x7a8] sm:$0xff] }
 0x465   :  { %1364 = vmatpush1.msra.mxu1 %v1069_v34  ;;  %1435 = vmatpush1.msra.mxu0 %v1071_v35  ;;  %v1208_v34 = vld [vmem:[#allocation7 + $0x7b8] sm:$0xff]  ;;  %v1205_v35 = vld [vmem:[#allocation7 + $0x7a0] sm:$0xff] }
 0x466   :  { %1365 = vmatprep.subr.mxu1 %v1062_v36  ;;  %1436 = vmatprep.subr.mxu0 %v1064_v37  ;;  %v1207_v36 = vld [vmem:[#allocation7 + $0x7b0] sm:$0xff]  ;;  %v1198_v37 = vld [vmem:[#allocation7 + $0x768] sm:$0xff] }
 0x467   :  { %1366 = vmatpush1.msra.mxu1 %v1061_v38  ;;  %1437 = vmatpush1.msra.mxu0 %v1063_v39  ;;  %v1200_v38 = vld [vmem:[#allocation7 + $0x778] sm:$0xff]  ;;  %v1197_v39 = vld [vmem:[#allocation7 + $0x760] sm:$0xff] }
 0x468   :  { %1367 = vmatprep.subr.mxu1 %v1054_v40  ;;  %1438 = vmatprep.subr.mxu0 %v1056_v41  ;;  %v1199_v40 = vld [vmem:[#allocation7 + $0x770] sm:$0xff]  ;;  %v1190_v41 = vld [vmem:[#allocation7 + $0x728] sm:$0xff] }
 0x469   :  { %1368 = vmatpush1.msra.mxu1 %v1053_v42  ;;  %1439 = vmatpush1.msra.mxu0 %v1055_v43  ;;  %v1192_v42 = vld [vmem:[#allocation7 + $0x738] sm:$0xff]  ;;  %v1189_v43 = vld [vmem:[#allocation7 + $0x720] sm:$0xff] }
 0x46a   :  { %1369 = vmatprep.subr.mxu1 %v1046_v44  ;;  %1440 = vmatprep.subr.mxu0 %v1048_v45  ;;  %v1191_v44 = vld [vmem:[#allocation7 + $0x730] sm:$0xff]  ;;  %v1182_v45 = vld [vmem:[#allocation7 + $0x6e8] sm:$0xff] }
 0x46b   :  { %1370 = vmatpush1.msra.mxu1 %v1045_v46  ;;  %1441 = vmatpush1.msra.mxu0 %v1047_v47  ;;  %v1184_v46 = vld [vmem:[#allocation7 + $0x6f8] sm:$0xff]  ;;  %v1181_v47 = vld [vmem:[#allocation7 + $0x6e0] sm:$0xff] }
 0x46c   :  { %1371 = vmatprep.subr.mxu1 %v1038_v48  ;;  %1442 = vmatprep.subr.mxu0 %v1040_v49  ;;  %v1183_v48 = vld [vmem:[#allocation7 + $0x6f0] sm:$0xff]  ;;  %v1174_v49 = vld [vmem:[#allocation7 + $0x6a8] sm:$0xff] }
 0x46d   :  { %1372 = vmatpush1.msra.mxu1 %v1037_v50  ;;  %1443 = vmatpush1.msra.mxu0 %v1039_v51  ;;  %v1176_v50 = vld [vmem:[#allocation7 + $0x6b8] sm:$0xff]  ;;  %v1173_v51 = vld [vmem:[#allocation7 + $0x6a0] sm:$0xff] }
 0x46e   :  { %1373 = vmatprep.subr.mxu1 %v1030_v52  ;;  %1444 = vmatprep.subr.mxu0 %v1032_v53  ;;  %v1175_v52 = vld [vmem:[#allocation7 + $0x6b0] sm:$0xff]  ;;  %v1166_v53 = vld [vmem:[#allocation7 + $0x668] sm:$0xff] }
 0x46f   :  { %1374 = vmatpush1.msra.mxu1 %v1029_v54  ;;  %1445 = vmatpush1.msra.mxu0 %v1031_v55  ;;  %v1168_v54 = vld [vmem:[#allocation7 + $0x678] sm:$0xff]  ;;  %v1165_v55 = vld [vmem:[#allocation7 + $0x660] sm:$0xff] }
 0x470   :  { %1375 = vmatprep.subr.mxu1 %v1022_v56  ;;  %1446 = vmatprep.subr.mxu0 %v1024_v57  ;;  %v1167_v56 = vld [vmem:[#allocation7 + $0x670] sm:$0xff]  ;;  %v1158_v57 = vld [vmem:[#allocation7 + $0x628] sm:$0xff] }
 0x471   :  { %1376 = vmatpush1.msra.mxu1 %v1021_v58  ;;  %1447 = vmatpush1.msra.mxu0 %v1023_v59  ;;  %v1160_v58 = vld [vmem:[#allocation7 + $0x638] sm:$0xff]  ;;  %v1157_v59 = vld [vmem:[#allocation7 + $0x620] sm:$0xff] }
 0x472   :  { %1377 = vmatprep.subr.mxu1 %v1014_v10  ;;  %1448 = vmatprep.subr.mxu0 %v1016_v11  ;;  %v1159_v10 = vld [vmem:[#allocation7 + $0x630] sm:$0xff]  ;;  %v1150_v11 = vld [vmem:[#allocation7 + $0x5e8] sm:$0xff] }
 0x473   :  { %1378 = vmatpush1.msra.mxu1 %v1013_v12  ;;  %1449 = vmatpush1.msra.mxu0 %v1015_v13  ;;  %v1152_v12 = vld [vmem:[#allocation7 + $0x5f8] sm:$0xff]  ;;  %v1149_v13 = vld [vmem:[#allocation7 + $0x5e0] sm:$0xff] }
 0x474   :  { %1379 = vmatprep.subr.mxu1 %v1006_v14  ;;  %1450 = vmatprep.subr.mxu0 %v1008_v16  ;;  %v1151_v14 = vld [vmem:[#allocation7 + $0x5f0] sm:$0xff]  ;;  %v1142_v16 = vld [vmem:[#allocation7 + $0x5a8] sm:$0xff] }
 0x475   :  { %1380 = vmatpush1.msra.mxu1 %v1005_v18  ;;  %1451 = vmatpush1.msra.mxu0 %v1007_v19  ;;  %v1144_v18 = vld [vmem:[#allocation7 + $0x5b8] sm:$0xff]  ;;  %v1141_v19 = vld [vmem:[#allocation7 + $0x5a0] sm:$0xff] }
 0x476   :  { %1381 = vmatprep.subr.mxu1 %v998_v20  ;;  %1452 = vmatprep.subr.mxu0 %v1000_v21  ;;  %v1143_v20 = vld [vmem:[#allocation7 + $0x5b0] sm:$0xff]  ;;  %v1134_v21 = vld [vmem:[#allocation7 + $0x568] sm:$0xff] }
 0x477   :  { %1382 = vmatpush1.msra.mxu1 %v997_v22  ;;  %1453 = vmatpush1.msra.mxu0 %v999_v23  ;;  %v1136_v22 = vld [vmem:[#allocation7 + $0x578] sm:$0xff]  ;;  %v1133_v23 = vld [vmem:[#allocation7 + $0x560] sm:$0xff] }
 0x478   :  { %1383 = vmatprep.subr.mxu1 %v990_v25  ;;  %1454 = vmatprep.subr.mxu0 %v992_v26  ;;  %v1135_v25 = vld [vmem:[#allocation7 + $0x570] sm:$0xff]  ;;  %v1126_v26 = vld [vmem:[#allocation7 + $0x528] sm:$0xff] }
 0x479   :  { %1384 = vmatpush1.msra.mxu1 %v989_v61  ;;  %1455 = vmatpush1.msra.mxu0 %v991_v8  ;;  %v1128_v61 = vld [vmem:[#allocation7 + $0x538] sm:$0xff]  ;;  %v1125_v8 = vld [vmem:[#allocation7 + $0x520] sm:$0xff] }
 0x47a   :  { %1385 = vmatprep.subr.mxu1 %v982_v63  ;;  %1456 = vmatprep.subr.mxu0 %v984_v9  ;;  %v1127_v63 = vld [vmem:[#allocation7 + $0x530] sm:$0xff]  ;;  %v1118_v9 = vld [vmem:[#allocation7 + $0x4e8] sm:$0xff] }
 0x47b   :  { %1386 = vmatpush1.msra.mxu1 %v981_v1  ;;  %1457 = vmatpush1.msra.mxu0 %v983_v2  ;;  %v1120_v1 = vld [vmem:[#allocation7 + $0x4f8] sm:$0xff]  ;;  %v1117_v2 = vld [vmem:[#allocation7 + $0x4e0] sm:$0xff] }
 0x47c   :  { %1387 = vmatprep.subr.mxu1 %v974_v3  ;;  %1458 = vmatprep.subr.mxu0 %v976_v4  ;;  %v1119_v3 = vld [vmem:[#allocation7 + $0x4f0] sm:$0xff]  ;;  %v1110_v4 = vld [vmem:[#allocation7 + $0x4a8] sm:$0xff] }
 0x47d   :  { %1388 = vmatpush1.msra.mxu1 %v973_v5  ;;  %1459 = vmatpush1.msra.mxu0 %v975_v6  ;;  %v1112_v5 = vld [vmem:[#allocation7 + $0x4b8] sm:$0xff]  ;;  %v1109_v6 = vld [vmem:[#allocation7 + $0x4a0] sm:$0xff] }
 0x47e   :  { %1389 = vmatprep.subr.mxu1 %v966_v7  ;;  %1460 = vmatprep.subr.mxu0 %v968_v28  ;;  %v1111_v7 = vld [vmem:[#allocation7 + $0x4b0] sm:$0xff]  ;;  %v1102_v28 = vld [vmem:[#allocation7 + $0x468] sm:$0xff] }
 0x47f   :  { %1390 = vmatpush1.msra.mxu1 %v965_v29  ;;  %1461 = vmatpush1.msra.mxu0 %v967_v60  ;;  %v1104_v29 = vld [vmem:[#allocation7 + $0x478] sm:$0xff]  ;;  %v1101_v60 = vld [vmem:[#allocation7 + $0x460] sm:$0xff] }
 0x480   :  { %1391 = vmatprep.subr.mxu1 %v1214_v62  ;;  %1462 = vmatprep.subr.mxu0 %v1216_v30  ;;  %v1103_v62 = vld [vmem:[#allocation7 + $0x470] sm:$0xff]  ;;  %v1094_v30 = vld [vmem:[#allocation7 + $0x428] sm:$0xff] }
 0x481   :  { %1392 = vmatpush2.msra.mxu1 %v1213_v31  ;;  %1463 = vmatpush2.msra.mxu0 %v1215_v32  ;;  %v1096_v31 = vld [vmem:[#allocation7 + $0x438] sm:$0xff]  ;;  %v1093_v32 = vld [vmem:[#allocation7 + $0x420] sm:$0xff] }
 0x482   :  { %1393 = vmatprep.subr.mxu1 %v1206_v33  ;;  %1464 = vmatprep.subr.mxu0 %v1208_v34  ;;  %v1095_v33 = vld [vmem:[#allocation7 + $0x430] sm:$0xff]  ;;  %v6744_v34 = vld [vmem:[%s8074_s29 + $0xf8] sm:$0xff] }
 0x483   :  { %1394 = vmatpush2.msra.mxu1 %v1205_v35  ;;  %1465 = vmatpush2.msra.mxu0 %v1207_v36  ;;  %v6749_v35 = vld [vmem:[%s8074_s29 + $0x78] sm:$0xff]  ;;  %v6754_v36 = vld [vmem:[%s8074_s29 + $0xf0] sm:$0xff] }
 0x484   :  { %1395 = vmatprep.subr.mxu1 %v1198_v37  ;;  %1466 = vmatprep.subr.mxu0 %v1200_v38  ;;  %v6766_v37 = vld [vmem:[%s8074_s29 + $0xe8] sm:$0xff] }
 0x485   :  { %1396 = vmatpush2.msra.mxu1 %v1197_v39  ;;  %1467 = vmatpush2.msra.mxu0 %v1199_v40  ;;  %v6772_v38 = vld [vmem:[%s8074_s29 + $0x68] sm:$0xff]  ;;  %v6778_v39 = vld [vmem:[%s8074_s29 + $0xe0] sm:$0xff] }
 0x486   :  { %1397 = vmatprep.subr.mxu1 %v1190_v41  ;;  %1468 = vmatprep.subr.mxu0 %v1192_v42  ;;  %v6784_v40 = vld [vmem:[%s8074_s29 + $0x60] sm:$0xff]  ;;  %v6790_v41 = vld [vmem:[%s8074_s29 + $0xd8] sm:$0xff] }
 0x487   :  { %1398 = vmatpush2.msra.mxu1 %v1189_v43  ;;  %1469 = vmatpush2.msra.mxu0 %v1191_v44  ;;  %v6796_v42 = vld [vmem:[%s8074_s29 + $0x58] sm:$0xff] }
 0x488   :  { %1399 = vmatprep.subr.mxu1 %v1182_v45  ;;  %1470 = vmatprep.subr.mxu0 %v1184_v46 }
 0x489   :  { %1400 = vmatpush2.msra.mxu1 %v1181_v47  ;;  %1471 = vmatpush2.msra.mxu0 %v1183_v48 }
 0x48a   :  { %1401 = vmatprep.subr.mxu1 %v1174_v49  ;;  %1472 = vmatprep.subr.mxu0 %v1176_v50 }
 0x48b   :  { %1402 = vmatpush2.msra.mxu1 %v1173_v51  ;;  %1473 = vmatpush2.msra.mxu0 %v1175_v52  ;;  %v1509_v51 = vld [vmem:[%s8075_s8] sm:$0xff]  ;;  %v1510_v52 = vld [vmem:[%s8075_s8 + $0x8] sm:$0xff] }
 0x48c   :  { %1403 = vmatprep.subr.mxu1 %v1166_v53  ;;  %1474 = vmatprep.subr.mxu0 %v1168_v54  ;;  %v6814_v53 = vld [vmem:[%s8074_s29 + $0xd0] sm:$0xff] }
 0x48d   :  { %1404 = vmatpush2.msra.mxu1 %v1165_v55  ;;  %1475 = vmatpush2.msra.mxu0 %v1167_v56  ;;  %v6820_v54 = vld [vmem:[%s8074_s29 + $0x50] sm:$0xff]  ;;  %v6826_v55 = vld [vmem:[%s8074_s29 + $0xc8] sm:$0xff] }
 0x48e   :  { %1405 = vmatprep.subr.mxu1 %v1158_v57  ;;  %1476 = vmatprep.subr.mxu0 %v1160_v58  ;;  %v6832_v56 = vld [vmem:[%s8074_s29 + $0x48] sm:$0xff]  ;;  %v6838_v57 = vld [vmem:[%s8074_s29 + $0xc0] sm:$0xff] }
 0x48f   :  { %1406 = vmatpush2.msra.mxu1 %v1157_v59  ;;  %1477 = vmatpush2.msra.mxu0 %v1159_v10  ;;  %v6844_v58 = vld [vmem:[%s8074_s29 + $0x40] sm:$0xff]  ;;  %v6850_v59 = vld [vmem:[%s8074_s29 + $0xb8] sm:$0xff] }
 0x490   :  { %1407 = vmatprep.subr.mxu1 %v1150_v11  ;;  %1478 = vmatprep.subr.mxu0 %v1152_v12  ;;  %v6856_v10 = vld [vmem:[%s8074_s29 + $0x38] sm:$0xff]  ;;  %v6862_v11 = vld [vmem:[%s8074_s29 + $0xb0] sm:$0xff] }
 0x491   :  { %1408 = vmatpush2.msra.mxu1 %v1149_v13  ;;  %1479 = vmatpush2.msra.mxu0 %v1151_v14  ;;  %v6868_v12 = vld [vmem:[%s8074_s29 + $0x30] sm:$0xff]  ;;  %v6874_v13 = vld [vmem:[%s8074_s29 + $0xa8] sm:$0xff] }
 0x492   :  { %1409 = vmatprep.subr.mxu1 %v1142_v16  ;;  %1480 = vmatprep.subr.mxu0 %v1144_v18  ;;  %v6880_v14 = vld [vmem:[%s8074_s29 + $0x28] sm:$0xff]  ;;  %v6886_v16 = vld [vmem:[%s8074_s29 + $0xa0] sm:$0xff] }
 0x493   :  { %1410 = vmatpush2.msra.mxu1 %v1141_v19  ;;  %1481 = vmatpush2.msra.mxu0 %v1143_v20  ;;  %v6892_v18 = vld [vmem:[%s8074_s29 + $0x20] sm:$0xff]  ;;  %v6898_v19 = vld [vmem:[%s8074_s29 + $0x98] sm:$0xff] }
 0x494   :  { %1411 = vmatprep.subr.mxu1 %v1134_v21  ;;  %1482 = vmatprep.subr.mxu0 %v1136_v22  ;;  %v6903_v20 = vld [vmem:[%s8074_s29 + $0x18] sm:$0xff]  ;;  %v6908_v21 = vld [vmem:[%s8074_s29 + $0x90] sm:$0xff] }
 0x495   :  { %1412 = vmatpush2.msra.mxu1 %v1133_v23  ;;  %1483 = vmatpush2.msra.mxu0 %v1135_v25  ;;  %v6914_v22 = vld [vmem:[%s8074_s29 + $0x10] sm:$0xff]  ;;  %v6920_v23 = vld [vmem:[%s8074_s29 + $0x88] sm:$0xff] }
 0x496   :  { %1413 = vmatprep.subr.mxu1 %v1126_v26  ;;  %1484 = vmatprep.subr.mxu0 %v1128_v61  ;;  %v6926_v25 = vld [vmem:[%s8074_s29 + $0x8] sm:$0xff]  ;;  %v6932_v26 = vld [vmem:[%s8074_s29 + $0x80] sm:$0xff] }
 0x497   :  { %1414 = vmatpush2.msra.mxu1 %v1125_v8  ;;  %1485 = vmatpush2.msra.mxu0 %v1127_v63  ;;  %v6938_v61 = vld [vmem:[%s8074_s29] sm:$0xff]  ;;  %v1743_v8 = vld [vmem:[%s8076_s11 + $0x38] sm:$0xff]  ;;  %v1742_v63 = vld [vmem:[%s8076_s11 + $0x30] sm:$0xff] }
 0x498   :  { %1415 = vmatprep.subr.mxu1 %v1118_v9  ;;  %1486 = vmatprep.subr.mxu0 %v1120_v1  ;;  %v1741_v9 = vld [vmem:[%s8076_s11 + $0x28] sm:$0xff]  ;;  %v1740_v1 = vld [vmem:[%s8076_s11 + $0x20] sm:$0xff] }
 0x499   :  { %1416 = vmatpush2.msra.mxu1 %v1117_v2  ;;  %1487 = vmatpush2.msra.mxu0 %v1119_v3 }
 0x49a   :  { %1417 = vmatprep.subr.mxu1 %v1110_v4  ;;  %1488 = vmatprep.subr.mxu0 %v1112_v5 }
 0x49b   :  { %1418 = vmatpush2.msra.mxu1 %v1109_v6  ;;  %1489 = vmatpush2.msra.mxu0 %v1111_v7 }
 0x49c   :  { %1419 = vmatprep.subr.mxu1 %v1102_v28  ;;  %1490 = vmatprep.subr.mxu0 %v1104_v29 }
 0x49d   :  { %1420 = vmatpush2.msra.mxu1 %v1101_v60  ;;  %1491 = vmatpush2.msra.mxu0 %v1103_v62 }
 0x49e   :  { %1421 = vmatprep.subr.mxu1 %v1094_v30  ;;  %1492 = vmatprep.subr.mxu0 %v1096_v31 }
 0x49f   :  { %1422 = vmatpush2.msra.mxu1 %v1093_v32  ;;  %1493 = vmatpush2.msra.mxu0 %v1095_v33 }
 0x4a0   :  { %1424 = vmatmul.mubr.f32.vlgmr.msra.gmra.mxu1 %v6734_v27  ;;  %1495 = vmatmul.mubr.f32.vlgmr.msra.gmra.mxu0 %v6734_v27  ;;  %v6760_v27 = vld [vmem:[%s8074_s29 + $0x70] sm:$0xff] }
 0x4a1   :  { %1589 = vmatprep.mubr.f32.mxu1 %v6133_v0  ;;  %5744 = vmatprep.subr.mxu0 %v6744_v34 }
 0x4a2   :  { %5745 = vmatpush3.msra.mxu0 %v6749_v35 }
 0x4a3   :  { %5746 = vmatprep.subr.mxu0 %v6754_v36 }
 0x4a4   :  { %5747 = vmatpush3.msra.mxu0 %v6760_v27 }
 0x4a5   :  { %5748 = vmatprep.subr.mxu0 %v6766_v37 }
 0x4a6   :  { %5749 = vmatpush3.msra.mxu0 %v6772_v38 }
 0x4a7   :  { %5750 = vmatprep.subr.mxu0 %v6778_v39 }
 0x4a8   :  { %5751 = vmatpush3.msra.mxu0 %v6784_v40 }
 0x4a9   :  { %5752 = vmatprep.subr.mxu0 %v6790_v41 }
 0x4aa   :  { %5753 = vmatpush3.msra.mxu0 %v6796_v42 }
 0x4ab   :  { %5754 = vmatprep.subr.mxu0 %v6814_v53 }
 0x4ac   :  { %5755 = vmatpush3.msra.mxu0 %v6820_v54 }
 0x4ad   :  { %5756 = vmatprep.subr.mxu0 %v6826_v55 }
 0x4ae   :  { %5757 = vmatpush3.msra.mxu0 %v6832_v56 }
 0x4af   :  { %5758 = vmatprep.subr.mxu0 %v6838_v57 }
 0x4b0   :  { %5759 = vmatpush3.msra.mxu0 %v6844_v58 }
 0x4b1   :  { %5760 = vmatprep.subr.mxu0 %v6850_v59 }
 0x4b2   :  { %5761 = vmatpush3.msra.mxu0 %v6856_v10 }
 0x4b3   :  { %5762 = vmatprep.subr.mxu0 %v6862_v11 }
 0x4b4   :  { %5763 = vmatpush3.msra.mxu0 %v6868_v12 }
 0x4b5   :  { %5764 = vmatprep.subr.mxu0 %v6874_v13 }
 0x4b6   :  { %5765 = vmatpush3.msra.mxu0 %v6880_v14 }
 0x4b7   :  { %5766 = vmatprep.subr.mxu0 %v6886_v16 }
 0x4b8   :  { %5767 = vmatpush3.msra.mxu0 %v6892_v18 }
 0x4b9   :  { %5768 = vmatprep.subr.mxu0 %v6898_v19 }
 0x4ba   :  { %5769 = vmatpush3.msra.mxu0 %v6903_v20 }
 0x4bb   :  { %5770 = vmatprep.subr.mxu0 %v6908_v21 }
 0x4bc   :  { %5771 = vmatpush3.msra.mxu0 %v6914_v22 }
 0x4bd   :  { %5772 = vmatprep.subr.mxu0 %v6920_v23 }
 0x4be   :  { %5773 = vmatpush3.msra.mxu0 %v6926_v25 }
 0x4bf   :  { %5774 = vmatprep.subr.mxu0 %v6932_v26 }
 0x4c0   :  { %5775 = vmatpush3.msra.mxu0 %v6938_v61 }
 0x4c1   :  { %1915 = vmatprep.subr.mxu0 %v1743_v8 }
 0x51f   :  { %v1283_v43 = vpop.f32.mrf.mxu1  ;;  %v1354_v44 = vpop.f32.mrf.mxu0 }
 0x521   :  { %v1285_v45 = vpop.f32.mrf.mxu1  ;;  %v1356_v46 = vpop.f32.mrf.mxu0 }
 0x560   :  { %v1425_v47 = vpop.f32.mrf.mxu1  ;;  %v1496_v48 = vpop.f32.mrf.mxu0 }
 0x562   :  { %v1498_v49 = vpop.f32.mrf.mxu0  ;;  %v1427_v50 = vpop.f32.mrf.mxu1 }
 0x563   :  { %1549 = vmatprep.subr.mxu1 %v1498_v49  ;;  %v1737_v49 = vld [vmem:[%s8076_s11 + $0x8] sm:$0xff] }
 0x564   :  { %1550 = vmatpush1.msra.mxu1 %v1496_v48  ;;  %v1738_v48 = vld [vmem:[%s8076_s11 + $0x10] sm:$0xff] }
 0x565   :  { %1551 = vmatprep.subr.mxu1 %v1427_v50  ;;  %v1736_v50 = vld [vmem:[%s8076_s11] sm:$0xff] }
 0x566   :  { %1552 = vmatpush1.msra.mxu1 %v1425_v47  ;;  %v1739_v47 = vld [vmem:[%s8076_s11 + $0x18] sm:$0xff]  ;;  %s6135_s11 = smov [#allocation3]  }
 0x567   :  { %1553 = vmatprep.subr.mxu1 %v1356_v46  ;;  %s104_s7 = sshll.u32 %s6135_s11, 4  ;;  %s105_s7 = int_to_ptr.vmem [resolvable:$true] %s104_s7 }
 0x568   :  { %1554 = vmatpush1.msra.mxu1 %v1354_v44  ;;  %s6070_s4 = scalar_lea.vmem %s105_s7, 32768  ;;  %p6075_p6 = scmp.lt.s32.totalorder %s105_s7, %s105_s7 }
 0x569   :  { %1555 = vmatprep.subr.mxu1 %v1285_v45  ;;  %p6071_p5 = scmp.ne.s32.totalorder %s105_s7, %s6070_s4  ;;  %p6076_p7 = scmp.lt.s32.totalorder %s6070_s4, %s6070_s4 }
 0x56a   :  { %1556 = vmatpush1.msra.mxu1 %v1283_v43 }
 0x56b   :  { %5659 = vmatmul.mubr.msk.f32.vlgmr.msra.gmra.mxu1 %vm454_vm1, %v1509_v51  ;;  %1771 = vmatprep.subr.mxu1 %v1743_v8  ;;  %p6077_p8 = por %p6076_p7, %p6075_p6 }
 0x56c   :  { %1595 = vmatprep.mubr.f32.mxu1 %v6133_v0  ;;  %1772 = vmatpush1.msra.mxu1 %v1742_v63 }
 0x56d   :  { %1773 = vmatprep.subr.mxu1 %v1741_v9  ;;  %p6078_p9 = pnand %p6077_p8, %p6071_p5 }
 0x56e   :  { %1774 = vmatpush1.msra.mxu1 %v1740_v1 }
 0x56f   :  { %5660 = vmatmul.mubr.msk.f32.gmra.mxu1 %vm454_vm1, %v1510_v52  ;;  %1775 = vmatprep.subr.mxu1 %v1739_v47 }
 0x570   :  { %1811 = vmatprep.mubr.f32.mxu1 %v6133_v0  ;;  %1776 = vmatpush1.msra.mxu1 %v1738_v48 }
 0x571   :  { %1777 = vmatprep.subr.mxu1 %v1737_v49 }
 0x572   :  { %1778 = vmatpush1.msra.mxu1 %v1736_v50 }
 0x573   :  { %5779 = vmatprep.subr.mxu1 %v6744_v34 }
 0x62b   :  { %v6955_v2 = vpop.f32.mrf.mxu1 }
 0x62d   :  { %v6957_v3 = vpop.f32.mrf.mxu1 }
 0x62e   :  { %v1617_v52 = vmul.f32 %v6957_v3, %v6957_v3 }
 0x62f   :  { %v6959_v4 = vpop.f32.mrf.mxu1 }
 0x630   :  { %v1602_v5 = vadd.f32 %v6959_v4, %v6955_v2  ;;  %v1618_v34 = vmul.f32 %v6959_v4, %v6959_v4 }
 0x631   :  { %v6963_v6 = vpop.f32.mrf.mxu1 }
 0x632   :  { %v1603_v7 = vrot.slane %v1602_v5, 4  ;;  %v1609_v28 = vadd.f32 %v6963_v6, %v6957_v3  ;;  %v1619_v51 = vmul.f32 %v6963_v6, %v6963_v6 }
 0x634   :  { %v1604_v29 = vadd.f32 %v1603_v7, %v1602_v5  ;;  %v1610_v60 = vrot.slane %v1609_v28, 4  ;;  %v1627_v8 = vadd.f32 %v1619_v51, %v1617_v52 }
 0x636   :  { %v1605_v62 = vrot.slane %v1604_v29, 2  ;;  %v1611_v30 = vadd.f32 %v1610_v60, %v1609_v28 }
 0x638   :  { %v1606_v31 = vadd.f32 %v1605_v62, %v1604_v29  ;;  %v1612_v32 = vrot.slane %v1611_v30, 2 }
 0x63a   :  { %v1613_v33 = vadd.f32 %v1612_v32, %v1611_v30  ;;  %v1607_v43 = vrot.slane %v1606_v31, 1  ;;  %v1616_v30 = vmul.f32 %v6955_v2, %v6955_v2 }
 0x63c   :  { %v1614_v44 = vrot.slane %v1613_v33, 1  ;;  %v1608_v46 = vadd.f32 %v1607_v43, %v1606_v31  ;;  %v1620_v31 = vadd.f32 %v1618_v34, %v1616_v30 }
 0x63e   :  { %v1615_v45 = vadd.f32 %v1614_v44, %v1613_v33 }
 0x640   :  { %1730 = vmatprep.mubr.f32.mxu0 %v1615_v45 }
 0x641   :  { %1731 = vmatmul.mubr.f32.vlgmr.msra.gmra.mxu0 %v1608_v46 }
 0x642   :  { %1916 = vmatpush1.msra.mxu0 %v1742_v63  ;;  %1955 = vmatprep.mubr.f32.mxu0 %v6133_v0  ;;  %v1628_v63 = vrot.slane %v1627_v8, 4 }
 0x643   :  { %1917 = vmatprep.subr.mxu0 %v1741_v9 }
 0x644   :  { %1918 = vmatpush1.msra.mxu0 %v1740_v1  ;;  %v1629_v9 = vadd.f32 %v1628_v63, %v1627_v8 }
 0x645   :  { %1919 = vmatprep.subr.mxu0 %v1739_v47 }
 0x646   :  { %1920 = vmatpush1.msra.mxu0 %v1738_v48  ;;  %v1630_v1 = vrot.slane %v1629_v9, 2 }
 0x647   :  { %1921 = vmatprep.subr.mxu0 %v1737_v49 }
 0x648   :  { %1922 = vmatpush1.msra.mxu0 %v1736_v50  ;;  %v1631_v5 = vadd.f32 %v1630_v1, %v1629_v9 }
 0x64a   :  { %v1632_v28 = vrot.slane %v1631_v5, 1 }
 0x64c   :  { %v1633_v62 = vadd.f32 %v1632_v28, %v1631_v5 }
 0x701   :  { %v5776_v7 = vpop.f32.mrf.mxu0 }
 0x703   :  { %v5777_v29 = vpop.f32.mrf.mxu0 }
 0x704   :  { %v5778_v60 = vadd.f32 %v5777_v29, %v5776_v7 }
 0x706   :  { %5661 = vmatmul.mubr.msk.f32.vlgmr.msra.gmra.mxu1 %vm454_vm1, %v5778_v60 }
 0x707   :  { %5780 = vmatpush3.msra.mxu1 %v6749_v35  ;;  %1882 = vmatprep.mubr.f32.mxu1 %v1633_v62  ;;  %v1621_v35 = vrot.slane %v1620_v31, 4 }
 0x708   :  { %5781 = vmatprep.subr.mxu1 %v6754_v36 }
 0x709   :  { %5782 = vmatpush3.msra.mxu1 %v6760_v27  ;;  %v1622_v36 = vadd.f32 %v1621_v35, %v1620_v31 }
 0x70a   :  { %5783 = vmatprep.subr.mxu1 %v6766_v37 }
 0x70b   :  { %5784 = vmatpush3.msra.mxu1 %v6772_v38  ;;  %v1623_v27 = vrot.slane %v1622_v36, 2 }
 0x70c   :  { %5785 = vmatprep.subr.mxu1 %v6778_v39 }
 0x70d   :  { %5786 = vmatpush3.msra.mxu1 %v6784_v40  ;;  %v1624_v37 = vadd.f32 %v1623_v27, %v1622_v36 }
 0x70e   :  { %5787 = vmatprep.subr.mxu1 %v6790_v41 }
 0x70f   :  { %5788 = vmatpush3.msra.mxu1 %v6796_v42  ;;  %v1625_v38 = vrot.slane %v1624_v37, 1 }
 0x710   :  { %5789 = vmatprep.subr.mxu1 %v6814_v53 }
 0x711   :  { %5790 = vmatpush3.msra.mxu1 %v6820_v54  ;;  %v1626_v39 = vadd.f32 %v1625_v38, %v1624_v37 }
 0x712   :  { %5791 = vmatprep.subr.mxu1 %v6826_v55 }
 0x713   :  { %5792 = vmatpush3.msra.mxu1 %v6832_v56 }
 0x714   :  { %5793 = vmatprep.subr.mxu1 %v6838_v57 }
 0x715   :  { %5794 = vmatpush3.msra.mxu1 %v6844_v58 }
 0x716   :  { %5795 = vmatprep.subr.mxu1 %v6850_v59 }
 0x717   :  { %5796 = vmatpush3.msra.mxu1 %v6856_v10 }
 0x718   :  { %5797 = vmatprep.subr.mxu1 %v6862_v11 }
 0x719   :  { %5798 = vmatpush3.msra.mxu1 %v6868_v12 }
 0x71a   :  { %5799 = vmatprep.subr.mxu1 %v6874_v13 }
 0x71b   :  { %5800 = vmatpush3.msra.mxu1 %v6880_v14 }
 0x71c   :  { %5801 = vmatprep.subr.mxu1 %v6886_v16 }
 0x71d   :  { %5802 = vmatpush3.msra.mxu1 %v6892_v18 }
 0x71e   :  { %5803 = vmatprep.subr.mxu1 %v6898_v19 }
 0x71f   :  { %5804 = vmatpush3.msra.mxu1 %v6903_v20 }
 0x720   :  { %5805 = vmatprep.subr.mxu1 %v6908_v21 }
 0x721   :  { %5806 = vmatpush3.msra.mxu1 %v6914_v22 }
 0x722   :  { %5807 = vmatprep.subr.mxu1 %v6920_v23 }
 0x723   :  { %5808 = vmatpush3.msra.mxu1 %v6926_v25 }
 0x724   :  { %5809 = vmatprep.subr.mxu1 %v6932_v26 }
 0x725   :  { %5810 = vmatpush3.msra.mxu1 %v6938_v61 }
 0x726   :  { %1883 = vmatmul.mubr.f32.vlgmr.msra.gmra.mxu1 %v1626_v39 }
 0x7c6   :  { %v1813_v40 = vpop.f32.mrf.mxu1 }
 0x7c8   :  { %v1815_v41 = vpop.f32.mrf.mxu1 }
 0x7e6   :  { %v5811_v42 = vpop.f32.mrf.mxu1 }
 0x7e8   :  { %v5812_v53 = vpop.f32.mrf.mxu1 }
 0x7e9   :  { %v5813_v54 = vadd.f32 %v5812_v53, %v5811_v42 }
 0x7eb   :  { %5662 = vmatmul.mubr.msk.f32.vlgmr.msra.gmra.mxu0 %vm454_vm1, %v5813_v54 }
 0x7ec   :  { %6081 = shalt.err (!%p6078_p9)  }
 0x7ed   :  { %107 = dma.hbm_to_vmem [thread:$0]  %s8032_s14, 32768, %s105_s7, [#allocation6] }
 0x7ee   :  { %s6090_s2 = scalar_lea.vmem %s117_s1, 32768  ;;  %p6095_p11 = scmp.lt.s32.totalorder %s117_s1, %s117_s1 }
 0x7ef   :  { %p6091_p10 = scmp.ne.s32.totalorder %s117_s1, %s6090_s2  ;;  %p6096_p12 = scmp.lt.s32.totalorder %s6090_s2, %s6090_s2 }
 0x7f1   :  { %p6097_p13 = por %p6096_p12, %p6095_p11 }
 0x7f3   :  { %p6098_p0 = pnand %p6097_p13, %p6091_p10 }
 0x7f5   :  { %6101 = shalt.err (!%p6098_p0)  }
 0x7f6   :  { %119 = dma.hbm_to_vmem [thread:$0]  %s8038_s20, 32768, %s117_s1, [#allocation6 + $0x1] }
 0x7f7   :  { %s6137_s9 = smov [#allocation5]  }
 0x7f8   :  { %s128_s30 = sshll.u32 %s6137_s9, 4  ;;  %s129_s30 = int_to_ptr.vmem [resolvable:$true] %s128_s30 }
 0x7f9   :  { %s6110_s3 = scalar_lea.vmem %s129_s30, 32768  ;;  %p6115_p2 = scmp.lt.s32.totalorder %s129_s30, %s129_s30 }
 0x7fa   :  { %p6111_p1 = scmp.ne.s32.totalorder %s129_s30, %s6110_s3  ;;  %p6116_p3 = scmp.lt.s32.totalorder %s6110_s3, %s6110_s3 }
 0x7fc   :  { %p6117_p4 = por %p6116_p3, %p6115_p2 }
 0x7fe   :  { %p6118_p5 = pnand %p6117_p4, %p6111_p1 }
 0x800   :  { %6121 = shalt.err (!%p6118_p5)  }
 0x801   :  { %131 = dma.hbm_to_vmem [thread:$0]  %s8044_s26, 32768, %s129_s30, [#allocation6 + $0x2]  ;;  %v1962_v55 = vmul.f32 %v1813_v40, %v1813_v40  ;;  %v1963_v57 = vmul.f32 %v1815_v41, %v1815_v41  ;;  %v1995_v21 = vrot.slane %v1813_v40, %v6712_v17  ;;  %v1999_v25 = vrot.slane %v1815_v41, %v6712_v17 }
 0x802   :  { %s8077_s0 = sld [smem:[#allocation32_spill]] }
 0x803   :  { %s8078_s12 = sld [smem:[#allocation33_spill]]  ;;  %v2000_v43 = vsub.f32 %v6955_v2, %v1995_v21  ;;  %v2002_v44 = vsub.f32 %v6959_v4, %v1995_v21  ;;  %v2001_v45 = vsub.f32 %v6957_v3, %v1999_v25  ;;  %v2003_v46 = vsub.f32 %v6963_v6, %v1999_v25 }
 0x808   :  { %v1968_v22 = vld [vmem:[%s8077_s0] sm:$0x3] }
 0x809   :  { %v2019_v23 = vld [vmem:[%s8078_s12] sm:$0x3] }
 0x80a   :  { %v2024_v32 = vrot.slane %v2019_v23, %v6712_v17  ;;  %v2028_v33 = vrot.slane %v2019_v23, %v6723_v24 }
 0x8ab   :  { %v1957_v56 = vpop.f32.mrf.mxu0 }
 0x8ac   :  { %v1964_v58 = vsub.f32 %v1957_v56, %v1962_v55 }
 0x8ad   :  { %v1959_v59 = vpop.f32.mrf.mxu0 }
 0x8ae   :  { %v1966_v10 = vmax.f32 %v1964_v58, 0.0  ;;  %v1965_v11 = vsub.f32 %v1959_v59, %v1963_v57 }
 0x8b0   :  { %v1969_v12 = vadd.f32 1e-05, %v1966_v10  ;;  %v1967_v13 = vmax.f32 %v1965_v11, 0.0 }
 0x8b2   :  { %v1970_v14 = vadd.f32 1e-05, %v1967_v13  ;;  %5966 = vrsqrt.f32 %v1969_v12 }
 0x8b4   :  { %5968 = vrsqrt.f32 %v1970_v14 }
 0x8bf   :  { %v5967_v16 = vpop.eup %5966 }
 0x8c1   :  { %v5969_v18 = vpop.eup %5968 }
 0x8c2   :  { %v1975_v19 = vcombine.low %v5967_v16, %v5969_v18 }
 0x8c4   :  { %v1982_v20 = vrot.slane %v1975_v19, %v6710_v15 }
 0x8c6   :  { %v1989_v26 = vrot.slane %v1982_v20, %v6710_v15 }
 0x8c8   :  { %v1991_v61 = vmul.f32 %v1989_v26, %v1968_v22 }
 0x8ca   :  { %v2008_v47 = vrot.slane %v1991_v61, %v6712_v17  ;;  %v2012_v48 = vrot.slane %v1991_v61, %v6723_v24 }
 0x8cc   :  { %v2015_v49 = vmul.f32 %v2008_v47, %v2000_v43  ;;  %v2016_v50 = vmul.f32 %v2012_v48, %v2001_v45  ;;  %v2017_v51 = vmul.f32 %v2008_v47, %v2002_v44  ;;  %v2018_v52 = vmul.f32 %v2012_v48, %v2003_v46 }
 0x8ce   :  { %v2031_v8 = vadd.f32 %v2024_v32, %v2015_v49  ;;  %v2032_v63 = vadd.f32 %v2028_v33, %v2016_v50  ;;  %v2033_v9 = vadd.f32 %v2024_v32, %v2017_v51  ;;  %v2034_v1 = vadd.f32 %v2028_v33, %v2018_v52 }
 0x8d0   :  { %v7049_v5 = vmax.f32 %v2031_v8, 0.0  ;;  %v7051_v2 = vmax.f32 %v2032_v63, 0.0  ;;  %v7053_v4 = vmax.f32 %v2033_v9, 0.0  ;;  %v7055_v3 = vmax.f32 %v2034_v1, 0.0 }
 0x8d1   :  { %6124 = dma.done.wait [#allocation6], 32768 }
 0x8d2   :  { %6125 = vsyncadd [#allocation6], 4294934528  ;;  %2440 = vmatprep.mubr.f32.mxu1 %v7051_v2  ;;  %2363 = vmatprep.mubr.f32.mxu0 %v7051_v2  ;;  %v2166_v6 = vld [vmem:[#allocation3 + $0x3d8] sm:$0xff]  ;;  %v2165_v7 = vld [vmem:[#allocation3 + $0x3d0] sm:$0xff] }
 0x8d3   :  { %v2164_v28 = vld [vmem:[#allocation3 + $0x3c8] sm:$0xff]  ;;  %2376 = vmatprep.subr.mxu1 %v2166_v6  ;;  %v2158_v29 = vld [vmem:[#allocation3 + $0x398] sm:$0xff]  ;;  %v2163_v60 = vld [vmem:[#allocation3 + $0x3c0] sm:$0xff] }
 0x8d4   :  { %2299 = vmatprep.subr.mxu0 %v2164_v28  ;;  %v2157_v62 = vld [vmem:[#allocation3 + $0x390] sm:$0xff]  ;;  %2377 = vmatpush1.msra.mxu1 %v2165_v7  ;;  %v2156_v34 = vld [vmem:[#allocation3 + $0x388] sm:$0xff]  ;;  %v2150_v30 = vld [vmem:[#allocation3 + $0x358] sm:$0xff] }
 0x8d5   :  { %2300 = vmatpush1.msra.mxu0 %v2163_v60  ;;  %v2155_v31 = vld [vmem:[#allocation3 + $0x380] sm:$0xff]  ;;  %2378 = vmatprep.subr.mxu1 %v2158_v29  ;;  %v2149_v35 = vld [vmem:[#allocation3 + $0x350] sm:$0xff]  ;;  %v2148_v36 = vld [vmem:[#allocation3 + $0x348] sm:$0xff] }
 0x8d6   :  { %2301 = vmatprep.subr.mxu0 %v2156_v34  ;;  %2379 = vmatpush1.msra.mxu1 %v2157_v62  ;;  %v2142_v27 = vld [vmem:[#allocation3 + $0x318] sm:$0xff]  ;;  %v2147_v37 = vld [vmem:[#allocation3 + $0x340] sm:$0xff]  ;;  %v2140_v38 = vld [vmem:[#allocation3 + $0x308] sm:$0xff] }
 0x8d7   :  { %2302 = vmatpush1.msra.mxu0 %v2155_v31  ;;  %2380 = vmatprep.subr.mxu1 %v2150_v30  ;;  %v2141_v39 = vld [vmem:[#allocation3 + $0x310] sm:$0xff]  ;;  %v2139_v40 = vld [vmem:[#allocation3 + $0x300] sm:$0xff]  ;;  %v2134_v41 = vld [vmem:[#allocation3 + $0x2d8] sm:$0xff] }
 0x8d8   :  { %2303 = vmatprep.subr.mxu0 %v2148_v36  ;;  %2381 = vmatpush1.msra.mxu1 %v2149_v35  ;;  %v2132_v42 = vld [vmem:[#allocation3 + $0x2c8] sm:$0xff]  ;;  %v2133_v53 = vld [vmem:[#allocation3 + $0x2d0] sm:$0xff]  ;;  %v2131_v54 = vld [vmem:[#allocation3 + $0x2c0] sm:$0xff] }
 0x8d9   :  { %2304 = vmatpush1.msra.mxu0 %v2147_v37  ;;  %2382 = vmatprep.subr.mxu1 %v2142_v27  ;;  %v2126_v55 = vld [vmem:[#allocation3 + $0x298] sm:$0xff]  ;;  %v2124_v56 = vld [vmem:[#allocation3 + $0x288] sm:$0xff]  ;;  %v2125_v57 = vld [vmem:[#allocation3 + $0x290] sm:$0xff] }
 0x8da   :  { %2305 = vmatprep.subr.mxu0 %v2140_v38  ;;  %2383 = vmatpush1.msra.mxu1 %v2141_v39  ;;  %v2123_v58 = vld [vmem:[#allocation3 + $0x280] sm:$0xff]  ;;  %v2118_v59 = vld [vmem:[#allocation3 + $0x258] sm:$0xff]  ;;  %v2116_v10 = vld [vmem:[#allocation3 + $0x248] sm:$0xff] }
 0x8db   :  { %2306 = vmatpush1.msra.mxu0 %v2139_v40  ;;  %2384 = vmatprep.subr.mxu1 %v2134_v41  ;;  %v2117_v11 = vld [vmem:[#allocation3 + $0x250] sm:$0xff]  ;;  %v2115_v12 = vld [vmem:[#allocation3 + $0x240] sm:$0xff]  ;;  %v2110_v13 = vld [vmem:[#allocation3 + $0x218] sm:$0xff] }
 0x8dc   :  { %2307 = vmatprep.subr.mxu0 %v2132_v42  ;;  %2385 = vmatpush1.msra.mxu1 %v2133_v53  ;;  %v2108_v14 = vld [vmem:[#allocation3 + $0x208] sm:$0xff]  ;;  %v2109_v16 = vld [vmem:[#allocation3 + $0x210] sm:$0xff]  ;;  %v2107_v18 = vld [vmem:[#allocation3 + $0x200] sm:$0xff] }
 0x8dd   :  { %2308 = vmatpush1.msra.mxu0 %v2131_v54  ;;  %2386 = vmatprep.subr.mxu1 %v2126_v55  ;;  %v2102_v19 = vld [vmem:[#allocation3 + $0x1d8] sm:$0xff]  ;;  %v2100_v20 = vld [vmem:[#allocation3 + $0x1c8] sm:$0xff]  ;;  %v2101_v21 = vld [vmem:[#allocation3 + $0x1d0] sm:$0xff] }
 0x8de   :  { %2309 = vmatprep.subr.mxu0 %v2124_v56  ;;  %2387 = vmatpush1.msra.mxu1 %v2125_v57  ;;  %v2099_v22 = vld [vmem:[#allocation3 + $0x1c0] sm:$0xff]  ;;  %v2094_v23 = vld [vmem:[#allocation3 + $0x198] sm:$0xff]  ;;  %v2092_v25 = vld [vmem:[#allocation3 + $0x188] sm:$0xff] }
 0x8df   :  { %2310 = vmatpush1.msra.mxu0 %v2123_v58  ;;  %2388 = vmatprep.subr.mxu1 %v2118_v59  ;;  %v2093_v26 = vld [vmem:[#allocation3 + $0x190] sm:$0xff]  ;;  %v2091_v61 = vld [vmem:[#allocation3 + $0x180] sm:$0xff]  ;;  %v2086_v32 = vld [vmem:[#allocation3 + $0x158] sm:$0xff] }
 0x8e0   :  { %2311 = vmatprep.subr.mxu0 %v2116_v10  ;;  %2389 = vmatpush1.msra.mxu1 %v2117_v11  ;;  %v2084_v33 = vld [vmem:[#allocation3 + $0x148] sm:$0xff]  ;;  %v2085_v43 = vld [vmem:[#allocation3 + $0x150] sm:$0xff]  ;;  %v2083_v44 = vld [vmem:[#allocation3 + $0x140] sm:$0xff] }
 0x8e1   :  { %2312 = vmatpush1.msra.mxu0 %v2115_v12  ;;  %2390 = vmatprep.subr.mxu1 %v2110_v13  ;;  %v2078_v45 = vld [vmem:[#allocation3 + $0x118] sm:$0xff]  ;;  %v2076_v46 = vld [vmem:[#allocation3 + $0x108] sm:$0xff]  ;;  %v2077_v47 = vld [vmem:[#allocation3 + $0x110] sm:$0xff] }
 0x8e2   :  { %2313 = vmatprep.subr.mxu0 %v2108_v14  ;;  %2391 = vmatpush1.msra.mxu1 %v2109_v16  ;;  %v2075_v48 = vld [vmem:[#allocation3 + $0x100] sm:$0xff]  ;;  %v2070_v49 = vld [vmem:[#allocation3 + $0xd8] sm:$0xff]  ;;  %v2068_v50 = vld [vmem:[#allocation3 + $0xc8] sm:$0xff] }
 0x8e3   :  { %2314 = vmatpush1.msra.mxu0 %v2107_v18  ;;  %2392 = vmatprep.subr.mxu1 %v2102_v19  ;;  %v2069_v51 = vld [vmem:[#allocation3 + $0xd0] sm:$0xff]  ;;  %v2067_v52 = vld [vmem:[#allocation3 + $0xc0] sm:$0xff]  ;;  %v2062_v8 = vld [vmem:[#allocation3 + $0x98] sm:$0xff] }
 0x8e4   :  { %2315 = vmatprep.subr.mxu0 %v2100_v20  ;;  %2393 = vmatpush1.msra.mxu1 %v2101_v21  ;;  %v2060_v63 = vld [vmem:[#allocation3 + $0x88] sm:$0xff]  ;;  %v2061_v9 = vld [vmem:[#allocation3 + $0x90] sm:$0xff]  ;;  %v2059_v1 = vld [vmem:[#allocation3 + $0x80] sm:$0xff] }
 0x8e5   :  { %2316 = vmatpush1.msra.mxu0 %v2099_v22  ;;  %2394 = vmatprep.subr.mxu1 %v2094_v23  ;;  %v2054_v6 = vld [vmem:[#allocation3 + $0x58] sm:$0xff]  ;;  %v2052_v7 = vld [vmem:[#allocation3 + $0x48] sm:$0xff]  ;;  %v2053_v28 = vld [vmem:[#allocation3 + $0x50] sm:$0xff] }
 0x8e6   :  { %2317 = vmatprep.subr.mxu0 %v2092_v25  ;;  %2395 = vmatpush1.msra.mxu1 %v2093_v26  ;;  %v2051_v29 = vld [vmem:[#allocation3 + $0x40] sm:$0xff]  ;;  %v2046_v60 = vld [vmem:[#allocation3 + $0x18] sm:$0xff]  ;;  %v2044_v62 = vld [vmem:[#allocation3 + $0x8] sm:$0xff] }
 0x8e7   :  { %2318 = vmatpush1.msra.mxu0 %v2091_v61  ;;  %2396 = vmatprep.subr.mxu1 %v2086_v32  ;;  %v2045_v34 = vld [vmem:[#allocation3 + $0x10] sm:$0xff]  ;;  %v2043_v30 = vld [vmem:[#allocation3] sm:$0xff]  ;;  %v2294_v31 = vld [vmem:[#allocation3 + $0x7d8] sm:$0xff] }
 0x8e8   :  { %2319 = vmatprep.subr.mxu0 %v2084_v33  ;;  %2397 = vmatpush1.msra.mxu1 %v2085_v43  ;;  %v2292_v35 = vld [vmem:[#allocation3 + $0x7c8] sm:$0xff]  ;;  %v2293_v36 = vld [vmem:[#allocation3 + $0x7d0] sm:$0xff]  ;;  %v2291_v27 = vld [vmem:[#allocation3 + $0x7c0] sm:$0xff] }
 0x8e9   :  { %2320 = vmatpush1.msra.mxu0 %v2083_v44  ;;  %2398 = vmatprep.subr.mxu1 %v2078_v45  ;;  %v2286_v37 = vld [vmem:[#allocation3 + $0x798] sm:$0xff]  ;;  %v2284_v38 = vld [vmem:[#allocation3 + $0x788] sm:$0xff]  ;;  %v2285_v39 = vld [vmem:[#allocation3 + $0x790] sm:$0xff] }
 0x8ea   :  { %2321 = vmatprep.subr.mxu0 %v2076_v46  ;;  %2399 = vmatpush1.msra.mxu1 %v2077_v47  ;;  %v2283_v40 = vld [vmem:[#allocation3 + $0x780] sm:$0xff]  ;;  %v2278_v41 = vld [vmem:[#allocation3 + $0x758] sm:$0xff]  ;;  %v2276_v42 = vld [vmem:[#allocation3 + $0x748] sm:$0xff] }
 0x8eb   :  { %2322 = vmatpush1.msra.mxu0 %v2075_v48  ;;  %2400 = vmatprep.subr.mxu1 %v2070_v49  ;;  %v2277_v53 = vld [vmem:[#allocation3 + $0x750] sm:$0xff]  ;;  %v2275_v54 = vld [vmem:[#allocation3 + $0x740] sm:$0xff]  ;;  %v2270_v55 = vld [vmem:[#allocation3 + $0x718] sm:$0xff] }
 0x8ec   :  { %2323 = vmatprep.subr.mxu0 %v2068_v50  ;;  %2401 = vmatpush1.msra.mxu1 %v2069_v51  ;;  %v2268_v56 = vld [vmem:[#allocation3 + $0x708] sm:$0xff]  ;;  %v2269_v57 = vld [vmem:[#allocation3 + $0x710] sm:$0xff]  ;;  %v2267_v58 = vld [vmem:[#allocation3 + $0x700] sm:$0xff] }
 0x8ed   :  { %2324 = vmatpush1.msra.mxu0 %v2067_v52  ;;  %2402 = vmatprep.subr.mxu1 %v2062_v8  ;;  %v2262_v59 = vld [vmem:[#allocation3 + $0x6d8] sm:$0xff]  ;;  %v2260_v10 = vld [vmem:[#allocation3 + $0x6c8] sm:$0xff]  ;;  %v2261_v11 = vld [vmem:[#allocation3 + $0x6d0] sm:$0xff] }
 0x8ee   :  { %2325 = vmatprep.subr.mxu0 %v2060_v63  ;;  %2403 = vmatpush1.msra.mxu1 %v2061_v9  ;;  %v2259_v12 = vld [vmem:[#allocation3 + $0x6c0] sm:$0xff]  ;;  %v2254_v13 = vld [vmem:[#allocation3 + $0x698] sm:$0xff]  ;;  %v2252_v14 = vld [vmem:[#allocation3 + $0x688] sm:$0xff] }
 0x8ef   :  { %2326 = vmatpush1.msra.mxu0 %v2059_v1  ;;  %2404 = vmatprep.subr.mxu1 %v2054_v6  ;;  %v2253_v16 = vld [vmem:[#allocation3 + $0x690] sm:$0xff]  ;;  %v2251_v18 = vld [vmem:[#allocation3 + $0x680] sm:$0xff]  ;;  %v2246_v19 = vld [vmem:[#allocation3 + $0x658] sm:$0xff] }
 0x8f0   :  { %2327 = vmatprep.subr.mxu0 %v2052_v7  ;;  %2405 = vmatpush1.msra.mxu1 %v2053_v28  ;;  %v2244_v20 = vld [vmem:[#allocation3 + $0x648] sm:$0xff]  ;;  %v2245_v21 = vld [vmem:[#allocation3 + $0x650] sm:$0xff]  ;;  %v2243_v22 = vld [vmem:[#allocation3 + $0x640] sm:$0xff] }
 0x8f1   :  { %2328 = vmatpush1.msra.mxu0 %v2051_v29  ;;  %2406 = vmatprep.subr.mxu1 %v2046_v60  ;;  %v2238_v23 = vld [vmem:[#allocation3 + $0x618] sm:$0xff]  ;;  %v2236_v25 = vld [vmem:[#allocation3 + $0x608] sm:$0xff]  ;;  %v2237_v26 = vld [vmem:[#allocation3 + $0x610] sm:$0xff] }
 0x8f2   :  { %2329 = vmatprep.subr.mxu0 %v2044_v62  ;;  %2407 = vmatpush1.msra.mxu1 %v2045_v34  ;;  %v2235_v61 = vld [vmem:[#allocation3 + $0x600] sm:$0xff]  ;;  %v2230_v32 = vld [vmem:[#allocation3 + $0x5d8] sm:$0xff]  ;;  %v2228_v33 = vld [vmem:[#allocation3 + $0x5c8] sm:$0xff] }
 0x8f3   :  { %2330 = vmatpush1.msra.mxu0 %v2043_v30  ;;  %2408 = vmatprep.subr.mxu1 %v2294_v31  ;;  %v2229_v43 = vld [vmem:[#allocation3 + $0x5d0] sm:$0xff]  ;;  %v2227_v44 = vld [vmem:[#allocation3 + $0x5c0] sm:$0xff]  ;;  %v2222_v45 = vld [vmem:[#allocation3 + $0x598] sm:$0xff] }
 0x8f4   :  { %2331 = vmatprep.subr.mxu0 %v2292_v35  ;;  %2409 = vmatpush2.msra.mxu1 %v2293_v36  ;;  %v2220_v46 = vld [vmem:[#allocation3 + $0x588] sm:$0xff]  ;;  %v2221_v47 = vld [vmem:[#allocation3 + $0x590] sm:$0xff]  ;;  %v2219_v48 = vld [vmem:[#allocation3 + $0x580] sm:$0xff] }
 0x8f5   :  { %2332 = vmatpush2.msra.mxu0 %v2291_v27  ;;  %2410 = vmatprep.subr.mxu1 %v2286_v37  ;;  %v2214_v49 = vld [vmem:[#allocation3 + $0x558] sm:$0xff]  ;;  %v2212_v50 = vld [vmem:[#allocation3 + $0x548] sm:$0xff]  ;;  %v2213_v51 = vld [vmem:[#allocation3 + $0x550] sm:$0xff] }
 0x8f6   :  { %2333 = vmatprep.subr.mxu0 %v2284_v38  ;;  %2411 = vmatpush2.msra.mxu1 %v2285_v39  ;;  %v2211_v52 = vld [vmem:[#allocation3 + $0x540] sm:$0xff]  ;;  %v2206_v8 = vld [vmem:[#allocation3 + $0x518] sm:$0xff]  ;;  %v2204_v63 = vld [vmem:[#allocation3 + $0x508] sm:$0xff] }
 0x8f7   :  { %2334 = vmatpush2.msra.mxu0 %v2283_v40  ;;  %2412 = vmatprep.subr.mxu1 %v2278_v41  ;;  %v2205_v9 = vld [vmem:[#allocation3 + $0x510] sm:$0xff]  ;;  %v2203_v1 = vld [vmem:[#allocation3 + $0x500] sm:$0xff]  ;;  %v2198_v6 = vld [vmem:[#allocation3 + $0x4d8] sm:$0xff] }
 0x8f8   :  { %2335 = vmatprep.subr.mxu0 %v2276_v42  ;;  %2413 = vmatpush2.msra.mxu1 %v2277_v53  ;;  %v2196_v7 = vld [vmem:[#allocation3 + $0x4c8] sm:$0xff]  ;;  %v2197_v28 = vld [vmem:[#allocation3 + $0x4d0] sm:$0xff]  ;;  %v2195_v29 = vld [vmem:[#allocation3 + $0x4c0] sm:$0xff] }
 0x8f9   :  { %2336 = vmatpush2.msra.mxu0 %v2275_v54  ;;  %2414 = vmatprep.subr.mxu1 %v2270_v55  ;;  %v2190_v60 = vld [vmem:[#allocation3 + $0x498] sm:$0xff]  ;;  %v2188_v62 = vld [vmem:[#allocation3 + $0x488] sm:$0xff]  ;;  %v2189_v34 = vld [vmem:[#allocation3 + $0x490] sm:$0xff] }
 0x8fa   :  { %2337 = vmatprep.subr.mxu0 %v2268_v56  ;;  %2415 = vmatpush2.msra.mxu1 %v2269_v57  ;;  %v2187_v30 = vld [vmem:[#allocation3 + $0x480] sm:$0xff]  ;;  %v2182_v31 = vld [vmem:[#allocation3 + $0x458] sm:$0xff]  ;;  %v2180_v35 = vld [vmem:[#allocation3 + $0x448] sm:$0xff] }
 0x8fb   :  { %2338 = vmatpush2.msra.mxu0 %v2267_v58  ;;  %2416 = vmatprep.subr.mxu1 %v2262_v59  ;;  %v2181_v36 = vld [vmem:[#allocation3 + $0x450] sm:$0xff]  ;;  %v2179_v27 = vld [vmem:[#allocation3 + $0x440] sm:$0xff]  ;;  %v2174_v37 = vld [vmem:[#allocation3 + $0x418] sm:$0xff] }
 0x8fc   :  { %2339 = vmatprep.subr.mxu0 %v2260_v10  ;;  %2417 = vmatpush2.msra.mxu1 %v2261_v11  ;;  %v2172_v38 = vld [vmem:[#allocation3 + $0x408] sm:$0xff]  ;;  %v2173_v39 = vld [vmem:[#allocation3 + $0x410] sm:$0xff]  ;;  %v2171_v40 = vld [vmem:[#allocation3 + $0x400] sm:$0xff] }
 0x8fd   :  { %2340 = vmatpush2.msra.mxu0 %v2259_v12  ;;  %2418 = vmatprep.subr.mxu1 %v2254_v13  ;;  %v2170_v41 = vld [vmem:[#allocation3 + $0x3f8] sm:$0xff]  ;;  %v2169_v42 = vld [vmem:[#allocation3 + $0x3f0] sm:$0xff]  ;;  %v2168_v53 = vld [vmem:[#allocation3 + $0x3e8] sm:$0xff] }
 0x8fe   :  { %2341 = vmatprep.subr.mxu0 %v2252_v14  ;;  %2419 = vmatpush2.msra.mxu1 %v2253_v16  ;;  %v2162_v54 = vld [vmem:[#allocation3 + $0x3b8] sm:$0xff]  ;;  %v2167_v55 = vld [vmem:[#allocation3 + $0x3e0] sm:$0xff]  ;;  %v2161_v56 = vld [vmem:[#allocation3 + $0x3b0] sm:$0xff] }
 0x8ff   :  { %2342 = vmatpush2.msra.mxu0 %v2251_v18  ;;  %2420 = vmatprep.subr.mxu1 %v2246_v19  ;;  %v2160_v57 = vld [vmem:[#allocation3 + $0x3a8] sm:$0xff]  ;;  %v2154_v58 = vld [vmem:[#allocation3 + $0x378] sm:$0xff]  ;;  %v2159_v59 = vld [vmem:[#allocation3 + $0x3a0] sm:$0xff] }
 0x900   :  { %2343 = vmatprep.subr.mxu0 %v2244_v20  ;;  %2421 = vmatpush2.msra.mxu1 %v2245_v21  ;;  %v2153_v10 = vld [vmem:[#allocation3 + $0x370] sm:$0xff]  ;;  %v2152_v11 = vld [vmem:[#allocation3 + $0x368] sm:$0xff]  ;;  %v2146_v12 = vld [vmem:[#allocation3 + $0x338] sm:$0xff] }
 0x901   :  { %2344 = vmatpush2.msra.mxu0 %v2243_v22  ;;  %2422 = vmatprep.subr.mxu1 %v2238_v23  ;;  %v2151_v13 = vld [vmem:[#allocation3 + $0x360] sm:$0xff]  ;;  %v2145_v14 = vld [vmem:[#allocation3 + $0x330] sm:$0xff]  ;;  %v2144_v16 = vld [vmem:[#allocation3 + $0x328] sm:$0xff] }
 0x902   :  { %2345 = vmatprep.subr.mxu0 %v2236_v25  ;;  %2423 = vmatpush2.msra.mxu1 %v2237_v26  ;;  %v2138_v18 = vld [vmem:[#allocation3 + $0x2f8] sm:$0xff]  ;;  %v2143_v19 = vld [vmem:[#allocation3 + $0x320] sm:$0xff]  ;;  %v2137_v20 = vld [vmem:[#allocation3 + $0x2f0] sm:$0xff] }
 0x903   :  { %2346 = vmatpush2.msra.mxu0 %v2235_v61  ;;  %2424 = vmatprep.subr.mxu1 %v2230_v32  ;;  %v2136_v21 = vld [vmem:[#allocation3 + $0x2e8] sm:$0xff]  ;;  %v2130_v22 = vld [vmem:[#allocation3 + $0x2b8] sm:$0xff]  ;;  %v2135_v23 = vld [vmem:[#allocation3 + $0x2e0] sm:$0xff] }
 0x904   :  { %2347 = vmatprep.subr.mxu0 %v2228_v33  ;;  %2425 = vmatpush2.msra.mxu1 %v2229_v43  ;;  %v2129_v25 = vld [vmem:[#allocation3 + $0x2b0] sm:$0xff]  ;;  %v2128_v26 = vld [vmem:[#allocation3 + $0x2a8] sm:$0xff]  ;;  %v2122_v61 = vld [vmem:[#allocation3 + $0x278] sm:$0xff] }
 0x905   :  { %2348 = vmatpush2.msra.mxu0 %v2227_v44  ;;  %2426 = vmatprep.subr.mxu1 %v2222_v45  ;;  %v2127_v32 = vld [vmem:[#allocation3 + $0x2a0] sm:$0xff]  ;;  %v2121_v33 = vld [vmem:[#allocation3 + $0x270] sm:$0xff]  ;;  %v2120_v43 = vld [vmem:[#allocation3 + $0x268] sm:$0xff] }
 0x906   :  { %2349 = vmatprep.subr.mxu0 %v2220_v46  ;;  %2427 = vmatpush2.msra.mxu1 %v2221_v47  ;;  %v2114_v44 = vld [vmem:[#allocation3 + $0x238] sm:$0xff]  ;;  %v2119_v45 = vld [vmem:[#allocation3 + $0x260] sm:$0xff]  ;;  %v2113_v46 = vld [vmem:[#allocation3 + $0x230] sm:$0xff] }
 0x907   :  { %2350 = vmatpush2.msra.mxu0 %v2219_v48  ;;  %2428 = vmatprep.subr.mxu1 %v2214_v49  ;;  %v2112_v47 = vld [vmem:[#allocation3 + $0x228] sm:$0xff]  ;;  %v2106_v48 = vld [vmem:[#allocation3 + $0x1f8] sm:$0xff]  ;;  %v2111_v49 = vld [vmem:[#allocation3 + $0x220] sm:$0xff] }
 0x908   :  { %2351 = vmatprep.subr.mxu0 %v2212_v50  ;;  %2429 = vmatpush2.msra.mxu1 %v2213_v51  ;;  %v2105_v50 = vld [vmem:[#allocation3 + $0x1f0] sm:$0xff]  ;;  %v2104_v51 = vld [vmem:[#allocation3 + $0x1e8] sm:$0xff] }
 0x909   :  { %2352 = vmatpush2.msra.mxu0 %v2211_v52  ;;  %2430 = vmatprep.subr.mxu1 %v2206_v8  ;;  %v2098_v52 = vld [vmem:[#allocation3 + $0x1b8] sm:$0xff]  ;;  %v2103_v8 = vld [vmem:[#allocation3 + $0x1e0] sm:$0xff] }
 0x90a   :  { %2353 = vmatprep.subr.mxu0 %v2204_v63  ;;  %2431 = vmatpush2.msra.mxu1 %v2205_v9  ;;  %v2097_v63 = vld [vmem:[#allocation3 + $0x1b0] sm:$0xff]  ;;  %v2096_v9 = vld [vmem:[#allocation3 + $0x1a8] sm:$0xff] }
 0x90b   :  { %2354 = vmatpush2.msra.mxu0 %v2203_v1  ;;  %2432 = vmatprep.subr.mxu1 %v2198_v6  ;;  %v2090_v1 = vld [vmem:[#allocation3 + $0x178] sm:$0xff]  ;;  %v2095_v6 = vld [vmem:[#allocation3 + $0x1a0] sm:$0xff] }
 0x90c   :  { %2355 = vmatprep.subr.mxu0 %v2196_v7  ;;  %2433 = vmatpush2.msra.mxu1 %v2197_v28  ;;  %v2089_v7 = vld [vmem:[#allocation3 + $0x170] sm:$0xff]  ;;  %v2088_v28 = vld [vmem:[#allocation3 + $0x168] sm:$0xff] }
 0x90d   :  { %2356 = vmatpush2.msra.mxu0 %v2195_v29  ;;  %2434 = vmatprep.subr.mxu1 %v2190_v60  ;;  %v2082_v29 = vld [vmem:[#allocation3 + $0x138] sm:$0xff]  ;;  %v2087_v60 = vld [vmem:[#allocation3 + $0x160] sm:$0xff] }
 0x90e   :  { %2357 = vmatprep.subr.mxu0 %v2188_v62  ;;  %2435 = vmatpush2.msra.mxu1 %v2189_v34  ;;  %v2081_v62 = vld [vmem:[#allocation3 + $0x130] sm:$0xff]  ;;  %v2080_v34 = vld [vmem:[#allocation3 + $0x128] sm:$0xff] }
 0x90f   :  { %2358 = vmatpush2.msra.mxu0 %v2187_v30  ;;  %2436 = vmatprep.subr.mxu1 %v2182_v31  ;;  %v2074_v30 = vld [vmem:[#allocation3 + $0xf8] sm:$0xff]  ;;  %v2079_v31 = vld [vmem:[#allocation3 + $0x120] sm:$0xff] }
 0x910   :  { %2359 = vmatprep.subr.mxu0 %v2180_v35  ;;  %2437 = vmatpush2.msra.mxu1 %v2181_v36  ;;  %v2073_v35 = vld [vmem:[#allocation3 + $0xf0] sm:$0xff]  ;;  %v2072_v36 = vld [vmem:[#allocation3 + $0xe8] sm:$0xff] }
 0x911   :  { %2360 = vmatpush2.msra.mxu0 %v2179_v27  ;;  %2438 = vmatprep.subr.mxu1 %v2174_v37  ;;  %v2066_v27 = vld [vmem:[#allocation3 + $0xb8] sm:$0xff]  ;;  %v2071_v37 = vld [vmem:[#allocation3 + $0xe0] sm:$0xff] }
 0x912   :  { %2361 = vmatprep.subr.mxu0 %v2172_v38  ;;  %2439 = vmatpush2.msra.mxu1 %v2173_v39  ;;  %v2065_v38 = vld [vmem:[#allocation3 + $0xb0] sm:$0xff]  ;;  %v2064_v39 = vld [vmem:[#allocation3 + $0xa8] sm:$0xff] }
 0x913   :  { %2362 = vmatpush2.msra.mxu0 %v2171_v40  ;;  %2441 = vmatmul.mubr.f32.vlgmr.msra.gmra.mxu1 %v7049_v5  ;;  %v2058_v40 = vld [vmem:[#allocation3 + $0x78] sm:$0xff] }
 0x914   :  { %2530 = vmatprep.subr.mxu1 %v2170_v41  ;;  %2453 = vmatprep.subr.mxu0 %v2168_v53  ;;  %v2063_v41 = vld [vmem:[#allocation3 + $0xa0] sm:$0xff]  ;;  %v2056_v53 = vld [vmem:[#allocation3 + $0x68] sm:$0xff] }
 0x915   :  { %2531 = vmatpush1.msra.mxu1 %v2169_v42  ;;  %2364 = vmatmul.mubr.f32.vlgmr.msra.gmra.mxu0 %v7049_v5  ;;  %v2057_v42 = vld [vmem:[#allocation3 + $0x70] sm:$0xff] }
 0x916   :  { %2532 = vmatprep.subr.mxu1 %v2162_v54  ;;  %2454 = vmatpush1.msra.mxu0 %v2167_v55  ;;  %v2050_v54 = vld [vmem:[#allocation3 + $0x38] sm:$0xff]  ;;  %v2055_v55 = vld [vmem:[#allocation3 + $0x60] sm:$0xff] }
 0x917   :  { %2533 = vmatpush1.msra.mxu1 %v2161_v56  ;;  %2455 = vmatprep.subr.mxu0 %v2160_v57  ;;  %v2049_v56 = vld [vmem:[#allocation3 + $0x30] sm:$0xff]  ;;  %v2048_v57 = vld [vmem:[#allocation3 + $0x28] sm:$0xff] }
 0x918   :  { %2534 = vmatprep.subr.mxu1 %v2154_v58  ;;  %2456 = vmatpush1.msra.mxu0 %v2159_v59  ;;  %v2298_v58 = vld [vmem:[#allocation3 + $0x7f8] sm:$0xff]  ;;  %v2047_v59 = vld [vmem:[#allocation3 + $0x20] sm:$0xff] }
 0x919   :  { %2535 = vmatpush1.msra.mxu1 %v2153_v10  ;;  %2457 = vmatprep.subr.mxu0 %v2152_v11  ;;  %v2297_v10 = vld [vmem:[#allocation3 + $0x7f0] sm:$0xff]  ;;  %v2296_v11 = vld [vmem:[#allocation3 + $0x7e8] sm:$0xff] }
 0x91a   :  { %2536 = vmatprep.subr.mxu1 %v2146_v12  ;;  %2458 = vmatpush1.msra.mxu0 %v2151_v13  ;;  %v2290_v12 = vld [vmem:[#allocation3 + $0x7b8] sm:$0xff]  ;;  %v2295_v13 = vld [vmem:[#allocation3 + $0x7e0] sm:$0xff] }
 0x91b   :  { %2537 = vmatpush1.msra.mxu1 %v2145_v14  ;;  %2459 = vmatprep.subr.mxu0 %v2144_v16  ;;  %v2289_v14 = vld [vmem:[#allocation3 + $0x7b0] sm:$0xff]  ;;  %v2288_v16 = vld [vmem:[#allocation3 + $0x7a8] sm:$0xff] }
 0x91c   :  { %2538 = vmatprep.subr.mxu1 %v2138_v18  ;;  %2460 = vmatpush1.msra.mxu0 %v2143_v19  ;;  %v2282_v18 = vld [vmem:[#allocation3 + $0x778] sm:$0xff]  ;;  %v2287_v19 = vld [vmem:[#allocation3 + $0x7a0] sm:$0xff] }
 0x91d   :  { %2539 = vmatpush1.msra.mxu1 %v2137_v20  ;;  %2461 = vmatprep.subr.mxu0 %v2136_v21  ;;  %v2281_v20 = vld [vmem:[#allocation3 + $0x770] sm:$0xff]  ;;  %v2280_v21 = vld [vmem:[#allocation3 + $0x768] sm:$0xff] }
 0x91e   :  { %2540 = vmatprep.subr.mxu1 %v2130_v22  ;;  %2462 = vmatpush1.msra.mxu0 %v2135_v23  ;;  %v2274_v22 = vld [vmem:[#allocation3 + $0x738] sm:$0xff]  ;;  %v2279_v23 = vld [vmem:[#allocation3 + $0x760] sm:$0xff] }
 0x91f   :  { %2541 = vmatpush1.msra.mxu1 %v2129_v25  ;;  %2463 = vmatprep.subr.mxu0 %v2128_v26  ;;  %v2273_v25 = vld [vmem:[#allocation3 + $0x730] sm:$0xff]  ;;  %v2272_v26 = vld [vmem:[#allocation3 + $0x728] sm:$0xff] }
 0x920   :  { %2542 = vmatprep.subr.mxu1 %v2122_v61  ;;  %2464 = vmatpush1.msra.mxu0 %v2127_v32  ;;  %v2266_v61 = vld [vmem:[#allocation3 + $0x6f8] sm:$0xff]  ;;  %v2271_v32 = vld [vmem:[#allocation3 + $0x720] sm:$0xff] }
 0x921   :  { %2543 = vmatpush1.msra.mxu1 %v2121_v33  ;;  %2465 = vmatprep.subr.mxu0 %v2120_v43  ;;  %v2265_v33 = vld [vmem:[#allocation3 + $0x6f0] sm:$0xff]  ;;  %v2264_v43 = vld [vmem:[#allocation3 + $0x6e8] sm:$0xff] }
 0x922   :  { %2544 = vmatprep.subr.mxu1 %v2114_v44  ;;  %2466 = vmatpush1.msra.mxu0 %v2119_v45  ;;  %v2258_v44 = vld [vmem:[#allocation3 + $0x6b8] sm:$0xff]  ;;  %v2263_v45 = vld [vmem:[#allocation3 + $0x6e0] sm:$0xff] }
 0x923   :  { %2545 = vmatpush1.msra.mxu1 %v2113_v46  ;;  %2467 = vmatprep.subr.mxu0 %v2112_v47  ;;  %v2257_v46 = vld [vmem:[#allocation3 + $0x6b0] sm:$0xff]  ;;  %v2256_v47 = vld [vmem:[#allocation3 + $0x6a8] sm:$0xff] }
 0x924   :  { %2546 = vmatprep.subr.mxu1 %v2106_v48  ;;  %2468 = vmatpush1.msra.mxu0 %v2111_v49  ;;  %v2250_v48 = vld [vmem:[#allocation3 + $0x678] sm:$0xff]  ;;  %v2255_v49 = vld [vmem:[#allocation3 + $0x6a0] sm:$0xff] }
 0x925   :  { %2547 = vmatpush1.msra.mxu1 %v2105_v50  ;;  %2469 = vmatprep.subr.mxu0 %v2104_v51  ;;  %v2249_v50 = vld [vmem:[#allocation3 + $0x670] sm:$0xff]  ;;  %v2248_v51 = vld [vmem:[#allocation3 + $0x668] sm:$0xff] }
 0x926   :  { %2548 = vmatprep.subr.mxu1 %v2098_v52  ;;  %2470 = vmatpush1.msra.mxu0 %v2103_v8  ;;  %v2242_v52 = vld [vmem:[#allocation3 + $0x638] sm:$0xff]  ;;  %v2247_v8 = vld [vmem:[#allocation3 + $0x660] sm:$0xff] }
 0x927   :  { %2549 = vmatpush1.msra.mxu1 %v2097_v63  ;;  %2471 = vmatprep.subr.mxu0 %v2096_v9  ;;  %v2241_v63 = vld [vmem:[#allocation3 + $0x630] sm:$0xff]  ;;  %v2240_v9 = vld [vmem:[#allocation3 + $0x628] sm:$0xff] }
 0x928   :  { %2550 = vmatprep.subr.mxu1 %v2090_v1  ;;  %2472 = vmatpush1.msra.mxu0 %v2095_v6  ;;  %v2234_v1 = vld [vmem:[#allocation3 + $0x5f8] sm:$0xff]  ;;  %v2239_v6 = vld [vmem:[#allocation3 + $0x620] sm:$0xff] }
 0x929   :  { %2551 = vmatpush1.msra.mxu1 %v2089_v7  ;;  %2473 = vmatprep.subr.mxu0 %v2088_v28  ;;  %v2233_v7 = vld [vmem:[#allocation3 + $0x5f0] sm:$0xff]  ;;  %v2232_v28 = vld [vmem:[#allocation3 + $0x5e8] sm:$0xff] }
 0x92a   :  { %2552 = vmatprep.subr.mxu1 %v2082_v29  ;;  %2474 = vmatpush1.msra.mxu0 %v2087_v60  ;;  %v2226_v29 = vld [vmem:[#allocation3 + $0x5b8] sm:$0xff]  ;;  %v2231_v60 = vld [vmem:[#allocation3 + $0x5e0] sm:$0xff] }
 0x92b   :  { %2553 = vmatpush1.msra.mxu1 %v2081_v62  ;;  %2475 = vmatprep.subr.mxu0 %v2080_v34  ;;  %v2225_v62 = vld [vmem:[#allocation3 + $0x5b0] sm:$0xff]  ;;  %v2224_v34 = vld [vmem:[#allocation3 + $0x5a8] sm:$0xff] }
 0x92c   :  { %2554 = vmatprep.subr.mxu1 %v2074_v30  ;;  %2476 = vmatpush1.msra.mxu0 %v2079_v31  ;;  %v2218_v30 = vld [vmem:[#allocation3 + $0x578] sm:$0xff]  ;;  %v2223_v31 = vld [vmem:[#allocation3 + $0x5a0] sm:$0xff] }
 0x92d   :  { %2555 = vmatpush1.msra.mxu1 %v2073_v35  ;;  %2477 = vmatprep.subr.mxu0 %v2072_v36  ;;  %v2217_v35 = vld [vmem:[#allocation3 + $0x570] sm:$0xff]  ;;  %v2216_v36 = vld [vmem:[#allocation3 + $0x568] sm:$0xff] }
 0x92e   :  { %2556 = vmatprep.subr.mxu1 %v2066_v27  ;;  %2478 = vmatpush1.msra.mxu0 %v2071_v37  ;;  %v2210_v27 = vld [vmem:[#allocation3 + $0x538] sm:$0xff]  ;;  %v2215_v37 = vld [vmem:[#allocation3 + $0x560] sm:$0xff] }
 0x92f   :  { %2557 = vmatpush1.msra.mxu1 %v2065_v38  ;;  %2479 = vmatprep.subr.mxu0 %v2064_v39  ;;  %v2209_v38 = vld [vmem:[#allocation3 + $0x530] sm:$0xff]  ;;  %v2208_v39 = vld [vmem:[#allocation3 + $0x528] sm:$0xff] }
 0x930   :  { %2558 = vmatprep.subr.mxu1 %v2058_v40  ;;  %2480 = vmatpush1.msra.mxu0 %v2063_v41  ;;  %v2202_v40 = vld [vmem:[#allocation3 + $0x4f8] sm:$0xff]  ;;  %v2207_v41 = vld [vmem:[#allocation3 + $0x520] sm:$0xff] }
 0x931   :  { %2559 = vmatpush1.msra.mxu1 %v2057_v42  ;;  %2481 = vmatprep.subr.mxu0 %v2056_v53  ;;  %v2201_v42 = vld [vmem:[#allocation3 + $0x4f0] sm:$0xff]  ;;  %v2200_v53 = vld [vmem:[#allocation3 + $0x4e8] sm:$0xff] }
 0x932   :  { %2560 = vmatprep.subr.mxu1 %v2050_v54  ;;  %2482 = vmatpush1.msra.mxu0 %v2055_v55  ;;  %v2194_v54 = vld [vmem:[#allocation3 + $0x4b8] sm:$0xff]  ;;  %v2199_v55 = vld [vmem:[#allocation3 + $0x4e0] sm:$0xff] }
 0x933   :  { %2561 = vmatpush1.msra.mxu1 %v2049_v56  ;;  %2483 = vmatprep.subr.mxu0 %v2048_v57  ;;  %v2193_v56 = vld [vmem:[#allocation3 + $0x4b0] sm:$0xff]  ;;  %v2192_v57 = vld [vmem:[#allocation3 + $0x4a8] sm:$0xff] }
 0x934   :  { %2562 = vmatprep.subr.mxu1 %v2298_v58  ;;  %2484 = vmatpush1.msra.mxu0 %v2047_v59  ;;  %v2186_v58 = vld [vmem:[#allocation3 + $0x478] sm:$0xff]  ;;  %v2191_v59 = vld [vmem:[#allocation3 + $0x4a0] sm:$0xff] }
 0x935   :  { %2563 = vmatpush2.msra.mxu1 %v2297_v10  ;;  %2485 = vmatprep.subr.mxu0 %v2296_v11  ;;  %v2185_v10 = vld [vmem:[#allocation3 + $0x470] sm:$0xff]  ;;  %v2184_v11 = vld [vmem:[#allocation3 + $0x468] sm:$0xff] }
 0x936   :  { %2564 = vmatprep.subr.mxu1 %v2290_v12  ;;  %2486 = vmatpush2.msra.mxu0 %v2295_v13  ;;  %v2178_v12 = vld [vmem:[#allocation3 + $0x438] sm:$0xff]  ;;  %v2183_v13 = vld [vmem:[#allocation3 + $0x460] sm:$0xff] }
 0x937   :  { %2565 = vmatpush2.msra.mxu1 %v2289_v14  ;;  %2487 = vmatprep.subr.mxu0 %v2288_v16  ;;  %v2177_v14 = vld [vmem:[#allocation3 + $0x430] sm:$0xff]  ;;  %v2176_v16 = vld [vmem:[#allocation3 + $0x428] sm:$0xff] }
 0x938   :  { %2566 = vmatprep.subr.mxu1 %v2282_v18  ;;  %2488 = vmatpush2.msra.mxu0 %v2287_v19  ;;  %v2175_v18 = vld [vmem:[#allocation3 + $0x420] sm:$0xff]  ;;  %v7077_v19 = vld [vmem:[%s8033_s15 + $0xf8] sm:$0xff] }
 0x939   :  { %2567 = vmatpush2.msra.mxu1 %v2281_v20  ;;  %2489 = vmatprep.subr.mxu0 %v2280_v21 }
 0x93a   :  { %2568 = vmatprep.subr.mxu1 %v2274_v22  ;;  %2490 = vmatpush2.msra.mxu0 %v2279_v23 }
 0x93b   :  { %2569 = vmatpush2.msra.mxu1 %v2273_v25  ;;  %2491 = vmatprep.subr.mxu0 %v2272_v26 }
 0x93c   :  { %2570 = vmatprep.subr.mxu1 %v2266_v61  ;;  %2492 = vmatpush2.msra.mxu0 %v2271_v32 }
 0x93d   :  { %2571 = vmatpush2.msra.mxu1 %v2265_v33  ;;  %2493 = vmatprep.subr.mxu0 %v2264_v43 }
 0x93e   :  { %2572 = vmatprep.subr.mxu1 %v2258_v44  ;;  %2494 = vmatpush2.msra.mxu0 %v2263_v45 }
 0x93f   :  { %2573 = vmatpush2.msra.mxu1 %v2257_v46  ;;  %2495 = vmatprep.subr.mxu0 %v2256_v47  ;;  %v2623_v47 = vld [vmem:[%s8031_s13] sm:$0xff] }
 0x940   :  { %2574 = vmatprep.subr.mxu1 %v2250_v48  ;;  %2496 = vmatpush2.msra.mxu0 %v2255_v49  ;;  %v2624_v48 = vld [vmem:[%s8031_s13 + $0x8] sm:$0xff]  ;;  %v2625_v49 = vld [vmem:[%s8031_s13 + $0x10] sm:$0xff] }
 0x941   :  { %2575 = vmatpush2.msra.mxu1 %v2249_v50  ;;  %2497 = vmatprep.subr.mxu0 %v2248_v51  ;;  %v2626_v50 = vld [vmem:[%s8031_s13 + $0x18] sm:$0xff]  ;;  %v7109_v51 = vld [vmem:[%s8033_s15 + $0xf0] sm:$0xff] }
 0x942   :  { %2576 = vmatprep.subr.mxu1 %v2242_v52  ;;  %2498 = vmatpush2.msra.mxu0 %v2247_v8  ;;  %v7115_v52 = vld [vmem:[%s8033_s15 + $0x70] sm:$0xff]  ;;  %v7121_v8 = vld [vmem:[%s8033_s15 + $0xe8] sm:$0xff] }
 0x943   :  { %2577 = vmatpush2.msra.mxu1 %v2241_v63  ;;  %2499 = vmatprep.subr.mxu0 %v2240_v9  ;;  %v7127_v63 = vld [vmem:[%s8033_s15 + $0x68] sm:$0xff]  ;;  %v7133_v9 = vld [vmem:[%s8033_s15 + $0xe0] sm:$0xff] }
 0x944   :  { %2578 = vmatprep.subr.mxu1 %v2234_v1  ;;  %2500 = vmatpush2.msra.mxu0 %v2239_v6  ;;  %v7139_v1 = vld [vmem:[%s8033_s15 + $0x60] sm:$0xff]  ;;  %v7145_v6 = vld [vmem:[%s8033_s15 + $0xd8] sm:$0xff] }
 0x945   :  { %2579 = vmatpush2.msra.mxu1 %v2233_v7  ;;  %2501 = vmatprep.subr.mxu0 %v2232_v28  ;;  %v7151_v7 = vld [vmem:[%s8033_s15 + $0x58] sm:$0xff]  ;;  %v7157_v28 = vld [vmem:[%s8033_s15 + $0xd0] sm:$0xff] }
 0x946   :  { %2580 = vmatprep.subr.mxu1 %v2226_v29  ;;  %2502 = vmatpush2.msra.mxu0 %v2231_v60  ;;  %v7163_v29 = vld [vmem:[%s8033_s15 + $0x50] sm:$0xff]  ;;  %v7169_v60 = vld [vmem:[%s8033_s15 + $0xc8] sm:$0xff] }
 0x947   :  { %2581 = vmatpush2.msra.mxu1 %v2225_v62  ;;  %2503 = vmatprep.subr.mxu0 %v2224_v34  ;;  %v7175_v62 = vld [vmem:[%s8033_s15 + $0x48] sm:$0xff]  ;;  %v7181_v34 = vld [vmem:[%s8033_s15 + $0xc0] sm:$0xff] }
 0x948   :  { %2582 = vmatprep.subr.mxu1 %v2218_v30  ;;  %2504 = vmatpush2.msra.mxu0 %v2223_v31  ;;  %v7187_v30 = vld [vmem:[%s8033_s15 + $0x40] sm:$0xff]  ;;  %v7193_v31 = vld [vmem:[%s8033_s15 + $0xb8] sm:$0xff] }
 0x949   :  { %2583 = vmatpush2.msra.mxu1 %v2217_v35  ;;  %2505 = vmatprep.subr.mxu0 %v2216_v36  ;;  %v7199_v35 = vld [vmem:[%s8033_s15 + $0x38] sm:$0xff]  ;;  %v7205_v36 = vld [vmem:[%s8033_s15 + $0xb0] sm:$0xff] }
 0x94a   :  { %2584 = vmatprep.subr.mxu1 %v2210_v27  ;;  %2506 = vmatpush2.msra.mxu0 %v2215_v37  ;;  %v7211_v27 = vld [vmem:[%s8033_s15 + $0x30] sm:$0xff]  ;;  %v7217_v37 = vld [vmem:[%s8033_s15 + $0xa8] sm:$0xff] }
 0x94b   :  { %2585 = vmatpush2.msra.mxu1 %v2209_v38  ;;  %2507 = vmatprep.subr.mxu0 %v2208_v39  ;;  %v7223_v38 = vld [vmem:[%s8033_s15 + $0x28] sm:$0xff]  ;;  %v7229_v39 = vld [vmem:[%s8033_s15 + $0xa0] sm:$0xff] }
 0x94c   :  { %2586 = vmatprep.subr.mxu1 %v2202_v40  ;;  %2446 = vmatprep.mubr.f32.mxu1 %v7055_v3  ;;  %v7235_v40 = vld [vmem:[%s8033_s15 + $0x20] sm:$0xff] }
 0x94d   :  { %2508 = vmatpush2.msra.mxu0 %v2207_v41  ;;  %2587 = vmatpush2.msra.mxu1 %v2201_v42  ;;  %v7241_v41 = vld [vmem:[%s8033_s15 + $0x98] sm:$0xff] }
 0x94e   :  { %2509 = vmatprep.subr.mxu0 %v2200_v53  ;;  %2447 = vmatmul.mubr.f32.gmra.mxu1 %v7053_v4  ;;  %v7247_v42 = vld [vmem:[%s8033_s15 + $0x18] sm:$0xff]  ;;  %v7253_v53 = vld [vmem:[%s8033_s15 + $0x90] sm:$0xff] }
 0x94f   :  { %2588 = vmatprep.subr.mxu1 %v2194_v54  ;;  %2510 = vmatpush2.msra.mxu0 %v2199_v55  ;;  %v7259_v54 = vld [vmem:[%s8033_s15 + $0x10] sm:$0xff]  ;;  %v7265_v55 = vld [vmem:[%s8033_s15 + $0x88] sm:$0xff] }
 0x950   :  { %2589 = vmatpush2.msra.mxu1 %v2193_v56  ;;  %2511 = vmatprep.subr.mxu0 %v2192_v57  ;;  %v7270_v56 = vld [vmem:[%s8033_s15 + $0x8] sm:$0xff]  ;;  %v7275_v57 = vld [vmem:[%s8033_s15 + $0x80] sm:$0xff] }
 0x951   :  { %2590 = vmatprep.subr.mxu1 %v2186_v58  ;;  %2369 = vmatprep.mubr.f32.mxu0 %v7055_v3  ;;  %v7281_v58 = vld [vmem:[%s8033_s15] sm:$0xff] }
 0x952   :  { %2512 = vmatpush2.msra.mxu0 %v2191_v59  ;;  %2591 = vmatpush2.msra.mxu1 %v2185_v10  ;;  %v2893_v59 = vld [vmem:[%s8034_s16 + $0x18] sm:$0xff]  ;;  %v2892_v10 = vld [vmem:[%s8034_s16 + $0x10] sm:$0xff] }
 0x953   :  { %2370 = vmatmul.mubr.f32.gmra.mxu0 %v7053_v4  ;;  %2513 = vmatprep.subr.mxu0 %v2184_v11  ;;  %v2891_v11 = vld [vmem:[%s8034_s16 + $0x8] sm:$0xff] }
 0x954   :  { %2592 = vmatprep.subr.mxu1 %v2178_v12  ;;  %2514 = vmatpush2.msra.mxu0 %v2183_v13  ;;  %v2890_v12 = vld [vmem:[%s8034_s16] sm:$0xff] }
 0x955   :  { %2593 = vmatpush2.msra.mxu1 %v2177_v14  ;;  %2594 = vmatprep.mubr.f32.mxu1 %v7051_v2 }
 0x956   :  { %2515 = vmatprep.subr.mxu0 %v2176_v16  ;;  %2595 = vmatmul.mubr.f32.vlgmr.msra.gmra.mxu1 %v7049_v5 }
 0x957   :  { %2516 = vmatpush2.msra.mxu0 %v2175_v18  ;;  %2517 = vmatprep.mubr.f32.mxu0 %v7051_v2  ;;  %v7082_v2 = vld [vmem:[%s8033_s15 + $0x78] sm:$0xff] }
 0x958   :  { %2600 = vmatprep.mubr.f32.mxu1 %v7055_v3  ;;  %2518 = vmatmul.mubr.f32.vlgmr.msra.gmra.mxu0 %v7049_v5 }
 0x959   :  { %2523 = vmatprep.mubr.f32.mxu0 %v7055_v3  ;;  %5814 = vmatprep.subr.mxu1 %v7077_v19 }
 0x95a   :  { %2601 = vmatmul.mubr.f32.gmra.mxu1 %v7053_v4 }
 0x95b   :  { %5815 = vmatpush3.msra.mxu1 %v7082_v2 }
 0x95c   :  { %2524 = vmatmul.mubr.f32.gmra.mxu0 %v7053_v4  ;;  %5816 = vmatprep.subr.mxu1 %v7109_v51 }
 0x95d   :  { %2719 = vmatprep.mubr.f32.mxu0 %v6133_v0  ;;  %5817 = vmatpush3.msra.mxu1 %v7115_v52 }
 0x95e   :  { %5818 = vmatprep.subr.mxu1 %v7121_v8 }
 0x95f   :  { %5819 = vmatpush3.msra.mxu1 %v7127_v63 }
 0x960   :  { %5820 = vmatprep.subr.mxu1 %v7133_v9 }
 0x961   :  { %5821 = vmatpush3.msra.mxu1 %v7139_v1 }
 0x962   :  { %5822 = vmatprep.subr.mxu1 %v7145_v6 }
 0x963   :  { %5823 = vmatpush3.msra.mxu1 %v7151_v7 }
 0x964   :  { %5824 = vmatprep.subr.mxu1 %v7157_v28 }
 0x965   :  { %5825 = vmatpush3.msra.mxu1 %v7163_v29 }
 0x966   :  { %5826 = vmatprep.subr.mxu1 %v7169_v60 }
 0x967   :  { %5827 = vmatpush3.msra.mxu1 %v7175_v62 }
 0x968   :  { %5828 = vmatprep.subr.mxu1 %v7181_v34 }
 0x969   :  { %5829 = vmatpush3.msra.mxu1 %v7187_v30 }
 0x96a   :  { %5830 = vmatprep.subr.mxu1 %v7193_v31 }
 0x96b   :  { %5831 = vmatpush3.msra.mxu1 %v7199_v35 }
 0x96c   :  { %5832 = vmatprep.subr.mxu1 %v7205_v36 }
 0x96d   :  { %5833 = vmatpush3.msra.mxu1 %v7211_v27 }
 0x96e   :  { %5834 = vmatprep.subr.mxu1 %v7217_v37 }
 0x96f   :  { %5835 = vmatpush3.msra.mxu1 %v7223_v38 }
 0x970   :  { %5836 = vmatprep.subr.mxu1 %v7229_v39 }
 0x971   :  { %5837 = vmatpush3.msra.mxu1 %v7235_v40 }
 0x972   :  { %5838 = vmatprep.subr.mxu1 %v7241_v41 }
 0x973   :  { %5839 = vmatpush3.msra.mxu1 %v7247_v42 }
 0x974   :  { %5840 = vmatprep.subr.mxu1 %v7253_v53 }
 0x975   :  { %5841 = vmatpush3.msra.mxu1 %v7259_v54 }
 0x976   :  { %5842 = vmatprep.subr.mxu1 %v7265_v55 }
 0x977   :  { %5843 = vmatpush3.msra.mxu1 %v7270_v56 }
 0x978   :  { %5844 = vmatprep.subr.mxu1 %v7275_v57 }
 0x979   :  { %5845 = vmatpush3.msra.mxu1 %v7281_v58 }
 0x97a   :  { %3069 = vmatprep.subr.mxu1 %v2893_v59 }
 0x9d3   :  { %v2442_v5 = vpop.f32.mrf.mxu1 }
 0x9d5   :  { %v2365_v3 = vpop.f32.mrf.mxu0  ;;  %v2444_v20 = vpop.f32.mrf.mxu1 }
 0x9d7   :  { %v2367_v4 = vpop.f32.mrf.mxu0 }
 0xa0e   :  { %v2448_v21 = vpop.f32.mrf.mxu1 }
 0xa10   :  { %v2450_v23 = vpop.f32.mrf.mxu1 }
 0xa13   :  { %v2371_v22 = vpop.f32.mrf.mxu0 }
 0xa15   :  { %v2373_v25 = vpop.f32.mrf.mxu0 }
 0xa16   :  { %v2596_v26 = vpop.f32.mrf.mxu1 }
 0xa18   :  { %v2519_v61 = vpop.f32.mrf.mxu0  ;;  %v2598_v32 = vpop.f32.mrf.mxu1 }
 0xa1a   :  { %v2521_v33 = vpop.f32.mrf.mxu0  ;;  %v2602_v43 = vpop.f32.mrf.mxu1 }
 0xa1c   :  { %v2525_v44 = vpop.f32.mrf.mxu0  ;;  %v2604_v45 = vpop.f32.mrf.mxu1 }
 0xa1d   :  { %2671 = vmatprep.subr.mxu0 %v2604_v45 }
 0xa1e   :  { %2672 = vmatpush1.msra.mxu0 %v2602_v43  ;;  %v2527_v46 = vpop.f32.mrf.mxu0 }
 0xa1f   :  { %2673 = vmatprep.subr.mxu0 %v2598_v32 }
 0xa20   :  { %2674 = vmatpush1.msra.mxu0 %v2596_v26 }
 0xa21   :  { %2675 = vmatprep.subr.mxu0 %v2527_v46 }
 0xa22   :  { %2676 = vmatpush1.msra.mxu0 %v2525_v44 }
 0xa23   :  { %2677 = vmatprep.subr.mxu0 %v2521_v33 }
 0xa24   :  { %2678 = vmatpush1.msra.mxu0 %v2519_v61 }
 0xa25   :  { %2679 = vmatprep.subr.mxu0 %v2450_v23 }
 0xa26   :  { %2680 = vmatpush1.msra.mxu0 %v2448_v21 }
 0xa27   :  { %2681 = vmatprep.subr.mxu0 %v2444_v20 }
 0xa28   :  { %2682 = vmatpush1.msra.mxu0 %v2442_v5 }
 0xa29   :  { %2683 = vmatprep.subr.mxu0 %v2373_v25 }
 0xa2a   :  { %2684 = vmatpush1.msra.mxu0 %v2371_v22 }
 0xa2b   :  { %2685 = vmatprep.subr.mxu0 %v2367_v4 }
 0xa2c   :  { %2686 = vmatpush1.msra.mxu0 %v2365_v3 }
 0xa2d   :  { %5663 = vmatmul.mubr.msk.f32.vlgmr.msra.gmra.mxu0 %vm673_vm2, %v2623_v47  ;;  %2925 = vmatprep.subr.mxu0 %v2893_v59 }
 0xa2e   :  { %2725 = vmatprep.mubr.f32.mxu0 %v6133_v0  ;;  %2926 = vmatpush1.msra.mxu0 %v2892_v10 }
 0xa2f   :  { %2927 = vmatprep.subr.mxu0 %v2891_v11 }
 0xa30   :  { %2928 = vmatpush1.msra.mxu0 %v2890_v12 }
 0xa31   :  { %5664 = vmatmul.mubr.msk.f32.gmra.mxu0 %vm673_vm2, %v2624_v48  ;;  %5849 = vmatprep.subr.mxu0 %v7077_v19 }
 0xa32   :  { %2731 = vmatprep.mubr.f32.mxu0 %v6133_v0 }
 0xa35   :  { %5665 = vmatmul.mubr.msk.f32.gmra.mxu0 %vm673_vm2, %v2625_v49 }
 0xa36   :  { %2737 = vmatprep.mubr.f32.mxu0 %v6133_v0 }
 0xa39   :  { %5666 = vmatmul.mubr.msk.f32.gmra.mxu0 %vm673_vm2, %v2626_v50 }
 0xa3a   :  { %2961 = vmatprep.mubr.f32.mxu0 %v6133_v0 }
 0xaed   :  { %v7299_v13 = vpop.f32.mrf.mxu0 }
 0xaef   :  { %v7301_v14 = vpop.f32.mrf.mxu0 }
 0xaf1   :  { %v7303_v16 = vpop.f32.mrf.mxu0 }
 0xaf2   :  { %v2744_v3 = vadd.f32 %v7303_v16, %v7299_v13 }
 0xaf3   :  { %v7305_v18 = vpop.f32.mrf.mxu0 }
 0xaf4   :  { %v2753_v4 = vadd.f32 %v7305_v18, %v7301_v14 }
 0xaf5   :  { %v7307_v5 = vpop.f32.mrf.mxu0 }
 0xaf6   :  { %v2745_v19 = vadd.f32 %v2744_v3, %v7307_v5  ;;  %v2765_v3 = vmul.f32 %v7305_v18, %v7305_v18 }
 0xaf7   :  { %v7311_v20 = vpop.f32.mrf.mxu0 }
 0xaf8   :  { %v2754_v22 = vadd.f32 %v2753_v4, %v7311_v20  ;;  %v2763_v4 = vmul.f32 %v7301_v14, %v7301_v14 }
 0xaf9   :  { %v7316_v21 = vpop.f32.mrf.mxu0 }
 0xafa   :  { %v2746_v23 = vadd.f32 %v2745_v19, %v7316_v21  ;;  %v2767_v19 = vmul.f32 %v7311_v20, %v7311_v20 }
 0xafb   :  { %v7320_v25 = vpop.f32.mrf.mxu0 }
 0xafc   :  { %v2747_v26 = vrot.slane %v2746_v23, 4  ;;  %v2755_v61 = vadd.f32 %v2754_v22, %v7320_v25  ;;  %v2779_v22 = vadd.f32 %v2765_v3, %v2763_v4 }
 0xafe   :  { %v2748_v32 = vadd.f32 %v2747_v26, %v2746_v23  ;;  %v2756_v33 = vrot.slane %v2755_v61, 4  ;;  %v2769_v23 = vmul.f32 %v7320_v25, %v7320_v25  ;;  %v2780_v26 = vadd.f32 %v2779_v22, %v2767_v19 }
 0xb00   :  { %v2749_v43 = vrot.slane %v2748_v32, 2  ;;  %v2757_v44 = vadd.f32 %v2756_v33, %v2755_v61  ;;  %v2781_v61 = vadd.f32 %v2780_v26, %v2769_v23 }
 0xb02   :  { %v2750_v45 = vadd.f32 %v2749_v43, %v2748_v32  ;;  %v2758_v46 = vrot.slane %v2757_v44, 2 }
 0xb04   :  { %v2759_v47 = vadd.f32 %v2758_v46, %v2757_v44  ;;  %v2751_v48 = vrot.slane %v2750_v45, 1 }
 0xb06   :  { %v2760_v49 = vrot.slane %v2759_v47, 1  ;;  %v2752_v59 = vadd.f32 %v2751_v48, %v2750_v45  ;;  %v2764_v45 = vmul.f32 %v7303_v16, %v7303_v16  ;;  %v2762_v48 = vmul.f32 %v7299_v13, %v7299_v13 }
 0xb08   :  { %v2761_v50 = vadd.f32 %v2760_v49, %v2759_v47  ;;  %v2766_v49 = vmul.f32 %v7307_v5, %v7307_v5 }
 0xb0a   :  { %2884 = vmatprep.mubr.f32.mxu1 %v2761_v50  ;;  %v2770_v50 = vadd.f32 %v2764_v45, %v2762_v48 }
 0xb0b   :  { %2885 = vmatmul.mubr.f32.vlgmr.msra.gmra.mxu1 %v2752_v59  ;;  %v2768_v59 = vmul.f32 %v7316_v21, %v7316_v21 }
 0xb0c   :  { %3070 = vmatpush1.msra.mxu1 %v2892_v10  ;;  %3105 = vmatprep.mubr.f32.mxu1 %v6133_v0  ;;  %v2782_v10 = vrot.slane %v2781_v61, 4  ;;  %v2771_v3 = vadd.f32 %v2770_v50, %v2766_v49 }
 0xb0d   :  { %3071 = vmatprep.subr.mxu1 %v2891_v11 }
 0xb0e   :  { %3072 = vmatpush1.msra.mxu1 %v2890_v12  ;;  %v2783_v32 = vadd.f32 %v2782_v10, %v2781_v61  ;;  %v2772_v4 = vadd.f32 %v2771_v3, %v2768_v59 }
 0xb10   :  { %v2784_v33 = vrot.slane %v2783_v32, 2 }
 0xb12   :  { %v2785_v11 = vadd.f32 %v2784_v33, %v2783_v32 }
 0xb14   :  { %v2786_v43 = vrot.slane %v2785_v11, 1 }
 0xb16   :  { %v2787_v47 = vadd.f32 %v2786_v43, %v2785_v11 }
 0xbcb   :  { %v5846_v12 = vpop.f32.mrf.mxu1 }
 0xbcd   :  { %v5847_v44 = vpop.f32.mrf.mxu1 }
 0xbce   :  { %v5848_v46 = vadd.f32 %v5847_v44, %v5846_v12 }
 0xbd0   :  { %5667 = vmatmul.mubr.msk.f32.vlgmr.msra.gmra.mxu0 %vm149_vm0, %v5848_v46 }
 0xbd1   :  { %5850 = vmatpush3.msra.mxu0 %v7082_v2  ;;  %3032 = vmatprep.mubr.f32.mxu0 %v2787_v47  ;;  %v2773_v2 = vrot.slane %v2772_v4, 4 }
 0xbd2   :  { %5851 = vmatprep.subr.mxu0 %v7109_v51 }
 0xbd3   :  { %5852 = vmatpush3.msra.mxu0 %v7115_v52  ;;  %v2774_v51 = vadd.f32 %v2773_v2, %v2772_v4 }
 0xbd4   :  { %5853 = vmatprep.subr.mxu0 %v7121_v8 }
 0xbd5   :  { %5854 = vmatpush3.msra.mxu0 %v7127_v63  ;;  %v2775_v52 = vrot.slane %v2774_v51, 2 }
 0xbd6   :  { %5855 = vmatprep.subr.mxu0 %v7133_v9 }
 0xbd7   :  { %5856 = vmatpush3.msra.mxu0 %v7139_v1  ;;  %v2776_v8 = vadd.f32 %v2775_v52, %v2774_v51 }
 0xbd8   :  { %5857 = vmatprep.subr.mxu0 %v7145_v6 }
 0xbd9   :  { %5858 = vmatpush3.msra.mxu0 %v7151_v7  ;;  %v2777_v63 = vrot.slane %v2776_v8, 1 }
 0xbda   :  { %5859 = vmatprep.subr.mxu0 %v7157_v28 }
 0xbdb   :  { %5860 = vmatpush3.msra.mxu0 %v7163_v29  ;;  %v2778_v9 = vadd.f32 %v2777_v63, %v2776_v8 }
 0xbdc   :  { %5861 = vmatprep.subr.mxu0 %v7169_v60 }
 0xbdd   :  { %5862 = vmatpush3.msra.mxu0 %v7175_v62 }
 0xbde   :  { %5863 = vmatprep.subr.mxu0 %v7181_v34 }
 0xbdf   :  { %5864 = vmatpush3.msra.mxu0 %v7187_v30 }
 0xbe0   :  { %5865 = vmatprep.subr.mxu0 %v7193_v31 }
 0xbe1   :  { %5866 = vmatpush3.msra.mxu0 %v7199_v35 }
 0xbe2   :  { %5867 = vmatprep.subr.mxu0 %v7205_v36 }
 0xbe3   :  { %5868 = vmatpush3.msra.mxu0 %v7211_v27 }
 0xbe4   :  { %5869 = vmatprep.subr.mxu0 %v7217_v37 }
 0xbe5   :  { %5870 = vmatpush3.msra.mxu0 %v7223_v38 }
 0xbe6   :  { %5871 = vmatprep.subr.mxu0 %v7229_v39 }
 0xbe7   :  { %5872 = vmatpush3.msra.mxu0 %v7235_v40 }
 0xbe8   :  { %5873 = vmatprep.subr.mxu0 %v7241_v41 }
 0xbe9   :  { %5874 = vmatpush3.msra.mxu0 %v7247_v42 }
 0xbea   :  { %5875 = vmatprep.subr.mxu0 %v7253_v53 }
 0xbeb   :  { %5876 = vmatpush3.msra.mxu0 %v7259_v54 }
 0xbec   :  { %5877 = vmatprep.subr.mxu0 %v7265_v55  ;;  %v3118_v55 = vld [vmem:[%s8035_s17] sm:$0x3] }
 0xbed   :  { %5878 = vmatpush3.msra.mxu0 %v7270_v56 }
 0xbee   :  { %5879 = vmatprep.subr.mxu0 %v7275_v57  ;;  %v3177_v57 = vld [vmem:[%s8036_s18] sm:$0x3] }
 0xbef   :  { %5880 = vmatpush3.msra.mxu0 %v7281_v58  ;;  %v3182_v32 = vrot.slane %v3177_v57, %v6712_v17  ;;  %v3186_v33 = vrot.slane %v3177_v57, %v6723_v24 }
 0xbf0   :  { %3033 = vmatmul.mubr.f32.vlgmr.msra.gmra.mxu0 %v2778_v9 }
 0xc90   :  { %v2963_v1 = vpop.f32.mrf.mxu0 }
 0xc91   :  { %v3112_v60 = vmul.f32 %v2963_v1, %v2963_v1  ;;  %v3145_v53 = vrot.slane %v2963_v1, %v6712_v17 }
 0xc92   :  { %v2965_v6 = vpop.f32.mrf.mxu0 }
 0xc93   :  { %v3113_v34 = vmul.f32 %v2965_v6, %v2965_v6  ;;  %v3149_v54 = vrot.slane %v2965_v6, %v6712_v17  ;;  %v3150_v19 = vsub.f32 %v7299_v13, %v3145_v53  ;;  %v3152_v22 = vsub.f32 %v7303_v16, %v3145_v53 }
 0xc94   :  { %v3154_v11 = vsub.f32 %v7307_v5, %v3145_v53  ;;  %v3156_v12 = vsub.f32 %v7316_v21, %v3145_v53 }
 0xc95   :  { %v3151_v23 = vsub.f32 %v7301_v14, %v3149_v54  ;;  %v3153_v26 = vsub.f32 %v7305_v18, %v3149_v54  ;;  %v3155_v13 = vsub.f32 %v7311_v20, %v3149_v54  ;;  %v3157_v16 = vsub.f32 %v7320_v25, %v3149_v54 }
 0xcb0   :  { %v5881_v7 = vpop.f32.mrf.mxu0 }
 0xcb2   :  { %v5882_v28 = vpop.f32.mrf.mxu0 }
 0xcb3   :  { %v5883_v29 = vadd.f32 %v5882_v28, %v5881_v7 }
 0xcb5   :  { %5668 = vmatmul.mubr.msk.f32.vlgmr.msra.gmra.mxu1 %vm149_vm0, %v5883_v29 }
 0xd75   :  { %v3107_v62 = vpop.f32.mrf.mxu1 }
 0xd76   :  { %v3114_v30 = vsub.f32 %v3107_v62, %v3112_v60 }
 0xd77   :  { %v3109_v31 = vpop.f32.mrf.mxu1 }
 0xd78   :  { %v3116_v35 = vmax.f32 %v3114_v30, 0.0  ;;  %v3115_v36 = vsub.f32 %v3109_v31, %v3113_v34 }
 0xd7a   :  { %v3119_v27 = vadd.f32 1e-05, %v3116_v35  ;;  %v3117_v37 = vmax.f32 %v3115_v36, 0.0 }
 0xd7c   :  { %v3120_v38 = vadd.f32 1e-05, %v3117_v37  ;;  %5970 = vrsqrt.f32 %v3119_v27 }
 0xd7e   :  { %5972 = vrsqrt.f32 %v3120_v38 }
 0xd89   :  { %v5971_v39 = vpop.eup %5970 }
 0xd8b   :  { %v5973_v40 = vpop.eup %5972 }
 0xd8c   :  { %v3125_v41 = vcombine.low %v5971_v39, %v5973_v40 }
 0xd8e   :  { %v3132_v42 = vrot.slane %v3125_v41, %v6710_v15 }
 0xd90   :  { %v3139_v56 = vrot.slane %v3132_v42, %v6710_v15 }
 0xd92   :  { %v3141_v58 = vmul.f32 %v3139_v56, %v3118_v55 }
 0xd94   :  { %v3162_v61 = vrot.slane %v3141_v58, %v6712_v17  ;;  %v3166_v10 = vrot.slane %v3141_v58, %v6723_v24 }
 0xd96   :  { %v3169_v43 = vmul.f32 %v3162_v61, %v3150_v19  ;;  %v3170_v14 = vmul.f32 %v3166_v10, %v3151_v23  ;;  %v3171_v44 = vmul.f32 %v3162_v61, %v3152_v22  ;;  %v3172_v18 = vmul.f32 %v3166_v10, %v3153_v26 }
 0xd97   :  { %v3173_v45 = vmul.f32 %v3162_v61, %v3154_v11  ;;  %v3174_v46 = vmul.f32 %v3166_v10, %v3155_v13  ;;  %v3175_v47 = vmul.f32 %v3162_v61, %v3156_v12  ;;  %v3176_v48 = vmul.f32 %v3166_v10, %v3157_v16 }
 0xd98   :  { %v3189_v49 = vadd.f32 %v3182_v32, %v3169_v43  ;;  %v3190_v50 = vadd.f32 %v3186_v33, %v3170_v14  ;;  %v3191_v59 = vadd.f32 %v3182_v32, %v3171_v44  ;;  %v3192_v3 = vadd.f32 %v3186_v33, %v3172_v18 }
 0xd99   :  { %v3193_v4 = vadd.f32 %v3182_v32, %v3173_v45  ;;  %v3194_v5 = vadd.f32 %v3186_v33, %v3174_v46  ;;  %v3195_v2 = vadd.f32 %v3182_v32, %v3175_v47  ;;  %v3196_v21 = vadd.f32 %v3186_v33, %v3176_v48 }
 0xd9a   :  { %v7395_v51 = vmax.f32 %v3189_v49, 0.0  ;;  %v7397_v20 = vmax.f32 %v3190_v50, 0.0  ;;  %v7399_v25 = vmax.f32 %v3191_v59, 0.0  ;;  %v7401_v52 = vmax.f32 %v3192_v3, 0.0 }
 0xd9b   :  { %v7403_v8 = vmax.f32 %v3193_v4, 0.0  ;;  %v7405_v63 = vmax.f32 %v3194_v5, 0.0  ;;  %v7407_v9 = vmax.f32 %v3195_v2, 0.0  ;;  %v7409_v1 = vmax.f32 %v3196_v21, 0.0 }
 0xd9c   :  { %6126 = dma.done.wait [#allocation6 + $0x1], 32768 }
 0xd9d   :  { %6127 = vsyncadd [#allocation6 + $0x1], 4294934528  ;;  %3616 = vmatprep.mubr.f32.mxu0 %v7397_v20  ;;  %3527 = vmatprep.mubr.f32.mxu1 %v7397_v20  ;;  %v3330_v6 = vld [vmem:[#allocation4 + $0x3d8] sm:$0xff]  ;;  %v3329_v7 = vld [vmem:[#allocation4 + $0x3d0] sm:$0xff]  ;;  %vm4176_vm3 = vcmask 64512  }
 0xd9e   :  { %v3322_v28 = vld [vmem:[#allocation4 + $0x398] sm:$0xff]  ;;  %3552 = vmatprep.subr.mxu0 %v3330_v6  ;;  %v3321_v29 = vld [vmem:[#allocation4 + $0x390] sm:$0xff]  ;;  %v3328_v62 = vld [vmem:[#allocation4 + $0x3c8] sm:$0xff] }
 0xd9f   :  { %3553 = vmatpush1.msra.mxu0 %v3329_v7  ;;  %v3314_v60 = vld [vmem:[#allocation4 + $0x358] sm:$0xff]  ;;  %v3327_v34 = vld [vmem:[#allocation4 + $0x3c0] sm:$0xff]  ;;  %v3313_v30 = vld [vmem:[#allocation4 + $0x350] sm:$0xff]  ;;  %3463 = vmatprep.subr.mxu1 %v3328_v62 }
 0xda0   :  { %3554 = vmatprep.subr.mxu0 %v3322_v28  ;;  %v3320_v31 = vld [vmem:[#allocation4 + $0x388] sm:$0xff]  ;;  %v3306_v35 = vld [vmem:[#allocation4 + $0x318] sm:$0xff]  ;;  %3464 = vmatpush1.msra.mxu1 %v3327_v34  ;;  %v3319_v36 = vld [vmem:[#allocation4 + $0x380] sm:$0xff] }
 0xda1   :  { %3555 = vmatpush1.msra.mxu0 %v3321_v29  ;;  %v3312_v27 = vld [vmem:[#allocation4 + $0x348] sm:$0xff]  ;;  %v3305_v37 = vld [vmem:[#allocation4 + $0x310] sm:$0xff]  ;;  %3465 = vmatprep.subr.mxu1 %v3320_v31  ;;  %v3311_v38 = vld [vmem:[#allocation4 + $0x340] sm:$0xff] }
 0xda2   :  { %3556 = vmatprep.subr.mxu0 %v3314_v60  ;;  %v3298_v39 = vld [vmem:[#allocation4 + $0x2d8] sm:$0xff]  ;;  %3466 = vmatpush1.msra.mxu1 %v3319_v36  ;;  %v3304_v40 = vld [vmem:[#allocation4 + $0x308] sm:$0xff]  ;;  %v3297_v41 = vld [vmem:[#allocation4 + $0x2d0] sm:$0xff] }
 0xda3   :  { %3557 = vmatpush1.msra.mxu0 %v3313_v30  ;;  %3467 = vmatprep.subr.mxu1 %v3312_v27  ;;  %v3303_v42 = vld [vmem:[#allocation4 + $0x300] sm:$0xff]  ;;  %v3290_v53 = vld [vmem:[#allocation4 + $0x298] sm:$0xff]  ;;  %v3296_v54 = vld [vmem:[#allocation4 + $0x2c8] sm:$0xff] }
 0xda4   :  { %3558 = vmatprep.subr.mxu0 %v3306_v35  ;;  %3468 = vmatpush1.msra.mxu1 %v3311_v38  ;;  %v3289_v55 = vld [vmem:[#allocation4 + $0x290] sm:$0xff]  ;;  %v3295_v56 = vld [vmem:[#allocation4 + $0x2c0] sm:$0xff]  ;;  %v3282_v57 = vld [vmem:[#allocation4 + $0x258] sm:$0xff] }
 0xda5   :  { %3559 = vmatpush1.msra.mxu0 %v3305_v37  ;;  %3469 = vmatprep.subr.mxu1 %v3304_v40  ;;  %v3288_v58 = vld [vmem:[#allocation4 + $0x288] sm:$0xff]  ;;  %v3281_v19 = vld [vmem:[#allocation4 + $0x250] sm:$0xff]  ;;  %v3287_v22 = vld [vmem:[#allocation4 + $0x280] sm:$0xff] }
 0xda6   :  { %3560 = vmatprep.subr.mxu0 %v3298_v39  ;;  %3470 = vmatpush1.msra.mxu1 %v3303_v42  ;;  %v3274_v23 = vld [vmem:[#allocation4 + $0x218] sm:$0xff]  ;;  %v3280_v26 = vld [vmem:[#allocation4 + $0x248] sm:$0xff]  ;;  %v3273_v61 = vld [vmem:[#allocation4 + $0x210] sm:$0xff] }
 0xda7   :  { %3561 = vmatpush1.msra.mxu0 %v3297_v41  ;;  %3471 = vmatprep.subr.mxu1 %v3296_v54  ;;  %v3279_v10 = vld [vmem:[#allocation4 + $0x240] sm:$0xff]  ;;  %v3266_v32 = vld [vmem:[#allocation4 + $0x1d8] sm:$0xff]  ;;  %v3272_v33 = vld [vmem:[#allocation4 + $0x208] sm:$0xff] }
 0xda8   :  { %3562 = vmatprep.subr.mxu0 %v3290_v53  ;;  %3472 = vmatpush1.msra.mxu1 %v3295_v56  ;;  %v3265_v11 = vld [vmem:[#allocation4 + $0x1d0] sm:$0xff]  ;;  %v3271_v12 = vld [vmem:[#allocation4 + $0x200] sm:$0xff]  ;;  %v3258_v13 = vld [vmem:[#allocation4 + $0x198] sm:$0xff] }
 0xda9   :  { %3563 = vmatpush1.msra.mxu0 %v3289_v55  ;;  %3473 = vmatprep.subr.mxu1 %v3288_v58  ;;  %v3264_v16 = vld [vmem:[#allocation4 + $0x1c8] sm:$0xff]  ;;  %v3257_v43 = vld [vmem:[#allocation4 + $0x190] sm:$0xff]  ;;  %v3263_v14 = vld [vmem:[#allocation4 + $0x1c0] sm:$0xff] }
 0xdaa   :  { %3564 = vmatprep.subr.mxu0 %v3282_v57  ;;  %3474 = vmatpush1.msra.mxu1 %v3287_v22  ;;  %v3250_v44 = vld [vmem:[#allocation4 + $0x158] sm:$0xff]  ;;  %v3256_v18 = vld [vmem:[#allocation4 + $0x188] sm:$0xff]  ;;  %v3249_v45 = vld [vmem:[#allocation4 + $0x150] sm:$0xff] }
 0xdab   :  { %3565 = vmatpush1.msra.mxu0 %v3281_v19  ;;  %3475 = vmatprep.subr.mxu1 %v3280_v26  ;;  %v3255_v46 = vld [vmem:[#allocation4 + $0x180] sm:$0xff]  ;;  %v3242_v47 = vld [vmem:[#allocation4 + $0x118] sm:$0xff]  ;;  %v3248_v48 = vld [vmem:[#allocation4 + $0x148] sm:$0xff] }
 0xdac   :  { %3566 = vmatprep.subr.mxu0 %v3274_v23  ;;  %3476 = vmatpush1.msra.mxu1 %v3279_v10  ;;  %v3241_v49 = vld [vmem:[#allocation4 + $0x110] sm:$0xff]  ;;  %v3247_v50 = vld [vmem:[#allocation4 + $0x140] sm:$0xff]  ;;  %v3234_v59 = vld [vmem:[#allocation4 + $0xd8] sm:$0xff] }
 0xdad   :  { %3567 = vmatpush1.msra.mxu0 %v3273_v61  ;;  %3477 = vmatprep.subr.mxu1 %v3272_v33  ;;  %v3240_v3 = vld [vmem:[#allocation4 + $0x108] sm:$0xff]  ;;  %v3233_v4 = vld [vmem:[#allocation4 + $0xd0] sm:$0xff]  ;;  %v3239_v5 = vld [vmem:[#allocation4 + $0x100] sm:$0xff] }
 0xdae   :  { %3568 = vmatprep.subr.mxu0 %v3266_v32  ;;  %3478 = vmatpush1.msra.mxu1 %v3271_v12  ;;  %v3226_v2 = vld [vmem:[#allocation4 + $0x98] sm:$0xff]  ;;  %v3232_v21 = vld [vmem:[#allocation4 + $0xc8] sm:$0xff]  ;;  %v3225_v6 = vld [vmem:[#allocation4 + $0x90] sm:$0xff] }
 0xdaf   :  { %3569 = vmatpush1.msra.mxu0 %v3265_v11  ;;  %3479 = vmatprep.subr.mxu1 %v3264_v16  ;;  %v3231_v7 = vld [vmem:[#allocation4 + $0xc0] sm:$0xff]  ;;  %v3218_v28 = vld [vmem:[#allocation4 + $0x58] sm:$0xff]  ;;  %v3224_v29 = vld [vmem:[#allocation4 + $0x88] sm:$0xff] }
 0xdb0   :  { %3570 = vmatprep.subr.mxu0 %v3258_v13  ;;  %3480 = vmatpush1.msra.mxu1 %v3263_v14  ;;  %v3217_v60 = vld [vmem:[#allocation4 + $0x50] sm:$0xff]  ;;  %v3223_v62 = vld [vmem:[#allocation4 + $0x80] sm:$0xff]  ;;  %v3210_v34 = vld [vmem:[#allocation4 + $0x18] sm:$0xff] }
 0xdb1   :  { %3571 = vmatpush1.msra.mxu0 %v3257_v43  ;;  %3481 = vmatprep.subr.mxu1 %v3256_v18  ;;  %v3216_v30 = vld [vmem:[#allocation4 + $0x48] sm:$0xff]  ;;  %v3209_v31 = vld [vmem:[#allocation4 + $0x10] sm:$0xff]  ;;  %v3215_v35 = vld [vmem:[#allocation4 + $0x40] sm:$0xff] }
 0xdb2   :  { %3572 = vmatprep.subr.mxu0 %v3250_v44  ;;  %3482 = vmatpush1.msra.mxu1 %v3255_v46  ;;  %v3458_v36 = vld [vmem:[#allocation4 + $0x7d8] sm:$0xff]  ;;  %v3208_v27 = vld [vmem:[#allocation4 + $0x8] sm:$0xff]  ;;  %v3457_v37 = vld [vmem:[#allocation4 + $0x7d0] sm:$0xff] }
 0xdb3   :  { %3573 = vmatpush1.msra.mxu0 %v3249_v45  ;;  %3483 = vmatprep.subr.mxu1 %v3248_v48  ;;  %v3207_v38 = vld [vmem:[#allocation4] sm:$0xff]  ;;  %v3450_v39 = vld [vmem:[#allocation4 + $0x798] sm:$0xff]  ;;  %v3456_v40 = vld [vmem:[#allocation4 + $0x7c8] sm:$0xff] }
 0xdb4   :  { %3574 = vmatprep.subr.mxu0 %v3242_v47  ;;  %3484 = vmatpush1.msra.mxu1 %v3247_v50  ;;  %v3449_v41 = vld [vmem:[#allocation4 + $0x790] sm:$0xff]  ;;  %v3455_v42 = vld [vmem:[#allocation4 + $0x7c0] sm:$0xff]  ;;  %v3442_v53 = vld [vmem:[#allocation4 + $0x758] sm:$0xff] }
 0xdb5   :  { %3575 = vmatpush1.msra.mxu0 %v3241_v49  ;;  %3485 = vmatprep.subr.mxu1 %v3240_v3  ;;  %v3448_v54 = vld [vmem:[#allocation4 + $0x788] sm:$0xff]  ;;  %v3441_v55 = vld [vmem:[#allocation4 + $0x750] sm:$0xff]  ;;  %v3447_v56 = vld [vmem:[#allocation4 + $0x780] sm:$0xff] }
 0xdb6   :  { %3576 = vmatprep.subr.mxu0 %v3234_v59  ;;  %3486 = vmatpush1.msra.mxu1 %v3239_v5  ;;  %v3434_v57 = vld [vmem:[#allocation4 + $0x718] sm:$0xff]  ;;  %v3440_v58 = vld [vmem:[#allocation4 + $0x748] sm:$0xff]  ;;  %v3433_v19 = vld [vmem:[#allocation4 + $0x710] sm:$0xff] }
 0xdb7   :  { %3577 = vmatpush1.msra.mxu0 %v3233_v4  ;;  %3487 = vmatprep.subr.mxu1 %v3232_v21  ;;  %v3439_v22 = vld [vmem:[#allocation4 + $0x740] sm:$0xff]  ;;  %v3426_v23 = vld [vmem:[#allocation4 + $0x6d8] sm:$0xff]  ;;  %v3432_v26 = vld [vmem:[#allocation4 + $0x708] sm:$0xff] }
 0xdb8   :  { %3578 = vmatprep.subr.mxu0 %v3226_v2  ;;  %3488 = vmatpush1.msra.mxu1 %v3231_v7  ;;  %v3425_v61 = vld [vmem:[#allocation4 + $0x6d0] sm:$0xff]  ;;  %v3431_v10 = vld [vmem:[#allocation4 + $0x700] sm:$0xff]  ;;  %v3418_v32 = vld [vmem:[#allocation4 + $0x698] sm:$0xff] }
 0xdb9   :  { %3579 = vmatpush1.msra.mxu0 %v3225_v6  ;;  %3489 = vmatprep.subr.mxu1 %v3224_v29  ;;  %v3424_v33 = vld [vmem:[#allocation4 + $0x6c8] sm:$0xff]  ;;  %v3417_v11 = vld [vmem:[#allocation4 + $0x690] sm:$0xff]  ;;  %v3423_v12 = vld [vmem:[#allocation4 + $0x6c0] sm:$0xff] }
 0xdba   :  { %3580 = vmatprep.subr.mxu0 %v3218_v28  ;;  %3490 = vmatpush1.msra.mxu1 %v3223_v62  ;;  %v3410_v13 = vld [vmem:[#allocation4 + $0x658] sm:$0xff]  ;;  %v3416_v16 = vld [vmem:[#allocation4 + $0x688] sm:$0xff]  ;;  %v3409_v43 = vld [vmem:[#allocation4 + $0x650] sm:$0xff] }
 0xdbb   :  { %3581 = vmatpush1.msra.mxu0 %v3217_v60  ;;  %3491 = vmatprep.subr.mxu1 %v3216_v30  ;;  %v3415_v14 = vld [vmem:[#allocation4 + $0x680] sm:$0xff]  ;;  %v3402_v44 = vld [vmem:[#allocation4 + $0x618] sm:$0xff]  ;;  %v3408_v18 = vld [vmem:[#allocation4 + $0x648] sm:$0xff] }
 0xdbc   :  { %3582 = vmatprep.subr.mxu0 %v3210_v34  ;;  %3492 = vmatpush1.msra.mxu1 %v3215_v35  ;;  %v3401_v45 = vld [vmem:[#allocation4 + $0x610] sm:$0xff]  ;;  %v3407_v46 = vld [vmem:[#allocation4 + $0x640] sm:$0xff]  ;;  %v3394_v47 = vld [vmem:[#allocation4 + $0x5d8] sm:$0xff] }
 0xdbd   :  { %3583 = vmatpush1.msra.mxu0 %v3209_v31  ;;  %3493 = vmatprep.subr.mxu1 %v3208_v27  ;;  %v3400_v48 = vld [vmem:[#allocation4 + $0x608] sm:$0xff]  ;;  %v3393_v49 = vld [vmem:[#allocation4 + $0x5d0] sm:$0xff]  ;;  %v3399_v50 = vld [vmem:[#allocation4 + $0x600] sm:$0xff] }
 0xdbe   :  { %3584 = vmatprep.subr.mxu0 %v3458_v36  ;;  %3494 = vmatpush1.msra.mxu1 %v3207_v38  ;;  %v3386_v59 = vld [vmem:[#allocation4 + $0x598] sm:$0xff]  ;;  %v3392_v3 = vld [vmem:[#allocation4 + $0x5c8] sm:$0xff]  ;;  %v3385_v4 = vld [vmem:[#allocation4 + $0x590] sm:$0xff] }
 0xdbf   :  { %3585 = vmatpush2.msra.mxu0 %v3457_v37  ;;  %3495 = vmatprep.subr.mxu1 %v3456_v40  ;;  %v3391_v5 = vld [vmem:[#allocation4 + $0x5c0] sm:$0xff]  ;;  %v3378_v2 = vld [vmem:[#allocation4 + $0x558] sm:$0xff]  ;;  %v3384_v21 = vld [vmem:[#allocation4 + $0x588] sm:$0xff] }
 0xdc0   :  { %3586 = vmatprep.subr.mxu0 %v3450_v39  ;;  %3496 = vmatpush2.msra.mxu1 %v3455_v42  ;;  %v3377_v6 = vld [vmem:[#allocation4 + $0x550] sm:$0xff]  ;;  %v3383_v7 = vld [vmem:[#allocation4 + $0x580] sm:$0xff]  ;;  %v3370_v28 = vld [vmem:[#allocation4 + $0x518] sm:$0xff] }
 0xdc1   :  { %3587 = vmatpush2.msra.mxu0 %v3449_v41  ;;  %3497 = vmatprep.subr.mxu1 %v3448_v54  ;;  %v3376_v29 = vld [vmem:[#allocation4 + $0x548] sm:$0xff]  ;;  %v3369_v60 = vld [vmem:[#allocation4 + $0x510] sm:$0xff]  ;;  %v3375_v62 = vld [vmem:[#allocation4 + $0x540] sm:$0xff] }
 0xdc2   :  { %3588 = vmatprep.subr.mxu0 %v3442_v53  ;;  %3498 = vmatpush2.msra.mxu1 %v3447_v56  ;;  %v3362_v34 = vld [vmem:[#allocation4 + $0x4d8] sm:$0xff]  ;;  %v3368_v30 = vld [vmem:[#allocation4 + $0x508] sm:$0xff]  ;;  %v3361_v31 = vld [vmem:[#allocation4 + $0x4d0] sm:$0xff] }
 0xdc3   :  { %3589 = vmatpush2.msra.mxu0 %v3441_v55  ;;  %3499 = vmatprep.subr.mxu1 %v3440_v58  ;;  %v3367_v35 = vld [vmem:[#allocation4 + $0x500] sm:$0xff]  ;;  %v3354_v36 = vld [vmem:[#allocation4 + $0x498] sm:$0xff]  ;;  %v3360_v27 = vld [vmem:[#allocation4 + $0x4c8] sm:$0xff] }
 0xdc4   :  { %3590 = vmatprep.subr.mxu0 %v3434_v57  ;;  %3500 = vmatpush2.msra.mxu1 %v3439_v22  ;;  %v3353_v37 = vld [vmem:[#allocation4 + $0x490] sm:$0xff]  ;;  %v3359_v38 = vld [vmem:[#allocation4 + $0x4c0] sm:$0xff]  ;;  %v3346_v39 = vld [vmem:[#allocation4 + $0x458] sm:$0xff] }
 0xdc5   :  { %3591 = vmatpush2.msra.mxu0 %v3433_v19  ;;  %3501 = vmatprep.subr.mxu1 %v3432_v26  ;;  %v3352_v40 = vld [vmem:[#allocation4 + $0x488] sm:$0xff]  ;;  %v3345_v41 = vld [vmem:[#allocation4 + $0x450] sm:$0xff]  ;;  %v3351_v42 = vld [vmem:[#allocation4 + $0x480] sm:$0xff] }
 0xdc6   :  { %3592 = vmatprep.subr.mxu0 %v3426_v23  ;;  %3502 = vmatpush2.msra.mxu1 %v3431_v10  ;;  %v3338_v53 = vld [vmem:[#allocation4 + $0x418] sm:$0xff]  ;;  %v3344_v54 = vld [vmem:[#allocation4 + $0x448] sm:$0xff]  ;;  %v3337_v55 = vld [vmem:[#allocation4 + $0x410] sm:$0xff] }
 0xdc7   :  { %3593 = vmatpush2.msra.mxu0 %v3425_v61  ;;  %3503 = vmatprep.subr.mxu1 %v3424_v33  ;;  %v3343_v56 = vld [vmem:[#allocation4 + $0x440] sm:$0xff]  ;;  %v3334_v57 = vld [vmem:[#allocation4 + $0x3f8] sm:$0xff]  ;;  %v3333_v58 = vld [vmem:[#allocation4 + $0x3f0] sm:$0xff] }
 0xdc8   :  { %3594 = vmatprep.subr.mxu0 %v3418_v32  ;;  %3504 = vmatpush2.msra.mxu1 %v3423_v12  ;;  %v3336_v19 = vld [vmem:[#allocation4 + $0x408] sm:$0xff]  ;;  %v3326_v22 = vld [vmem:[#allocation4 + $0x3b8] sm:$0xff]  ;;  %v3335_v23 = vld [vmem:[#allocation4 + $0x400] sm:$0xff] }
 0xdc9   :  { %3595 = vmatpush2.msra.mxu0 %v3417_v11  ;;  %3505 = vmatprep.subr.mxu1 %v3416_v16  ;;  %v3325_v26 = vld [vmem:[#allocation4 + $0x3b0] sm:$0xff]  ;;  %v3332_v61 = vld [vmem:[#allocation4 + $0x3e8] sm:$0xff]  ;;  %v3318_v10 = vld [vmem:[#allocation4 + $0x378] sm:$0xff] }
 0xdca   :  { %3596 = vmatprep.subr.mxu0 %v3410_v13  ;;  %3506 = vmatpush2.msra.mxu1 %v3415_v14  ;;  %v3317_v32 = vld [vmem:[#allocation4 + $0x370] sm:$0xff]  ;;  %v3331_v33 = vld [vmem:[#allocation4 + $0x3e0] sm:$0xff]  ;;  %v3310_v11 = vld [vmem:[#allocation4 + $0x338] sm:$0xff] }
 0xdcb   :  { %3597 = vmatpush2.msra.mxu0 %v3409_v43  ;;  %3507 = vmatprep.subr.mxu1 %v3408_v18  ;;  %v3324_v12 = vld [vmem:[#allocation4 + $0x3a8] sm:$0xff]  ;;  %v3309_v13 = vld [vmem:[#allocation4 + $0x330] sm:$0xff]  ;;  %v3323_v16 = vld [vmem:[#allocation4 + $0x3a0] sm:$0xff] }
 0xdcc   :  { %3598 = vmatprep.subr.mxu0 %v3402_v44  ;;  %3508 = vmatpush2.msra.mxu1 %v3407_v46  ;;  %v3302_v43 = vld [vmem:[#allocation4 + $0x2f8] sm:$0xff]  ;;  %v3316_v14 = vld [vmem:[#allocation4 + $0x368] sm:$0xff]  ;;  %v3301_v44 = vld [vmem:[#allocation4 + $0x2f0] sm:$0xff] }
 0xdcd   :  { %3599 = vmatpush2.msra.mxu0 %v3401_v45  ;;  %3509 = vmatprep.subr.mxu1 %v3400_v48  ;;  %v3315_v18 = vld [vmem:[#allocation4 + $0x360] sm:$0xff]  ;;  %v3294_v45 = vld [vmem:[#allocation4 + $0x2b8] sm:$0xff]  ;;  %v3308_v46 = vld [vmem:[#allocation4 + $0x328] sm:$0xff] }
 0xdce   :  { %3600 = vmatprep.subr.mxu0 %v3394_v47  ;;  %3510 = vmatpush2.msra.mxu1 %v3399_v50  ;;  %v3293_v47 = vld [vmem:[#allocation4 + $0x2b0] sm:$0xff]  ;;  %v3307_v48 = vld [vmem:[#allocation4 + $0x320] sm:$0xff]  ;;  %v3300_v50 = vld [vmem:[#allocation4 + $0x2e8] sm:$0xff] }
 0xdcf   :  { %3601 = vmatpush2.msra.mxu0 %v3393_v49  ;;  %3511 = vmatprep.subr.mxu1 %v3392_v3  ;;  %v3286_v49 = vld [vmem:[#allocation4 + $0x278] sm:$0xff]  ;;  %v3299_v3 = vld [vmem:[#allocation4 + $0x2e0] sm:$0xff] }
 0xdd0   :  { %3602 = vmatprep.subr.mxu0 %v3386_v59  ;;  %3512 = vmatpush2.msra.mxu1 %v3391_v5  ;;  %v3285_v59 = vld [vmem:[#allocation4 + $0x270] sm:$0xff]  ;;  %v3292_v5 = vld [vmem:[#allocation4 + $0x2a8] sm:$0xff] }
 0xdd1   :  { %3603 = vmatpush2.msra.mxu0 %v3385_v4  ;;  %3513 = vmatprep.subr.mxu1 %v3384_v21  ;;  %v3278_v4 = vld [vmem:[#allocation4 + $0x238] sm:$0xff]  ;;  %v3291_v21 = vld [vmem:[#allocation4 + $0x2a0] sm:$0xff] }
 0xdd2   :  { %3604 = vmatprep.subr.mxu0 %v3378_v2  ;;  %3514 = vmatpush2.msra.mxu1 %v3383_v7  ;;  %v3277_v2 = vld [vmem:[#allocation4 + $0x230] sm:$0xff]  ;;  %v3284_v7 = vld [vmem:[#allocation4 + $0x268] sm:$0xff] }
 0xdd3   :  { %3605 = vmatpush2.msra.mxu0 %v3377_v6  ;;  %3515 = vmatprep.subr.mxu1 %v3376_v29  ;;  %v3270_v6 = vld [vmem:[#allocation4 + $0x1f8] sm:$0xff]  ;;  %v3283_v29 = vld [vmem:[#allocation4 + $0x260] sm:$0xff] }
 0xdd4   :  { %3606 = vmatprep.subr.mxu0 %v3370_v28  ;;  %3516 = vmatpush2.msra.mxu1 %v3375_v62  ;;  %v3269_v28 = vld [vmem:[#allocation4 + $0x1f0] sm:$0xff]  ;;  %v3276_v62 = vld [vmem:[#allocation4 + $0x228] sm:$0xff] }
 0xdd5   :  { %3607 = vmatpush2.msra.mxu0 %v3369_v60  ;;  %3517 = vmatprep.subr.mxu1 %v3368_v30  ;;  %v3262_v60 = vld [vmem:[#allocation4 + $0x1b8] sm:$0xff]  ;;  %v3275_v30 = vld [vmem:[#allocation4 + $0x220] sm:$0xff] }
 0xdd6   :  { %3608 = vmatprep.subr.mxu0 %v3362_v34  ;;  %3518 = vmatpush2.msra.mxu1 %v3367_v35  ;;  %v3261_v34 = vld [vmem:[#allocation4 + $0x1b0] sm:$0xff]  ;;  %v3268_v35 = vld [vmem:[#allocation4 + $0x1e8] sm:$0xff] }
 0xdd7   :  { %3609 = vmatpush2.msra.mxu0 %v3361_v31  ;;  %3519 = vmatprep.subr.mxu1 %v3360_v27  ;;  %v3254_v31 = vld [vmem:[#allocation4 + $0x178] sm:$0xff]  ;;  %v3267_v27 = vld [vmem:[#allocation4 + $0x1e0] sm:$0xff] }
 0xdd8   :  { %3610 = vmatprep.subr.mxu0 %v3354_v36  ;;  %3520 = vmatpush2.msra.mxu1 %v3359_v38  ;;  %v3253_v36 = vld [vmem:[#allocation4 + $0x170] sm:$0xff]  ;;  %v3260_v38 = vld [vmem:[#allocation4 + $0x1a8] sm:$0xff] }
 0xdd9   :  { %3611 = vmatpush2.msra.mxu0 %v3353_v37  ;;  %3521 = vmatprep.subr.mxu1 %v3352_v40  ;;  %v3246_v37 = vld [vmem:[#allocation4 + $0x138] sm:$0xff]  ;;  %v3259_v40 = vld [vmem:[#allocation4 + $0x1a0] sm:$0xff] }
 0xdda   :  { %3612 = vmatprep.subr.mxu0 %v3346_v39  ;;  %3522 = vmatpush2.msra.mxu1 %v3351_v42  ;;  %v3245_v39 = vld [vmem:[#allocation4 + $0x130] sm:$0xff]  ;;  %v3252_v42 = vld [vmem:[#allocation4 + $0x168] sm:$0xff] }
 0xddb   :  { %3613 = vmatpush2.msra.mxu0 %v3345_v41  ;;  %3523 = vmatprep.subr.mxu1 %v3344_v54  ;;  %v3238_v41 = vld [vmem:[#allocation4 + $0xf8] sm:$0xff]  ;;  %v3251_v54 = vld [vmem:[#allocation4 + $0x160] sm:$0xff] }
 0xddc   :  { %3614 = vmatprep.subr.mxu0 %v3338_v53  ;;  %3524 = vmatpush2.msra.mxu1 %v3343_v56  ;;  %v3237_v53 = vld [vmem:[#allocation4 + $0xf0] sm:$0xff]  ;;  %v3244_v56 = vld [vmem:[#allocation4 + $0x128] sm:$0xff] }
 0xddd   :  { %3615 = vmatpush2.msra.mxu0 %v3337_v55  ;;  %3525 = vmatprep.subr.mxu1 %v3336_v19  ;;  %v3230_v55 = vld [vmem:[#allocation4 + $0xb8] sm:$0xff] }
 0xdde   :  { %3617 = vmatmul.mubr.f32.vlgmr.msra.gmra.mxu0 %v7395_v51  ;;  %3730 = vmatprep.subr.mxu0 %v3334_v57  ;;  %v3229_v57 = vld [vmem:[#allocation4 + $0xb0] sm:$0xff]  ;;  %v3222_v19 = vld [vmem:[#allocation4 + $0x78] sm:$0xff] }
 0xddf   :  { %3731 = vmatpush1.msra.mxu0 %v3333_v58  ;;  %3526 = vmatpush2.msra.mxu1 %v3335_v23  ;;  %v3243_v58 = vld [vmem:[#allocation4 + $0x120] sm:$0xff]  ;;  %v3221_v23 = vld [vmem:[#allocation4 + $0x70] sm:$0xff] }
 0xde0   :  { %3732 = vmatprep.subr.mxu0 %v3326_v22  ;;  %3641 = vmatprep.subr.mxu1 %v3332_v61  ;;  %v3236_v22 = vld [vmem:[#allocation4 + $0xe8] sm:$0xff]  ;;  %v3214_v61 = vld [vmem:[#allocation4 + $0x38] sm:$0xff] }
 0xde1   :  { %3733 = vmatpush1.msra.mxu0 %v3325_v26  ;;  %3528 = vmatmul.mubr.f32.vlgmr.msra.gmra.mxu1 %v7395_v51  ;;  %v3235_v26 = vld [vmem:[#allocation4 + $0xe0] sm:$0xff] }
 0xde2   :  { %3734 = vmatprep.subr.mxu0 %v3318_v10  ;;  %3642 = vmatpush1.msra.mxu1 %v3331_v33  ;;  %v3228_v10 = vld [vmem:[#allocation4 + $0xa8] sm:$0xff]  ;;  %v3227_v33 = vld [vmem:[#allocation4 + $0xa0] sm:$0xff] }
 0xde3   :  { %3735 = vmatpush1.msra.mxu0 %v3317_v32  ;;  %3643 = vmatprep.subr.mxu1 %v3324_v12  ;;  %v3213_v32 = vld [vmem:[#allocation4 + $0x30] sm:$0xff]  ;;  %v3220_v12 = vld [vmem:[#allocation4 + $0x68] sm:$0xff] }
 0xde4   :  { %3736 = vmatprep.subr.mxu0 %v3310_v11  ;;  %3644 = vmatpush1.msra.mxu1 %v3323_v16  ;;  %v3462_v11 = vld [vmem:[#allocation4 + $0x7f8] sm:$0xff]  ;;  %v3219_v16 = vld [vmem:[#allocation4 + $0x60] sm:$0xff] }
 0xde5   :  { %3737 = vmatpush1.msra.mxu0 %v3309_v13  ;;  %3645 = vmatprep.subr.mxu1 %v3316_v14  ;;  %v3461_v13 = vld [vmem:[#allocation4 + $0x7f0] sm:$0xff]  ;;  %v3212_v14 = vld [vmem:[#allocation4 + $0x28] sm:$0xff] }
 0xde6   :  { %3738 = vmatprep.subr.mxu0 %v3302_v43  ;;  %3646 = vmatpush1.msra.mxu1 %v3315_v18  ;;  %v3454_v43 = vld [vmem:[#allocation4 + $0x7b8] sm:$0xff]  ;;  %v3211_v18 = vld [vmem:[#allocation4 + $0x20] sm:$0xff] }
 0xde7   :  { %3739 = vmatpush1.msra.mxu0 %v3301_v44  ;;  %3647 = vmatprep.subr.mxu1 %v3308_v46  ;;  %v3453_v44 = vld [vmem:[#allocation4 + $0x7b0] sm:$0xff]  ;;  %v3460_v46 = vld [vmem:[#allocation4 + $0x7e8] sm:$0xff] }
 0xde8   :  { %3740 = vmatprep.subr.mxu0 %v3294_v45  ;;  %3648 = vmatpush1.msra.mxu1 %v3307_v48  ;;  %v3446_v45 = vld [vmem:[#allocation4 + $0x778] sm:$0xff]  ;;  %v3459_v48 = vld [vmem:[#allocation4 + $0x7e0] sm:$0xff] }
 0xde9   :  { %3741 = vmatpush1.msra.mxu0 %v3293_v47  ;;  %3649 = vmatprep.subr.mxu1 %v3300_v50  ;;  %v3445_v47 = vld [vmem:[#allocation4 + $0x770] sm:$0xff]  ;;  %v3452_v50 = vld [vmem:[#allocation4 + $0x7a8] sm:$0xff] }
 0xdea   :  { %3742 = vmatprep.subr.mxu0 %v3286_v49  ;;  %3650 = vmatpush1.msra.mxu1 %v3299_v3  ;;  %v3438_v49 = vld [vmem:[#allocation4 + $0x738] sm:$0xff]  ;;  %v3451_v3 = vld [vmem:[#allocation4 + $0x7a0] sm:$0xff] }
 0xdeb   :  { %3743 = vmatpush1.msra.mxu0 %v3285_v59  ;;  %3651 = vmatprep.subr.mxu1 %v3292_v5  ;;  %v3437_v59 = vld [vmem:[#allocation4 + $0x730] sm:$0xff]  ;;  %v3444_v5 = vld [vmem:[#allocation4 + $0x768] sm:$0xff] }
 0xdec   :  { %3744 = vmatprep.subr.mxu0 %v3278_v4  ;;  %3652 = vmatpush1.msra.mxu1 %v3291_v21  ;;  %v3430_v4 = vld [vmem:[#allocation4 + $0x6f8] sm:$0xff]  ;;  %v3443_v21 = vld [vmem:[#allocation4 + $0x760] sm:$0xff] }
 0xded   :  { %3745 = vmatpush1.msra.mxu0 %v3277_v2  ;;  %3653 = vmatprep.subr.mxu1 %v3284_v7  ;;  %v3429_v2 = vld [vmem:[#allocation4 + $0x6f0] sm:$0xff]  ;;  %v3436_v7 = vld [vmem:[#allocation4 + $0x728] sm:$0xff] }
 0xdee   :  { %3746 = vmatprep.subr.mxu0 %v3270_v6  ;;  %3654 = vmatpush1.msra.mxu1 %v3283_v29  ;;  %v3422_v6 = vld [vmem:[#allocation4 + $0x6b8] sm:$0xff]  ;;  %v3435_v29 = vld [vmem:[#allocation4 + $0x720] sm:$0xff] }
 0xdef   :  { %3747 = vmatpush1.msra.mxu0 %v3269_v28  ;;  %3655 = vmatprep.subr.mxu1 %v3276_v62  ;;  %v3421_v28 = vld [vmem:[#allocation4 + $0x6b0] sm:$0xff]  ;;  %v3428_v62 = vld [vmem:[#allocation4 + $0x6e8] sm:$0xff] }
 0xdf0   :  { %3748 = vmatprep.subr.mxu0 %v3262_v60  ;;  %3656 = vmatpush1.msra.mxu1 %v3275_v30  ;;  %v3414_v60 = vld [vmem:[#allocation4 + $0x678] sm:$0xff]  ;;  %v3427_v30 = vld [vmem:[#allocation4 + $0x6e0] sm:$0xff] }
 0xdf1   :  { %3749 = vmatpush1.msra.mxu0 %v3261_v34  ;;  %3657 = vmatprep.subr.mxu1 %v3268_v35  ;;  %v3413_v34 = vld [vmem:[#allocation4 + $0x670] sm:$0xff]  ;;  %v3420_v35 = vld [vmem:[#allocation4 + $0x6a8] sm:$0xff] }
 0xdf2   :  { %3750 = vmatprep.subr.mxu0 %v3254_v31  ;;  %3658 = vmatpush1.msra.mxu1 %v3267_v27  ;;  %v3406_v31 = vld [vmem:[#allocation4 + $0x638] sm:$0xff] }
 0xdf3   :  { %3751 = vmatpush1.msra.mxu0 %v3253_v36  ;;  %3659 = vmatprep.subr.mxu1 %v3260_v38  ;;  %v3405_v36 = vld [vmem:[#allocation4 + $0x630] sm:$0xff]  ;;  %v3398_v27 = vld [vmem:[#allocation4 + $0x5f8] sm:$0xff] }
 0xdf4   :  { %3752 = vmatprep.subr.mxu0 %v3246_v37  ;;  %3660 = vmatpush1.msra.mxu1 %v3259_v40  ;;  %v3419_v37 = vld [vmem:[#allocation4 + $0x6a0] sm:$0xff]  ;;  %v3397_v38 = vld [vmem:[#allocation4 + $0x5f0] sm:$0xff]  ;;  %v3390_v40 = vld [vmem:[#allocation4 + $0x5b8] sm:$0xff] }
 0xdf5   :  { %3753 = vmatpush1.msra.mxu0 %v3245_v39  ;;  %3661 = vmatprep.subr.mxu1 %v3252_v42  ;;  %v3412_v39 = vld [vmem:[#allocation4 + $0x668] sm:$0xff]  ;;  %v3389_v42 = vld [vmem:[#allocation4 + $0x5b0] sm:$0xff] }
 0xdf6   :  { %3754 = vmatprep.subr.mxu0 %v3238_v41  ;;  %3662 = vmatpush1.msra.mxu1 %v3251_v54  ;;  %v3411_v41 = vld [vmem:[#allocation4 + $0x660] sm:$0xff]  ;;  %v3382_v54 = vld [vmem:[#allocation4 + $0x578] sm:$0xff] }
 0xdf7   :  { %3755 = vmatpush1.msra.mxu0 %v3237_v53  ;;  %3663 = vmatprep.subr.mxu1 %v3244_v56  ;;  %v3404_v53 = vld [vmem:[#allocation4 + $0x628] sm:$0xff]  ;;  %v3381_v56 = vld [vmem:[#allocation4 + $0x570] sm:$0xff] }
 0xdf8   :  { %3756 = vmatprep.subr.mxu0 %v3230_v55  ;;  %3664 = vmatpush1.msra.mxu1 %v3243_v58  ;;  %v3403_v55 = vld [vmem:[#allocation4 + $0x620] sm:$0xff]  ;;  %v3374_v58 = vld [vmem:[#allocation4 + $0x538] sm:$0xff] }
 0xdf9   :  { %3757 = vmatpush1.msra.mxu0 %v3229_v57  ;;  %3665 = vmatprep.subr.mxu1 %v3236_v22  ;;  %v3396_v57 = vld [vmem:[#allocation4 + $0x5e8] sm:$0xff]  ;;  %v3373_v22 = vld [vmem:[#allocation4 + $0x530] sm:$0xff] }
 0xdfa   :  { %3758 = vmatprep.subr.mxu0 %v3222_v19  ;;  %3666 = vmatpush1.msra.mxu1 %v3235_v26  ;;  %v3395_v19 = vld [vmem:[#allocation4 + $0x5e0] sm:$0xff]  ;;  %v3366_v26 = vld [vmem:[#allocation4 + $0x4f8] sm:$0xff] }
 0xdfb   :  { %3759 = vmatpush1.msra.mxu0 %v3221_v23  ;;  %3667 = vmatprep.subr.mxu1 %v3228_v10  ;;  %v3388_v23 = vld [vmem:[#allocation4 + $0x5a8] sm:$0xff]  ;;  %v3365_v10 = vld [vmem:[#allocation4 + $0x4f0] sm:$0xff] }
 0xdfc   :  { %3760 = vmatprep.subr.mxu0 %v3214_v61  ;;  %3668 = vmatpush1.msra.mxu1 %v3227_v33  ;;  %v3387_v61 = vld [vmem:[#allocation4 + $0x5a0] sm:$0xff]  ;;  %v3358_v33 = vld [vmem:[#allocation4 + $0x4b8] sm:$0xff] }
 0xdfd   :  { %3761 = vmatpush1.msra.mxu0 %v3213_v32  ;;  %3669 = vmatprep.subr.mxu1 %v3220_v12  ;;  %v3380_v32 = vld [vmem:[#allocation4 + $0x568] sm:$0xff]  ;;  %v3357_v12 = vld [vmem:[#allocation4 + $0x4b0] sm:$0xff] }
 0xdfe   :  { %3762 = vmatprep.subr.mxu0 %v3462_v11  ;;  %3670 = vmatpush1.msra.mxu1 %v3219_v16  ;;  %v3379_v11 = vld [vmem:[#allocation4 + $0x560] sm:$0xff]  ;;  %v3350_v16 = vld [vmem:[#allocation4 + $0x478] sm:$0xff] }
 0xdff   :  { %3763 = vmatpush2.msra.mxu0 %v3461_v13  ;;  %3671 = vmatprep.subr.mxu1 %v3212_v14  ;;  %v3372_v13 = vld [vmem:[#allocation4 + $0x528] sm:$0xff]  ;;  %v3349_v14 = vld [vmem:[#allocation4 + $0x470] sm:$0xff] }
 0xe00   :  { %3764 = vmatprep.subr.mxu0 %v3454_v43  ;;  %3672 = vmatpush1.msra.mxu1 %v3211_v18  ;;  %v3371_v43 = vld [vmem:[#allocation4 + $0x520] sm:$0xff]  ;;  %v3342_v18 = vld [vmem:[#allocation4 + $0x438] sm:$0xff] }
 0xe01   :  { %3765 = vmatpush2.msra.mxu0 %v3453_v44  ;;  %3673 = vmatprep.subr.mxu1 %v3460_v46  ;;  %v3364_v44 = vld [vmem:[#allocation4 + $0x4e8] sm:$0xff]  ;;  %v3341_v46 = vld [vmem:[#allocation4 + $0x430] sm:$0xff] }
 0xe02   :  { %3766 = vmatprep.subr.mxu0 %v3446_v45  ;;  %3674 = vmatpush2.msra.mxu1 %v3459_v48  ;;  %v3363_v45 = vld [vmem:[#allocation4 + $0x4e0] sm:$0xff] }
 0xe03   :  { %3767 = vmatpush2.msra.mxu0 %v3445_v47  ;;  %3675 = vmatprep.subr.mxu1 %v3452_v50  ;;  %v3356_v47 = vld [vmem:[#allocation4 + $0x4a8] sm:$0xff]  ;;  %v3355_v48 = vld [vmem:[#allocation4 + $0x4a0] sm:$0xff] }
 0xe04   :  { %3768 = vmatprep.subr.mxu0 %v3438_v49  ;;  %3676 = vmatpush2.msra.mxu1 %v3451_v3  ;;  %v3348_v49 = vld [vmem:[#allocation4 + $0x468] sm:$0xff]  ;;  %v3347_v50 = vld [vmem:[#allocation4 + $0x460] sm:$0xff] }
 0xe05   :  { %3769 = vmatpush2.msra.mxu0 %v3437_v59  ;;  %3677 = vmatprep.subr.mxu1 %v3444_v5  ;;  %v3340_v59 = vld [vmem:[#allocation4 + $0x428] sm:$0xff]  ;;  %v3339_v3 = vld [vmem:[#allocation4 + $0x420] sm:$0xff] }
 0xe06   :  { %3770 = vmatprep.subr.mxu0 %v3430_v4  ;;  %3678 = vmatpush2.msra.mxu1 %v3443_v21 }
 0xe07   :  { %3771 = vmatpush2.msra.mxu0 %v3429_v2  ;;  %3679 = vmatprep.subr.mxu1 %v3436_v7 }
 0xe08   :  { %3772 = vmatprep.subr.mxu0 %v3422_v6  ;;  %3680 = vmatpush2.msra.mxu1 %v3435_v29 }
 0xe09   :  { %3773 = vmatpush2.msra.mxu0 %v3421_v28  ;;  %3681 = vmatprep.subr.mxu1 %v3428_v62 }
 0xe0a   :  { %3774 = vmatprep.subr.mxu0 %v3414_v60  ;;  %3682 = vmatpush2.msra.mxu1 %v3427_v30 }
 0xe0b   :  { %3775 = vmatpush2.msra.mxu0 %v3413_v34  ;;  %3683 = vmatprep.subr.mxu1 %v3420_v35 }
 0xe0c   :  { %3776 = vmatprep.subr.mxu0 %v3406_v31  ;;  %3622 = vmatprep.mubr.f32.mxu0 %v7401_v52 }
 0xe0d   :  { %3777 = vmatpush2.msra.mxu0 %v3405_v36  ;;  %3684 = vmatpush2.msra.mxu1 %v3419_v37 }
 0xe0e   :  { %3778 = vmatprep.subr.mxu0 %v3398_v27  ;;  %3685 = vmatprep.subr.mxu1 %v3412_v39 }
 0xe0f   :  { %3779 = vmatpush2.msra.mxu0 %v3397_v38  ;;  %3686 = vmatpush2.msra.mxu1 %v3411_v41 }
 0xe10   :  { %3623 = vmatmul.mubr.f32.gmra.mxu0 %v7399_v25  ;;  %3780 = vmatprep.subr.mxu0 %v3390_v40 }
 0xe11   :  { %3781 = vmatpush2.msra.mxu0 %v3389_v42  ;;  %3687 = vmatprep.subr.mxu1 %v3404_v53 }
 0xe12   :  { %3782 = vmatprep.subr.mxu0 %v3382_v54  ;;  %3628 = vmatprep.mubr.f32.mxu0 %v7405_v63 }
 0xe13   :  { %3688 = vmatpush2.msra.mxu1 %v3403_v55  ;;  %3783 = vmatpush2.msra.mxu0 %v3381_v56  ;;  %v3851_v55 = vld [vmem:[%s8037_s19] sm:$0xff]  ;;  %v3852_v56 = vld [vmem:[%s8037_s19 + $0x8] sm:$0xff] }
 0xe14   :  { %3689 = vmatprep.subr.mxu1 %v3396_v57  ;;  %3629 = vmatmul.mubr.f32.gmra.mxu0 %v7403_v8  ;;  %v3853_v57 = vld [vmem:[%s8037_s19 + $0x10] sm:$0xff] }
 0xe15   :  { %3784 = vmatprep.subr.mxu0 %v3374_v58  ;;  %3690 = vmatpush2.msra.mxu1 %v3395_v19  ;;  %v3854_v58 = vld [vmem:[%s8037_s19 + $0x18] sm:$0xff]  ;;  %v3855_v19 = vld [vmem:[%s8037_s19 + $0x20] sm:$0xff] }
 0xe16   :  { %3785 = vmatpush2.msra.mxu0 %v3373_v22  ;;  %3691 = vmatprep.subr.mxu1 %v3388_v23  ;;  %v3856_v22 = vld [vmem:[%s8037_s19 + $0x28] sm:$0xff]  ;;  %v3857_v23 = vld [vmem:[%s8037_s19 + $0x30] sm:$0xff] }
 0xe17   :  { %3786 = vmatprep.subr.mxu0 %v3366_v26  ;;  %3533 = vmatprep.mubr.f32.mxu1 %v7401_v52  ;;  %v3858_v26 = vld [vmem:[%s8037_s19 + $0x38] sm:$0xff] }
 0xe18   :  { %3634 = vmatprep.mubr.f32.mxu0 %v7409_v1  ;;  %3692 = vmatpush2.msra.mxu1 %v3387_v61  ;;  %v4103_v61 = vld [vmem:[%s8039_s21 + $0xf8] sm:$0xff] }
 0xe19   :  { %3787 = vmatpush2.msra.mxu0 %v3365_v10  ;;  %3534 = vmatmul.mubr.f32.gmra.mxu1 %v7399_v25  ;;  %v4087_v10 = vld [vmem:[%s8039_s21 + $0x78] sm:$0xff] }
 0xe1a   :  { %3635 = vmatmul.mubr.f32.gmra.mxu0 %v7407_v9  ;;  %3693 = vmatprep.subr.mxu1 %v3380_v32  ;;  %v4102_v32 = vld [vmem:[%s8039_s21 + $0xf0] sm:$0xff] }
 0xe1b   :  { %3788 = vmatprep.subr.mxu0 %v3358_v33  ;;  %3694 = vmatpush2.msra.mxu1 %v3379_v11  ;;  %v4086_v33 = vld [vmem:[%s8039_s21 + $0x70] sm:$0xff]  ;;  %v4101_v11 = vld [vmem:[%s8039_s21 + $0xe8] sm:$0xff] }
 0xe1c   :  { %3789 = vmatpush2.msra.mxu0 %v3357_v12  ;;  %3695 = vmatprep.subr.mxu1 %v3372_v13  ;;  %v4085_v12 = vld [vmem:[%s8039_s21 + $0x68] sm:$0xff]  ;;  %v4100_v13 = vld [vmem:[%s8039_s21 + $0xe0] sm:$0xff] }
 0xe1d   :  { %3790 = vmatprep.subr.mxu0 %v3350_v16  ;;  %3539 = vmatprep.mubr.f32.mxu1 %v7405_v63  ;;  %v4084_v16 = vld [vmem:[%s8039_s21 + $0x60] sm:$0xff] }
 0xe1e   :  { %3696 = vmatpush2.msra.mxu1 %v3371_v43  ;;  %3791 = vmatpush2.msra.mxu0 %v3349_v14  ;;  %v4099_v43 = vld [vmem:[%s8039_s21 + $0xd8] sm:$0xff] }
 0xe1f   :  { %3540 = vmatmul.mubr.f32.gmra.mxu1 %v7403_v8  ;;  %3697 = vmatprep.subr.mxu1 %v3364_v44  ;;  %v4083_v14 = vld [vmem:[%s8039_s21 + $0x58] sm:$0xff]  ;;  %v4098_v44 = vld [vmem:[%s8039_s21 + $0xd0] sm:$0xff] }
 0xe20   :  { %3792 = vmatprep.subr.mxu0 %v3342_v18  ;;  %3698 = vmatpush2.msra.mxu1 %v3363_v45  ;;  %v4082_v18 = vld [vmem:[%s8039_s21 + $0x50] sm:$0xff]  ;;  %v4097_v45 = vld [vmem:[%s8039_s21 + $0xc8] sm:$0xff] }
 0xe21   :  { %3793 = vmatpush2.msra.mxu0 %v3341_v46  ;;  %3794 = vmatprep.mubr.f32.mxu0 %v7397_v20  ;;  %v4081_v46 = vld [vmem:[%s8039_s21 + $0x48] sm:$0xff] }
 0xe22   :  { %3699 = vmatprep.subr.mxu1 %v3356_v47  ;;  %3795 = vmatmul.mubr.f32.vlgmr.msra.gmra.mxu0 %v7395_v51  ;;  %v4096_v47 = vld [vmem:[%s8039_s21 + $0xc0] sm:$0xff] }
 0xe23   :  { %3545 = vmatprep.mubr.f32.mxu1 %v7409_v1  ;;  %3700 = vmatpush2.msra.mxu1 %v3355_v48  ;;  %v4080_v48 = vld [vmem:[%s8039_s21 + $0x40] sm:$0xff] }
 0xe24   :  { %3800 = vmatprep.mubr.f32.mxu0 %v7401_v52  ;;  %3546 = vmatmul.mubr.f32.gmra.mxu1 %v7407_v9 }
 0xe25   :  { %3701 = vmatprep.subr.mxu1 %v3348_v49  ;;  %3705 = vmatprep.mubr.f32.mxu1 %v7397_v20  ;;  %v4095_v49 = vld [vmem:[%s8039_s21 + $0xb8] sm:$0xff] }
 0xe26   :  { %3702 = vmatpush2.msra.mxu1 %v3347_v50  ;;  %3801 = vmatmul.mubr.f32.gmra.mxu0 %v7399_v25  ;;  %v4079_v50 = vld [vmem:[%s8039_s21 + $0x38] sm:$0xff] }
 0xe27   :  { %3703 = vmatprep.subr.mxu1 %v3340_v59  ;;  %3806 = vmatprep.mubr.f32.mxu0 %v7405_v63  ;;  %v4094_v59 = vld [vmem:[%s8039_s21 + $0xb0] sm:$0xff] }
 0xe28   :  { %3704 = vmatpush2.msra.mxu1 %v3339_v3  ;;  %5884 = vmatprep.subr.mxu0 %v4103_v61  ;;  %v4078_v3 = vld [vmem:[%s8039_s21 + $0x30] sm:$0xff] }
 0xe29   :  { %3706 = vmatmul.mubr.f32.vlgmr.msra.gmra.mxu1 %v7395_v51  ;;  %5885 = vmatpush3.msra.mxu0 %v4087_v10 }
 0xe2a   :  { %3711 = vmatprep.mubr.f32.mxu1 %v7401_v52  ;;  %3807 = vmatmul.mubr.f32.gmra.mxu0 %v7403_v8 }
 0xe2b   :  { %3812 = vmatprep.mubr.f32.mxu0 %v7409_v1  ;;  %5886 = vmatprep.subr.mxu0 %v4102_v32 }
 0xe2c   :  { %5887 = vmatpush3.msra.mxu0 %v4086_v33 }
 0xe2d   :  { %3712 = vmatmul.mubr.f32.gmra.mxu1 %v7399_v25  ;;  %5888 = vmatprep.subr.mxu0 %v4101_v11 }
 0xe2e   :  { %3717 = vmatprep.mubr.f32.mxu1 %v7405_v63  ;;  %3813 = vmatmul.mubr.f32.gmra.mxu0 %v7407_v9 }
 0xe2f   :  { %5889 = vmatpush3.msra.mxu0 %v4085_v12 }
 0xe30   :  { %5890 = vmatprep.subr.mxu0 %v4100_v13 }
 0xe31   :  { %3718 = vmatmul.mubr.f32.gmra.mxu1 %v7403_v8  ;;  %5891 = vmatpush3.msra.mxu0 %v4084_v16 }
 0xe32   :  { %3723 = vmatprep.mubr.f32.mxu1 %v7409_v1  ;;  %5892 = vmatprep.subr.mxu0 %v4099_v43 }
 0xe33   :  { %5893 = vmatpush3.msra.mxu0 %v4083_v14 }
 0xe34   :  { %5894 = vmatprep.subr.mxu0 %v4098_v44 }
 0xe35   :  { %3724 = vmatmul.mubr.f32.gmra.mxu1 %v7407_v9  ;;  %5895 = vmatpush3.msra.mxu0 %v4082_v18 }
 0xe36   :  { %3955 = vmatprep.mubr.f32.mxu1 %v6133_v0  ;;  %5896 = vmatprep.subr.mxu0 %v4097_v45 }
 0xe37   :  { %5897 = vmatpush3.msra.mxu0 %v4081_v46 }
 0xe38   :  { %5898 = vmatprep.subr.mxu0 %v4096_v47 }
 0xe39   :  { %5899 = vmatpush3.msra.mxu0 %v4080_v48 }
 0xe3a   :  { %5900 = vmatprep.subr.mxu0 %v4095_v49 }
 0xe3b   :  { %5901 = vmatpush3.msra.mxu0 %v4079_v50 }
 0xe3c   :  { %5902 = vmatprep.subr.mxu0 %v4094_v59 }
 0xe3d   :  { %5903 = vmatpush3.msra.mxu0 %v4078_v3 }
 0xe9e   :  { %v3618_v51 = vpop.f32.mrf.mxu0 }
 0xea0   :  { %v3620_v20 = vpop.f32.mrf.mxu0 }
 0xea1   :  { %v3529_v5 = vpop.f32.mrf.mxu1 }
 0xea3   :  { %v3531_v21 = vpop.f32.mrf.mxu1 }
 0xed0   :  { %v3624_v52 = vpop.f32.mrf.mxu0 }
 0xed2   :  { %v3626_v4 = vpop.f32.mrf.mxu0 }
 0xed4   :  { %v3630_v2 = vpop.f32.mrf.mxu0 }
 0xed6   :  { %v3632_v25 = vpop.f32.mrf.mxu0 }
 0xed9   :  { %v3535_v6 = vpop.f32.mrf.mxu1 }
 0xeda   :  { %v3636_v7 = vpop.f32.mrf.mxu0 }
 0xedb   :  { %v3537_v63 = vpop.f32.mrf.mxu1 }
 0xedc   :  { %v3638_v29 = vpop.f32.mrf.mxu0 }
 0xedf   :  { %v3541_v28 = vpop.f32.mrf.mxu1 }
 0xee1   :  { %v3543_v8 = vpop.f32.mrf.mxu1 }
 0xee2   :  { %v3796_v60 = vpop.f32.mrf.mxu0 }
 0xee4   :  { %v3547_v1 = vpop.f32.mrf.mxu1  ;;  %v3798_v62 = vpop.f32.mrf.mxu0 }
 0xee6   :  { %v3549_v9 = vpop.f32.mrf.mxu1  ;;  %v3802_v34 = vpop.f32.mrf.mxu0 }
 0xee8   :  { %v3804_v31 = vpop.f32.mrf.mxu0 }
 0xee9   :  { %v3707_v30 = vpop.f32.mrf.mxu1 }
 0xeea   :  { %v3808_v36 = vpop.f32.mrf.mxu0 }
 0xeeb   :  { %v3709_v35 = vpop.f32.mrf.mxu1 }
 0xeec   :  { %v3810_v37 = vpop.f32.mrf.mxu0 }
 0xeed   :  { %v3713_v27 = vpop.f32.mrf.mxu1 }
 0xeee   :  { %v3814_v39 = vpop.f32.mrf.mxu0 }
 0xeef   :  { %v3715_v38 = vpop.f32.mrf.mxu1 }
 0xef0   :  { %v3816_v41 = vpop.f32.mrf.mxu0 }
 0xef1   :  { %v3719_v40 = vpop.f32.mrf.mxu1  ;;  %3891 = vmatprep.subr.mxu1 %v3816_v41 }
 0xef2   :  { %3892 = vmatpush1.msra.mxu1 %v3814_v39 }
 0xef3   :  { %v3721_v42 = vpop.f32.mrf.mxu1  ;;  %3893 = vmatprep.subr.mxu1 %v3810_v37 }
 0xef4   :  { %3894 = vmatpush1.msra.mxu1 %v3808_v36 }
 0xef5   :  { %v3725_v53 = vpop.f32.mrf.mxu1  ;;  %3895 = vmatprep.subr.mxu1 %v3804_v31 }
 0xef6   :  { %3896 = vmatpush1.msra.mxu1 %v3802_v34 }
 0xef7   :  { %3897 = vmatprep.subr.mxu1 %v3798_v62  ;;  %v3727_v54 = vpop.f32.mrf.mxu1 }
 0xef8   :  { %3898 = vmatpush1.msra.mxu1 %v3796_v60 }
 0xef9   :  { %3899 = vmatprep.subr.mxu1 %v3727_v54 }
 0xefa   :  { %3900 = vmatpush1.msra.mxu1 %v3725_v53 }
 0xefb   :  { %3901 = vmatprep.subr.mxu1 %v3721_v42 }
 0xefc   :  { %3902 = vmatpush1.msra.mxu1 %v3719_v40 }
 0xefd   :  { %3903 = vmatprep.subr.mxu1 %v3715_v38 }
 0xefe   :  { %3904 = vmatpush1.msra.mxu1 %v3713_v27 }
 0xeff   :  { %3905 = vmatprep.subr.mxu1 %v3709_v35 }
 0xf00   :  { %3906 = vmatpush1.msra.mxu1 %v3707_v30 }
 0xf01   :  { %3907 = vmatprep.subr.mxu1 %v3638_v29 }
 0xf02   :  { %3908 = vmatpush1.msra.mxu1 %v3636_v7  ;;  %v4088_v7 = vld [vmem:[%s8039_s21 + $0x80] sm:$0xff] }
 0xf03   :  { %3909 = vmatprep.subr.mxu1 %v3632_v25  ;;  %v4074_v25 = vld [vmem:[%s8039_s21 + $0x10] sm:$0xff] }
 0xf04   :  { %3910 = vmatpush1.msra.mxu1 %v3630_v2  ;;  %v4075_v2 = vld [vmem:[%s8039_s21 + $0x18] sm:$0xff] }
 0xf05   :  { %3911 = vmatprep.subr.mxu1 %v3626_v4  ;;  %v4076_v4 = vld [vmem:[%s8039_s21 + $0x20] sm:$0xff] }
 0xf06   :  { %3912 = vmatpush1.msra.mxu1 %v3624_v52  ;;  %v4092_v52 = vld [vmem:[%s8039_s21 + $0xa0] sm:$0xff] }
 0xf07   :  { %3913 = vmatprep.subr.mxu1 %v3620_v20  ;;  %v4077_v20 = vld [vmem:[%s8039_s21 + $0x28] sm:$0xff] }
 0xf08   :  { %3914 = vmatpush1.msra.mxu1 %v3618_v51  ;;  %v4093_v51 = vld [vmem:[%s8039_s21 + $0xa8] sm:$0xff] }
 0xf09   :  { %3915 = vmatprep.subr.mxu1 %v3549_v9  ;;  %5904 = vmatprep.subr.mxu0 %v4093_v51 }
 0xf0a   :  { %3916 = vmatpush1.msra.mxu1 %v3547_v1  ;;  %5905 = vmatpush3.msra.mxu0 %v4077_v20 }
 0xf0b   :  { %3917 = vmatprep.subr.mxu1 %v3543_v8  ;;  %5906 = vmatprep.subr.mxu0 %v4092_v52 }
 0xf0c   :  { %3918 = vmatpush1.msra.mxu1 %v3541_v28  ;;  %5907 = vmatpush3.msra.mxu0 %v4076_v4  ;;  %v4072_v28 = vld [vmem:[%s8039_s21] sm:$0xff] }
 0xf0d   :  { %3919 = vmatprep.subr.mxu1 %v3537_v63  ;;  %v4073_v63 = vld [vmem:[%s8039_s21 + $0x8] sm:$0xff] }
 0xf0e   :  { %3920 = vmatpush1.msra.mxu1 %v3535_v6  ;;  %v4089_v6 = vld [vmem:[%s8039_s21 + $0x88] sm:$0xff] }
 0xf0f   :  { %3921 = vmatprep.subr.mxu1 %v3531_v21  ;;  %v4090_v21 = vld [vmem:[%s8039_s21 + $0x90] sm:$0xff] }
 0xf10   :  { %3922 = vmatpush1.msra.mxu1 %v3529_v5  ;;  %v4091_v5 = vld [vmem:[%s8039_s21 + $0x98] sm:$0xff] }
 0xf11   :  { %3956 = vmatmul.mubr.f32.vlgmr.msra.gmra.mxu1 %v3851_v55  ;;  %5919 = vmatprep.subr.mxu1 %v4103_v61 }
 0xf12   :  { %3961 = vmatprep.mubr.f32.mxu1 %v6133_v0  ;;  %5920 = vmatpush3.msra.mxu1 %v4087_v10 }
 0xf13   :  { %5921 = vmatprep.subr.mxu1 %v4102_v32  ;;  %5908 = vmatprep.subr.mxu0 %v4091_v5 }
 0xf14   :  { %5922 = vmatpush3.msra.mxu1 %v4086_v33  ;;  %5909 = vmatpush3.msra.mxu0 %v4075_v2 }
 0xf15   :  { %3962 = vmatmul.mubr.f32.gmra.mxu1 %v3852_v56  ;;  %5923 = vmatprep.subr.mxu1 %v4101_v11 }
 0xf16   :  { %3967 = vmatprep.mubr.f32.mxu1 %v6133_v0  ;;  %5924 = vmatpush3.msra.mxu1 %v4085_v12 }
 0xf17   :  { %5925 = vmatprep.subr.mxu1 %v4100_v13  ;;  %5910 = vmatprep.subr.mxu0 %v4090_v21 }
 0xf18   :  { %5926 = vmatpush3.msra.mxu1 %v4084_v16  ;;  %5911 = vmatpush3.msra.mxu0 %v4074_v25 }
 0xf19   :  { %3968 = vmatmul.mubr.f32.gmra.mxu1 %v3853_v57  ;;  %5927 = vmatprep.subr.mxu1 %v4099_v43 }
 0xf1a   :  { %3973 = vmatprep.mubr.f32.mxu1 %v6133_v0  ;;  %5928 = vmatpush3.msra.mxu1 %v4083_v14 }
 0xf1b   :  { %5929 = vmatprep.subr.mxu1 %v4098_v44  ;;  %5912 = vmatprep.subr.mxu0 %v4089_v6 }
 0xf1c   :  { %5930 = vmatpush3.msra.mxu1 %v4082_v18  ;;  %5913 = vmatpush3.msra.mxu0 %v4073_v63 }
 0xf1d   :  { %3974 = vmatmul.mubr.f32.gmra.mxu1 %v3854_v58  ;;  %5931 = vmatprep.subr.mxu1 %v4097_v45 }
 0xf1e   :  { %3979 = vmatprep.mubr.f32.mxu1 %v6133_v0  ;;  %5932 = vmatpush3.msra.mxu1 %v4081_v46 }
 0xf1f   :  { %5933 = vmatprep.subr.mxu1 %v4096_v47  ;;  %5914 = vmatprep.subr.mxu0 %v4088_v7 }
 0xf20   :  { %5934 = vmatpush3.msra.mxu1 %v4080_v48  ;;  %5915 = vmatpush3.msra.mxu0 %v4072_v28 }
 0xf21   :  { %3980 = vmatmul.mubr.f32.gmra.mxu1 %v3855_v19  ;;  %5935 = vmatprep.subr.mxu1 %v4095_v49 }
 0xf22   :  { %3985 = vmatprep.mubr.f32.mxu1 %v6133_v0  ;;  %5936 = vmatpush3.msra.mxu1 %v4079_v50 }
 0xf23   :  { %5937 = vmatprep.subr.mxu1 %v4094_v59 }
 0xf24   :  { %5938 = vmatpush3.msra.mxu1 %v4078_v3 }
 0xf25   :  { %3986 = vmatmul.mubr.f32.gmra.mxu1 %v3856_v22  ;;  %5939 = vmatprep.subr.mxu1 %v4093_v51 }
 0xf26   :  { %3991 = vmatprep.mubr.f32.mxu1 %v6133_v0  ;;  %5940 = vmatpush3.msra.mxu1 %v4077_v20 }
 0xf27   :  { %5941 = vmatprep.subr.mxu1 %v4092_v52 }
 0xf28   :  { %5942 = vmatpush3.msra.mxu1 %v4076_v4 }
 0xf29   :  { %3992 = vmatmul.mubr.f32.gmra.mxu1 %v3857_v23  ;;  %5943 = vmatprep.subr.mxu1 %v4091_v5 }
 0xf2a   :  { %3997 = vmatprep.mubr.f32.mxu1 %v6133_v0  ;;  %5944 = vmatpush3.msra.mxu1 %v4075_v2 }
 0xf2b   :  { %5945 = vmatprep.subr.mxu1 %v4090_v21 }
 0xf2c   :  { %5946 = vmatpush3.msra.mxu1 %v4074_v25 }
 0xf2d   :  { %3998 = vmatmul.mubr.f32.gmra.mxu1 %v3858_v26  ;;  %5947 = vmatprep.subr.mxu1 %v4089_v6 }
 0xf2e   :  { %5948 = vmatpush3.msra.mxu1 %v4073_v63 }
 0xf2f   :  { %5949 = vmatprep.subr.mxu1 %v4088_v7 }
 0xf30   :  { %5950 = vmatpush3.msra.mxu1 %v4072_v28 }
 0xfd1   :  { %v7571_v29 = vpop.f32.mrf.mxu1 }
 0xfd2   :  { %v4030_v27 = vmul.f32 %v7571_v29, %v7571_v29 }
 0xfd3   :  { %v7573_v8 = vpop.f32.mrf.mxu1 }
 0xfd4   :  { %v4031_v39 = vmul.f32 %v7573_v8, %v7573_v8 }
 0xfd5   :  { %v7575_v60 = vpop.f32.mrf.mxu1 }
 0xfd6   :  { %v4032_v31 = vmul.f32 %v7575_v60, %v7575_v60  ;;  %v4004_v37 = vadd.f32 %v7575_v60, %v7571_v29 }
 0xfd7   :  { %v7577_v1 = vpop.f32.mrf.mxu1 }
 0xfd8   :  { %v4033_v35 = vmul.f32 %v7577_v1, %v7577_v1  ;;  %v4046_v42 = vadd.f32 %v4032_v31, %v4030_v27  ;;  %v4017_v53 = vadd.f32 %v7577_v1, %v7573_v8 }
 0xfd9   :  { %v7579_v62 = vpop.f32.mrf.mxu1 }
 0xfda   :  { %v4034_v38 = vmul.f32 %v7579_v62, %v7579_v62  ;;  %v4005_v54 = vadd.f32 %v4004_v37, %v7579_v62  ;;  %v4059_v56 = vadd.f32 %v4033_v35, %v4031_v39 }
 0xfdb   :  { %v7581_v9 = vpop.f32.mrf.mxu1 }
 0xfdc   :  { %v4035_v40 = vmul.f32 %v7581_v9, %v7581_v9  ;;  %v4047_v19 = vadd.f32 %v4046_v42, %v4034_v38  ;;  %v4018_v22 = vadd.f32 %v4017_v53, %v7581_v9 }
 0xfdd   :  { %v7583_v34 = vpop.f32.mrf.mxu1 }
 0xfde   :  { %v4036_v55 = vmul.f32 %v7583_v34, %v7583_v34  ;;  %v4006_v23 = vadd.f32 %v4005_v54, %v7583_v34  ;;  %v4060_v61 = vadd.f32 %v4059_v56, %v4035_v40 }
 0xfdf   :  { %v7585_v30 = vpop.f32.mrf.mxu1 }
 0xfe0   :  { %v4037_v57 = vmul.f32 %v7585_v30, %v7585_v30  ;;  %v4048_v33 = vadd.f32 %v4047_v19, %v4036_v55  ;;  %v4019_v11 = vadd.f32 %v4018_v22, %v7585_v30 }
 0xfe1   :  { %v7591_v36 = vpop.f32.mrf.mxu1 }
 0xfe2   :  { %v4038_v26 = vmul.f32 %v7591_v36, %v7591_v36  ;;  %v4007_v12 = vadd.f32 %v4006_v23, %v7591_v36  ;;  %v4061_v16 = vadd.f32 %v4060_v61, %v4037_v57 }
 0xfe3   :  { %v7603_v41 = vpop.f32.mrf.mxu1 }
 0xfe4   :  { %v4039_v10 = vmul.f32 %v7603_v41, %v7603_v41  ;;  %v4049_v44 = vadd.f32 %v4048_v33, %v4038_v26  ;;  %v4020_v18 = vadd.f32 %v4019_v11, %v7603_v41 }
 0xfe5   :  { %v7612_v58 = vpop.f32.mrf.mxu1 }
 0xfe6   :  { %v4040_v13 = vmul.f32 %v7612_v58, %v7612_v58  ;;  %v4008_v45 = vadd.f32 %v4007_v12, %v7612_v58  ;;  %v4062_v47 = vadd.f32 %v4061_v16, %v4039_v10 }
 0xfe7   :  { %v7620_v32 = vpop.f32.mrf.mxu1 }
 0xfe8   :  { %v4041_v43 = vmul.f32 %v7620_v32, %v7620_v32  ;;  %v4050_v49 = vadd.f32 %v4049_v44, %v4040_v13  ;;  %v4021_v50 = vadd.f32 %v4020_v18, %v7620_v32  ;;  %v4174_v44 = vld [vmem:[%s8040_s22] sm:$0xff] }
 0xfe9   :  { %v7628_v14 = vpop.f32.mrf.mxu1 }
 0xfea   :  { %v4042_v46 = vmul.f32 %v7628_v14, %v7628_v14  ;;  %v4009_v59 = vadd.f32 %v4008_v45, %v7628_v14  ;;  %v4063_v51 = vadd.f32 %v4062_v47, %v4041_v43  ;;  %v4175_v43 = vld [vmem:[%s8040_s22 + $0x8] sm:$0xff] }
 0xfeb   :  { %v7634_v48 = vpop.f32.mrf.mxu1  ;;  %4210 = vmatprep.subr.mxu0 %v4175_v43 }
 0xfec   :  { %v4043_v3 = vmul.f32 %v7634_v48, %v7634_v48  ;;  %v4051_v52 = vadd.f32 %v4050_v49, %v4042_v46  ;;  %v4022_v4 = vadd.f32 %v4021_v50, %v7634_v48 }
 0xfed   :  { %v7640_v20 = vpop.f32.mrf.mxu1 }
 0xfee   :  { %v4010_v5 = vadd.f32 %v4009_v59, %v7640_v20  ;;  %v4044_v2 = vmul.f32 %v7640_v20, %v7640_v20  ;;  %v4064_v21 = vadd.f32 %v4063_v51, %v4043_v3 }
 0xfef   :  { %v7646_v25 = vpop.f32.mrf.mxu1 }
 0xff0   :  { %v4011_v6 = vrot.slane %v4010_v5, 4  ;;  %v4052_v63 = vadd.f32 %v4051_v52, %v4044_v2  ;;  %v4023_v7 = vadd.f32 %v4022_v4, %v7646_v25  ;;  %v4045_v28 = vmul.f32 %v7646_v25, %v7646_v25 }
 0xff2   :  { %v4012_v31 = vadd.f32 %v4011_v6, %v4010_v5  ;;  %v4053_v35 = vrot.slane %v4052_v63, 4  ;;  %v4024_v27 = vrot.slane %v4023_v7, 4  ;;  %v4065_v37 = vadd.f32 %v4064_v21, %v4045_v28 }
 0xff4   :  { %v4013_v38 = vrot.slane %v4012_v31, 2  ;;  %v4054_v39 = vadd.f32 %v4053_v35, %v4052_v63  ;;  %v4025_v40 = vadd.f32 %v4024_v27, %v4023_v7  ;;  %v4066_v42 = vrot.slane %v4065_v37, 4 }
 0xff6   :  { %v4014_v53 = vadd.f32 %v4013_v38, %v4012_v31  ;;  %v4055_v54 = vrot.slane %v4054_v39, 2  ;;  %v4026_v55 = vrot.slane %v4025_v40, 2  ;;  %v4067_v56 = vadd.f32 %v4066_v42, %v4065_v37  ;;  %v4476_v37 = vld [vmem:[%s8042_s24] sm:$0x3] }
 0xff8   :  { %v4056_v57 = vadd.f32 %v4055_v54, %v4054_v39  ;;  %v4027_v19 = vadd.f32 %v4026_v55, %v4025_v40  ;;  %v4068_v22 = vrot.slane %v4067_v56, 2  ;;  %v4015_v23 = vrot.slane %v4014_v53, 1  ;;  %v4401_v40 = vld [vmem:[%s8041_s23] sm:$0x3] }
 0xffa   :  { %v4028_v26 = vrot.slane %v4027_v19, 1  ;;  %v4069_v61 = vadd.f32 %v4068_v22, %v4067_v56  ;;  %v4057_v10 = vrot.slane %v4056_v57, 1  ;;  %v4016_v12 = vadd.f32 %v4015_v23, %v4014_v53 }
 0xffb   :  { %v4481_v53 = vrot.slane %v4476_v37, %v6712_v17 }
 0xffc   :  { %v4029_v33 = vadd.f32 %v4028_v26, %v4027_v19  ;;  %v4070_v11 = vrot.slane %v4069_v61, 1  ;;  %v4058_v16 = vadd.f32 %v4057_v10, %v4056_v57  ;;  %v4485_v57 = vrot.slane %v4476_v37, %v6723_v24 }
 0xffe   :  { %4168 = vmatprep.mubr.f32.mxu0 %v4029_v33  ;;  %v4071_v13 = vadd.f32 %v4070_v11, %v4069_v61 }
 0xfff   :  { %4169 = vmatmul.mubr.f32.vlgmr.msra.gmra.mxu0 %v4016_v12 }
0x1000   :  { %4315 = vmatprep.mubr.f32.mxu1 %v4071_v13  ;;  %4244 = vmatprep.mubr.f32.mxu0 %v6133_v0 }
0x1001   :  { %4316 = vmatmul.mubr.f32.vlgmr.msra.gmra.mxu1 %v4058_v16  ;;  %4211 = vmatpush1.msra.mxu0 %v4174_v44 }
0x1002   :  { %4354 = vmatprep.subr.mxu0 %v4175_v43 }
0x10bf   :  { %v5916_v18 = vpop.f32.mrf.mxu0 }
0x10c1   :  { %v5917_v45 = vpop.f32.mrf.mxu0  ;;  %v5951_v46 = vpop.f32.mrf.mxu1 }
0x10c2   :  { %v5918_v47 = vadd.f32 %v5917_v45, %v5916_v18 }
0x10c3   :  { %v5952_v49 = vpop.f32.mrf.mxu1 }
0x10c4   :  { %5669 = vmatmul.mubr.msk.f32.vlgmr.msra.gmra.mxu0 %vm4176_vm3, %v5918_v47  ;;  %v5953_v50 = vadd.f32 %v5952_v49, %v5951_v46 }
0x10c5   :  { %4355 = vmatpush1.msra.mxu0 %v4174_v44  ;;  %4388 = vmatprep.mubr.f32.mxu0 %v6133_v0 }
0x10c8   :  { %5670 = vmatmul.mubr.msk.f32.vlgmr.msra.gmra.mxu0 %vm4176_vm3, %v5953_v50 }
0x1184   :  { %v4246_v59 = vpop.f32.mrf.mxu0 }
0x1185   :  { %v4395_v51 = vmul.f32 %v4246_v59, %v4246_v59  ;;  %v4428_v0 = vrot.slane %v4246_v59, %v6712_v17 }
0x1186   :  { %v4248_v3 = vpop.f32.mrf.mxu0 }
0x1187   :  { %v4396_v2 = vmul.f32 %v4248_v3, %v4248_v3  ;;  %v4432_v39 = vrot.slane %v4248_v3, %v6712_v17  ;;  %v4433_v54 = vsub.f32 %v7571_v29, %v4428_v0  ;;  %v4435_v55 = vsub.f32 %v7575_v60, %v4428_v0 }
0x1188   :  { %v4390_v52 = vpop.f32.mrf.mxu0  ;;  %v4437_v56 = vsub.f32 %v7579_v62, %v4428_v0  ;;  %v4439_v19 = vsub.f32 %v7583_v34, %v4428_v0  ;;  %v4441_v22 = vsub.f32 %v7591_v36, %v4428_v0  ;;  %v4443_v23 = vsub.f32 %v7612_v58, %v4428_v0 }
0x1189   :  { %v4397_v4 = vsub.f32 %v4390_v52, %v4395_v51  ;;  %v4445_v61 = vsub.f32 %v7628_v14, %v4428_v0  ;;  %v4434_v10 = vsub.f32 %v7573_v8, %v4432_v39  ;;  %v4436_v29 = vsub.f32 %v7577_v1, %v4432_v39 }
0x118a   :  { %v4392_v5 = vpop.f32.mrf.mxu0  ;;  %v4438_v60 = vsub.f32 %v7581_v9, %v4432_v39  ;;  %v4440_v62 = vsub.f32 %v7585_v30, %v4432_v39  ;;  %v4442_v36 = vsub.f32 %v7603_v41, %v4432_v39  ;;  %v4444_v58 = vsub.f32 %v7620_v32, %v4432_v39 }
0x118b   :  { %v4399_v21 = vmax.f32 %v4397_v4, 0.0  ;;  %v4398_v6 = vsub.f32 %v4392_v5, %v4396_v2  ;;  %v4446_v14 = vsub.f32 %v7634_v48, %v4432_v39 }
0x118d   :  { %v4402_v63 = vadd.f32 1e-05, %v4399_v21  ;;  %v4400_v7 = vmax.f32 %v4398_v6, 0.0 }
0x118f   :  { %v4403_v28 = vadd.f32 1e-05, %v4400_v7  ;;  %5974 = vrsqrt.f32 %v4402_v63 }
0x1191   :  { %5976 = vrsqrt.f32 %v4403_v28 }
0x119c   :  { %v5975_v31 = vpop.eup %5974 }
0x119e   :  { %v5977_v35 = vpop.eup %5976 }
0x119f   :  { %v4408_v27 = vcombine.low %v5975_v31, %v5977_v35 }
0x11a1   :  { %v4415_v38 = vrot.slane %v4408_v27, %v6710_v15 }
0x11a3   :  { %v4422_v42 = vrot.slane %v4415_v38, %v6710_v15  ;;  %v4447_v15 = vsub.f32 %v7640_v20, %v4428_v0  ;;  %v4448_v20 = vsub.f32 %v7646_v25, %v4432_v39 }
0x11a5   :  { %v4424_v26 = vmul.f32 %v4422_v42, %v4401_v40 }
0x11a7   :  { %v4453_v33 = vrot.slane %v4424_v26, %v6712_v17  ;;  %v4457_v34 = vrot.slane %v4424_v26, %v6723_v24 }
0x11a9   :  { %v4460_v11 = vmul.f32 %v4453_v33, %v4433_v54  ;;  %v4461_v8 = vmul.f32 %v4457_v34, %v4434_v10  ;;  %v4462_v12 = vmul.f32 %v4453_v33, %v4435_v55  ;;  %v4463_v1 = vmul.f32 %v4457_v34, %v4436_v29 }
0x11aa   :  { %v4464_v13 = vmul.f32 %v4453_v33, %v4437_v56  ;;  %v4465_v9 = vmul.f32 %v4457_v34, %v4438_v60  ;;  %v4466_v16 = vmul.f32 %v4453_v33, %v4439_v19  ;;  %v4467_v30 = vmul.f32 %v4457_v34, %v4440_v62 }
0x11ab   :  { %v4468_v43 = vmul.f32 %v4453_v33, %v4441_v22  ;;  %v4469_v44 = vmul.f32 %v4457_v34, %v4442_v36  ;;  %v4470_v18 = vmul.f32 %v4453_v33, %v4443_v23  ;;  %v4471_v45 = vmul.f32 %v4457_v34, %v4444_v58 }
0x11ac   :  { %v4472_v46 = vmul.f32 %v4453_v33, %v4445_v61  ;;  %v4473_v41 = vmul.f32 %v4457_v34, %v4446_v14  ;;  %v4474_v47 = vmul.f32 %v4453_v33, %v4447_v15  ;;  %v4475_v32 = vmul.f32 %v4457_v34, %v4448_v20 }
0x11ad   :  { %v4488_v49 = vadd.f32 %v4481_v53, %v4460_v11  ;;  %v4489_v48 = vadd.f32 %v4485_v57, %v4461_v8  ;;  %v4490_v50 = vadd.f32 %v4481_v53, %v4462_v12  ;;  %v4491_v25 = vadd.f32 %v4485_v57, %v4463_v1 }
0x11ae   :  { %v4492_v59 = vadd.f32 %v4481_v53, %v4464_v13  ;;  %v4493_v3 = vadd.f32 %v4485_v57, %v4465_v9  ;;  %v4494_v51 = vadd.f32 %v4481_v53, %v4466_v16  ;;  %v4495_v52 = vadd.f32 %v4485_v57, %v4467_v30 }
0x11af   :  { %v4496_v4 = vadd.f32 %v4481_v53, %v4468_v43  ;;  %v4497_v5 = vadd.f32 %v4485_v57, %v4469_v44  ;;  %v4498_v2 = vadd.f32 %v4481_v53, %v4470_v18  ;;  %v4499_v21 = vadd.f32 %v4485_v57, %v4471_v45 }
0x11b0   :  { %v4500_v6 = vadd.f32 %v4481_v53, %v4472_v46  ;;  %v4501_v63 = vadd.f32 %v4485_v57, %v4473_v41  ;;  %v4502_v7 = vadd.f32 %v4481_v53, %v4474_v47  ;;  %v4503_v28 = vadd.f32 %v4485_v57, %v4475_v32 }
0x11b1   :  { %v7689_v31 = vmax.f32 %v4488_v49, 0.0  ;;  %v7691_v35 = vmax.f32 %v4489_v48, 0.0  ;;  %v7693_v27 = vmax.f32 %v4490_v50, 0.0  ;;  %v7695_v0 = vmax.f32 %v4491_v25, 0.0 }
0x11b2   :  { %v7697_v37 = vmax.f32 %v4492_v59, 0.0  ;;  %v7699_v38 = vmax.f32 %v4493_v3, 0.0  ;;  %v7701_v39 = vmax.f32 %v4494_v51, 0.0  ;;  %v7703_v40 = vmax.f32 %v4495_v52, 0.0 }
0x11b3   :  { %v7705_v42 = vmax.f32 %v4496_v4, 0.0  ;;  %v7707_v53 = vmax.f32 %v4497_v5, 0.0  ;;  %v7709_v54 = vmax.f32 %v4498_v2, 0.0  ;;  %v7711_v55 = vmax.f32 %v4499_v21, 0.0 }
0x11b4   :  { %v7713_v56 = vmax.f32 %v4500_v6, 0.0  ;;  %v7715_v57 = vmax.f32 %v4501_v63, 0.0  ;;  %v7717_v19 = vmax.f32 %v4502_v7, 0.0  ;;  %v7719_v22 = vmax.f32 %v4503_v28, 0.0 }
0x11b5   :  { %6128 = dma.done.wait [#allocation6 + $0x2], 32768 }
0x11b6   :  { %6129 = vsyncadd [#allocation6 + $0x2], 4294934528  ;;  %4955 = vmatprep.mubr.f32.mxu0 %v7691_v35  ;;  %4842 = vmatprep.mubr.f32.mxu1 %v7691_v35  ;;  %v4645_v23 = vld [vmem:[#allocation5 + $0x3d8] sm:$0xff]  ;;  %v4644_v26 = vld [vmem:[#allocation5 + $0x3d0] sm:$0xff] }
0x11b7   :  { %v4637_v61 = vld [vmem:[#allocation5 + $0x398] sm:$0xff]  ;;  %4891 = vmatprep.subr.mxu0 %v4645_v23  ;;  %v4636_v15 = vld [vmem:[#allocation5 + $0x390] sm:$0xff]  ;;  %v4643_v62 = vld [vmem:[#allocation5 + $0x3c8] sm:$0xff] }
0x11b8   :  { %4892 = vmatpush1.msra.mxu0 %v4644_v26  ;;  %v4629_v10 = vld [vmem:[#allocation5 + $0x358] sm:$0xff]  ;;  %v4628_v29 = vld [vmem:[#allocation5 + $0x350] sm:$0xff]  ;;  %4778 = vmatprep.subr.mxu1 %v4643_v62  ;;  %v4642_v34 = vld [vmem:[#allocation5 + $0x3c0] sm:$0xff] }
0x11b9   :  { %4893 = vmatprep.subr.mxu0 %v4637_v61  ;;  %v4621_v60 = vld [vmem:[#allocation5 + $0x318] sm:$0xff]  ;;  %v4620_v33 = vld [vmem:[#allocation5 + $0x310] sm:$0xff]  ;;  %4779 = vmatpush1.msra.mxu1 %v4642_v34  ;;  %v4635_v58 = vld [vmem:[#allocation5 + $0x388] sm:$0xff] }
0x11ba   :  { %4894 = vmatpush1.msra.mxu0 %v4636_v15  ;;  %v4613_v36 = vld [vmem:[#allocation5 + $0x2d8] sm:$0xff]  ;;  %v4634_v14 = vld [vmem:[#allocation5 + $0x380] sm:$0xff]  ;;  %v4612_v20 = vld [vmem:[#allocation5 + $0x2d0] sm:$0xff]  ;;  %4780 = vmatprep.subr.mxu1 %v4635_v58 }
0x11bb   :  { %4895 = vmatprep.subr.mxu0 %v4629_v10  ;;  %v4627_v11 = vld [vmem:[#allocation5 + $0x348] sm:$0xff]  ;;  %v4605_v8 = vld [vmem:[#allocation5 + $0x298] sm:$0xff]  ;;  %4781 = vmatpush1.msra.mxu1 %v4634_v14  ;;  %v4626_v12 = vld [vmem:[#allocation5 + $0x340] sm:$0xff] }
0x11bc   :  { %4896 = vmatpush1.msra.mxu0 %v4628_v29  ;;  %v4619_v1 = vld [vmem:[#allocation5 + $0x308] sm:$0xff]  ;;  %v4604_v13 = vld [vmem:[#allocation5 + $0x290] sm:$0xff]  ;;  %4782 = vmatprep.subr.mxu1 %v4627_v11  ;;  %v4618_v9 = vld [vmem:[#allocation5 + $0x300] sm:$0xff] }
0x11bd   :  { %4897 = vmatprep.subr.mxu0 %v4621_v60  ;;  %v4597_v16 = vld [vmem:[#allocation5 + $0x258] sm:$0xff]  ;;  %4783 = vmatpush1.msra.mxu1 %v4626_v12  ;;  %v4611_v30 = vld [vmem:[#allocation5 + $0x2c8] sm:$0xff]  ;;  %v4596_v43 = vld [vmem:[#allocation5 + $0x250] sm:$0xff] }
0x11be   :  { %4898 = vmatpush1.msra.mxu0 %v4620_v33  ;;  %4784 = vmatprep.subr.mxu1 %v4619_v1  ;;  %v4610_v44 = vld [vmem:[#allocation5 + $0x2c0] sm:$0xff]  ;;  %v4589_v18 = vld [vmem:[#allocation5 + $0x218] sm:$0xff]  ;;  %v4603_v45 = vld [vmem:[#allocation5 + $0x288] sm:$0xff] }
0x11bf   :  { %4899 = vmatprep.subr.mxu0 %v4613_v36  ;;  %4785 = vmatpush1.msra.mxu1 %v4618_v9  ;;  %v4588_v46 = vld [vmem:[#allocation5 + $0x210] sm:$0xff]  ;;  %v4602_v41 = vld [vmem:[#allocation5 + $0x280] sm:$0xff]  ;;  %v4581_v47 = vld [vmem:[#allocation5 + $0x1d8] sm:$0xff] }
0x11c0   :  { %4900 = vmatpush1.msra.mxu0 %v4612_v20  ;;  %4786 = vmatprep.subr.mxu1 %v4611_v30  ;;  %v4595_v32 = vld [vmem:[#allocation5 + $0x248] sm:$0xff]  ;;  %v4580_v49 = vld [vmem:[#allocation5 + $0x1d0] sm:$0xff]  ;;  %v4594_v48 = vld [vmem:[#allocation5 + $0x240] sm:$0xff] }
0x11c1   :  { %4901 = vmatprep.subr.mxu0 %v4605_v8  ;;  %4787 = vmatpush1.msra.mxu1 %v4610_v44  ;;  %v4573_v50 = vld [vmem:[#allocation5 + $0x198] sm:$0xff]  ;;  %v4587_v25 = vld [vmem:[#allocation5 + $0x208] sm:$0xff]  ;;  %v4572_v59 = vld [vmem:[#allocation5 + $0x190] sm:$0xff] }
0x11c2   :  { %4902 = vmatpush1.msra.mxu0 %v4604_v13  ;;  %4788 = vmatprep.subr.mxu1 %v4603_v45  ;;  %v4586_v3 = vld [vmem:[#allocation5 + $0x200] sm:$0xff]  ;;  %v4565_v51 = vld [vmem:[#allocation5 + $0x158] sm:$0xff]  ;;  %v4579_v52 = vld [vmem:[#allocation5 + $0x1c8] sm:$0xff] }
0x11c3   :  { %4903 = vmatprep.subr.mxu0 %v4597_v16  ;;  %4789 = vmatpush1.msra.mxu1 %v4602_v41  ;;  %v4564_v4 = vld [vmem:[#allocation5 + $0x150] sm:$0xff]  ;;  %v4578_v5 = vld [vmem:[#allocation5 + $0x1c0] sm:$0xff]  ;;  %v4557_v2 = vld [vmem:[#allocation5 + $0x118] sm:$0xff] }
0x11c4   :  { %4904 = vmatpush1.msra.mxu0 %v4596_v43  ;;  %4790 = vmatprep.subr.mxu1 %v4595_v32  ;;  %v4571_v21 = vld [vmem:[#allocation5 + $0x188] sm:$0xff]  ;;  %v4556_v6 = vld [vmem:[#allocation5 + $0x110] sm:$0xff]  ;;  %v4570_v63 = vld [vmem:[#allocation5 + $0x180] sm:$0xff] }
0x11c5   :  { %4905 = vmatprep.subr.mxu0 %v4589_v18  ;;  %4791 = vmatpush1.msra.mxu1 %v4594_v48  ;;  %v4549_v7 = vld [vmem:[#allocation5 + $0xd8] sm:$0xff]  ;;  %v4563_v28 = vld [vmem:[#allocation5 + $0x148] sm:$0xff]  ;;  %v4548_v23 = vld [vmem:[#allocation5 + $0xd0] sm:$0xff] }
0x11c6   :  { %4906 = vmatpush1.msra.mxu0 %v4588_v46  ;;  %4792 = vmatprep.subr.mxu1 %v4587_v25  ;;  %v4562_v26 = vld [vmem:[#allocation5 + $0x140] sm:$0xff]  ;;  %v4541_v61 = vld [vmem:[#allocation5 + $0x98] sm:$0xff]  ;;  %v4555_v15 = vld [vmem:[#allocation5 + $0x108] sm:$0xff] }
0x11c7   :  { %4907 = vmatprep.subr.mxu0 %v4581_v47  ;;  %4793 = vmatpush1.msra.mxu1 %v4586_v3  ;;  %v4540_v10 = vld [vmem:[#allocation5 + $0x90] sm:$0xff]  ;;  %v4554_v29 = vld [vmem:[#allocation5 + $0x100] sm:$0xff]  ;;  %v4533_v60 = vld [vmem:[#allocation5 + $0x58] sm:$0xff] }
0x11c8   :  { %4908 = vmatpush1.msra.mxu0 %v4580_v49  ;;  %4794 = vmatprep.subr.mxu1 %v4579_v52  ;;  %v4547_v62 = vld [vmem:[#allocation5 + $0xc8] sm:$0xff]  ;;  %v4532_v33 = vld [vmem:[#allocation5 + $0x50] sm:$0xff]  ;;  %v4546_v34 = vld [vmem:[#allocation5 + $0xc0] sm:$0xff] }
0x11c9   :  { %4909 = vmatprep.subr.mxu0 %v4573_v50  ;;  %4795 = vmatpush1.msra.mxu1 %v4578_v5  ;;  %v4525_v36 = vld [vmem:[#allocation5 + $0x18] sm:$0xff]  ;;  %v4539_v58 = vld [vmem:[#allocation5 + $0x88] sm:$0xff]  ;;  %v4524_v14 = vld [vmem:[#allocation5 + $0x10] sm:$0xff] }
0x11ca   :  { %4910 = vmatpush1.msra.mxu0 %v4572_v59  ;;  %4796 = vmatprep.subr.mxu1 %v4571_v21  ;;  %v4538_v20 = vld [vmem:[#allocation5 + $0x80] sm:$0xff]  ;;  %v4773_v11 = vld [vmem:[#allocation5 + $0x7d8] sm:$0xff]  ;;  %v4531_v8 = vld [vmem:[#allocation5 + $0x48] sm:$0xff] }
0x11cb   :  { %4911 = vmatprep.subr.mxu0 %v4565_v51  ;;  %4797 = vmatpush1.msra.mxu1 %v4570_v63  ;;  %v4772_v12 = vld [vmem:[#allocation5 + $0x7d0] sm:$0xff]  ;;  %v4530_v1 = vld [vmem:[#allocation5 + $0x40] sm:$0xff]  ;;  %v4765_v13 = vld [vmem:[#allocation5 + $0x798] sm:$0xff] }
0x11cc   :  { %4912 = vmatpush1.msra.mxu0 %v4564_v4  ;;  %4798 = vmatprep.subr.mxu1 %v4563_v28  ;;  %v4523_v9 = vld [vmem:[#allocation5 + $0x8] sm:$0xff]  ;;  %v4764_v16 = vld [vmem:[#allocation5 + $0x790] sm:$0xff]  ;;  %v4522_v30 = vld [vmem:[#allocation5] sm:$0xff] }
0x11cd   :  { %4913 = vmatprep.subr.mxu0 %v4557_v2  ;;  %4799 = vmatpush1.msra.mxu1 %v4562_v26  ;;  %v4757_v43 = vld [vmem:[#allocation5 + $0x758] sm:$0xff]  ;;  %v4771_v44 = vld [vmem:[#allocation5 + $0x7c8] sm:$0xff]  ;;  %v4756_v18 = vld [vmem:[#allocation5 + $0x750] sm:$0xff] }
0x11ce   :  { %4914 = vmatpush1.msra.mxu0 %v4556_v6  ;;  %4800 = vmatprep.subr.mxu1 %v4555_v15  ;;  %v4770_v45 = vld [vmem:[#allocation5 + $0x7c0] sm:$0xff]  ;;  %v4749_v46 = vld [vmem:[#allocation5 + $0x718] sm:$0xff]  ;;  %v4763_v41 = vld [vmem:[#allocation5 + $0x788] sm:$0xff] }
0x11cf   :  { %4915 = vmatprep.subr.mxu0 %v4549_v7  ;;  %4801 = vmatpush1.msra.mxu1 %v4554_v29  ;;  %v4748_v47 = vld [vmem:[#allocation5 + $0x710] sm:$0xff]  ;;  %v4762_v32 = vld [vmem:[#allocation5 + $0x780] sm:$0xff]  ;;  %v4741_v49 = vld [vmem:[#allocation5 + $0x6d8] sm:$0xff] }
0x11d0   :  { %4916 = vmatpush1.msra.mxu0 %v4548_v23  ;;  %4802 = vmatprep.subr.mxu1 %v4547_v62  ;;  %v4755_v48 = vld [vmem:[#allocation5 + $0x748] sm:$0xff]  ;;  %v4740_v50 = vld [vmem:[#allocation5 + $0x6d0] sm:$0xff]  ;;  %v4754_v25 = vld [vmem:[#allocation5 + $0x740] sm:$0xff] }
0x11d1   :  { %4917 = vmatprep.subr.mxu0 %v4541_v61  ;;  %4803 = vmatpush1.msra.mxu1 %v4546_v34  ;;  %v4733_v59 = vld [vmem:[#allocation5 + $0x698] sm:$0xff]  ;;  %v4747_v3 = vld [vmem:[#allocation5 + $0x708] sm:$0xff]  ;;  %v4732_v51 = vld [vmem:[#allocation5 + $0x690] sm:$0xff] }
0x11d2   :  { %4918 = vmatpush1.msra.mxu0 %v4540_v10  ;;  %4804 = vmatprep.subr.mxu1 %v4539_v58  ;;  %v4746_v52 = vld [vmem:[#allocation5 + $0x700] sm:$0xff]  ;;  %v4725_v4 = vld [vmem:[#allocation5 + $0x658] sm:$0xff]  ;;  %v4739_v5 = vld [vmem:[#allocation5 + $0x6c8] sm:$0xff] }
0x11d3   :  { %4919 = vmatprep.subr.mxu0 %v4533_v60  ;;  %4805 = vmatpush1.msra.mxu1 %v4538_v20  ;;  %v4724_v2 = vld [vmem:[#allocation5 + $0x650] sm:$0xff]  ;;  %v4738_v21 = vld [vmem:[#allocation5 + $0x6c0] sm:$0xff]  ;;  %v4717_v6 = vld [vmem:[#allocation5 + $0x618] sm:$0xff] }
0x11d4   :  { %4920 = vmatpush1.msra.mxu0 %v4532_v33  ;;  %4806 = vmatprep.subr.mxu1 %v4531_v8  ;;  %v4731_v63 = vld [vmem:[#allocation5 + $0x688] sm:$0xff]  ;;  %v4716_v7 = vld [vmem:[#allocation5 + $0x610] sm:$0xff]  ;;  %v4730_v28 = vld [vmem:[#allocation5 + $0x680] sm:$0xff] }
0x11d5   :  { %4921 = vmatprep.subr.mxu0 %v4525_v36  ;;  %4807 = vmatpush1.msra.mxu1 %v4530_v1  ;;  %v4709_v23 = vld [vmem:[#allocation5 + $0x5d8] sm:$0xff]  ;;  %v4723_v26 = vld [vmem:[#allocation5 + $0x648] sm:$0xff]  ;;  %v4708_v61 = vld [vmem:[#allocation5 + $0x5d0] sm:$0xff] }
0x11d6   :  { %4922 = vmatpush1.msra.mxu0 %v4524_v14  ;;  %4808 = vmatprep.subr.mxu1 %v4523_v9  ;;  %v4722_v15 = vld [vmem:[#allocation5 + $0x640] sm:$0xff]  ;;  %v4701_v10 = vld [vmem:[#allocation5 + $0x598] sm:$0xff]  ;;  %v4715_v29 = vld [vmem:[#allocation5 + $0x608] sm:$0xff] }
0x11d7   :  { %4923 = vmatprep.subr.mxu0 %v4773_v11  ;;  %4809 = vmatpush1.msra.mxu1 %v4522_v30  ;;  %v4700_v60 = vld [vmem:[#allocation5 + $0x590] sm:$0xff]  ;;  %v4714_v62 = vld [vmem:[#allocation5 + $0x600] sm:$0xff]  ;;  %v4693_v33 = vld [vmem:[#allocation5 + $0x558] sm:$0xff] }
0x11d8   :  { %4924 = vmatpush2.msra.mxu0 %v4772_v12  ;;  %4810 = vmatprep.subr.mxu1 %v4771_v44  ;;  %v4707_v34 = vld [vmem:[#allocation5 + $0x5c8] sm:$0xff]  ;;  %v4692_v36 = vld [vmem:[#allocation5 + $0x550] sm:$0xff]  ;;  %v4706_v58 = vld [vmem:[#allocation5 + $0x5c0] sm:$0xff] }
0x11d9   :  { %4925 = vmatprep.subr.mxu0 %v4765_v13  ;;  %4811 = vmatpush2.msra.mxu1 %v4770_v45  ;;  %v4685_v14 = vld [vmem:[#allocation5 + $0x518] sm:$0xff]  ;;  %v4699_v20 = vld [vmem:[#allocation5 + $0x588] sm:$0xff]  ;;  %v4684_v11 = vld [vmem:[#allocation5 + $0x510] sm:$0xff] }
0x11da   :  { %4926 = vmatpush2.msra.mxu0 %v4764_v16  ;;  %4812 = vmatprep.subr.mxu1 %v4763_v41  ;;  %v4698_v8 = vld [vmem:[#allocation5 + $0x580] sm:$0xff]  ;;  %v4677_v12 = vld [vmem:[#allocation5 + $0x4d8] sm:$0xff]  ;;  %v4691_v1 = vld [vmem:[#allocation5 + $0x548] sm:$0xff] }
0x11db   :  { %4927 = vmatprep.subr.mxu0 %v4757_v43  ;;  %4813 = vmatpush2.msra.mxu1 %v4762_v32  ;;  %v4676_v13 = vld [vmem:[#allocation5 + $0x4d0] sm:$0xff]  ;;  %v4690_v9 = vld [vmem:[#allocation5 + $0x540] sm:$0xff]  ;;  %v4669_v16 = vld [vmem:[#allocation5 + $0x498] sm:$0xff] }
0x11dc   :  { %4928 = vmatpush2.msra.mxu0 %v4756_v18  ;;  %4814 = vmatprep.subr.mxu1 %v4755_v48  ;;  %v4683_v30 = vld [vmem:[#allocation5 + $0x508] sm:$0xff]  ;;  %v4668_v43 = vld [vmem:[#allocation5 + $0x490] sm:$0xff]  ;;  %v4682_v44 = vld [vmem:[#allocation5 + $0x500] sm:$0xff] }
0x11dd   :  { %4929 = vmatprep.subr.mxu0 %v4749_v46  ;;  %4815 = vmatpush2.msra.mxu1 %v4754_v25  ;;  %v4661_v18 = vld [vmem:[#allocation5 + $0x458] sm:$0xff]  ;;  %v4675_v45 = vld [vmem:[#allocation5 + $0x4c8] sm:$0xff]  ;;  %v4660_v46 = vld [vmem:[#allocation5 + $0x450] sm:$0xff] }
0x11de   :  { %4930 = vmatpush2.msra.mxu0 %v4748_v47  ;;  %4816 = vmatprep.subr.mxu1 %v4747_v3  ;;  %v4674_v41 = vld [vmem:[#allocation5 + $0x4c0] sm:$0xff]  ;;  %v4653_v47 = vld [vmem:[#allocation5 + $0x418] sm:$0xff]  ;;  %v4667_v32 = vld [vmem:[#allocation5 + $0x488] sm:$0xff] }
0x11df   :  { %4931 = vmatprep.subr.mxu0 %v4741_v49  ;;  %4817 = vmatpush2.msra.mxu1 %v4746_v52  ;;  %v4652_v49 = vld [vmem:[#allocation5 + $0x410] sm:$0xff]  ;;  %v4666_v48 = vld [vmem:[#allocation5 + $0x480] sm:$0xff]  ;;  %v4659_v3 = vld [vmem:[#allocation5 + $0x448] sm:$0xff] }
0x11e0   :  { %4932 = vmatpush2.msra.mxu0 %v4740_v50  ;;  %4818 = vmatprep.subr.mxu1 %v4739_v5  ;;  %v4649_v50 = vld [vmem:[#allocation5 + $0x3f8] sm:$0xff]  ;;  %v4648_v25 = vld [vmem:[#allocation5 + $0x3f0] sm:$0xff]  ;;  %v4658_v52 = vld [vmem:[#allocation5 + $0x440] sm:$0xff] }
0x11e1   :  { %4933 = vmatprep.subr.mxu0 %v4733_v59  ;;  %4819 = vmatpush2.msra.mxu1 %v4738_v21  ;;  %v4641_v59 = vld [vmem:[#allocation5 + $0x3b8] sm:$0xff]  ;;  %v4632_v5 = vld [vmem:[#allocation5 + $0x370] sm:$0xff]  ;;  %v4651_v21 = vld [vmem:[#allocation5 + $0x408] sm:$0xff] }
0x11e2   :  { %4934 = vmatpush2.msra.mxu0 %v4732_v51  ;;  %4820 = vmatprep.subr.mxu1 %v4731_v63  ;;  %v4640_v51 = vld [vmem:[#allocation5 + $0x3b0] sm:$0xff]  ;;  %v4650_v63 = vld [vmem:[#allocation5 + $0x400] sm:$0xff] }
0x11e3   :  { %4935 = vmatprep.subr.mxu0 %v4725_v4  ;;  %4821 = vmatpush2.msra.mxu1 %v4730_v28  ;;  %v4633_v4 = vld [vmem:[#allocation5 + $0x378] sm:$0xff]  ;;  %v4616_v28 = vld [vmem:[#allocation5 + $0x2f0] sm:$0xff] }
0x11e4   :  { %4936 = vmatpush2.msra.mxu0 %v4724_v2  ;;  %4822 = vmatprep.subr.mxu1 %v4723_v26  ;;  %v4625_v2 = vld [vmem:[#allocation5 + $0x338] sm:$0xff]  ;;  %v4647_v26 = vld [vmem:[#allocation5 + $0x3e8] sm:$0xff] }
0x11e5   :  { %4937 = vmatprep.subr.mxu0 %v4717_v6  ;;  %4823 = vmatpush2.msra.mxu1 %v4722_v15  ;;  %v4624_v6 = vld [vmem:[#allocation5 + $0x330] sm:$0xff]  ;;  %v4601_v15 = vld [vmem:[#allocation5 + $0x278] sm:$0xff] }
0x11e6   :  { %4938 = vmatpush2.msra.mxu0 %v4716_v7  ;;  %4824 = vmatprep.subr.mxu1 %v4715_v29  ;;  %v4617_v7 = vld [vmem:[#allocation5 + $0x2f8] sm:$0xff] }
0x11e7   :  { %4939 = vmatprep.subr.mxu0 %v4709_v23  ;;  %4825 = vmatpush2.msra.mxu1 %v4714_v62  ;;  %v4609_v23 = vld [vmem:[#allocation5 + $0x2b8] sm:$0xff]  ;;  %v4592_v62 = vld [vmem:[#allocation5 + $0x230] sm:$0xff] }
0x11e8   :  { %4940 = vmatpush2.msra.mxu0 %v4708_v61  ;;  %4826 = vmatprep.subr.mxu1 %v4707_v34  ;;  %v4608_v61 = vld [vmem:[#allocation5 + $0x2b0] sm:$0xff]  ;;  %v4593_v29 = vld [vmem:[#allocation5 + $0x238] sm:$0xff] }
0x11e9   :  { %4941 = vmatprep.subr.mxu0 %v4701_v10  ;;  %4827 = vmatpush2.msra.mxu1 %v4706_v58  ;;  %v4600_v10 = vld [vmem:[#allocation5 + $0x270] sm:$0xff]  ;;  %v4585_v34 = vld [vmem:[#allocation5 + $0x1f8] sm:$0xff] }
0x11ea   :  { %4942 = vmatpush2.msra.mxu0 %v4700_v60  ;;  %4828 = vmatprep.subr.mxu1 %v4699_v20  ;;  %v4646_v60 = vld [vmem:[#allocation5 + $0x3e0] sm:$0xff]  ;;  %v4584_v58 = vld [vmem:[#allocation5 + $0x1f0] sm:$0xff]  ;;  %v4577_v20 = vld [vmem:[#allocation5 + $0x1b8] sm:$0xff] }
0x11eb   :  { %4943 = vmatprep.subr.mxu0 %v4693_v33  ;;  %4829 = vmatpush2.msra.mxu1 %v4698_v8  ;;  %v4639_v33 = vld [vmem:[#allocation5 + $0x3a8] sm:$0xff]  ;;  %v4576_v8 = vld [vmem:[#allocation5 + $0x1b0] sm:$0xff] }
0x11ec   :  { %4944 = vmatpush2.msra.mxu0 %v4692_v36  ;;  %4830 = vmatprep.subr.mxu1 %v4691_v1  ;;  %v4638_v36 = vld [vmem:[#allocation5 + $0x3a0] sm:$0xff]  ;;  %v4569_v1 = vld [vmem:[#allocation5 + $0x178] sm:$0xff] }
0x11ed   :  { %4945 = vmatprep.subr.mxu0 %v4685_v14  ;;  %4831 = vmatpush2.msra.mxu1 %v4690_v9  ;;  %v4631_v14 = vld [vmem:[#allocation5 + $0x368] sm:$0xff]  ;;  %v4568_v9 = vld [vmem:[#allocation5 + $0x170] sm:$0xff] }
0x11ee   :  { %4946 = vmatpush2.msra.mxu0 %v4684_v11  ;;  %4832 = vmatprep.subr.mxu1 %v4683_v30  ;;  %v4630_v11 = vld [vmem:[#allocation5 + $0x360] sm:$0xff]  ;;  %v4561_v30 = vld [vmem:[#allocation5 + $0x138] sm:$0xff] }
0x11ef   :  { %4947 = vmatprep.subr.mxu0 %v4677_v12  ;;  %4833 = vmatpush2.msra.mxu1 %v4682_v44  ;;  %v4623_v12 = vld [vmem:[#allocation5 + $0x328] sm:$0xff]  ;;  %v4560_v44 = vld [vmem:[#allocation5 + $0x130] sm:$0xff] }
0x11f0   :  { %4948 = vmatpush2.msra.mxu0 %v4676_v13  ;;  %4834 = vmatprep.subr.mxu1 %v4675_v45  ;;  %v4622_v13 = vld [vmem:[#allocation5 + $0x320] sm:$0xff]  ;;  %v4553_v45 = vld [vmem:[#allocation5 + $0xf8] sm:$0xff] }
0x11f1   :  { %4949 = vmatprep.subr.mxu0 %v4669_v16  ;;  %4835 = vmatpush2.msra.mxu1 %v4674_v41  ;;  %v4615_v16 = vld [vmem:[#allocation5 + $0x2e8] sm:$0xff]  ;;  %v4552_v41 = vld [vmem:[#allocation5 + $0xf0] sm:$0xff] }
0x11f2   :  { %4950 = vmatpush2.msra.mxu0 %v4668_v43  ;;  %4836 = vmatprep.subr.mxu1 %v4667_v32  ;;  %v4614_v43 = vld [vmem:[#allocation5 + $0x2e0] sm:$0xff]  ;;  %v4545_v32 = vld [vmem:[#allocation5 + $0xb8] sm:$0xff] }
0x11f3   :  { %4951 = vmatprep.subr.mxu0 %v4661_v18  ;;  %4837 = vmatpush2.msra.mxu1 %v4666_v48  ;;  %v4607_v18 = vld [vmem:[#allocation5 + $0x2a8] sm:$0xff]  ;;  %v4544_v48 = vld [vmem:[#allocation5 + $0xb0] sm:$0xff] }
0x11f4   :  { %4952 = vmatpush2.msra.mxu0 %v4660_v46  ;;  %4838 = vmatprep.subr.mxu1 %v4659_v3  ;;  %v4606_v46 = vld [vmem:[#allocation5 + $0x2a0] sm:$0xff]  ;;  %v4536_v3 = vld [vmem:[#allocation5 + $0x70] sm:$0xff] }
0x11f5   :  { %4953 = vmatprep.subr.mxu0 %v4653_v47  ;;  %4839 = vmatpush2.msra.mxu1 %v4658_v52  ;;  %v4599_v47 = vld [vmem:[#allocation5 + $0x268] sm:$0xff]  ;;  %v4529_v52 = vld [vmem:[#allocation5 + $0x38] sm:$0xff] }
0x11f6   :  { %4954 = vmatpush2.msra.mxu0 %v4652_v49  ;;  %4840 = vmatprep.subr.mxu1 %v4651_v21  ;;  %v4598_v49 = vld [vmem:[#allocation5 + $0x260] sm:$0xff]  ;;  %v4777_v21 = vld [vmem:[#allocation5 + $0x7f8] sm:$0xff] }
0x11f7   :  { %4956 = vmatmul.mubr.f32.vlgmr.msra.gmra.mxu0 %v7689_v31  ;;  %5117 = vmatprep.subr.mxu0 %v4649_v50  ;;  %v4591_v50 = vld [vmem:[#allocation5 + $0x228] sm:$0xff] }
0x11f8   :  { %5118 = vmatpush1.msra.mxu0 %v4648_v25  ;;  %4961 = vmatprep.mubr.f32.mxu0 %v7695_v0  ;;  %v4537_v25 = vld [vmem:[#allocation5 + $0x78] sm:$0xff] }
0x11f9   :  { %5119 = vmatprep.subr.mxu0 %v4641_v59  ;;  %4841 = vmatpush2.msra.mxu1 %v4650_v63  ;;  %v4590_v59 = vld [vmem:[#allocation5 + $0x220] sm:$0xff]  ;;  %v4776_v63 = vld [vmem:[#allocation5 + $0x7f0] sm:$0xff] }
0x11fa   :  { %5120 = vmatpush1.msra.mxu0 %v4640_v51  ;;  %5004 = vmatprep.subr.mxu1 %v4647_v26  ;;  %v4583_v51 = vld [vmem:[#allocation5 + $0x1e8] sm:$0xff]  ;;  %v4768_v26 = vld [vmem:[#allocation5 + $0x7b0] sm:$0xff] }
0x11fb   :  { %4962 = vmatmul.mubr.f32.gmra.mxu0 %v7693_v27  ;;  %5121 = vmatprep.subr.mxu0 %v4633_v4  ;;  %v4582_v4 = vld [vmem:[#allocation5 + $0x1e0] sm:$0xff] }
0x11fc   :  { %5122 = vmatpush1.msra.mxu0 %v4632_v5  ;;  %4967 = vmatprep.mubr.f32.mxu0 %v7699_v38  ;;  %v4528_v5 = vld [vmem:[#allocation5 + $0x30] sm:$0xff] }
0x11fd   :  { %5123 = vmatprep.subr.mxu0 %v4625_v2  ;;  %4843 = vmatmul.mubr.f32.vlgmr.msra.gmra.mxu1 %v7689_v31  ;;  %v4575_v2 = vld [vmem:[#allocation5 + $0x1a8] sm:$0xff] }
0x11fe   :  { %5124 = vmatpush1.msra.mxu0 %v4624_v6  ;;  %5005 = vmatpush1.msra.mxu1 %v4646_v60  ;;  %v4574_v6 = vld [vmem:[#allocation5 + $0x1a0] sm:$0xff]  ;;  %v4551_v60 = vld [vmem:[#allocation5 + $0xe8] sm:$0xff] }
0x11ff   :  { %4968 = vmatmul.mubr.f32.gmra.mxu0 %v7697_v37  ;;  %5125 = vmatprep.subr.mxu0 %v4617_v7  ;;  %v4567_v7 = vld [vmem:[#allocation5 + $0x168] sm:$0xff] }
0x1200   :  { %5126 = vmatpush1.msra.mxu0 %v4616_v28  ;;  %4973 = vmatprep.mubr.f32.mxu0 %v7703_v40  ;;  %v4769_v28 = vld [vmem:[#allocation5 + $0x7b8] sm:$0xff] }
0x1201   :  { %5127 = vmatprep.subr.mxu0 %v4609_v23  ;;  %5006 = vmatprep.subr.mxu1 %v4639_v33  ;;  %v4566_v23 = vld [vmem:[#allocation5 + $0x160] sm:$0xff] }
0x1202   :  { %5128 = vmatpush1.msra.mxu0 %v4608_v61  ;;  %5007 = vmatpush1.msra.mxu1 %v4638_v36  ;;  %v4559_v61 = vld [vmem:[#allocation5 + $0x128] sm:$0xff]  ;;  %v4550_v33 = vld [vmem:[#allocation5 + $0xe0] sm:$0xff] }
0x1203   :  { %4974 = vmatmul.mubr.f32.gmra.mxu0 %v7701_v39  ;;  %5129 = vmatprep.subr.mxu0 %v4601_v15  ;;  %v4761_v15 = vld [vmem:[#allocation5 + $0x778] sm:$0xff]  ;;  %v4543_v36 = vld [vmem:[#allocation5 + $0xa8] sm:$0xff] }
0x1204   :  { %5130 = vmatpush1.msra.mxu0 %v4600_v10  ;;  %4979 = vmatprep.mubr.f32.mxu0 %v7707_v53  ;;  %v4558_v10 = vld [vmem:[#allocation5 + $0x120] sm:$0xff] }
0x1205   :  { %5131 = vmatprep.subr.mxu0 %v4593_v29  ;;  %5008 = vmatprep.subr.mxu1 %v4631_v14  ;;  %v4760_v29 = vld [vmem:[#allocation5 + $0x770] sm:$0xff]  ;;  %v4542_v14 = vld [vmem:[#allocation5 + $0xa0] sm:$0xff] }
0x1206   :  { %5132 = vmatpush1.msra.mxu0 %v4592_v62  ;;  %4848 = vmatprep.mubr.f32.mxu1 %v7695_v0  ;;  %v4753_v62 = vld [vmem:[#allocation5 + $0x738] sm:$0xff] }
0x1207   :  { %4980 = vmatmul.mubr.f32.gmra.mxu0 %v7705_v42  ;;  %5133 = vmatprep.subr.mxu0 %v4585_v34  ;;  %v4752_v34 = vld [vmem:[#allocation5 + $0x730] sm:$0xff] }
0x1208   :  { %5134 = vmatpush1.msra.mxu0 %v4584_v58  ;;  %4985 = vmatprep.mubr.f32.mxu0 %v7711_v55  ;;  %v4745_v58 = vld [vmem:[#allocation5 + $0x6f8] sm:$0xff] }
0x1209   :  { %5135 = vmatprep.subr.mxu0 %v4577_v20  ;;  %5009 = vmatpush1.msra.mxu1 %v4630_v11  ;;  %v4744_v20 = vld [vmem:[#allocation5 + $0x6f0] sm:$0xff]  ;;  %v4535_v11 = vld [vmem:[#allocation5 + $0x68] sm:$0xff] }
0x120a   :  { %5136 = vmatpush1.msra.mxu0 %v4576_v8  ;;  %4849 = vmatmul.mubr.f32.gmra.mxu1 %v7693_v27  ;;  %v4737_v8 = vld [vmem:[#allocation5 + $0x6b8] sm:$0xff] }
0x120b   :  { %4986 = vmatmul.mubr.f32.gmra.mxu0 %v7709_v54  ;;  %5010 = vmatprep.subr.mxu1 %v4623_v12  ;;  %v4534_v12 = vld [vmem:[#allocation5 + $0x60] sm:$0xff] }
0x120c   :  { %5137 = vmatprep.subr.mxu0 %v4569_v1  ;;  %5011 = vmatpush1.msra.mxu1 %v4622_v13  ;;  %v4736_v1 = vld [vmem:[#allocation5 + $0x6b0] sm:$0xff]  ;;  %v4527_v13 = vld [vmem:[#allocation5 + $0x28] sm:$0xff] }
0x120d   :  { %5138 = vmatpush1.msra.mxu0 %v4568_v9  ;;  %5012 = vmatprep.subr.mxu1 %v4615_v16  ;;  %v4729_v9 = vld [vmem:[#allocation5 + $0x678] sm:$0xff]  ;;  %v4526_v16 = vld [vmem:[#allocation5 + $0x20] sm:$0xff] }
0x120e   :  { %5139 = vmatprep.subr.mxu0 %v4561_v30  ;;  %4854 = vmatprep.mubr.f32.mxu1 %v7699_v38  ;;  %v4728_v30 = vld [vmem:[#allocation5 + $0x670] sm:$0xff] }
0x120f   :  { %4991 = vmatprep.mubr.f32.mxu0 %v7715_v57  ;;  %5013 = vmatpush1.msra.mxu1 %v4614_v43  ;;  %v4775_v43 = vld [vmem:[#allocation5 + $0x7e8] sm:$0xff] }
0x1210   :  { %5140 = vmatpush1.msra.mxu0 %v4560_v44  ;;  %4855 = vmatmul.mubr.f32.gmra.mxu1 %v7697_v37  ;;  %v4721_v44 = vld [vmem:[#allocation5 + $0x638] sm:$0xff] }
0x1211   :  { %4992 = vmatmul.mubr.f32.gmra.mxu0 %v7713_v56  ;;  %5014 = vmatprep.subr.mxu1 %v4607_v18  ;;  %v4774_v18 = vld [vmem:[#allocation5 + $0x7e0] sm:$0xff] }
0x1212   :  { %5141 = vmatprep.subr.mxu0 %v4553_v45  ;;  %5015 = vmatpush1.msra.mxu1 %v4606_v46  ;;  %v4720_v45 = vld [vmem:[#allocation5 + $0x630] sm:$0xff]  ;;  %v4767_v46 = vld [vmem:[#allocation5 + $0x7a8] sm:$0xff] }
0x1213   :  { %5142 = vmatpush1.msra.mxu0 %v4552_v41  ;;  %5016 = vmatprep.subr.mxu1 %v4599_v47  ;;  %v4713_v41 = vld [vmem:[#allocation5 + $0x5f8] sm:$0xff]  ;;  %v4766_v47 = vld [vmem:[#allocation5 + $0x7a0] sm:$0xff] }
0x1214   :  { %5143 = vmatprep.subr.mxu0 %v4545_v32  ;;  %4860 = vmatprep.mubr.f32.mxu1 %v7703_v40  ;;  %v4712_v32 = vld [vmem:[#allocation5 + $0x5f0] sm:$0xff] }
0x1215   :  { %4997 = vmatprep.mubr.f32.mxu0 %v7719_v22  ;;  %5017 = vmatpush1.msra.mxu1 %v4598_v49  ;;  %v4759_v49 = vld [vmem:[#allocation5 + $0x768] sm:$0xff] }
0x1216   :  { %5144 = vmatpush1.msra.mxu0 %v4544_v48  ;;  %4861 = vmatmul.mubr.f32.gmra.mxu1 %v7701_v39  ;;  %v4705_v48 = vld [vmem:[#allocation5 + $0x5b8] sm:$0xff] }
0x1217   :  { %4998 = vmatmul.mubr.f32.gmra.mxu0 %v7717_v19  ;;  %5018 = vmatprep.subr.mxu1 %v4591_v50  ;;  %v4758_v50 = vld [vmem:[#allocation5 + $0x760] sm:$0xff] }
0x1218   :  { %5145 = vmatprep.subr.mxu0 %v4537_v25  ;;  %5019 = vmatpush1.msra.mxu1 %v4590_v59  ;;  %v4704_v25 = vld [vmem:[#allocation5 + $0x5b0] sm:$0xff]  ;;  %v4751_v59 = vld [vmem:[#allocation5 + $0x728] sm:$0xff] }
0x1219   :  { %5146 = vmatpush1.msra.mxu0 %v4536_v3  ;;  %5020 = vmatprep.subr.mxu1 %v4583_v51  ;;  %v4697_v3 = vld [vmem:[#allocation5 + $0x578] sm:$0xff]  ;;  %v4750_v51 = vld [vmem:[#allocation5 + $0x720] sm:$0xff] }
0x121a   :  { %5147 = vmatprep.subr.mxu0 %v4529_v52  ;;  %4866 = vmatprep.mubr.f32.mxu1 %v7707_v53  ;;  %v4696_v52 = vld [vmem:[#allocation5 + $0x570] sm:$0xff] }
0x121b   :  { %5021 = vmatpush1.msra.mxu1 %v4582_v4  ;;  %5148 = vmatpush1.msra.mxu0 %v4528_v5  ;;  %v4743_v4 = vld [vmem:[#allocation5 + $0x6e8] sm:$0xff]  ;;  %v4689_v5 = vld [vmem:[#allocation5 + $0x538] sm:$0xff] }
0x121c   :  { %4867 = vmatmul.mubr.f32.gmra.mxu1 %v7705_v42  ;;  %5022 = vmatprep.subr.mxu1 %v4575_v2  ;;  %v4742_v2 = vld [vmem:[#allocation5 + $0x6e0] sm:$0xff] }
0x121d   :  { %5149 = vmatprep.subr.mxu0 %v4777_v21  ;;  %5023 = vmatpush1.msra.mxu1 %v4574_v6  ;;  %v4688_v21 = vld [vmem:[#allocation5 + $0x530] sm:$0xff]  ;;  %v4735_v6 = vld [vmem:[#allocation5 + $0x6a8] sm:$0xff] }
0x121e   :  { %5150 = vmatpush2.msra.mxu0 %v4776_v63  ;;  %5024 = vmatprep.subr.mxu1 %v4567_v7  ;;  %v4681_v63 = vld [vmem:[#allocation5 + $0x4f8] sm:$0xff]  ;;  %v4734_v7 = vld [vmem:[#allocation5 + $0x6a0] sm:$0xff] }
0x121f   :  { %5151 = vmatprep.subr.mxu0 %v4769_v28  ;;  %4872 = vmatprep.mubr.f32.mxu1 %v7711_v55  ;;  %v4680_v28 = vld [vmem:[#allocation5 + $0x4f0] sm:$0xff] }
0x1220   :  { %5025 = vmatpush1.msra.mxu1 %v4566_v23  ;;  %5152 = vmatpush2.msra.mxu0 %v4768_v26  ;;  %v4727_v23 = vld [vmem:[#allocation5 + $0x668] sm:$0xff]  ;;  %v4673_v26 = vld [vmem:[#allocation5 + $0x4b8] sm:$0xff] }
0x1221   :  { %4873 = vmatmul.mubr.f32.gmra.mxu1 %v7709_v54  ;;  %5026 = vmatprep.subr.mxu1 %v4559_v61  ;;  %v4726_v61 = vld [vmem:[#allocation5 + $0x660] sm:$0xff] }
0x1222   :  { %5153 = vmatprep.subr.mxu0 %v4761_v15  ;;  %5027 = vmatpush1.msra.mxu1 %v4558_v10  ;;  %v4672_v15 = vld [vmem:[#allocation5 + $0x4b0] sm:$0xff]  ;;  %v4719_v10 = vld [vmem:[#allocation5 + $0x628] sm:$0xff] }
0x1223   :  { %5154 = vmatpush2.msra.mxu0 %v4760_v29  ;;  %5028 = vmatprep.subr.mxu1 %v4551_v60  ;;  %v4665_v29 = vld [vmem:[#allocation5 + $0x478] sm:$0xff]  ;;  %v4718_v60 = vld [vmem:[#allocation5 + $0x620] sm:$0xff] }
0x1224   :  { %5155 = vmatprep.subr.mxu0 %v4753_v62  ;;  %4878 = vmatprep.mubr.f32.mxu1 %v7715_v57  ;;  %v4664_v62 = vld [vmem:[#allocation5 + $0x470] sm:$0xff] }
0x1225   :  { %5029 = vmatpush1.msra.mxu1 %v4550_v33  ;;  %5156 = vmatpush2.msra.mxu0 %v4752_v34  ;;  %v4711_v33 = vld [vmem:[#allocation5 + $0x5e8] sm:$0xff]  ;;  %v4657_v34 = vld [vmem:[#allocation5 + $0x438] sm:$0xff] }
0x1226   :  { %4879 = vmatmul.mubr.f32.gmra.mxu1 %v7713_v56  ;;  %5030 = vmatprep.subr.mxu1 %v4543_v36  ;;  %v4710_v36 = vld [vmem:[#allocation5 + $0x5e0] sm:$0xff] }
0x1227   :  { %5157 = vmatprep.subr.mxu0 %v4745_v58  ;;  %5031 = vmatpush1.msra.mxu1 %v4542_v14  ;;  %v4656_v58 = vld [vmem:[#allocation5 + $0x430] sm:$0xff]  ;;  %v4703_v14 = vld [vmem:[#allocation5 + $0x5a8] sm:$0xff] }
0x1228   :  { %5158 = vmatpush2.msra.mxu0 %v4744_v20  ;;  %5032 = vmatprep.subr.mxu1 %v4535_v11  ;;  %v4702_v20 = vld [vmem:[#allocation5 + $0x5a0] sm:$0xff]  ;;  %v4695_v11 = vld [vmem:[#allocation5 + $0x568] sm:$0xff] }
0x1229   :  { %5159 = vmatprep.subr.mxu0 %v4737_v8  ;;  %4884 = vmatprep.mubr.f32.mxu1 %v7719_v22  ;;  %v4694_v8 = vld [vmem:[#allocation5 + $0x560] sm:$0xff] }
0x122a   :  { %5033 = vmatpush1.msra.mxu1 %v4534_v12  ;;  %5160 = vmatpush2.msra.mxu0 %v4736_v1  ;;  %v4687_v12 = vld [vmem:[#allocation5 + $0x528] sm:$0xff]  ;;  %v4686_v1 = vld [vmem:[#allocation5 + $0x520] sm:$0xff] }
0x122b   :  { %4885 = vmatmul.mubr.f32.gmra.mxu1 %v7717_v19  ;;  %5034 = vmatprep.subr.mxu1 %v4527_v13  ;;  %v4679_v13 = vld [vmem:[#allocation5 + $0x4e8] sm:$0xff] }
0x122c   :  { %5161 = vmatprep.subr.mxu0 %v4729_v9  ;;  %5035 = vmatpush1.msra.mxu1 %v4526_v16  ;;  %v4678_v9 = vld [vmem:[#allocation5 + $0x4e0] sm:$0xff]  ;;  %v4671_v16 = vld [vmem:[#allocation5 + $0x4a8] sm:$0xff] }
0x122d   :  { %5162 = vmatpush2.msra.mxu0 %v4728_v30  ;;  %5036 = vmatprep.subr.mxu1 %v4775_v43  ;;  %v4670_v30 = vld [vmem:[#allocation5 + $0x4a0] sm:$0xff]  ;;  %v4663_v43 = vld [vmem:[#allocation5 + $0x468] sm:$0xff] }
0x122e   :  { %5163 = vmatprep.subr.mxu0 %v4721_v44  ;;  %5037 = vmatpush2.msra.mxu1 %v4774_v18  ;;  %v4662_v44 = vld [vmem:[#allocation5 + $0x460] sm:$0xff]  ;;  %v4655_v18 = vld [vmem:[#allocation5 + $0x428] sm:$0xff] }
0x122f   :  { %5164 = vmatpush2.msra.mxu0 %v4720_v45  ;;  %5038 = vmatprep.subr.mxu1 %v4767_v46 }
0x1230   :  { %5165 = vmatprep.subr.mxu0 %v4713_v41  ;;  %5039 = vmatpush2.msra.mxu1 %v4766_v47 }
0x1231   :  { %5166 = vmatpush2.msra.mxu0 %v4712_v32  ;;  %5040 = vmatprep.subr.mxu1 %v4759_v49 }
0x1232   :  { %5167 = vmatprep.subr.mxu0 %v4705_v48  ;;  %5041 = vmatpush2.msra.mxu1 %v4758_v50 }
0x1233   :  { %5168 = vmatpush2.msra.mxu0 %v4704_v25  ;;  %5042 = vmatprep.subr.mxu1 %v4751_v59 }
0x1234   :  { %5169 = vmatprep.subr.mxu0 %v4697_v3  ;;  %5043 = vmatpush2.msra.mxu1 %v4750_v51 }
0x1235   :  { %5170 = vmatpush2.msra.mxu0 %v4696_v52  ;;  %5044 = vmatprep.subr.mxu1 %v4743_v4 }
0x1236   :  { %5171 = vmatprep.subr.mxu0 %v4689_v5  ;;  %5045 = vmatpush2.msra.mxu1 %v4742_v2 }
0x1237   :  { %5172 = vmatpush2.msra.mxu0 %v4688_v21  ;;  %5046 = vmatprep.subr.mxu1 %v4735_v6 }
0x1238   :  { %5173 = vmatprep.subr.mxu0 %v4681_v63  ;;  %5047 = vmatpush2.msra.mxu1 %v4734_v7 }
0x1239   :  { %5174 = vmatpush2.msra.mxu0 %v4680_v28  ;;  %5048 = vmatprep.subr.mxu1 %v4727_v23 }
0x123a   :  { %5175 = vmatprep.subr.mxu0 %v4673_v26  ;;  %5049 = vmatpush2.msra.mxu1 %v4726_v61 }
0x123b   :  { %5176 = vmatpush2.msra.mxu0 %v4672_v15  ;;  %5050 = vmatprep.subr.mxu1 %v4719_v10 }
0x123c   :  { %5177 = vmatprep.subr.mxu0 %v4665_v29  ;;  %5051 = vmatpush2.msra.mxu1 %v4718_v60 }
0x123d   :  { %5178 = vmatpush2.msra.mxu0 %v4664_v62  ;;  %5052 = vmatprep.subr.mxu1 %v4711_v33 }
0x123e   :  { %5179 = vmatprep.subr.mxu0 %v4657_v34  ;;  %5053 = vmatpush2.msra.mxu1 %v4710_v36 }
0x123f   :  { %5180 = vmatpush2.msra.mxu0 %v4656_v58  ;;  %5181 = vmatprep.mubr.f32.mxu0 %v7691_v35 }
0x1240   :  { %5054 = vmatprep.subr.mxu1 %v4703_v14  ;;  %5182 = vmatmul.mubr.f32.vlgmr.msra.gmra.mxu0 %v7689_v31 }
0x1241   :  { %5055 = vmatpush2.msra.mxu1 %v4702_v20  ;;  %5187 = vmatprep.mubr.f32.mxu0 %v7695_v0 }
0x1242   :  { %5056 = vmatprep.subr.mxu1 %v4695_v11  ;;  %5068 = vmatprep.mubr.f32.mxu1 %v7691_v35  ;;  %v4654_v35 = vld [vmem:[#allocation5 + $0x420] sm:$0xff] }
0x1243   :  { %5057 = vmatpush2.msra.mxu1 %v4694_v8 }
0x1244   :  { %5058 = vmatprep.subr.mxu1 %v4687_v12  ;;  %5188 = vmatmul.mubr.f32.gmra.mxu0 %v7693_v27 }
0x1245   :  { %5059 = vmatpush2.msra.mxu1 %v4686_v1  ;;  %5193 = vmatprep.mubr.f32.mxu0 %v7699_v38 }
0x1246   :  { %5060 = vmatprep.subr.mxu1 %v4679_v13 }
0x1247   :  { %5061 = vmatpush2.msra.mxu1 %v4678_v9 }
0x1248   :  { %5062 = vmatprep.subr.mxu1 %v4671_v16  ;;  %5194 = vmatmul.mubr.f32.gmra.mxu0 %v7697_v37 }
0x1249   :  { %5063 = vmatpush2.msra.mxu1 %v4670_v30  ;;  %5199 = vmatprep.mubr.f32.mxu0 %v7703_v40 }
0x124a   :  { %5064 = vmatprep.subr.mxu1 %v4663_v43 }
0x124b   :  { %5065 = vmatpush2.msra.mxu1 %v4662_v44 }
0x124c   :  { %5066 = vmatprep.subr.mxu1 %v4655_v18  ;;  %5200 = vmatmul.mubr.f32.gmra.mxu0 %v7701_v39 }
0x124d   :  { %5067 = vmatpush2.msra.mxu1 %v4654_v35  ;;  %5205 = vmatprep.mubr.f32.mxu0 %v7707_v53 }
0x124e   :  { %5069 = vmatmul.mubr.f32.vlgmr.msra.gmra.mxu1 %v7689_v31 }
0x124f   :  { %5074 = vmatprep.mubr.f32.mxu1 %v7695_v0 }
0x1250   :  { %5206 = vmatmul.mubr.f32.gmra.mxu0 %v7705_v42 }
0x1251   :  { %5211 = vmatprep.mubr.f32.mxu0 %v7711_v55 }
0x1252   :  { %5075 = vmatmul.mubr.f32.gmra.mxu1 %v7693_v27 }
0x1253   :  { %5080 = vmatprep.mubr.f32.mxu1 %v7699_v38 }
0x1254   :  { %5212 = vmatmul.mubr.f32.gmra.mxu0 %v7709_v54 }
0x1255   :  { %5217 = vmatprep.mubr.f32.mxu0 %v7715_v57 }
0x1256   :  { %5081 = vmatmul.mubr.f32.gmra.mxu1 %v7697_v37 }
0x1257   :  { %5086 = vmatprep.mubr.f32.mxu1 %v7703_v40 }
0x1258   :  { %5218 = vmatmul.mubr.f32.gmra.mxu0 %v7713_v56 }
0x1259   :  { %5223 = vmatprep.mubr.f32.mxu0 %v7719_v22 }
0x125a   :  { %5087 = vmatmul.mubr.f32.gmra.mxu1 %v7701_v39  ;;  %v5295_v39 = vld [vmem:[%s8043_s25 + $0x8] sm:$0xff] }
0x125b   :  { %5092 = vmatprep.mubr.f32.mxu1 %v7707_v53 }
0x125c   :  { %5224 = vmatmul.mubr.f32.gmra.mxu0 %v7717_v19 }
0x125e   :  { %5093 = vmatmul.mubr.f32.gmra.mxu1 %v7705_v42 }
0x125f   :  { %5098 = vmatprep.mubr.f32.mxu1 %v7711_v55 }
0x1262   :  { %5099 = vmatmul.mubr.f32.gmra.mxu1 %v7709_v54 }
0x1263   :  { %5104 = vmatprep.mubr.f32.mxu1 %v7715_v57 }
0x1266   :  { %5105 = vmatmul.mubr.f32.gmra.mxu1 %v7713_v56 }
0x1267   :  { %5110 = vmatprep.mubr.f32.mxu1 %v7719_v22 }
0x126a   :  { %5111 = vmatmul.mubr.f32.gmra.mxu1 %v7717_v19 }
0x126b   :  { %5466 = vmatprep.mubr.f32.mxu1 %v5295_v39  ;;  %v5296_v39 = vld [vmem:[%s8043_s25 + $0x10] sm:$0xff] }
0x12b7   :  { %v4957_v31 = vpop.f32.mrf.mxu0 }
0x12b9   :  { %v4959_v27 = vpop.f32.mrf.mxu0 }
0x12bb   :  { %v4963_v0 = vpop.f32.mrf.mxu0 }
0x12bd   :  { %v4965_v37 = vpop.f32.mrf.mxu0  ;;  %v4844_v53 = vpop.f32.mrf.mxu1 }
0x12bf   :  { %v4969_v38 = vpop.f32.mrf.mxu0  ;;  %v4846_v56 = vpop.f32.mrf.mxu1 }
0x12c1   :  { %v4971_v40 = vpop.f32.mrf.mxu0 }
0x12c3   :  { %v4975_v42 = vpop.f32.mrf.mxu0 }
0x12c5   :  { %v4977_v54 = vpop.f32.mrf.mxu0 }
0x12c7   :  { %v4981_v55 = vpop.f32.mrf.mxu0 }
0x12c9   :  { %v4983_v57 = vpop.f32.mrf.mxu0 }
0x12ca   :  { %v4850_v22 = vpop.f32.mrf.mxu1 }
0x12cb   :  { %v4987_v45 = vpop.f32.mrf.mxu0 }
0x12cc   :  { %v4852_v19 = vpop.f32.mrf.mxu1 }
0x12cd   :  { %v4989_v46 = vpop.f32.mrf.mxu0 }
0x12d0   :  { %v4856_v41 = vpop.f32.mrf.mxu1 }
0x12d1   :  { %v4993_v47 = vpop.f32.mrf.mxu0 }
0x12d2   :  { %v4858_v32 = vpop.f32.mrf.mxu1 }
0x12d3   :  { %v4995_v49 = vpop.f32.mrf.mxu0 }
0x12d6   :  { %v4862_v48 = vpop.f32.mrf.mxu1 }
0x12d7   :  { %v4999_v50 = vpop.f32.mrf.mxu0 }
0x12d8   :  { %v4864_v25 = vpop.f32.mrf.mxu1 }
0x12d9   :  { %v5001_v59 = vpop.f32.mrf.mxu0 }
0x12da   :  { %5402 = vmatprep.subr.mxu1 %v5001_v59  ;;  %v5317_v59 = vld [vmem:[%s8043_s25 + $0xb8] sm:$0xff] }
0x12db   :  { %5403 = vmatpush1.msra.mxu1 %v4999_v50  ;;  %v5315_v50 = vld [vmem:[%s8043_s25 + $0xa8] sm:$0xff] }
0x12dc   :  { %v4868_v3 = vpop.f32.mrf.mxu1  ;;  %5404 = vmatprep.subr.mxu1 %v4995_v49  ;;  %v5313_v49 = vld [vmem:[%s8043_s25 + $0x98] sm:$0xff] }
0x12dd   :  { %5405 = vmatpush1.msra.mxu1 %v4993_v47  ;;  %v5311_v47 = vld [vmem:[%s8043_s25 + $0x88] sm:$0xff] }
0x12de   :  { %v4870_v51 = vpop.f32.mrf.mxu1  ;;  %5406 = vmatprep.subr.mxu1 %v4989_v46  ;;  %v5309_v46 = vld [vmem:[%s8043_s25 + $0x78] sm:$0xff] }
0x12df   :  { %5407 = vmatpush1.msra.mxu1 %v4987_v45  ;;  %v5307_v45 = vld [vmem:[%s8043_s25 + $0x68] sm:$0xff] }
0x12e0   :  { %5408 = vmatprep.subr.mxu1 %v4983_v57  ;;  %v5305_v57 = vld [vmem:[%s8043_s25 + $0x58] sm:$0xff] }
0x12e1   :  { %v4874_v52 = vpop.f32.mrf.mxu1  ;;  %5409 = vmatpush1.msra.mxu1 %v4981_v55  ;;  %v5303_v55 = vld [vmem:[%s8043_s25 + $0x48] sm:$0xff] }
0x12e2   :  { %5410 = vmatprep.subr.mxu1 %v4977_v54  ;;  %v5300_v54 = vld [vmem:[%s8043_s25 + $0x30] sm:$0xff] }
0x12e3   :  { %v4876_v4 = vpop.f32.mrf.mxu1  ;;  %5411 = vmatpush1.msra.mxu1 %v4975_v42  ;;  %v5298_v42 = vld [vmem:[%s8043_s25 + $0x20] sm:$0xff] }
0x12e4   :  { %5412 = vmatprep.subr.mxu1 %v4971_v40  ;;  %v5299_v40 = vld [vmem:[%s8043_s25 + $0x28] sm:$0xff] }
0x12e5   :  { %5413 = vmatpush1.msra.mxu1 %v4969_v38  ;;  %v5297_v38 = vld [vmem:[%s8043_s25 + $0x18] sm:$0xff] }
0x12e6   :  { %v4880_v5 = vpop.f32.mrf.mxu1  ;;  %5414 = vmatprep.subr.mxu1 %v4965_v37  ;;  %v5294_v37 = vld [vmem:[%s8043_s25] sm:$0xff] }
0x12e7   :  { %5415 = vmatpush1.msra.mxu1 %v4963_v0 }
0x12e8   :  { %v4882_v2 = vpop.f32.mrf.mxu1  ;;  %5416 = vmatprep.subr.mxu1 %v4959_v27 }
0x12e9   :  { %5417 = vmatpush1.msra.mxu1 %v4957_v31 }
0x12eb   :  { %v4886_v21 = vpop.f32.mrf.mxu1 }
0x12ed   :  { %v4888_v6 = vpop.f32.mrf.mxu1 }
0x12ee   :  { %5418 = vmatprep.subr.mxu1 %v4888_v6  ;;  %v5325_v6 = vld [vmem:[%s8043_s25 + $0xf8] sm:$0xff] }
0x12ef   :  { %5419 = vmatpush1.msra.mxu1 %v4886_v21  ;;  %v5322_v21 = vld [vmem:[%s8043_s25 + $0xe0] sm:$0xff] }
0x12f0   :  { %5420 = vmatprep.subr.mxu1 %v4882_v2  ;;  %v5323_v2 = vld [vmem:[%s8043_s25 + $0xe8] sm:$0xff] }
0x12f1   :  { %5421 = vmatpush1.msra.mxu1 %v4880_v5  ;;  %v5320_v5 = vld [vmem:[%s8043_s25 + $0xd0] sm:$0xff] }
0x12f2   :  { %5422 = vmatprep.subr.mxu1 %v4876_v4  ;;  %v5321_v4 = vld [vmem:[%s8043_s25 + $0xd8] sm:$0xff] }
0x12f3   :  { %5423 = vmatpush1.msra.mxu1 %v4874_v52  ;;  %v5318_v52 = vld [vmem:[%s8043_s25 + $0xc0] sm:$0xff] }
0x12f4   :  { %5424 = vmatprep.subr.mxu1 %v4870_v51  ;;  %v5319_v51 = vld [vmem:[%s8043_s25 + $0xc8] sm:$0xff] }
0x12f5   :  { %5425 = vmatpush1.msra.mxu1 %v4868_v3  ;;  %v5316_v3 = vld [vmem:[%s8043_s25 + $0xb0] sm:$0xff] }
0x12f6   :  { %5426 = vmatprep.subr.mxu1 %v4864_v25  ;;  %v5314_v25 = vld [vmem:[%s8043_s25 + $0xa0] sm:$0xff] }
0x12f7   :  { %5427 = vmatpush1.msra.mxu1 %v4862_v48  ;;  %v5312_v48 = vld [vmem:[%s8043_s25 + $0x90] sm:$0xff] }
0x12f8   :  { %5428 = vmatprep.subr.mxu1 %v4858_v32  ;;  %v5310_v32 = vld [vmem:[%s8043_s25 + $0x80] sm:$0xff] }
0x12f9   :  { %5429 = vmatpush1.msra.mxu1 %v4856_v41  ;;  %v5308_v41 = vld [vmem:[%s8043_s25 + $0x70] sm:$0xff] }
0x12fa   :  { %5430 = vmatprep.subr.mxu1 %v4852_v19  ;;  %v5306_v19 = vld [vmem:[%s8043_s25 + $0x60] sm:$0xff] }
0x12fb   :  { %5431 = vmatpush1.msra.mxu1 %v4850_v22  ;;  %v5304_v22 = vld [vmem:[%s8043_s25 + $0x50] sm:$0xff] }
0x12fc   :  { %5432 = vmatprep.subr.mxu1 %v4846_v56  ;;  %v5302_v56 = vld [vmem:[%s8043_s25 + $0x40] sm:$0xff] }
0x12fd   :  { %5433 = vmatpush1.msra.mxu1 %v4844_v53  ;;  %v5301_v53 = vld [vmem:[%s8043_s25 + $0x38] sm:$0xff] }
0x1300   :  { %v5183_v63 = vpop.f32.mrf.mxu0 }
0x1302   :  { %v5185_v7 = vpop.f32.mrf.mxu0 }
0x1304   :  { %v5189_v28 = vpop.f32.mrf.mxu0 }
0x1306   :  { %v5191_v23 = vpop.f32.mrf.mxu0 }
0x1308   :  { %v5195_v26 = vpop.f32.mrf.mxu0 }
0x130a   :  { %v5197_v61 = vpop.f32.mrf.mxu0 }
0x130c   :  { %v5201_v15 = vpop.f32.mrf.mxu0 }
0x130e   :  { %v5070_v10 = vpop.f32.mrf.mxu1  ;;  %v5203_v29 = vpop.f32.mrf.mxu0 }
0x1310   :  { %v5072_v60 = vpop.f32.mrf.mxu1  ;;  %v5207_v62 = vpop.f32.mrf.mxu0 }
0x1312   :  { %v5076_v33 = vpop.f32.mrf.mxu1  ;;  %v5209_v34 = vpop.f32.mrf.mxu0 }
0x1314   :  { %v5078_v36 = vpop.f32.mrf.mxu1  ;;  %v5213_v58 = vpop.f32.mrf.mxu0 }
0x1316   :  { %v5082_v14 = vpop.f32.mrf.mxu1  ;;  %v5215_v20 = vpop.f32.mrf.mxu0 }
0x1318   :  { %v5084_v11 = vpop.f32.mrf.mxu1  ;;  %v5219_v8 = vpop.f32.mrf.mxu0 }
0x131a   :  { %v5088_v12 = vpop.f32.mrf.mxu1  ;;  %v5221_v1 = vpop.f32.mrf.mxu0 }
0x131c   :  { %v5090_v13 = vpop.f32.mrf.mxu1  ;;  %v5225_v9 = vpop.f32.mrf.mxu0 }
0x131e   :  { %v5094_v16 = vpop.f32.mrf.mxu1  ;;  %v5227_v30 = vpop.f32.mrf.mxu0 }
0x131f   :  { %5434 = vmatprep.subr.mxu1 %v5227_v30 }
0x1320   :  { %v5096_v43 = vpop.f32.mrf.mxu1  ;;  %5435 = vmatpush2.msra.mxu1 %v5225_v9 }
0x1321   :  { %5436 = vmatprep.subr.mxu1 %v5221_v1 }
0x1322   :  { %v5100_v44 = vpop.f32.mrf.mxu1  ;;  %5437 = vmatpush2.msra.mxu1 %v5219_v8 }
0x1323   :  { %5438 = vmatprep.subr.mxu1 %v5215_v20 }
0x1324   :  { %v5102_v18 = vpop.f32.mrf.mxu1  ;;  %5439 = vmatpush2.msra.mxu1 %v5213_v58 }
0x1325   :  { %5440 = vmatprep.subr.mxu1 %v5209_v34 }
0x1326   :  { %v5106_v35 = vpop.f32.mrf.mxu1  ;;  %5441 = vmatpush2.msra.mxu1 %v5207_v62 }
0x1327   :  { %5442 = vmatprep.subr.mxu1 %v5203_v29 }
0x1328   :  { %v5108_v31 = vpop.f32.mrf.mxu1  ;;  %5443 = vmatpush2.msra.mxu1 %v5201_v15 }
0x1329   :  { %5444 = vmatprep.subr.mxu1 %v5197_v61 }
0x132a   :  { %v5112_v27 = vpop.f32.mrf.mxu1  ;;  %5445 = vmatpush2.msra.mxu1 %v5195_v26 }
0x132b   :  { %5446 = vmatprep.subr.mxu1 %v5191_v23 }
0x132c   :  { %5447 = vmatpush2.msra.mxu1 %v5189_v28  ;;  %v5114_v0 = vpop.f32.mrf.mxu1 }
0x132d   :  { %5448 = vmatprep.subr.mxu1 %v5185_v7  ;;  %v5390_v7 = vld [vmem:[%s8045_s27] sm:$0x3] }
0x132e   :  { %5449 = vmatpush2.msra.mxu1 %v5183_v63  ;;  %v5324_v63 = vld [vmem:[%s8043_s25 + $0xf0] sm:$0xff]  ;;  %v7885_v28 = vrot.slane %v5390_v7, %v6712_v17  ;;  %v7888_v23 = vrot.slane %v5390_v7, %v6723_v24 }
0x132f   :  { %5450 = vmatprep.subr.mxu1 %v5114_v0 }
0x1330   :  { %5451 = vmatpush2.msra.mxu1 %v5112_v27 }
0x1331   :  { %5452 = vmatprep.subr.mxu1 %v5108_v31 }
0x1332   :  { %5453 = vmatpush2.msra.mxu1 %v5106_v35 }
0x1333   :  { %5454 = vmatprep.subr.mxu1 %v5102_v18 }
0x1334   :  { %5455 = vmatpush2.msra.mxu1 %v5100_v44 }
0x1335   :  { %5456 = vmatprep.subr.mxu1 %v5096_v43 }
0x1336   :  { %5457 = vmatpush2.msra.mxu1 %v5094_v16 }
0x1337   :  { %5458 = vmatprep.subr.mxu1 %v5090_v13 }
0x1338   :  { %5459 = vmatpush2.msra.mxu1 %v5088_v12 }
0x1339   :  { %5460 = vmatprep.subr.mxu1 %v5084_v11 }
0x133a   :  { %5461 = vmatpush2.msra.mxu1 %v5082_v14 }
0x133b   :  { %5462 = vmatprep.subr.mxu1 %v5078_v36 }
0x133c   :  { %5463 = vmatpush2.msra.mxu1 %v5076_v33 }
0x133d   :  { %5464 = vmatprep.subr.mxu1 %v5072_v60 }
0x133e   :  { %5465 = vmatpush2.msra.mxu1 %v5070_v10 }
0x133f   :  { %5467 = vmatmul.mubr.f32.vlgmr.msra.gmra.mxu1 %v5294_v37 }
0x1340   :  { %5472 = vmatprep.mubr.f32.mxu1 %v5297_v38 }
0x1343   :  { %5473 = vmatmul.mubr.f32.gmra.mxu1 %v5296_v39 }
0x1344   :  { %5478 = vmatprep.mubr.f32.mxu1 %v5299_v40 }
0x1347   :  { %5479 = vmatmul.mubr.f32.gmra.mxu1 %v5298_v42 }
0x1348   :  { %5484 = vmatprep.mubr.f32.mxu1 %v5301_v53 }
0x134b   :  { %5485 = vmatmul.mubr.f32.gmra.mxu1 %v5300_v54 }
0x134c   :  { %5490 = vmatprep.mubr.f32.mxu1 %v5303_v55 }
0x134f   :  { %5491 = vmatmul.mubr.f32.gmra.mxu1 %v5302_v56 }
0x1350   :  { %5496 = vmatprep.mubr.f32.mxu1 %v5305_v57 }
0x1353   :  { %5497 = vmatmul.mubr.f32.gmra.mxu1 %v5304_v22 }
0x1354   :  { %5502 = vmatprep.mubr.f32.mxu1 %v5307_v45 }
0x1357   :  { %5503 = vmatmul.mubr.f32.gmra.mxu1 %v5306_v19 }
0x1358   :  { %5508 = vmatprep.mubr.f32.mxu1 %v5309_v46 }
0x135b   :  { %5509 = vmatmul.mubr.f32.gmra.mxu1 %v5308_v41 }
0x135c   :  { %5514 = vmatprep.mubr.f32.mxu1 %v5311_v47 }
0x135f   :  { %5515 = vmatmul.mubr.f32.gmra.mxu1 %v5310_v32 }
0x1360   :  { %5520 = vmatprep.mubr.f32.mxu1 %v5313_v49 }
0x1363   :  { %5521 = vmatmul.mubr.f32.gmra.mxu1 %v5312_v48 }
0x1364   :  { %5526 = vmatprep.mubr.f32.mxu1 %v5315_v50 }
0x1367   :  { %5527 = vmatmul.mubr.f32.gmra.mxu1 %v5314_v25 }
0x1368   :  { %5532 = vmatprep.mubr.f32.mxu1 %v5317_v59 }
0x136b   :  { %5533 = vmatmul.mubr.f32.gmra.mxu1 %v5316_v3 }
0x136c   :  { %5538 = vmatprep.mubr.f32.mxu1 %v5319_v51 }
0x136f   :  { %5539 = vmatmul.mubr.f32.gmra.mxu1 %v5318_v52 }
0x1370   :  { %5544 = vmatprep.mubr.f32.mxu1 %v5321_v4 }
0x1373   :  { %5545 = vmatmul.mubr.f32.gmra.mxu1 %v5320_v5 }
0x1374   :  { %5550 = vmatprep.mubr.f32.mxu1 %v5323_v2 }
0x1377   :  { %5551 = vmatmul.mubr.f32.gmra.mxu1 %v5322_v21 }
0x1378   :  { %5556 = vmatprep.mubr.f32.mxu1 %v5325_v6 }
0x137b   :  { %5557 = vmatmul.mubr.f32.gmra.mxu1 %v5324_v63 }
0x13ff   :  { %v5468_v26 = vpop.f32.mrf.mxu1 }
0x1400   :  { %v5469_v61 = vadd.f32 %v5468_v26, %v7885_v28 }
0x1401   :  { %v5470_v15 = vpop.f32.mrf.mxu1 }
0x1402   :  { %5978 = vtanh.f32 %v5469_v61  ;;  %v5471_v10 = vadd.f32 %v5470_v15, %v7888_v23 }
0x1403   :  { %v5474_v29 = vpop.f32.mrf.mxu1 }
0x1404   :  { %5980 = vtanh.f32 %v5471_v10  ;;  %v5475_v60 = vadd.f32 %v5474_v29, %v7885_v28 }
0x1405   :  { %v5476_v62 = vpop.f32.mrf.mxu1 }
0x1406   :  { %5982 = vtanh.f32 %v5475_v60  ;;  %v5477_v33 = vadd.f32 %v5476_v62, %v7888_v23 }
0x1407   :  { %v5480_v17 = vpop.f32.mrf.mxu1 }
0x1408   :  { %5984 = vtanh.f32 %v5477_v33  ;;  %v5481_v24 = vadd.f32 %v5480_v17, %v7885_v28 }
0x1409   :  { %v5482_v34 = vpop.f32.mrf.mxu1 }
0x140a   :  { %5986 = vtanh.f32 %v5481_v24  ;;  %v5483_v36 = vadd.f32 %v5482_v34, %v7888_v23 }
0x140b   :  { %v5486_v58 = vpop.f32.mrf.mxu1 }
0x140c   :  { %5988 = vtanh.f32 %v5483_v36  ;;  %v5487_v14 = vadd.f32 %v5486_v58, %v7885_v28 }
0x140d   :  { %v5488_v20 = vpop.f32.mrf.mxu1 }
0x140e   :  { %5990 = vtanh.f32 %v5487_v14  ;;  %v5489_v11 = vadd.f32 %v5488_v20, %v7888_v23 }
0x140f   :  { %v5979_v8 = vpop.eup %5978  ;;  %v5492_v12 = vpop.f32.mrf.mxu1 }
0x1410   :  { %5595 = vst [vmem:[%s8046_s28] sm:$0xff] %v5979_v8  ;;  %5992 = vtanh.f32 %v5489_v11  ;;  %v5493_v1 = vadd.f32 %v5492_v12, %v7885_v28 }
0x1411   :  { %v5981_v13 = vpop.eup %5980  ;;  %v5494_v9 = vpop.f32.mrf.mxu1 }
0x1412   :  { %5596 = vst [vmem:[%s8046_s28 + $0x8] sm:$0xff] %v5981_v13  ;;  %5994 = vtanh.f32 %v5493_v1  ;;  %v5495_v16 = vadd.f32 %v5494_v9, %v7888_v23 }
0x1413   :  { %v5983_v30 = vpop.eup %5982  ;;  %v5498_v43 = vpop.f32.mrf.mxu1 }
0x1414   :  { %5597 = vst [vmem:[%s8046_s28 + $0x10] sm:$0xff] %v5983_v30  ;;  %5996 = vtanh.f32 %v5495_v16  ;;  %v5499_v44 = vadd.f32 %v5498_v43, %v7885_v28 }
0x1415   :  { %v5985_v18 = vpop.eup %5984  ;;  %v5500_v35 = vpop.f32.mrf.mxu1 }
0x1416   :  { %5598 = vst [vmem:[%s8046_s28 + $0x18] sm:$0xff] %v5985_v18  ;;  %5998 = vtanh.f32 %v5499_v44  ;;  %v5501_v31 = vadd.f32 %v5500_v35, %v7888_v23 }
0x1417   :  { %v5987_v27 = vpop.eup %5986  ;;  %v5504_v0 = vpop.f32.mrf.mxu1 }
0x1418   :  { %5599 = vst [vmem:[%s8046_s28 + $0x20] sm:$0xff] %v5987_v27  ;;  %6000 = vtanh.f32 %v5501_v31  ;;  %v5505_v37 = vadd.f32 %v5504_v0, %v7885_v28 }
0x1419   :  { %v5989_v38 = vpop.eup %5988  ;;  %v5506_v39 = vpop.f32.mrf.mxu1 }
0x141a   :  { %5600 = vst [vmem:[%s8046_s28 + $0x28] sm:$0xff] %v5989_v38  ;;  %6002 = vtanh.f32 %v5505_v37  ;;  %v5507_v40 = vadd.f32 %v5506_v39, %v7888_v23 }
0x141b   :  { %v5991_v42 = vpop.eup %5990  ;;  %v5510_v53 = vpop.f32.mrf.mxu1 }
0x141c   :  { %5601 = vst [vmem:[%s8046_s28 + $0x30] sm:$0xff] %v5991_v42  ;;  %6004 = vtanh.f32 %v5507_v40  ;;  %v5511_v54 = vadd.f32 %v5510_v53, %v7885_v28 }
0x141d   :  { %v5993_v55 = vpop.eup %5992  ;;  %v5512_v56 = vpop.f32.mrf.mxu1 }
0x141e   :  { %5602 = vst [vmem:[%s8046_s28 + $0x38] sm:$0xff] %v5993_v55  ;;  %6006 = vtanh.f32 %v5511_v54  ;;  %v5513_v57 = vadd.f32 %v5512_v56, %v7888_v23 }
0x141f   :  { %v5995_v22 = vpop.eup %5994  ;;  %v5516_v45 = vpop.f32.mrf.mxu1 }
0x1420   :  { %5603 = vst [vmem:[%s8046_s28 + $0x40] sm:$0xff] %v5995_v22  ;;  %6008 = vtanh.f32 %v5513_v57  ;;  %v5517_v19 = vadd.f32 %v5516_v45, %v7885_v28 }
0x1421   :  { %v5997_v46 = vpop.eup %5996  ;;  %v5518_v41 = vpop.f32.mrf.mxu1 }
0x1422   :  { %5604 = vst [vmem:[%s8046_s28 + $0x48] sm:$0xff] %v5997_v46  ;;  %6010 = vtanh.f32 %v5517_v19  ;;  %v5519_v47 = vadd.f32 %v5518_v41, %v7888_v23 }
0x1423   :  { %v5999_v32 = vpop.eup %5998  ;;  %v5522_v49 = vpop.f32.mrf.mxu1 }
0x1424   :  { %5605 = vst [vmem:[%s8046_s28 + $0x50] sm:$0xff] %v5999_v32  ;;  %6012 = vtanh.f32 %v5519_v47  ;;  %v5523_v48 = vadd.f32 %v5522_v49, %v7885_v28 }
0x1425   :  { %v6001_v50 = vpop.eup %6000  ;;  %v5524_v25 = vpop.f32.mrf.mxu1 }
0x1426   :  { %5606 = vst [vmem:[%s8046_s28 + $0x58] sm:$0xff] %v6001_v50  ;;  %6014 = vtanh.f32 %v5523_v48  ;;  %v5525_v59 = vadd.f32 %v5524_v25, %v7888_v23 }
0x1427   :  { %v6003_v3 = vpop.eup %6002  ;;  %v5528_v51 = vpop.f32.mrf.mxu1 }
0x1428   :  { %5607 = vst [vmem:[%s8046_s28 + $0x60] sm:$0xff] %v6003_v3  ;;  %6016 = vtanh.f32 %v5525_v59  ;;  %v5529_v52 = vadd.f32 %v5528_v51, %v7885_v28 }
0x1429   :  { %v6005_v4 = vpop.eup %6004  ;;  %v5530_v5 = vpop.f32.mrf.mxu1 }
0x142a   :  { %5608 = vst [vmem:[%s8046_s28 + $0x68] sm:$0xff] %v6005_v4  ;;  %6018 = vtanh.f32 %v5529_v52  ;;  %v5531_v2 = vadd.f32 %v5530_v5, %v7888_v23 }
0x142b   :  { %v6007_v21 = vpop.eup %6006  ;;  %v5534_v6 = vpop.f32.mrf.mxu1 }
0x142c   :  { %5609 = vst [vmem:[%s8046_s28 + $0x70] sm:$0xff] %v6007_v21  ;;  %6020 = vtanh.f32 %v5531_v2  ;;  %v5535_v63 = vadd.f32 %v5534_v6, %v7885_v28 }
0x142d   :  { %v6009_v7 = vpop.eup %6008  ;;  %v5536_v26 = vpop.f32.mrf.mxu1 }
0x142e   :  { %5610 = vst [vmem:[%s8046_s28 + $0x78] sm:$0xff] %v6009_v7  ;;  %6022 = vtanh.f32 %v5535_v63  ;;  %v5537_v61 = vadd.f32 %v5536_v26, %v7888_v23 }
0x142f   :  { %v6011_v15 = vpop.eup %6010  ;;  %v5540_v10 = vpop.f32.mrf.mxu1 }
0x1430   :  { %5611 = vst [vmem:[%s8046_s28 + $0x80] sm:$0xff] %v6011_v15  ;;  %6024 = vtanh.f32 %v5537_v61  ;;  %v5541_v29 = vadd.f32 %v5540_v10, %v7885_v28 }
0x1431   :  { %v6013_v60 = vpop.eup %6012  ;;  %v5542_v62 = vpop.f32.mrf.mxu1 }
0x1432   :  { %5612 = vst [vmem:[%s8046_s28 + $0x88] sm:$0xff] %v6013_v60  ;;  %6026 = vtanh.f32 %v5541_v29  ;;  %v5543_v33 = vadd.f32 %v5542_v62, %v7888_v23 }
0x1433   :  { %v6015_v17 = vpop.eup %6014  ;;  %v5546_v24 = vpop.f32.mrf.mxu1 }
0x1434   :  { %5613 = vst [vmem:[%s8046_s28 + $0x90] sm:$0xff] %v6015_v17  ;;  %6028 = vtanh.f32 %v5543_v33  ;;  %v5547_v34 = vadd.f32 %v5546_v24, %v7885_v28 }
0x1435   :  { %v6017_v36 = vpop.eup %6016  ;;  %v5548_v58 = vpop.f32.mrf.mxu1 }
0x1436   :  { %5614 = vst [vmem:[%s8046_s28 + $0x98] sm:$0xff] %v6017_v36  ;;  %6030 = vtanh.f32 %v5547_v34  ;;  %v5549_v14 = vadd.f32 %v5548_v58, %v7888_v23 }
0x1437   :  { %v6019_v20 = vpop.eup %6018  ;;  %v5552_v11 = vpop.f32.mrf.mxu1 }
0x1438   :  { %5615 = vst [vmem:[%s8046_s28 + $0xa0] sm:$0xff] %v6019_v20  ;;  %6032 = vtanh.f32 %v5549_v14  ;;  %v5553_v8 = vadd.f32 %v5552_v11, %v7885_v28 }
0x1439   :  { %v6021_v12 = vpop.eup %6020  ;;  %v5554_v1 = vpop.f32.mrf.mxu1 }
0x143a   :  { %5616 = vst [vmem:[%s8046_s28 + $0xa8] sm:$0xff] %v6021_v12  ;;  %6034 = vtanh.f32 %v5553_v8  ;;  %v5555_v13 = vadd.f32 %v5554_v1, %v7888_v23 }
0x143b   :  { %v6023_v9 = vpop.eup %6022  ;;  %v5558_v16 = vpop.f32.mrf.mxu1 }
0x143c   :  { %5617 = vst [vmem:[%s8046_s28 + $0xb0] sm:$0xff] %v6023_v9  ;;  %6036 = vtanh.f32 %v5555_v13  ;;  %v5559_v30 = vadd.f32 %v5558_v16, %v7885_v28 }
0x143d   :  { %v6025_v43 = vpop.eup %6024  ;;  %v5560_v44 = vpop.f32.mrf.mxu1 }
0x143e   :  { %5618 = vst [vmem:[%s8046_s28 + $0xb8] sm:$0xff] %v6025_v43  ;;  %6038 = vtanh.f32 %v5559_v30  ;;  %v5561_v18 = vadd.f32 %v5560_v44, %v7888_v23 }
0x143f   :  { %v6027_v35 = vpop.eup %6026 }
0x1440   :  { %5619 = vst [vmem:[%s8046_s28 + $0xc0] sm:$0xff] %v6027_v35  ;;  %6040 = vtanh.f32 %v5561_v18 }
0x1441   :  { %v6029_v31 = vpop.eup %6028 }
0x1442   :  { %5620 = vst [vmem:[%s8046_s28 + $0xc8] sm:$0xff] %v6029_v31 }
0x1443   :  { %v6031_v28 = vpop.eup %6030 }
0x1444   :  { %5621 = vst [vmem:[%s8046_s28 + $0xd0] sm:$0xff] %v6031_v28 }
0x1445   :  { %v6033_v27 = vpop.eup %6032 }
0x1446   :  { %5622 = vst [vmem:[%s8046_s28 + $0xd8] sm:$0xff] %v6033_v27 }
0x1447   :  { %v6035_v23 = vpop.eup %6034 }
0x1448   :  { %5623 = vst [vmem:[%s8046_s28 + $0xe0] sm:$0xff] %v6035_v23 }
0x1449   :  { %v6037_v0 = vpop.eup %6036 }
0x144a   :  { %5624 = vst [vmem:[%s8046_s28 + $0xe8] sm:$0xff] %v6037_v0 }
0x144b   :  { %v6039_v37 = vpop.eup %6038 }
0x144c   :  { %5625 = vst [vmem:[%s8046_s28 + $0xf0] sm:$0xff] %v6039_v37 }
0x144d   :  { %v6041_v38 = vpop.eup %6040 }
0x144e   :  { %5626 = vst [vmem:[%s8046_s28 + $0xf8] sm:$0xff] %v6041_v38 }
0x144f   :  { %5631 = vsyncpa [#allocation8], 1 }
0x1450   :  { %5632 = vsyncmov [#allocation6] }
0x1453   :  { %s5633_s17 = vpop.sfrf %5632 }
0x1454   :  { %p5671_p6 = scmp.ne.s32.totalorder %s5633_s17, 0 }
0x1456   :  { %5637 = shalt.err (%p5671_p6)  }
0x1457   :  { %5639 = vsyncmov [#allocation6 + $0x1] }
0x145a   :  { %s5640_s18 = vpop.sfrf %5639 }
0x145b   :  { %p5672_p7 = scmp.ne.s32.totalorder %s5640_s18, 0 }
0x145d   :  { %5644 = shalt.err (%p5672_p7)  }
0x145e   :  { %5646 = vsyncmov [#allocation6 + $0x2] }
0x1461   :  { %s5647_s5 = vpop.sfrf %5646 }
0x1462   :  { %p5673_p8 = scmp.ne.s32.totalorder %s5647_s5, 0 }
0x1464   :  { %5651 = shalt.err (%p5673_p8)  }

</bundles_post_ra>
